<compile_context>
chip_gen: v5e
topology: v5e:2x2
jax: 0.10.0
libtpu: 0.0.40
codegen_flags: <defaults>
</compile_context>

<pallas_src>
import functools

import numpy as np
import jax
import jax.numpy as jnp
from jax.experimental import pallas as pl
from jax.experimental.pallas import tpu as pltpu


VMEM_LIMIT_BYTES = 32 * 1024 * 1024           # safe on v5e/v6e (128 MiB) and v7x (64 MiB)


def _pick_div(n, cap, quantum):
    """Largest divisor of n that is <= cap and a multiple of quantum; else n (full dim)."""
    if n <= cap:
        return n
    start = cap - cap % quantum
    for d in range(start, 0, -quantum):
        if n % d == 0:
            return d
    return n


# -----------------------------------------------------------------------------
# Pallas kernel 1: K-tiled matmul  acc += X @ W ; epilogue: + shift, activation.
# Used for all 1x1 convs and for im2col'ed 3x3 convs (stride-2 / tiny spatial).
# -----------------------------------------------------------------------------
def _matmul_kernel(act, x_ref, w_ref, shift_ref, o_ref, acc_ref):
    @pl.when(pl.program_id(2) == 0)
    def _():
        acc_ref[...] = jnp.zeros_like(acc_ref)

    acc_ref[...] += jnp.dot(x_ref[...], w_ref[...],
                            preferred_element_type=jnp.float32)

    @pl.when(pl.program_id(2) == pl.num_programs(2) - 1)
    def _():
        y = acc_ref[...] + shift_ref[...]
        if act == "leaky":
            y = jnp.where(y > 0, y, 0.01 * y)      # nn.LeakyReLU default slope
        elif act == "relu":
            y = jnp.maximum(y, 0.0)
        o_ref[...] = y.astype(o_ref.dtype)


@functools.lru_cache(maxsize=None)
def _get_matmul_call(M, K, N, act):
    tm = _pick_div(M, 4096, 8)
    tn = _pick_div(N, 256, 128)
    tk = _pick_div(K, 1024, 128)
    grid = (M // tm, N // tn, K // tk)
    fn = pl.pallas_call(
        functools.partial(_matmul_kernel, act),
        out_shape=jax.ShapeDtypeStruct((M, N), jnp.bfloat16),
        grid_spec=pltpu.PrefetchScalarGridSpec(
            num_scalar_prefetch=0,
            grid=grid,
            in_specs=[
                pl.BlockSpec((tm, tk), lambda i, j, k: (i, k)),
                pl.BlockSpec((tk, tn), lambda i, j, k: (k, j)),
                pl.BlockSpec((1, tn), lambda i, j, k: (0, j)),
            ],
            out_specs=pl.BlockSpec((tm, tn), lambda i, j, k: (i, j)),
            scratch_shapes=[pltpu.VMEM((tm, tn), jnp.float32)],
        ),
        compiler_params=pltpu.CompilerParams(
            dimension_semantics=("parallel", "parallel", "arbitrary"),
            vmem_limit_bytes=VMEM_LIMIT_BYTES),
    )
    return jax.jit(fn)


# -----------------------------------------------------------------------------
# Pallas kernel 2: fused 3x3 stride-1 conv.  Padded NHWC input stays resident in
# VMEM (constant block index); the 9 (kh,kw) taps are sliced + matmul'ed in-kernel,
# accumulated in f32, then shift + activation + bf16 store.  No im2col in HBM.
# -----------------------------------------------------------------------------
def _conv3x3_fused_kernel(act, Hout, Wout, x_ref, w_ref, shift_ref, o_ref):
    B = x_ref.shape[0]
    Cin = x_ref.shape[3]
    M = B * Hout * Wout
    tn = o_ref.shape[1]
    acc = jnp.zeros((M, tn), jnp.float32)
    for kh in range(3):
        for kw in range(3):
            xw = x_ref[:, kh:kh + Hout, kw:kw + Wout, :]          # (B, Hout, Wout, Cin)
            acc = acc + jnp.dot(xw.reshape(M, Cin), w_ref[kh * 3 + kw],
                                preferred_element_type=jnp.float32)
    y = acc + shift_ref[...]
    if act == "leaky":
        y = jnp.where(y > 0, y, 0.01 * y)
    elif act == "relu":
        y = jnp.maximum(y, 0.0)
    o_ref[...] = y.astype(o_ref.dtype)


def _fused_vmem_ok(B, Hout, Wout, Cin, Cout):
    tn = 128 if (Cout > 128 and Cout % 128 == 0) else Cout

    def rup(v, m):
        return ((v + m - 1) // m) * m

    x_b = B * (Hout + 2) * rup(Wout + 2, 16) * max(Cin, 128) * 2
    w_b = 9 * Cin * max(tn, 128) * 2
    out_b = B * Hout * Wout * max(tn, 128) * 2
    acc_b = B * Hout * Wout * max(tn, 128) * 4
    total = 2 * x_b + 2 * w_b + 2 * out_b + 2 * acc_b
    return total <= 20 * 1024 * 1024


@functools.lru_cache(maxsize=None)
def _get_conv3x3_fused_call(B, Hout, Wout, Cin, Cout, act):
    M = B * Hout * Wout
    tn = 128 if (Cout > 128 and Cout % 128 == 0) else Cout
    grid = (Cout // tn,)
    fn = pl.pallas_call(
        functools.partial(_conv3x3_fused_kernel, act, Hout, Wout),
        out_shape=jax.ShapeDtypeStruct((M, Cout), jnp.bfloat16),
        grid_spec=pltpu.PrefetchScalarGridSpec(
            num_scalar_prefetch=0,
            grid=grid,
            in_specs=[
                pl.BlockSpec((B, Hout + 2, Wout + 2, Cin),
                             lambda j: (0, 0, 0, 0)),
                pl.BlockSpec((9, Cin, tn), lambda j: (0, 0, j)),
                pl.BlockSpec((1, tn), lambda j: (0, j)),
            ],
            out_specs=pl.BlockSpec((M, tn), lambda j: (0, j)),
        ),
        compiler_params=pltpu.CompilerParams(
            dimension_semantics=("parallel",),
            vmem_limit_bytes=VMEM_LIMIT_BYTES),
    )
    return jax.jit(fn)


def conv_bn_act(x, p):
    """x: (B, H, W, Cin) NHWC (bf16) -> (B, Hout, Wout, Cout) bf16."""
    k, s = p["ksize"], p["stride"]
    x = x.astype(jnp.bfloat16)
    B, H, W, C = x.shape
    N = p["cout"]

    if k == 1:
        if s != 1:                      # 1x1 stride-s conv (pad 0) == spatial subsample
            x = x[:, ::s, ::s, :]
        B2, H2, W2, _ = x.shape
        M = B2 * H2 * W2
        out = _get_matmul_call(M, C, N, p["act"])(x.reshape(M, C), p["w2"], p["shift"])
        return out.reshape(B2, H2, W2, N)

    pad = 1
    Hout = (H + 2 * pad - k) // s + 1
    Wout = (W + 2 * pad - k) // s + 1
    xp = jnp.pad(x, ((0, 0), (pad, pad), (pad, pad), (0, 0)))

    if (k == 3 and s == 1 and C >= 16 and Wout % 16 == 0
            and _fused_vmem_ok(B, Hout, Wout, C, N)):
        try:
            call = _get_conv3x3_fused_call(B, Hout, Wout, C, N, p["act"])
            out = call(xp, p["w3"], p["shift"])
            return out.reshape(B, Hout, Wout, N)
        except Exception:
            pass   # safety net: fall through to the im2col path

    # Fallback: bf16 im2col + K-tiled matmul (stride-2 convs, tiny-spatial deep convs).
    cols = []
    for kh in range(k):
        for kw in range(k):
            cols.append(xp[:, kh:kh + s * (Hout - 1) + 1:s,
                              kw:kw + s * (Wout - 1) + 1:s, :])
    patches = jnp.concatenate(cols, axis=-1).reshape(B * Hout * Wout, k * k * C)
    out = _get_matmul_call(patches.shape[0], patches.shape[1], N, p["act"])(
        patches, p["w2"], p["shift"])
    return out.reshape(B, Hout, Wout, N)


# -----------------------------------------------------------------------------
# Pallas kernel 3: YOLO detection-layer prediction transform (elementwise).
# Layout in kernel: (8, cols_pad) with rows [tx, ty, tw, th, obj, cls0, cls1, pad],
# cols padded to a multiple of 128.  Single full-tile store.
# -----------------------------------------------------------------------------
def _detect_kernel(stride, pred_ref, aux_ref, out_ref):
    s = jnp.float32(stride)
    p = pred_ref[...]
    aux = aux_ref[...]                 # rows 0,1 = x/y offsets; rows 2,3 = anchors; rest 0
    sig = jax.nn.sigmoid(p)
    row = jax.lax.broadcasted_iota(jnp.int32, p.shape, 0)
    xy = (sig + aux) * s
    wh = jnp.exp(p) * aux * s
    out_ref[...] = jnp.where(row < 2, xy, jnp.where(row < 4, wh, sig))


@functools.lru_cache(maxsize=None)
def _get_detect_call(rows, cols, stride):
    fn = pl.pallas_call(
        functools.partial(_detect_kernel, stride),
        out_shape=jax.ShapeDtypeStruct((rows, cols), jnp.float32),
        grid_spec=pltpu.PrefetchScalarGridSpec(
            num_scalar_prefetch=0,
            grid=(1,),
            in_specs=[pl.BlockSpec((rows, cols), lambda i: (0, 0)),
                      pl.BlockSpec((rows, cols), lambda i: (0, 0))],
            out_specs=pl.BlockSpec((rows, cols), lambda i: (0, 0)),
        ),
        compiler_params=pltpu.CompilerParams(
            dimension_semantics=("arbitrary",),
            vmem_limit_bytes=VMEM_LIMIT_BYTES),
    )
    return jax.jit(fn)


def detection_transform(x_nhwc, anchors, inp=256, classes=2):
    B, G, _, _ = x_nhwc.shape
    num_anchors = len(anchors)
    bbox = 5 + classes                       # 7
    stride = inp // G
    P = G * G * num_anchors
    cols = B * P
    cols_pad = ((cols + 127) // 128) * 128
    rows_pad = 8

    # (B, G, G, 21) -> (B, P, 7): identical element mapping to the PyTorch
    # view/transpose/view sequence on the NCHW tensor.
    pred = x_nhwc.astype(jnp.float32).reshape(B, P, bbox)
    pred_t = jnp.transpose(pred, (2, 0, 1)).reshape(bbox, cols)
    pred_t = jnp.pad(pred_t, ((0, rows_pad - bbox), (0, cols_pad - cols)))

    cell = np.arange(G * G)
    x_off = np.repeat((cell % G).astype(np.float32), num_anchors)
    y_off = np.repeat((cell // G).astype(np.float32), num_anchors)
    anc = np.asarray(anchors, np.float32) / float(stride)
    aw = np.tile(anc[:, 0], G * G)
    ah = np.tile(anc[:, 1], G * G)
    aux = np.tile(np.stack([x_off, y_off, aw, ah], axis=0), (1, B))   # (4, cols)
    aux_pad = np.zeros((rows_pad, cols_pad), np.float32)
    aux_pad[:4, :cols] = aux

    out_t = _get_detect_call(rows_pad, cols_pad, float(stride))(
        pred_t, jnp.asarray(aux_pad))
    out_t = out_t[:bbox, :cols]
    return out_t.reshape(bbox, B, P).transpose(1, 2, 0)              # (B, P, 7)


# -----------------------------------------------------------------------------
# Glue: nn.Upsample(scale_factor=2, mode='bilinear', align_corners=True)
# TODO(synk): bilinear 2x upsample (align_corners=True) kept in plain JAX; the tiny
# gather/lerp has no compelling Pallas formulation at these sizes.
# -----------------------------------------------------------------------------
def upsample2x_bilinear_align_corners(x):
    B, H, W, C = x.shape
    Ho, Wo = 2 * H, 2 * W

    def src(n_in, n_out):
        if n_in == 1:
            return np.zeros((n_out,), np.float32)
        return np.arange(n_out, dtype=np.float32) * (n_in - 1) / (n_out - 1)

    ys, xs = src(H, Ho), src(W, Wo)
    y0 = np.floor(ys).astype(np.int32); y1 = np.minimum(y0 + 1, H - 1)
    x0 = np.floor(xs).astype(np.int32); x1 = np.minimum(x0 + 1, W - 1)
    wy = jnp.asarray(ys - y0)[None, :, None, None]
    wx = jnp.asarray(xs - x0)[None, None, :, None]
    r0, r1 = x[:, y0, :, :], x[:, y1, :, :]
    top = r0[:, :, x0, :] * (1 - wx) + r0[:, :, x1, :] * wx
    bot = r1[:, :, x0, :] * (1 - wx) + r1[:, :, x1, :] * wx
    return (top * (1 - wy) + bot * wy).astype(x.dtype)


# -----------------------------------------------------------------------------
# Deterministic parameter construction (shapes follow the module's __init__)
# -----------------------------------------------------------------------------
def make_conv_params(key, cin, cout, ksize, stride, act="leaky", bias=True, bn=True):
    kw_, kb, kg, kbe, km, kv = jax.random.split(key, 6)
    fan_in = cin * ksize * ksize
    w = jax.random.normal(kw_, (ksize, ksize, cin, cout), jnp.float32) / np.sqrt(fan_in)
    b = (0.1 * jax.random.normal(kb, (cout,), jnp.float32)) if bias \
        else jnp.zeros((cout,), jnp.float32)
    if bn:  # eval-mode BatchNorm: y = scale*(conv + b - mean) + beta
        eps = 1e-5
        gamma = 1.0 + 0.1 * jax.random.normal(kg, (cout,), jnp.float32)
        beta = 0.1 * jax.random.normal(kbe, (cout,), jnp.float32)
        mean = 0.1 * jax.random.normal(km, (cout,), jnp.float32)
        var = 1.0 + 0.1 * jnp.abs(jax.random.normal(kv, (cout,), jnp.float32))
        scale = gamma / jnp.sqrt(var + eps)
        shift = beta + scale * (b - mean)
    else:
        scale = jnp.ones((cout,), jnp.float32)
        shift = b
    w = w * scale[None, None, None, :]               # fold BN scale into the weights
    w_bf16 = w.astype(jnp.bfloat16)
    return {
        "w2": w_bf16.reshape(ksize * ksize * cin, cout),   # im2col / 1x1 matmul form
        "w3": w_bf16.reshape(ksize * ksize, cin, cout),    # fused 3x3 tap form
        "shift": shift.reshape(1, cout).astype(jnp.float32),
        "cout": cout, "ksize": ksize, "stride": stride, "act": act,
    }


ANCHORS = [[10, 13], [16, 30], [33, 23], [30, 61], [62, 45],
           [59, 119], [116, 90], [156, 198], [373, 326]]


def build_yolo(key):
    layers = []
    counter = [0]

    def nk():
        counter[0] += 1
        return jax.random.fold_in(key, counter[0])

    def add_conv(cin, cout, k, s, act="leaky", bias=True, bn=True):
        layers.append(("conv", make_conv_params(nk(), cin, cout, k, s, act, bias, bn)))

    # index 0: Conv(3,32,3,s1,p1,bias=False) + BN + LeakyReLU
    add_conv(3, 32, 3, 1, bias=False)

    # darknet stages (generate_conv_blocks); the dangling Conv(...,64)+BN(364)
    # block is overwritten in the original __init__ and therefore omitted.
    for i, n in enumerate([1, 2, 8, 8, 4]):
        feat1 = 32 * (2 ** i)
        feat2 = 2 * feat1
        add_conv(feat1, feat2, 3, 2)
        for _ in range(n):
            add_conv(feat2, feat1, 1, 1)
            add_conv(feat1, feat2, 3, 1)
            layers.append(("skip", -3))

    # detection heads (generate_pool_blocks) + Route/Upsample wiring
    for i, (mask, route) in enumerate(zip([[6, 7, 8], [3, 4, 5], [0, 1, 2]],
                                          [61, 36, None])):
        feat1 = 128 * (2 ** (2 - i))
        feat2 = 256 * (2 ** (2 - i))
        for j in range(3):
            cin = feat2 + feat1 if (i in (1, 2) and j == 0) else feat2
            add_conv(cin, feat1, 1, 1)
            add_conv(feat1, feat2, 3, 1)
        add_conv(feat2, 21, 1, 1, act="relu", bn=False, bias=True)   # Conv + ReLU
        layers.append(("detect", [ANCHORS[m] for m in mask]))
        if i != 2:
            layers.append(("route", [-4, 0]))
            layers.append(("upsample", None))
            add_conv(feat1, feat1 // 2, 1, 1)
            layers.append(("route", [-1, route]))
    return layers


def yolo_forward(layers, x_nchw):
    x = jnp.transpose(x_nchw, (0, 2, 3, 1)).astype(jnp.bfloat16)   # NCHW -> NHWC
    outputs = {}
    detections = None
    for i, (kind, spec) in enumerate(layers):
        if kind == "conv":
            x = conv_bn_act(x, spec)
        elif kind == "upsample":
            x = upsample2x_bilinear_align_corners(x)
        elif kind == "skip":
            x = outputs[i - 1] + outputs[i + spec]
        elif kind == "route":
            l0, l1 = spec
            if l0 > 0:
                l0 = l0 - i
            if l1 == 0:
                x = outputs[i + l0]
            else:
                if l1 > 0:
                    l1 = l1 - i
                x = jnp.concatenate([outputs[i + l0], outputs[i + l1]], axis=-1)
        elif kind == "detect":
            x = detection_transform(x, spec, inp=256, classes=2)
            detections = x if detections is None else jnp.concatenate(
                [detections, x], axis=1)
        outputs[i] = x
    return detections


if __name__ == "__main__":
    key = jax.random.PRNGKey(0)
    pkey, xkey = jax.random.split(key)
    layers = build_yolo(pkey)

    # Small input: batch=2, 3 channels, 64x64 (divisible by 32 and divides 256).
    B, C, H, W = 2, 3, 64, 64
    x = jax.random.normal(xkey, (B, C, H, W), jnp.float32)

    dets = yolo_forward(layers, x)
    dets = jax.block_until_ready(dets)

    expected_rows = 3 * ((H // 32) ** 2 + (H // 16) ** 2 + (H // 8) ** 2)
    assert dets.shape == (B, expected_rows, 7), dets.shape
    assert bool(jnp.all(jnp.isfinite(dets)))
    print("KERNEL_OK")
</pallas_src>

<mosaic_0001>
module attributes {stable_mosaic.version = 11 : i64} {
  func.func @_matmul_kernel(%arg0: i32, %arg1: i32, %arg2: i32, %arg3: memref<4096x27xbf16, #tpu.memory_space<vmem>>, %arg4: memref<27x32xbf16, #tpu.memory_space<vmem>>, %arg5: memref<1x32xf32, #tpu.memory_space<vmem>>, %arg6: memref<4096x32xbf16, #tpu.memory_space<vmem>>, %arg7: memref<4096x32xf32, #tpu.memory_space<vmem>>) attributes {dimension_semantics = [#tpu.dimension_semantics<parallel>, #tpu.dimension_semantics<parallel>, #tpu.dimension_semantics<arbitrary>], iteration_bounds = array<i64: 2, 1, 1>, scalar_prefetch = 0 : i64, scratch_operands = 1 : i64, tpu.core_type = #tpu.core_type<tc>, window_params = [{transform_indices = @transform_0, window_bounds = array<i64: 4096, 27>}, {transform_indices = @transform_1, window_bounds = array<i64: 27, 32>}, {transform_indices = @transform_2, window_bounds = array<i64: 1, 32>}, {transform_indices = @transform_3, window_bounds = array<i64: 4096, 32>}]} {
    %c0_i32 = arith.constant 0 : i32
    %0 = arith.cmpi eq, %arg2, %c0_i32 : i32
    %1 = arith.extui %0 : i1 to i32
    %c0_i32_0 = arith.constant 0 : i32
    %2 = arith.cmpi ne, %1, %c0_i32_0 : i32
    scf.if %2 {
      %cst_10 = arith.constant 0.000000e+00 : f32
      %12 = vector.broadcast %cst_10 : f32 to vector<4096x32xf32>
      %c0_11 = arith.constant 0 : index
      %c0_12 = arith.constant 0 : index
      %13 = vector.load %arg7[%c0_11, %c0_12] : memref<4096x32xf32, #tpu.memory_space<vmem>>, vector<4096x32xf32>
      tpu.vector_store %arg7[%c0_11, %c0_12], %12 {strides = array<i32>} : memref<4096x32xf32, #tpu.memory_space<vmem>>, vector<4096x32xf32>,
    } else {
    }
    %c0 = arith.constant 0 : index
    %c0_1 = arith.constant 0 : index
    %3 = vector.load %arg7[%c0, %c0_1] : memref<4096x32xf32, #tpu.memory_space<vmem>>, vector<4096x32xf32>
    %c0_2 = arith.constant 0 : index
    %c0_3 = arith.constant 0 : index
    %4 = vector.load %arg3[%c0_2, %c0_3] : memref<4096x27xbf16, #tpu.memory_space<vmem>>, vector<4096x27xbf16>
    %c0_4 = arith.constant 0 : index
    %c0_5 = arith.constant 0 : index
    %5 = vector.load %arg4[%c0_4, %c0_5] : memref<27x32xbf16, #tpu.memory_space<vmem>>, vector<27x32xbf16>
    %cst = arith.constant dense<0.000000e+00> : vector<4096x32xf32>
    %6 = tpu.matmul %4, %5, %cst {dimension_numbers = #tpu.dot_dimension_numbers<[1], [0], [0], [1], [0, 0, 1, 1], [], []>} : vector<4096x27xbf16>, vector<27x32xbf16>, vector<4096x32xf32> -> vector<4096x32xf32>
    %7 = arith.addf %3, %6 : vector<4096x32xf32>
    %c0_6 = arith.constant 0 : index
    %c0_7 = arith.constant 0 : index
    %8 = vector.load %arg7[%c0_6, %c0_7] : memref<4096x32xf32, #tpu.memory_space<vmem>>, vector<4096x32xf32>
    tpu.vector_store %arg7[%c0_6, %c0_7], %7 {strides = array<i32>} : memref<4096x32xf32, #tpu.memory_space<vmem>>, vector<4096x32xf32>,
    %c0_i32_8 = arith.constant 0 : i32
    %9 = arith.cmpi eq, %arg2, %c0_i32_8 : i32
    %10 = arith.extui %9 : i1 to i32
    %c0_i32_9 = arith.constant 0 : i32
    %11 = arith.cmpi ne, %10, %c0_i32_9 : i32
    scf.if %11 {
      %c0_10 = arith.constant 0 : index
      %c0_11 = arith.constant 0 : index
      %12 = vector.load %arg7[%c0_10, %c0_11] : memref<4096x32xf32, #tpu.memory_space<vmem>>, vector<4096x32xf32>
      %c0_12 = arith.constant 0 : index
      %c0_13 = arith.constant 0 : index
      %13 = vector.load %arg5[%c0_12, %c0_13] : memref<1x32xf32, #tpu.memory_space<vmem>>, vector<1x32xf32>
      %14 = vector.broadcast %13 : vector<1x32xf32> to vector<4096x32xf32>
      %15 = arith.addf %12, %14 : vector<4096x32xf32>
      %cst_14 = arith.constant 0.000000e+00 : f32
      %16 = vector.broadcast %cst_14 : f32 to vector<4096x32xf32>
      %17 = arith.cmpf ogt, %15, %16 : vector<4096x32xf32>
      %cst_15 = arith.constant 0.00999999977 : f32
      %18 = vector.broadcast %cst_15 : f32 to vector<4096x32xf32>
      %19 = arith.mulf %18, %15 : vector<4096x32xf32>
      %20 = arith.select %17, %15, %19 : vector<4096x32xi1>, vector<4096x32xf32>
      %21 = arith.truncf %20 : vector<4096x32xf32> to vector<4096x32xbf16>
      %c0_16 = arith.constant 0 : index
      %c0_17 = arith.constant 0 : index
      %22 = vector.load %arg6[%c0_16, %c0_17] : memref<4096x32xbf16, #tpu.memory_space<vmem>>, vector<4096x32xbf16>
      tpu.vector_store %arg6[%c0_16, %c0_17], %21 {strides = array<i32>} : memref<4096x32xbf16, #tpu.memory_space<vmem>>, vector<4096x32xbf16>,
    } else {
    }
    return
  }
  func.func @transform_0(%arg0: i32, %arg1: i32, %arg2: i32) -> (i32, i32) {
    %c0_i32 = arith.constant 0 : i32
    return %arg0, %arg2 : i32, i32
  }
  func.func @transform_1(%arg0: i32, %arg1: i32, %arg2: i32) -> (i32, i32) {
    %c0_i32 = arith.constant 0 : i32
    return %arg2, %arg1 : i32, i32
  }
  func.func @transform_2(%arg0: i32, %arg1: i32, %arg2: i32) -> (i32, i32) {
    %c0_i32 = arith.constant 0 : i32
    %c0_i32_0 = arith.constant 0 : i32
    return %c0_i32, %arg1 : i32, i32
  }
  func.func @transform_3(%arg0: i32, %arg1: i32, %arg2: i32) -> (i32, i32) {
    %c0_i32 = arith.constant 0 : i32
    return %arg0, %arg1 : i32, i32
  }
}

</mosaic_0001>

<bundles_post_ra>
// kernel: tpu_custom_call.1
= control target key start
LH: loop header
LB: loop body
LE: loop exit
PB: predicated region body
PF: predicated region fallthrough
CT: control target
= control target key end

     0   :  { %s11539_s12 = smov 0   ;;  %s11541_s13 = smov 0   ;;  %s16745_s0 = inlined_call_operand.vmem [shape: bf16[8192,27], index: 0, kind: input, shape index: {}]   ;;  %s16746_s1 = inlined_call_operand.vmem [shape: bf16[27,32], index: 1, kind: input, shape index: {}]   ;;  %s16747_s2 = inlined_call_operand.vmem [shape: f32[1,32], index: 2, kind: input, shape index: {}]   ;;  %s16748_s3 = inlined_call_operand.vmem [shape: bf16[8192,32], index: 3, kind: output, shape index: {}]  }
   0x1   :  { %s11543_s14 = smov 0  }
   0x2 LB: > { %s32_s15 = sadd.s32 1, %s11511_s13  ;;  %p9895_p0 = scmp.ge.s32.totalorder %s11515_s14, 1  ;;  %s11515_s14 = sphi %s11543_s14, %s13_s14   ;;  %s11511_s13 = sphi %s11541_s13, %s16750_s13   ;;  %s11507_s12 = sphi %s11539_s12, %s16749_s12  }
   0x3   : > { %p34_p1 = scmp.ge.s32.totalorder %s32_s15, 2  ;;  %p188_p2 = scmp.lt.s32.totalorder %s11515_s14, 3 }
   0x5   : > { %s16752_s15 = smov (%p34_p1, %s32_s15), 0  ;;  %p189_p3 = pnand %p9895_p0, %p188_p2 }
   0x6   : > { %s9896_s20 = sshll.u32 (!%p189_p3), %s11507_s12, 9 }
   0x7   : > { %192 = sbr.rel (%p189_p3) target bundleno = 1557 (0x615), region = 32  ;;  %p230_p4 = scmp.lt.s32.totalorder (!%p189_p3), %s9896_s20, 1023 }
   0xc   : > { %v10930_v0 = vld [vmem:[%s16746_s1 + $0x8] sm:$0xf]  ;;  %v11447_v1 = vld [vmem:[%s16746_s1 + $0x8] sm:$0x30]  ;;  %vm3865_vm0 = vcmask 1044480   ;;  %vm3866_vm1 = vcmask 1045504  }
   0xd   : > { %v10931_v2 = vor.u32 %v11447_v1, %v10930_v0  ;;  %v11517_v3 = vmov 65535   ;;  %s16754_s20 = smov (!%p230_p4, %s9896_s20), 1023  ;;  %v11446_v7 = vld [vmem:[%s16746_s1] sm:$0xff]  ;;  %vm3096_vm2 = vcmask 220160   ;;  %vm264_vm3 = vcmask 261120  }
   0xe   : > { %v3867_v4 = vsel %vm3865_vm0, 4294967295, %v11517_v3  ;;  %s9897_s23 = sshll.u32 %s16754_s20, 2  ;;  %v11518_v32 = vmov 0.0   ;;  %v11480_v44 = vld [vmem:[%s16747_s2] ss:$0 sm:$0xff]  ;;  %vm9265_vm5 = vcmask 257024  }
   0xf   : > { %v3868_v5 = vsel %vm3866_vm1, %v3867_v4, 0  ;;  %s11574_s26 = scalar_lea.vmem %s16745_s0, %s9897_s23  ;;  %265 = vst.msk [vmem:[#allocation2] sm:$0xff] %vm264_vm3, %v11518_v32  ;;  %s11763_s4 = scalar_lea.vmem %s16748_s3, %s9897_s23 }
  0x10   : > { %v3870_v6 = vand.u32 %v10931_v2, %v3868_v5  ;;  %v11190_v8 = vld [vmem:[%s11574_s26] sm:$0xff]  ;;  %v11191_v12 = vld [vmem:[%s11574_s26 + $0x8] sm:$0xff]  ;;  %v11192_v16 = vld [vmem:[%s11574_s26 + $0x10] sm:$0xff]  ;;  %266 = vst.msk [vmem:[#allocation2 + $0x8] sm:$0xff] %vm264_vm3, %v11518_v32 }
  0x11   : > { %v11254_v9 = vld [vmem:[%s11574_s26 + $0x200] sm:$0xff]  ;;  %v11255_v13 = vld [vmem:[%s11574_s26 + $0x208] sm:$0xff]  ;;  %v11256_v17 = vld [vmem:[%s11574_s26 + $0x210] sm:$0xff]  ;;  %267 = vst.msk [vmem:[#allocation2 + $0x10] sm:$0xff] %vm264_vm3, %v11518_v32 }
  0x12   : > { %3878 = vmatpush.bf16.msra.mxu0 %v3870_v6  ;;  %11448 = vmatpush.bf16.msra.mxu1 %v3870_v6  ;;  %v11318_v10 = vld [vmem:[%s11574_s26 + $0x400] sm:$0xff]  ;;  %v11319_v14 = vld [vmem:[%s11574_s26 + $0x408] sm:$0xff]  ;;  %v11320_v18 = vld [vmem:[%s11574_s26 + $0x410] sm:$0xff]  ;;  %268 = vst.msk [vmem:[#allocation2 + $0x18] sm:$0xff] %vm264_vm3, %v11518_v32 }
  0x13   : > { %11449 = vmatpush.bf16.msra.mxu2 %v3870_v6  ;;  %11450 = vmatpush.bf16.msra.mxu3 %v3870_v6  ;;  %v11382_v11 = vld [vmem:[%s11574_s26 + $0x600] sm:$0xff]  ;;  %v11383_v15 = vld [vmem:[%s11574_s26 + $0x608] sm:$0xff]  ;;  %v11384_v19 = vld [vmem:[%s11574_s26 + $0x610] sm:$0xff]  ;;  %269 = vst.msk [vmem:[#allocation2 + $0x20] sm:$0xff] %vm264_vm3, %v11518_v32 }
  0x14   : > { %v11193_v20 = vld [vmem:[%s11574_s26 + $0x18] sm:$0xff]  ;;  %v11194_v24 = vld [vmem:[%s11574_s26 + $0x20] sm:$0xff]  ;;  %v11195_v28 = vld [vmem:[%s11574_s26 + $0x28] sm:$0xff]  ;;  %270 = vst.msk [vmem:[#allocation2 + $0x28] sm:$0xff] %vm264_vm3, %v11518_v32 }
  0x15   : > { %v11257_v21 = vld [vmem:[%s11574_s26 + $0x218] sm:$0xff]  ;;  %v11258_v25 = vld [vmem:[%s11574_s26 + $0x220] sm:$0xff]  ;;  %v11259_v29 = vld [vmem:[%s11574_s26 + $0x228] sm:$0xff]  ;;  %271 = vst.msk [vmem:[#allocation2 + $0x30] sm:$0xff] %vm264_vm3, %v11518_v32 }
  0x16   : > { %3879 = vmatpush.bf16.msra.mxu0 %v11446_v7  ;;  %11451 = vmatpush.bf16.msra.mxu1 %v11446_v7  ;;  %v11321_v22 = vld [vmem:[%s11574_s26 + $0x418] sm:$0xff]  ;;  %v11322_v26 = vld [vmem:[%s11574_s26 + $0x420] sm:$0xff]  ;;  %v11323_v30 = vld [vmem:[%s11574_s26 + $0x428] sm:$0xff]  ;;  %272 = vst.msk [vmem:[#allocation2 + $0x38] sm:$0xff] %vm264_vm3, %v11518_v32 }
  0x17   : > { %11452 = vmatpush.bf16.msra.mxu2 %v11446_v7  ;;  %11453 = vmatpush.bf16.msra.mxu3 %v11446_v7  ;;  %v11385_v23 = vld [vmem:[%s11574_s26 + $0x618] sm:$0xff]  ;;  %v11386_v27 = vld [vmem:[%s11574_s26 + $0x620] sm:$0xff]  ;;  %v11387_v31 = vld [vmem:[%s11574_s26 + $0x628] sm:$0xff]  ;;  %273 = vst.msk [vmem:[#allocation2 + $0x40] sm:$0xff] %vm264_vm3, %v11518_v32 }
  0x18   : > { %274 = vst.msk [vmem:[#allocation2 + $0x48] sm:$0xff] %vm264_vm3, %v11518_v32  ;;  %v11196_v33 = vld [vmem:[%s11574_s26 + $0x30] sm:$0xff]  ;;  %v11197_v37 = vld [vmem:[%s11574_s26 + $0x38] sm:$0xff]  ;;  %v777_v41 = vld [vmem:[#allocation2] sm:$0xff] }
  0x19   : > { %10932 = vmatmul.msk.bf16.vlgmr.msra.gmra.mxu0 %vm3096_vm2, %v11190_v8  ;;  %10996 = vmatmul.msk.bf16.vlgmr.msra.gmra.mxu1 %vm3096_vm2, %v11254_v9  ;;  %v11260_v34 = vld [vmem:[%s11574_s26 + $0x230] sm:$0xff]  ;;  %275 = vst.msk [vmem:[#allocation2 + $0x50] sm:$0xff] %vm264_vm3, %v11518_v32  ;;  %v11261_v38 = vld [vmem:[%s11574_s26 + $0x238] sm:$0xff]  ;;  %v11198_v51 = vld [vmem:[%s11574_s26 + $0x40] sm:$0xff] }
  0x1a   : > { %11060 = vmatmul.msk.bf16.vlgmr.msra.gmra.mxu2 %vm3096_vm2, %v11318_v10  ;;  %11124 = vmatmul.msk.bf16.vlgmr.msra.gmra.mxu3 %vm3096_vm2, %v11382_v11  ;;  %v11324_v35 = vld [vmem:[%s11574_s26 + $0x430] sm:$0xff]  ;;  %276 = vst.msk [vmem:[#allocation2 + $0x58] sm:$0xff] %vm264_vm3, %v11518_v32  ;;  %v11325_v39 = vld [vmem:[%s11574_s26 + $0x438] sm:$0xff]  ;;  %v11262_v52 = vld [vmem:[%s11574_s26 + $0x240] sm:$0xff] }
  0x1b   : > { %v11388_v36 = vld [vmem:[%s11574_s26 + $0x630] sm:$0xff]  ;;  %277 = vst.msk [vmem:[#allocation2 + $0x60] sm:$0xff] %vm264_vm3, %v11518_v32  ;;  %v11389_v40 = vld [vmem:[%s11574_s26 + $0x638] sm:$0xff]  ;;  %v11326_v53 = vld [vmem:[%s11574_s26 + $0x440] sm:$0xff] }
  0x1c   : > { %278 = vst.msk [vmem:[#allocation2 + $0x68] sm:$0xff] %vm264_vm3, %v11518_v32  ;;  %v11390_v54 = vld [vmem:[%s11574_s26 + $0x640] sm:$0xff]  ;;  %v11199_v63 = vld [vmem:[%s11574_s26 + $0x48] sm:$0xff] }
  0x1d   : > { %279 = vst.msk [vmem:[#allocation2 + $0x70] sm:$0xff] %vm264_vm3, %v11518_v32  ;;  %v11263_v0 = vld [vmem:[%s11574_s26 + $0x248] sm:$0xff] }
  0x1e   : > { %280 = vst.msk [vmem:[#allocation2 + $0x78] sm:$0xff] %vm264_vm3, %v11518_v32  ;;  %v11327_v1 = vld [vmem:[%s11574_s26 + $0x448] sm:$0xff] }
  0x1f   : > { %281 = vst.msk [vmem:[#allocation2 + $0x80] sm:$0xff] %vm264_vm3, %v11518_v32  ;;  %v11391_v2 = vld [vmem:[%s11574_s26 + $0x648] sm:$0xff] }
  0x20   : > { %282 = vst.msk [vmem:[#allocation2 + $0x88] sm:$0xff] %vm264_vm3, %v11518_v32 }
  0x21   : > { %283 = vst.msk [vmem:[#allocation2 + $0x90] sm:$0xff] %vm264_vm3, %v11518_v32 }
  0x22   : > { %284 = vst.msk [vmem:[#allocation2 + $0x98] sm:$0xff] %vm264_vm3, %v11518_v32 }
  0x23   : > { %285 = vst.msk [vmem:[#allocation2 + $0xa0] sm:$0xff] %vm264_vm3, %v11518_v32 }
  0x24   : > { %286 = vst.msk [vmem:[#allocation2 + $0xa8] sm:$0xff] %vm264_vm3, %v11518_v32 }
  0x25   : > { %287 = vst.msk [vmem:[#allocation2 + $0xb0] sm:$0xff] %vm264_vm3, %v11518_v32 }
  0x26   : > { %288 = vst.msk [vmem:[#allocation2 + $0xb8] sm:$0xff] %vm264_vm3, %v11518_v32 }
  0x27   : > { %289 = vst.msk [vmem:[#allocation2 + $0xc0] sm:$0xff] %vm264_vm3, %v11518_v32 }
  0x28   : > { %290 = vst.msk [vmem:[#allocation2 + $0xc8] sm:$0xff] %vm264_vm3, %v11518_v32 }
  0x29   : > { %10933 = vmatmul.msk.bf16.gmra.mxu0 %vm3096_vm2, %v11191_v12  ;;  %10997 = vmatmul.msk.bf16.gmra.mxu1 %vm3096_vm2, %v11255_v13  ;;  %291 = vst.msk [vmem:[#allocation2 + $0xd0] sm:$0xff] %vm264_vm3, %v11518_v32  ;;  %v11200_v13 = vld [vmem:[%s11574_s26 + $0x50] sm:$0xff] }
  0x2a   : > { %11061 = vmatmul.msk.bf16.gmra.mxu2 %vm3096_vm2, %v11319_v14  ;;  %11125 = vmatmul.msk.bf16.gmra.mxu3 %vm3096_vm2, %v11383_v15  ;;  %292 = vst.msk [vmem:[#allocation2 + $0xd8] sm:$0xff] %vm264_vm3, %v11518_v32  ;;  %v11264_v14 = vld [vmem:[%s11574_s26 + $0x250] sm:$0xff] }
  0x2b   : > { %293 = vst.msk [vmem:[#allocation2 + $0xe0] sm:$0xff] %vm264_vm3, %v11518_v32  ;;  %v11328_v15 = vld [vmem:[%s11574_s26 + $0x450] sm:$0xff] }
  0x2c   : > { %294 = vst.msk [vmem:[#allocation2 + $0xe8] sm:$0xff] %vm264_vm3, %v11518_v32 }
  0x2d   : > { %295 = vst.msk [vmem:[#allocation2 + $0xf0] sm:$0xff] %vm264_vm3, %v11518_v32 }
  0x2e   : > { %296 = vst.msk [vmem:[#allocation2 + $0xf8] sm:$0xff] %vm264_vm3, %v11518_v32 }
  0x2f   : > { %297 = vst.msk [vmem:[#allocation2 + $0x100] sm:$0xff] %vm264_vm3, %v11518_v32 }
  0x30   : > { %298 = vst.msk [vmem:[#allocation2 + $0x108] sm:$0xff] %vm264_vm3, %v11518_v32 }
  0x31   : > { %299 = vst.msk [vmem:[#allocation2 + $0x110] sm:$0xff] %vm264_vm3, %v11518_v32 }
  0x32   : > { %300 = vst.msk [vmem:[#allocation2 + $0x118] sm:$0xff] %vm264_vm3, %v11518_v32 }
  0x33   : > { %301 = vst.msk [vmem:[#allocation2 + $0x120] sm:$0xff] %vm264_vm3, %v11518_v32 }
  0x34   : > { %302 = vst.msk [vmem:[#allocation2 + $0x128] sm:$0xff] %vm264_vm3, %v11518_v32 }
  0x35   : > { %303 = vst.msk [vmem:[#allocation2 + $0x130] sm:$0xff] %vm264_vm3, %v11518_v32 }
  0x36   : > { %304 = vst.msk [vmem:[#allocation2 + $0x138] sm:$0xff] %vm264_vm3, %v11518_v32 }
  0x37   : > { %305 = vst.msk [vmem:[#allocation2 + $0x140] sm:$0xff] %vm264_vm3, %v11518_v32 }
  0x38   : > { %306 = vst.msk [vmem:[#allocation2 + $0x148] sm:$0xff] %vm264_vm3, %v11518_v32 }
  0x39   : > { %10934 = vmatmul.msk.bf16.gmra.mxu0 %vm3096_vm2, %v11192_v16  ;;  %10998 = vmatmul.msk.bf16.gmra.mxu1 %vm3096_vm2, %v11256_v17  ;;  %307 = vst.msk [vmem:[#allocation2 + $0x150] sm:$0xff] %vm264_vm3, %v11518_v32  ;;  %v11392_v17 = vld [vmem:[%s11574_s26 + $0x650] sm:$0xff] }
  0x3a   : > { %11062 = vmatmul.msk.bf16.gmra.mxu2 %vm3096_vm2, %v11320_v18  ;;  %11126 = vmatmul.msk.bf16.gmra.mxu3 %vm3096_vm2, %v11384_v19  ;;  %308 = vst.msk [vmem:[#allocation2 + $0x158] sm:$0xff] %vm264_vm3, %v11518_v32  ;;  %v778_v19 = vld [vmem:[#allocation2 + $0x8] sm:$0xff] }
  0x3b   : > { %309 = vst.msk [vmem:[#allocation2 + $0x160] sm:$0xff] %vm264_vm3, %v11518_v32 }
  0x3c   : > { %310 = vst.msk [vmem:[#allocation2 + $0x168] sm:$0xff] %vm264_vm3, %v11518_v32 }
  0x3d   : > { %311 = vst.msk [vmem:[#allocation2 + $0x170] sm:$0xff] %vm264_vm3, %v11518_v32 }
  0x3e   : > { %312 = vst.msk [vmem:[#allocation2 + $0x178] sm:$0xff] %vm264_vm3, %v11518_v32 }
  0x3f   : > { %313 = vst.msk [vmem:[#allocation2 + $0x180] sm:$0xff] %vm264_vm3, %v11518_v32 }
  0x40   : > { %314 = vst.msk [vmem:[#allocation2 + $0x188] sm:$0xff] %vm264_vm3, %v11518_v32 }
  0x41   : > { %315 = vst.msk [vmem:[#allocation2 + $0x190] sm:$0xff] %vm264_vm3, %v11518_v32 }
  0x42   : > { %316 = vst.msk [vmem:[#allocation2 + $0x198] sm:$0xff] %vm264_vm3, %v11518_v32 }
  0x43   : > { %317 = vst.msk [vmem:[#allocation2 + $0x1a0] sm:$0xff] %vm264_vm3, %v11518_v32 }
  0x44   : > { %318 = vst.msk [vmem:[#allocation2 + $0x1a8] sm:$0xff] %vm264_vm3, %v11518_v32 }
  0x45   : > { %319 = vst.msk [vmem:[#allocation2 + $0x1b0] sm:$0xff] %vm264_vm3, %v11518_v32 }
  0x46   : > { %320 = vst.msk [vmem:[#allocation2 + $0x1b8] sm:$0xff] %vm264_vm3, %v11518_v32 }
  0x47   : > { %321 = vst.msk [vmem:[#allocation2 + $0x1c0] sm:$0xff] %vm264_vm3, %v11518_v32 }
  0x48   : > { %322 = vst.msk [vmem:[#allocation2 + $0x1c8] sm:$0xff] %vm264_vm3, %v11518_v32 }
  0x49   : > { %10935 = vmatmul.msk.bf16.gmra.mxu0 %vm3096_vm2, %v11193_v20  ;;  %10999 = vmatmul.msk.bf16.gmra.mxu1 %vm3096_vm2, %v11257_v21  ;;  %323 = vst.msk [vmem:[#allocation2 + $0x1d0] sm:$0xff] %vm264_vm3, %v11518_v32 }
  0x4a   : > { %11063 = vmatmul.msk.bf16.gmra.mxu2 %vm3096_vm2, %v11321_v22  ;;  %11127 = vmatmul.msk.bf16.gmra.mxu3 %vm3096_vm2, %v11385_v23  ;;  %324 = vst.msk [vmem:[#allocation2 + $0x1d8] sm:$0xff] %vm264_vm3, %v11518_v32 }
  0x4b   : > { %325 = vst.msk [vmem:[#allocation2 + $0x1e0] sm:$0xff] %vm264_vm3, %v11518_v32 }
  0x4c   : > { %326 = vst.msk [vmem:[#allocation2 + $0x1e8] sm:$0xff] %vm264_vm3, %v11518_v32 }
  0x4d   : > { %327 = vst.msk [vmem:[#allocation2 + $0x1f0] sm:$0xff] %vm264_vm3, %v11518_v32 }
  0x4e   : > { %328 = vst.msk [vmem:[#allocation2 + $0x1f8] sm:$0xff] %vm264_vm3, %v11518_v32 }
  0x4f   : > { %329 = vst.msk [vmem:[#allocation2 + $0x200] sm:$0xff] %vm264_vm3, %v11518_v32 }
  0x50   : > { %330 = vst.msk [vmem:[#allocation2 + $0x208] sm:$0xff] %vm264_vm3, %v11518_v32 }
  0x51   : > { %331 = vst.msk [vmem:[#allocation2 + $0x210] sm:$0xff] %vm264_vm3, %v11518_v32 }
  0x52   : > { %332 = vst.msk [vmem:[#allocation2 + $0x218] sm:$0xff] %vm264_vm3, %v11518_v32 }
  0x53   : > { %333 = vst.msk [vmem:[#allocation2 + $0x220] sm:$0xff] %vm264_vm3, %v11518_v32 }
  0x54   : > { %334 = vst.msk [vmem:[#allocation2 + $0x228] sm:$0xff] %vm264_vm3, %v11518_v32 }
  0x55   : > { %335 = vst.msk [vmem:[#allocation2 + $0x230] sm:$0xff] %vm264_vm3, %v11518_v32 }
  0x56   : > { %336 = vst.msk [vmem:[#allocation2 + $0x238] sm:$0xff] %vm264_vm3, %v11518_v32 }
  0x57   : > { %337 = vst.msk [vmem:[#allocation2 + $0x240] sm:$0xff] %vm264_vm3, %v11518_v32 }
  0x58   : > { %338 = vst.msk [vmem:[#allocation2 + $0x248] sm:$0xff] %vm264_vm3, %v11518_v32 }
  0x59   : > { %10936 = vmatmul.msk.bf16.gmra.mxu0 %vm3096_vm2, %v11194_v24  ;;  %11000 = vmatmul.msk.bf16.gmra.mxu1 %vm3096_vm2, %v11258_v25  ;;  %339 = vst.msk [vmem:[#allocation2 + $0x250] sm:$0xff] %vm264_vm3, %v11518_v32 }
  0x5a   : > { %11064 = vmatmul.msk.bf16.gmra.mxu2 %vm3096_vm2, %v11322_v26  ;;  %11128 = vmatmul.msk.bf16.gmra.mxu3 %vm3096_vm2, %v11386_v27  ;;  %340 = vst.msk [vmem:[#allocation2 + $0x258] sm:$0xff] %vm264_vm3, %v11518_v32 }
  0x5b   : > { %341 = vst.msk [vmem:[#allocation2 + $0x260] sm:$0xff] %vm264_vm3, %v11518_v32 }
  0x5c   : > { %342 = vst.msk [vmem:[#allocation2 + $0x268] sm:$0xff] %vm264_vm3, %v11518_v32 }
  0x5d   : > { %343 = vst.msk [vmem:[#allocation2 + $0x270] sm:$0xff] %vm264_vm3, %v11518_v32 }
  0x5e   : > { %344 = vst.msk [vmem:[#allocation2 + $0x278] sm:$0xff] %vm264_vm3, %v11518_v32 }
  0x5f   : > { %345 = vst.msk [vmem:[#allocation2 + $0x280] sm:$0xff] %vm264_vm3, %v11518_v32 }
  0x60   : > { %346 = vst.msk [vmem:[#allocation2 + $0x288] sm:$0xff] %vm264_vm3, %v11518_v32 }
  0x61   : > { %347 = vst.msk [vmem:[#allocation2 + $0x290] sm:$0xff] %vm264_vm3, %v11518_v32 }
  0x62   : > { %348 = vst.msk [vmem:[#allocation2 + $0x298] sm:$0xff] %vm264_vm3, %v11518_v32 }
  0x63   : > { %349 = vst.msk [vmem:[#allocation2 + $0x2a0] sm:$0xff] %vm264_vm3, %v11518_v32 }
  0x64   : > { %350 = vst.msk [vmem:[#allocation2 + $0x2a8] sm:$0xff] %vm264_vm3, %v11518_v32 }
  0x65   : > { %351 = vst.msk [vmem:[#allocation2 + $0x2b0] sm:$0xff] %vm264_vm3, %v11518_v32 }
  0x66   : > { %352 = vst.msk [vmem:[#allocation2 + $0x2b8] sm:$0xff] %vm264_vm3, %v11518_v32 }
  0x67   : > { %353 = vst.msk [vmem:[#allocation2 + $0x2c0] sm:$0xff] %vm264_vm3, %v11518_v32 }
  0x68   : > { %354 = vst.msk [vmem:[#allocation2 + $0x2c8] sm:$0xff] %vm264_vm3, %v11518_v32 }
  0x69   : > { %10937 = vmatmul.msk.bf16.gmra.mxu0 %vm3096_vm2, %v11195_v28  ;;  %11001 = vmatmul.msk.bf16.gmra.mxu1 %vm3096_vm2, %v11259_v29  ;;  %355 = vst.msk [vmem:[#allocation2 + $0x2d0] sm:$0xff] %vm264_vm3, %v11518_v32  ;;  %v779_v29 = vld [vmem:[#allocation2 + $0x10] sm:$0xff] }
  0x6a   : > { %11065 = vmatmul.msk.bf16.gmra.mxu2 %vm3096_vm2, %v11323_v30  ;;  %11129 = vmatmul.msk.bf16.gmra.mxu3 %vm3096_vm2, %v11387_v31  ;;  %356 = vst.msk [vmem:[#allocation2 + $0x2d8] sm:$0xff] %vm264_vm3, %v11518_v32 }
  0x6b   : > { %357 = vst.msk [vmem:[#allocation2 + $0x2e0] sm:$0xff] %vm264_vm3, %v11518_v32 }
  0x6c   : > { %358 = vst.msk [vmem:[#allocation2 + $0x2e8] sm:$0xff] %vm264_vm3, %v11518_v32 }
  0x6d   : > { %359 = vst.msk [vmem:[#allocation2 + $0x2f0] sm:$0xff] %vm264_vm3, %v11518_v32 }
  0x6e   : > { %360 = vst.msk [vmem:[#allocation2 + $0x2f8] sm:$0xff] %vm264_vm3, %v11518_v32 }
  0x6f   : > { %361 = vst.msk [vmem:[#allocation2 + $0x300] sm:$0xff] %vm264_vm3, %v11518_v32 }
  0x70   : > { %362 = vst.msk [vmem:[#allocation2 + $0x308] sm:$0xff] %vm264_vm3, %v11518_v32 }
  0x71   : > { %363 = vst.msk [vmem:[#allocation2 + $0x310] sm:$0xff] %vm264_vm3, %v11518_v32 }
  0x72   : > { %364 = vst.msk [vmem:[#allocation2 + $0x318] sm:$0xff] %vm264_vm3, %v11518_v32 }
  0x73   : > { %365 = vst.msk [vmem:[#allocation2 + $0x320] sm:$0xff] %vm264_vm3, %v11518_v32 }
  0x74   : > { %366 = vst.msk [vmem:[#allocation2 + $0x328] sm:$0xff] %vm264_vm3, %v11518_v32 }
  0x75   : > { %367 = vst.msk [vmem:[#allocation2 + $0x330] sm:$0xff] %vm264_vm3, %v11518_v32 }
  0x76   : > { %368 = vst.msk [vmem:[#allocation2 + $0x338] sm:$0xff] %vm264_vm3, %v11518_v32 }
  0x77   : > { %369 = vst.msk [vmem:[#allocation2 + $0x340] sm:$0xff] %vm264_vm3, %v11518_v32 }
  0x78   : > { %370 = vst.msk [vmem:[#allocation2 + $0x348] sm:$0xff] %vm264_vm3, %v11518_v32 }
  0x79   : > { %10938 = vmatmul.msk.bf16.gmra.mxu0 %vm3096_vm2, %v11196_v33  ;;  %11002 = vmatmul.msk.bf16.gmra.mxu1 %vm3096_vm2, %v11260_v34  ;;  %371 = vst.msk [vmem:[#allocation2 + $0x350] sm:$0xff] %vm264_vm3, %v11518_v32 }
  0x7a   : > { %11066 = vmatmul.msk.bf16.gmra.mxu2 %vm3096_vm2, %v11324_v35  ;;  %11130 = vmatmul.msk.bf16.gmra.mxu3 %vm3096_vm2, %v11388_v36  ;;  %372 = vst.msk [vmem:[#allocation2 + $0x358] sm:$0xff] %vm264_vm3, %v11518_v32 }
  0x7b   : > { %373 = vst.msk [vmem:[#allocation2 + $0x360] sm:$0xff] %vm264_vm3, %v11518_v32 }
  0x7c   : > { %374 = vst.msk [vmem:[#allocation2 + $0x368] sm:$0xff] %vm264_vm3, %v11518_v32 }
  0x7d   : > { %375 = vst.msk [vmem:[#allocation2 + $0x370] sm:$0xff] %vm264_vm3, %v11518_v32 }
  0x7e   : > { %376 = vst.msk [vmem:[#allocation2 + $0x378] sm:$0xff] %vm264_vm3, %v11518_v32 }
  0x7f   : > { %377 = vst.msk [vmem:[#allocation2 + $0x380] sm:$0xff] %vm264_vm3, %v11518_v32 }
  0x80   : > { %378 = vst.msk [vmem:[#allocation2 + $0x388] sm:$0xff] %vm264_vm3, %v11518_v32 }
  0x81   : > { %379 = vst.msk [vmem:[#allocation2 + $0x390] sm:$0xff] %vm264_vm3, %v11518_v32 }
  0x82   : > { %380 = vst.msk [vmem:[#allocation2 + $0x398] sm:$0xff] %vm264_vm3, %v11518_v32 }
  0x83   : > { %381 = vst.msk [vmem:[#allocation2 + $0x3a0] sm:$0xff] %vm264_vm3, %v11518_v32 }
  0x84   : > { %382 = vst.msk [vmem:[#allocation2 + $0x3a8] sm:$0xff] %vm264_vm3, %v11518_v32 }
  0x85   : > { %383 = vst.msk [vmem:[#allocation2 + $0x3b0] sm:$0xff] %vm264_vm3, %v11518_v32 }
  0x86   : > { %384 = vst.msk [vmem:[#allocation2 + $0x3b8] sm:$0xff] %vm264_vm3, %v11518_v32 }
  0x87   : > { %385 = vst.msk [vmem:[#allocation2 + $0x3c0] sm:$0xff] %vm264_vm3, %v11518_v32 }
  0x88   : > { %386 = vst.msk [vmem:[#allocation2 + $0x3c8] sm:$0xff] %vm264_vm3, %v11518_v32 }
  0x89   : > { %10939 = vmatmul.msk.bf16.gmra.mxu0 %vm3096_vm2, %v11197_v37  ;;  %11003 = vmatmul.msk.bf16.gmra.mxu1 %vm3096_vm2, %v11261_v38  ;;  %387 = vst.msk [vmem:[#allocation2 + $0x3d0] sm:$0xff] %vm264_vm3, %v11518_v32 }
  0x8a   : > { %11067 = vmatmul.msk.bf16.gmra.mxu2 %vm3096_vm2, %v11325_v39  ;;  %11131 = vmatmul.msk.bf16.gmra.mxu3 %vm3096_vm2, %v11389_v40  ;;  %388 = vst.msk [vmem:[#allocation2 + $0x3d8] sm:$0xff] %vm264_vm3, %v11518_v32  ;;  %v780_v39 = vld [vmem:[#allocation2 + $0x18] sm:$0xff] }
  0x8b   : > { %389 = vst.msk [vmem:[#allocation2 + $0x3e0] sm:$0xff] %vm264_vm3, %v11518_v32 }
  0x8c   : > { %390 = vst.msk [vmem:[#allocation2 + $0x3e8] sm:$0xff] %vm264_vm3, %v11518_v32 }
  0x8d   : > { %391 = vst.msk [vmem:[#allocation2 + $0x3f0] sm:$0xff] %vm264_vm3, %v11518_v32 }
  0x8e   : > { %392 = vst.msk [vmem:[#allocation2 + $0x3f8] sm:$0xff] %vm264_vm3, %v11518_v32 }
  0x8f   : > { %393 = vst.msk [vmem:[#allocation2 + $0x400] sm:$0xff] %vm264_vm3, %v11518_v32 }
  0x90   : > { %394 = vst.msk [vmem:[#allocation2 + $0x408] sm:$0xff] %vm264_vm3, %v11518_v32 }
  0x91   : > { %395 = vst.msk [vmem:[#allocation2 + $0x410] sm:$0xff] %vm264_vm3, %v11518_v32 }
  0x92   : > { %396 = vst.msk [vmem:[#allocation2 + $0x418] sm:$0xff] %vm264_vm3, %v11518_v32 }
  0x93   : > { %397 = vst.msk [vmem:[#allocation2 + $0x420] sm:$0xff] %vm264_vm3, %v11518_v32 }
  0x94   : > { %398 = vst.msk [vmem:[#allocation2 + $0x428] sm:$0xff] %vm264_vm3, %v11518_v32 }
  0x95   : > { %399 = vst.msk [vmem:[#allocation2 + $0x430] sm:$0xff] %vm264_vm3, %v11518_v32 }
  0x96   : > { %v3881_v42 = vpop.f32.mrf.mxu0  ;;  %400 = vst.msk [vmem:[#allocation2 + $0x438] sm:$0xff] %vm264_vm3, %v11518_v32  ;;  %v12597_v50 = vpop.f32.mrf.mxu1  ;;  %v905_v9 = vld [vmem:[#allocation2 + $0x400] sm:$0xff] }
  0x97   : > { %v5161_v43 = vadd.f32 %v3881_v42, %v777_v41  ;;  %401 = vst.msk [vmem:[#allocation2 + $0x440] sm:$0xff] %vm264_vm3, %v11518_v32  ;;  %v5289_v18 = vadd.f32 %v12597_v50, %v905_v9  ;;  %v906_v21 = vld [vmem:[#allocation2 + $0x408] sm:$0xff] }
  0x98   : > { %402 = vst.msk [vmem:[#allocation2 + $0x448] sm:$0xff] %vm264_vm3, %v11518_v32  ;;  %v907_v31 = vld [vmem:[#allocation2 + $0x410] sm:$0xff] }
  0x99   : > { %5674 = vst.msk [vmem:[#allocation2] sm:$0xff] %vm264_vm3, %v5161_v43  ;;  %10940 = vmatmul.msk.bf16.gmra.mxu0 %vm3096_vm2, %v11198_v51  ;;  %11004 = vmatmul.msk.bf16.gmra.mxu1 %vm3096_vm2, %v11262_v52  ;;  %v908_v41 = vld [vmem:[#allocation2 + $0x418] sm:$0xff]  ;;  %v781_v51 = vld [vmem:[#allocation2 + $0x20] sm:$0xff] }
  0x9a   : > { %403 = vst.msk [vmem:[#allocation2 + $0x450] sm:$0xff] %vm264_vm3, %v11518_v32  ;;  %11068 = vmatmul.msk.bf16.gmra.mxu2 %vm3096_vm2, %v11326_v53  ;;  %11132 = vmatmul.msk.bf16.gmra.mxu3 %vm3096_vm2, %v11390_v54 }
  0x9b   : > { %404 = vst.msk [vmem:[#allocation2 + $0x458] sm:$0xff] %vm264_vm3, %v11518_v32 }
  0x9c   : > { %405 = vst.msk [vmem:[#allocation2 + $0x460] sm:$0xff] %vm264_vm3, %v11518_v32 }
  0x9d   : > { %406 = vst.msk [vmem:[#allocation2 + $0x468] sm:$0xff] %vm264_vm3, %v11518_v32  ;;  %v12623_v55 = vpop.f32.mrf.mxu2  ;;  %v12625_v56 = vpop.f32.mrf.mxu3 }
  0x9e   : > { %407 = vst.msk [vmem:[#allocation2 + $0x470] sm:$0xff] %vm264_vm3, %v11518_v32  ;;  %v12631_v57 = vpop.f32.mrf.mxu0  ;;  %v12633_v58 = vpop.f32.mrf.mxu1 }
  0x9f   : > { %408 = vst.msk [vmem:[#allocation2 + $0x478] sm:$0xff] %vm264_vm3, %v11518_v32  ;;  %v5162_v24 = vadd.f32 %v12631_v57, %v778_v19  ;;  %v5290_v28 = vadd.f32 %v12633_v58, %v906_v21 }
  0xa0   : > { %v6189_v45 = vld [vmem:[#allocation2] sm:$0xff]  ;;  %409 = vst.msk [vmem:[#allocation2 + $0x480] sm:$0xff] %vm264_vm3, %v11518_v32 }
  0xa1   : > { %v6705_v46 = vadd.f32 %v11480_v44, %v6189_v45  ;;  %410 = vst.msk [vmem:[#allocation2 + $0x488] sm:$0xff] %vm264_vm3, %v11518_v32 }
  0xa2   : > { %411 = vst.msk [vmem:[#allocation2 + $0x490] sm:$0xff] %vm264_vm3, %v11518_v32 }
  0xa3   : > { %vm7217_vm4 = vcmp.gt.f32.partialorder %v6705_v46, 0.0  ;;  %v7729_v47 = vmul.f32 0.01, %v6705_v46  ;;  %412 = vst.msk [vmem:[#allocation2 + $0x498] sm:$0xff] %vm264_vm3, %v11518_v32 }
  0xa4   : > { %413 = vst.msk [vmem:[#allocation2 + $0x4a0] sm:$0xff] %vm264_vm3, %v11518_v32 }
  0xa5   : > { %v8241_v48 = vsel %vm7217_vm4, %v6705_v46, %v7729_v47  ;;  %414 = vst.msk [vmem:[#allocation2 + $0x4a8] sm:$0xff] %vm264_vm3, %v11518_v32  ;;  %v12647_v59 = vpop.f32.mrf.mxu2  ;;  %v12649_v60 = vpop.f32.mrf.mxu3  ;;  %v12766_v47 = vld [vmem:[%s16747_s2] ss:$0 sm:$0xff] }
  0xa6   : > { %v8753_v49 = vpack.c.bf16 %v8241_v48, %v8241_v48  ;;  %415 = vst.msk [vmem:[#allocation2 + $0x4b0] sm:$0xff] %vm264_vm3, %v11518_v32  ;;  %v12655_v61 = vpop.f32.mrf.mxu0  ;;  %v12657_v62 = vpop.f32.mrf.mxu1 }
  0xa7   : > { %416 = vst.msk [vmem:[#allocation2 + $0x4b8] sm:$0xff] %vm264_vm3, %v11518_v32  ;;  %v5163_v36 = vadd.f32 %v12655_v61, %v779_v29  ;;  %v5291_v38 = vadd.f32 %v12657_v62, %v907_v31 }
  0xa8   : > { %9266 = vst.msk [vmem:[%s11763_s4] sm:$0xf] %vm9265_vm5, %v8753_v49 }
  0xa9   : > { %417 = vst.msk [vmem:[#allocation2 + $0x4c0] sm:$0xff] %vm264_vm3, %v11518_v32  ;;  %10941 = vmatmul.msk.bf16.gmra.mxu0 %vm3096_vm2, %v11199_v63  ;;  %11005 = vmatmul.msk.bf16.gmra.mxu1 %vm3096_vm2, %v11263_v0 }
  0xaa   : > { %418 = vst.msk [vmem:[#allocation2 + $0x4c8] sm:$0xff] %vm264_vm3, %v11518_v32  ;;  %11069 = vmatmul.msk.bf16.gmra.mxu2 %vm3096_vm2, %v11327_v1  ;;  %11133 = vmatmul.msk.bf16.gmra.mxu3 %vm3096_vm2, %v11391_v2 }
  0xab   : > { %419 = vst.msk [vmem:[#allocation2 + $0x4d0] sm:$0xff] %vm264_vm3, %v11518_v32 }
  0xac   : > { %420 = vst.msk [vmem:[#allocation2 + $0x4d8] sm:$0xff] %vm264_vm3, %v11518_v32 }
  0xad   : > { %421 = vst.msk [vmem:[#allocation2 + $0x4e0] sm:$0xff] %vm264_vm3, %v11518_v32  ;;  %v12679_v3 = vpop.f32.mrf.mxu2  ;;  %v12681_v4 = vpop.f32.mrf.mxu3 }
  0xae   : > { %422 = vst.msk [vmem:[#allocation2 + $0x4e8] sm:$0xff] %vm264_vm3, %v11518_v32  ;;  %v12687_v5 = vpop.f32.mrf.mxu0  ;;  %v12689_v6 = vpop.f32.mrf.mxu1 }
  0xaf   : > { %423 = vst.msk [vmem:[#allocation2 + $0x4f0] sm:$0xff] %vm264_vm3, %v11518_v32  ;;  %v5164_v45 = vadd.f32 %v12687_v5, %v780_v39  ;;  %v5292_v50 = vadd.f32 %v12689_v6, %v908_v41 }
  0xb0   : > { %424 = vst.msk [vmem:[#allocation2 + $0x4f8] sm:$0xff] %vm264_vm3, %v11518_v32 }
  0xb1   : > { %425 = vst.msk [vmem:[#allocation2 + $0x500] sm:$0xff] %vm264_vm3, %v11518_v32 }
  0xb2   : > { %426 = vst.msk [vmem:[#allocation2 + $0x508] sm:$0xff] %vm264_vm3, %v11518_v32 }
  0xb3   : > { %427 = vst.msk [vmem:[#allocation2 + $0x510] sm:$0xff] %vm264_vm3, %v11518_v32 }
  0xb4   : > { %428 = vst.msk [vmem:[#allocation2 + $0x518] sm:$0xff] %vm264_vm3, %v11518_v32 }
  0xb5   : > { %429 = vst.msk [vmem:[#allocation2 + $0x520] sm:$0xff] %vm264_vm3, %v11518_v32  ;;  %v12703_v7 = vpop.f32.mrf.mxu2  ;;  %v12705_v8 = vpop.f32.mrf.mxu3 }
  0xb6   : > { %430 = vst.msk [vmem:[#allocation2 + $0x528] sm:$0xff] %vm264_vm3, %v11518_v32  ;;  %v12711_v11 = vpop.f32.mrf.mxu0  ;;  %v12713_v12 = vpop.f32.mrf.mxu1 }
  0xb7   : > { %431 = vst.msk [vmem:[#allocation2 + $0x530] sm:$0xff] %vm264_vm3, %v11518_v32  ;;  %v12788_v2 = vadd.f32 %v12711_v11, %v781_v51  ;;  %v11329_v11 = vld [vmem:[%s11574_s26 + $0x458] sm:$0xff] }
  0xb8   : > { %432 = vst.msk [vmem:[#allocation2 + $0x538] sm:$0xff] %vm264_vm3, %v11518_v32 }
  0xb9   : > { %433 = vst.msk [vmem:[#allocation2 + $0x540] sm:$0xff] %vm264_vm3, %v11518_v32  ;;  %10942 = vmatmul.msk.bf16.gmra.mxu0 %vm3096_vm2, %v11200_v13  ;;  %11006 = vmatmul.msk.bf16.gmra.mxu1 %vm3096_vm2, %v11264_v14 }
  0xba   : > { %434 = vst.msk [vmem:[#allocation2 + $0x548] sm:$0xff] %vm264_vm3, %v11518_v32  ;;  %11070 = vmatmul.msk.bf16.gmra.mxu2 %vm3096_vm2, %v11328_v15  ;;  %11134 = vmatmul.msk.bf16.gmra.mxu3 %vm3096_vm2, %v11392_v17 }
  0xbb   : > { %435 = vst.msk [vmem:[#allocation2 + $0x550] sm:$0xff] %vm264_vm3, %v11518_v32 }
  0xbc   : > { %436 = vst.msk [vmem:[#allocation2 + $0x558] sm:$0xff] %vm264_vm3, %v11518_v32 }
  0xbd   : > { %437 = vst.msk [vmem:[#allocation2 + $0x560] sm:$0xff] %vm264_vm3, %v11518_v32  ;;  %v12739_v26 = vpop.f32.mrf.mxu2  ;;  %v12741_v27 = vpop.f32.mrf.mxu3 }
  0xbe   : > { %438 = vst.msk [vmem:[#allocation2 + $0x568] sm:$0xff] %vm264_vm3, %v11518_v32  ;;  %v12747_v33 = vpop.f32.mrf.mxu0 }
  0xbf   : > { %439 = vst.msk [vmem:[#allocation2 + $0x570] sm:$0xff] %vm264_vm3, %v11518_v32 }
  0xc0   : > { %440 = vst.msk [vmem:[#allocation2 + $0x578] sm:$0xff] %vm264_vm3, %v11518_v32 }
  0xc1   : > { %441 = vst.msk [vmem:[#allocation2 + $0x580] sm:$0xff] %vm264_vm3, %v11518_v32 }
  0xc2   : > { %442 = vst.msk [vmem:[#allocation2 + $0x588] sm:$0xff] %vm264_vm3, %v11518_v32 }
  0xc3   : > { %443 = vst.msk [vmem:[#allocation2 + $0x590] sm:$0xff] %vm264_vm3, %v11518_v32 }
  0xc4   : > { %444 = vst.msk [vmem:[#allocation2 + $0x598] sm:$0xff] %vm264_vm3, %v11518_v32 }
  0xc5   : > { %445 = vst.msk [vmem:[#allocation2 + $0x5a0] sm:$0xff] %vm264_vm3, %v11518_v32  ;;  %v12771_v52 = vpop.f32.mrf.mxu2  ;;  %v12773_v53 = vpop.f32.mrf.mxu3 }
  0xc6   : > { %446 = vst.msk [vmem:[#allocation2 + $0x5a8] sm:$0xff] %vm264_vm3, %v11518_v32  ;;  %v12781_v61 = vpop.f32.mrf.mxu0 }
  0xc7   : > { %447 = vst.msk [vmem:[#allocation2 + $0x5b0] sm:$0xff] %vm264_vm3, %v11518_v32 }
  0xc8   : > { %448 = vst.msk [vmem:[#allocation2 + $0x5b8] sm:$0xff] %vm264_vm3, %v11518_v32 }
  0xc9   : > { %449 = vst.msk [vmem:[#allocation2 + $0x5c0] sm:$0xff] %vm264_vm3, %v11518_v32 }
  0xca   : > { %450 = vst.msk [vmem:[#allocation2 + $0x5c8] sm:$0xff] %vm264_vm3, %v11518_v32  ;;  %11071 = vmatmul.msk.bf16.gmra.mxu2 %vm3096_vm2, %v11329_v11 }
  0xcb   : > { %451 = vst.msk [vmem:[#allocation2 + $0x5d0] sm:$0xff] %vm264_vm3, %v11518_v32 }
  0xcc   : > { %452 = vst.msk [vmem:[#allocation2 + $0x5d8] sm:$0xff] %vm264_vm3, %v11518_v32 }
  0xcd   : > { %453 = vst.msk [vmem:[#allocation2 + $0x5e0] sm:$0xff] %vm264_vm3, %v11518_v32 }
  0xce   : > { %454 = vst.msk [vmem:[#allocation2 + $0x5e8] sm:$0xff] %vm264_vm3, %v11518_v32  ;;  %v12819_v41 = vpop.f32.mrf.mxu0 }
  0xcf   : > { %455 = vst.msk [vmem:[#allocation2 + $0x5f0] sm:$0xff] %vm264_vm3, %v11518_v32 }
  0xd0   : > { %456 = vst.msk [vmem:[#allocation2 + $0x5f8] sm:$0xff] %vm264_vm3, %v11518_v32 }
  0xd1   : > { %457 = vst.msk [vmem:[#allocation2 + $0x600] sm:$0xff] %vm264_vm3, %v11518_v32 }
  0xd2   : > { %458 = vst.msk [vmem:[#allocation2 + $0x608] sm:$0xff] %vm264_vm3, %v11518_v32 }
  0xd3   : > { %459 = vst.msk [vmem:[#allocation2 + $0x610] sm:$0xff] %vm264_vm3, %v11518_v32 }
  0xd4   : > { %460 = vst.msk [vmem:[#allocation2 + $0x618] sm:$0xff] %vm264_vm3, %v11518_v32 }
  0xd5   : > { %461 = vst.msk [vmem:[#allocation2 + $0x620] sm:$0xff] %vm264_vm3, %v11518_v32 }
  0xd6   : > { %462 = vst.msk [vmem:[#allocation2 + $0x628] sm:$0xff] %vm264_vm3, %v11518_v32 }
  0xd7   : > { %463 = vst.msk [vmem:[#allocation2 + $0x630] sm:$0xff] %vm264_vm3, %v11518_v32 }
  0xd8   : > { %464 = vst.msk [vmem:[#allocation2 + $0x638] sm:$0xff] %vm264_vm3, %v11518_v32 }
  0xd9   : > { %465 = vst.msk [vmem:[#allocation2 + $0x640] sm:$0xff] %vm264_vm3, %v11518_v32 }
  0xda   : > { %466 = vst.msk [vmem:[#allocation2 + $0x648] sm:$0xff] %vm264_vm3, %v11518_v32 }
  0xdb   : > { %467 = vst.msk [vmem:[#allocation2 + $0x650] sm:$0xff] %vm264_vm3, %v11518_v32 }
  0xdc   : > { %468 = vst.msk [vmem:[#allocation2 + $0x658] sm:$0xff] %vm264_vm3, %v11518_v32 }
  0xdd   : > { %469 = vst.msk [vmem:[#allocation2 + $0x660] sm:$0xff] %vm264_vm3, %v11518_v32 }
  0xde   : > { %470 = vst.msk [vmem:[#allocation2 + $0x668] sm:$0xff] %vm264_vm3, %v11518_v32 }
  0xdf   : > { %471 = vst.msk [vmem:[#allocation2 + $0x670] sm:$0xff] %vm264_vm3, %v11518_v32 }
  0xe0   : > { %472 = vst.msk [vmem:[#allocation2 + $0x678] sm:$0xff] %vm264_vm3, %v11518_v32 }
  0xe1   : > { %473 = vst.msk [vmem:[#allocation2 + $0x680] sm:$0xff] %vm264_vm3, %v11518_v32 }
  0xe2   : > { %474 = vst.msk [vmem:[#allocation2 + $0x688] sm:$0xff] %vm264_vm3, %v11518_v32 }
  0xe3   : > { %475 = vst.msk [vmem:[#allocation2 + $0x690] sm:$0xff] %vm264_vm3, %v11518_v32 }
  0xe4   : > { %476 = vst.msk [vmem:[#allocation2 + $0x698] sm:$0xff] %vm264_vm3, %v11518_v32 }
  0xe5   : > { %477 = vst.msk [vmem:[#allocation2 + $0x6a0] sm:$0xff] %vm264_vm3, %v11518_v32 }
  0xe6   : > { %478 = vst.msk [vmem:[#allocation2 + $0x6a8] sm:$0xff] %vm264_vm3, %v11518_v32 }
  0xe7   : > { %479 = vst.msk [vmem:[#allocation2 + $0x6b0] sm:$0xff] %vm264_vm3, %v11518_v32 }
  0xe8   : > { %480 = vst.msk [vmem:[#allocation2 + $0x6b8] sm:$0xff] %vm264_vm3, %v11518_v32 }
  0xe9   : > { %481 = vst.msk [vmem:[#allocation2 + $0x6c0] sm:$0xff] %vm264_vm3, %v11518_v32 }
  0xea   : > { %482 = vst.msk [vmem:[#allocation2 + $0x6c8] sm:$0xff] %vm264_vm3, %v11518_v32 }
  0xeb   : > { %483 = vst.msk [vmem:[#allocation2 + $0x6d0] sm:$0xff] %vm264_vm3, %v11518_v32 }
  0xec   : > { %484 = vst.msk [vmem:[#allocation2 + $0x6d8] sm:$0xff] %vm264_vm3, %v11518_v32 }
  0xed   : > { %485 = vst.msk [vmem:[#allocation2 + $0x6e0] sm:$0xff] %vm264_vm3, %v11518_v32 }
  0xee   : > { %486 = vst.msk [vmem:[#allocation2 + $0x6e8] sm:$0xff] %vm264_vm3, %v11518_v32 }
  0xef   : > { %487 = vst.msk [vmem:[#allocation2 + $0x6f0] sm:$0xff] %vm264_vm3, %v11518_v32 }
  0xf0   : > { %488 = vst.msk [vmem:[#allocation2 + $0x6f8] sm:$0xff] %vm264_vm3, %v11518_v32 }
  0xf1   : > { %489 = vst.msk [vmem:[#allocation2 + $0x700] sm:$0xff] %vm264_vm3, %v11518_v32 }
  0xf2   : > { %490 = vst.msk [vmem:[#allocation2 + $0x708] sm:$0xff] %vm264_vm3, %v11518_v32 }
  0xf3   : > { %491 = vst.msk [vmem:[#allocation2 + $0x710] sm:$0xff] %vm264_vm3, %v11518_v32 }
  0xf4   : > { %492 = vst.msk [vmem:[#allocation2 + $0x718] sm:$0xff] %vm264_vm3, %v11518_v32 }
  0xf5   : > { %493 = vst.msk [vmem:[#allocation2 + $0x720] sm:$0xff] %vm264_vm3, %v11518_v32 }
  0xf6   : > { %494 = vst.msk [vmem:[#allocation2 + $0x728] sm:$0xff] %vm264_vm3, %v11518_v32 }
  0xf7   : > { %495 = vst.msk [vmem:[#allocation2 + $0x730] sm:$0xff] %vm264_vm3, %v11518_v32 }
  0xf8   : > { %496 = vst.msk [vmem:[#allocation2 + $0x738] sm:$0xff] %vm264_vm3, %v11518_v32 }
  0xf9   : > { %497 = vst.msk [vmem:[#allocation2 + $0x740] sm:$0xff] %vm264_vm3, %v11518_v32 }
  0xfa   : > { %498 = vst.msk [vmem:[#allocation2 + $0x748] sm:$0xff] %vm264_vm3, %v11518_v32 }
  0xfb   : > { %499 = vst.msk [vmem:[#allocation2 + $0x750] sm:$0xff] %vm264_vm3, %v11518_v32 }
  0xfc   : > { %500 = vst.msk [vmem:[#allocation2 + $0x758] sm:$0xff] %vm264_vm3, %v11518_v32 }
  0xfd   : > { %501 = vst.msk [vmem:[#allocation2 + $0x760] sm:$0xff] %vm264_vm3, %v11518_v32 }
  0xfe   : > { %502 = vst.msk [vmem:[#allocation2 + $0x768] sm:$0xff] %vm264_vm3, %v11518_v32 }
  0xff   : > { %503 = vst.msk [vmem:[#allocation2 + $0x770] sm:$0xff] %vm264_vm3, %v11518_v32 }
 0x100   : > { %504 = vst.msk [vmem:[#allocation2 + $0x778] sm:$0xff] %vm264_vm3, %v11518_v32 }
 0x101   : > { %505 = vst.msk [vmem:[#allocation2 + $0x780] sm:$0xff] %vm264_vm3, %v11518_v32 }
 0x102   : > { %506 = vst.msk [vmem:[#allocation2 + $0x788] sm:$0xff] %vm264_vm3, %v11518_v32 }
 0x103   : > { %507 = vst.msk [vmem:[#allocation2 + $0x790] sm:$0xff] %vm264_vm3, %v11518_v32 }
 0x104   : > { %508 = vst.msk [vmem:[#allocation2 + $0x798] sm:$0xff] %vm264_vm3, %v11518_v32 }
 0x105   : > { %509 = vst.msk [vmem:[#allocation2 + $0x7a0] sm:$0xff] %vm264_vm3, %v11518_v32 }
 0x106   : > { %510 = vst.msk [vmem:[#allocation2 + $0x7a8] sm:$0xff] %vm264_vm3, %v11518_v32 }
 0x107   : > { %511 = vst.msk [vmem:[#allocation2 + $0x7b0] sm:$0xff] %vm264_vm3, %v11518_v32 }
 0x108   : > { %512 = vst.msk [vmem:[#allocation2 + $0x7b8] sm:$0xff] %vm264_vm3, %v11518_v32 }
 0x109   : > { %513 = vst.msk [vmem:[#allocation2 + $0x7c0] sm:$0xff] %vm264_vm3, %v11518_v32 }
 0x10a   : > { %514 = vst.msk [vmem:[#allocation2 + $0x7c8] sm:$0xff] %vm264_vm3, %v11518_v32 }
 0x10b   : > { %515 = vst.msk [vmem:[#allocation2 + $0x7d0] sm:$0xff] %vm264_vm3, %v11518_v32 }
 0x10c   : > { %516 = vst.msk [vmem:[#allocation2 + $0x7d8] sm:$0xff] %vm264_vm3, %v11518_v32 }
 0x10d   : > { %517 = vst.msk [vmem:[#allocation2 + $0x7e0] sm:$0xff] %vm264_vm3, %v11518_v32 }
 0x10e   : > { %518 = vst.msk [vmem:[#allocation2 + $0x7e8] sm:$0xff] %vm264_vm3, %v11518_v32 }
 0x10f   : > { %519 = vst.msk [vmem:[#allocation2 + $0x7f0] sm:$0xff] %vm264_vm3, %v11518_v32 }
 0x110   : > { %520 = vst.msk [vmem:[#allocation2 + $0x7f8] sm:$0xff] %vm264_vm3, %v11518_v32 }
 0x111   : > { %521 = vst.msk [vmem:[#allocation2 + $0x800] sm:$0xff] %vm264_vm3, %v11518_v32 }
 0x112   : > { %522 = vst.msk [vmem:[#allocation2 + $0x808] sm:$0xff] %vm264_vm3, %v11518_v32 }
 0x113   : > { %523 = vst.msk [vmem:[#allocation2 + $0x810] sm:$0xff] %vm264_vm3, %v11518_v32 }
 0x114   : > { %524 = vst.msk [vmem:[#allocation2 + $0x818] sm:$0xff] %vm264_vm3, %v11518_v32 }
 0x115   : > { %525 = vst.msk [vmem:[#allocation2 + $0x820] sm:$0xff] %vm264_vm3, %v11518_v32 }
 0x116   : > { %526 = vst.msk [vmem:[#allocation2 + $0x828] sm:$0xff] %vm264_vm3, %v11518_v32 }
 0x117   : > { %527 = vst.msk [vmem:[#allocation2 + $0x830] sm:$0xff] %vm264_vm3, %v11518_v32 }
 0x118   : > { %528 = vst.msk [vmem:[#allocation2 + $0x838] sm:$0xff] %vm264_vm3, %v11518_v32  ;;  %v1033_v10 = vld [vmem:[#allocation2 + $0x800] sm:$0xff] }
 0x119   : > { %529 = vst.msk [vmem:[#allocation2 + $0x840] sm:$0xff] %vm264_vm3, %v11518_v32  ;;  %v5417_v20 = vadd.f32 %v12623_v55, %v1033_v10  ;;  %v1034_v23 = vld [vmem:[#allocation2 + $0x808] sm:$0xff] }
 0x11a   : > { %530 = vst.msk [vmem:[#allocation2 + $0x848] sm:$0xff] %vm264_vm3, %v11518_v32  ;;  %v5418_v30 = vadd.f32 %v12647_v59, %v1034_v23  ;;  %v1035_v35 = vld [vmem:[#allocation2 + $0x810] sm:$0xff] }
 0x11b   : > { %531 = vst.msk [vmem:[#allocation2 + $0x850] sm:$0xff] %vm264_vm3, %v11518_v32  ;;  %v5419_v40 = vadd.f32 %v12679_v3, %v1035_v35  ;;  %v1036_v43 = vld [vmem:[#allocation2 + $0x818] sm:$0xff]  ;;  %v12808_v35 = vpop.f32.mrf.mxu2 }
 0x11c   : > { %532 = vst.msk [vmem:[#allocation2 + $0x858] sm:$0xff] %vm264_vm3, %v11518_v32  ;;  %v11201_v3 = vld [vmem:[%s11574_s26 + $0x58] sm:$0xff]  ;;  %v1037_v11 = vld [vmem:[#allocation2 + $0x820] sm:$0xff] }
 0x11d   : > { %533 = vst.msk [vmem:[#allocation2 + $0x860] sm:$0xff] %vm264_vm3, %v11518_v32  ;;  %10943 = vmatmul.msk.bf16.gmra.mxu0 %vm3096_vm2, %v11201_v3 }
 0x11e   : > { %534 = vst.msk [vmem:[#allocation2 + $0x868] sm:$0xff] %vm264_vm3, %v11518_v32 }
 0x11f   : > { %535 = vst.msk [vmem:[#allocation2 + $0x870] sm:$0xff] %vm264_vm3, %v11518_v32 }
 0x120   : > { %536 = vst.msk [vmem:[#allocation2 + $0x878] sm:$0xff] %vm264_vm3, %v11518_v32 }
 0x121   : > { %537 = vst.msk [vmem:[#allocation2 + $0x880] sm:$0xff] %vm264_vm3, %v11518_v32 }
 0x122   : > { %538 = vst.msk [vmem:[#allocation2 + $0x888] sm:$0xff] %vm264_vm3, %v11518_v32 }
 0x123   : > { %539 = vst.msk [vmem:[#allocation2 + $0x890] sm:$0xff] %vm264_vm3, %v11518_v32 }
 0x124   : > { %540 = vst.msk [vmem:[#allocation2 + $0x898] sm:$0xff] %vm264_vm3, %v11518_v32 }
 0x125   : > { %541 = vst.msk [vmem:[#allocation2 + $0x8a0] sm:$0xff] %vm264_vm3, %v11518_v32 }
 0x126   : > { %542 = vst.msk [vmem:[#allocation2 + $0x8a8] sm:$0xff] %vm264_vm3, %v11518_v32 }
 0x127   : > { %543 = vst.msk [vmem:[#allocation2 + $0x8b0] sm:$0xff] %vm264_vm3, %v11518_v32 }
 0x128   : > { %544 = vst.msk [vmem:[#allocation2 + $0x8b8] sm:$0xff] %vm264_vm3, %v11518_v32 }
 0x129   : > { %545 = vst.msk [vmem:[#allocation2 + $0x8c0] sm:$0xff] %vm264_vm3, %v11518_v32 }
 0x12a   : > { %546 = vst.msk [vmem:[#allocation2 + $0x8c8] sm:$0xff] %vm264_vm3, %v11518_v32 }
 0x12b   : > { %547 = vst.msk [vmem:[#allocation2 + $0x8d0] sm:$0xff] %vm264_vm3, %v11518_v32 }
 0x12c   : > { %548 = vst.msk [vmem:[#allocation2 + $0x8d8] sm:$0xff] %vm264_vm3, %v11518_v32 }
 0x12d   : > { %549 = vst.msk [vmem:[#allocation2 + $0x8e0] sm:$0xff] %vm264_vm3, %v11518_v32 }
 0x12e   : > { %550 = vst.msk [vmem:[#allocation2 + $0x8e8] sm:$0xff] %vm264_vm3, %v11518_v32 }
 0x12f   : > { %551 = vst.msk [vmem:[#allocation2 + $0x8f0] sm:$0xff] %vm264_vm3, %v11518_v32 }
 0x130   : > { %552 = vst.msk [vmem:[#allocation2 + $0x8f8] sm:$0xff] %vm264_vm3, %v11518_v32 }
 0x131   : > { %553 = vst.msk [vmem:[#allocation2 + $0x900] sm:$0xff] %vm264_vm3, %v11518_v32 }
 0x132   : > { %554 = vst.msk [vmem:[#allocation2 + $0x908] sm:$0xff] %vm264_vm3, %v11518_v32 }
 0x133   : > { %555 = vst.msk [vmem:[#allocation2 + $0x910] sm:$0xff] %vm264_vm3, %v11518_v32 }
 0x134   : > { %556 = vst.msk [vmem:[#allocation2 + $0x918] sm:$0xff] %vm264_vm3, %v11518_v32 }
 0x135   : > { %557 = vst.msk [vmem:[#allocation2 + $0x920] sm:$0xff] %vm264_vm3, %v11518_v32 }
 0x136   : > { %558 = vst.msk [vmem:[#allocation2 + $0x928] sm:$0xff] %vm264_vm3, %v11518_v32 }
 0x137   : > { %559 = vst.msk [vmem:[#allocation2 + $0x930] sm:$0xff] %vm264_vm3, %v11518_v32 }
 0x138   : > { %560 = vst.msk [vmem:[#allocation2 + $0x938] sm:$0xff] %vm264_vm3, %v11518_v32 }
 0x139   : > { %561 = vst.msk [vmem:[#allocation2 + $0x940] sm:$0xff] %vm264_vm3, %v11518_v32 }
 0x13a   : > { %562 = vst.msk [vmem:[#allocation2 + $0x948] sm:$0xff] %vm264_vm3, %v11518_v32 }
 0x13b   : > { %563 = vst.msk [vmem:[#allocation2 + $0x950] sm:$0xff] %vm264_vm3, %v11518_v32 }
 0x13c   : > { %564 = vst.msk [vmem:[#allocation2 + $0x958] sm:$0xff] %vm264_vm3, %v11518_v32 }
 0x13d   : > { %565 = vst.msk [vmem:[#allocation2 + $0x960] sm:$0xff] %vm264_vm3, %v11518_v32 }
 0x13e   : > { %566 = vst.msk [vmem:[#allocation2 + $0x968] sm:$0xff] %vm264_vm3, %v11518_v32 }
 0x13f   : > { %567 = vst.msk [vmem:[#allocation2 + $0x970] sm:$0xff] %vm264_vm3, %v11518_v32 }
 0x140   : > { %568 = vst.msk [vmem:[#allocation2 + $0x978] sm:$0xff] %vm264_vm3, %v11518_v32 }
 0x141   : > { %569 = vst.msk [vmem:[#allocation2 + $0x980] sm:$0xff] %vm264_vm3, %v11518_v32 }
 0x142   : > { %570 = vst.msk [vmem:[#allocation2 + $0x988] sm:$0xff] %vm264_vm3, %v11518_v32 }
 0x143   : > { %571 = vst.msk [vmem:[#allocation2 + $0x990] sm:$0xff] %vm264_vm3, %v11518_v32 }
 0x144   : > { %572 = vst.msk [vmem:[#allocation2 + $0x998] sm:$0xff] %vm264_vm3, %v11518_v32 }
 0x145   : > { %573 = vst.msk [vmem:[#allocation2 + $0x9a0] sm:$0xff] %vm264_vm3, %v11518_v32 }
 0x146   : > { %574 = vst.msk [vmem:[#allocation2 + $0x9a8] sm:$0xff] %vm264_vm3, %v11518_v32 }
 0x147   : > { %575 = vst.msk [vmem:[#allocation2 + $0x9b0] sm:$0xff] %vm264_vm3, %v11518_v32 }
 0x148   : > { %576 = vst.msk [vmem:[#allocation2 + $0x9b8] sm:$0xff] %vm264_vm3, %v11518_v32 }
 0x149   : > { %577 = vst.msk [vmem:[#allocation2 + $0x9c0] sm:$0xff] %vm264_vm3, %v11518_v32 }
 0x14a   : > { %578 = vst.msk [vmem:[#allocation2 + $0x9c8] sm:$0xff] %vm264_vm3, %v11518_v32 }
 0x14b   : > { %579 = vst.msk [vmem:[#allocation2 + $0x9d0] sm:$0xff] %vm264_vm3, %v11518_v32 }
 0x14c   : > { %580 = vst.msk [vmem:[#allocation2 + $0x9d8] sm:$0xff] %vm264_vm3, %v11518_v32 }
 0x14d   : > { %581 = vst.msk [vmem:[#allocation2 + $0x9e0] sm:$0xff] %vm264_vm3, %v11518_v32 }
 0x14e   : > { %582 = vst.msk [vmem:[#allocation2 + $0x9e8] sm:$0xff] %vm264_vm3, %v11518_v32 }
 0x14f   : > { %583 = vst.msk [vmem:[#allocation2 + $0x9f0] sm:$0xff] %vm264_vm3, %v11518_v32 }
 0x150   : > { %584 = vst.msk [vmem:[#allocation2 + $0x9f8] sm:$0xff] %vm264_vm3, %v11518_v32 }
 0x151   : > { %585 = vst.msk [vmem:[#allocation2 + $0xa00] sm:$0xff] %vm264_vm3, %v11518_v32 }
 0x152   : > { %586 = vst.msk [vmem:[#allocation2 + $0xa08] sm:$0xff] %vm264_vm3, %v11518_v32 }
 0x153   : > { %587 = vst.msk [vmem:[#allocation2 + $0xa10] sm:$0xff] %vm264_vm3, %v11518_v32 }
 0x154   : > { %588 = vst.msk [vmem:[#allocation2 + $0xa18] sm:$0xff] %vm264_vm3, %v11518_v32 }
 0x155   : > { %589 = vst.msk [vmem:[#allocation2 + $0xa20] sm:$0xff] %vm264_vm3, %v11518_v32 }
 0x156   : > { %590 = vst.msk [vmem:[#allocation2 + $0xa28] sm:$0xff] %vm264_vm3, %v11518_v32 }
 0x157   : > { %591 = vst.msk [vmem:[#allocation2 + $0xa30] sm:$0xff] %vm264_vm3, %v11518_v32 }
 0x158   : > { %592 = vst.msk [vmem:[#allocation2 + $0xa38] sm:$0xff] %vm264_vm3, %v11518_v32 }
 0x159   : > { %593 = vst.msk [vmem:[#allocation2 + $0xa40] sm:$0xff] %vm264_vm3, %v11518_v32 }
 0x15a   : > { %594 = vst.msk [vmem:[#allocation2 + $0xa48] sm:$0xff] %vm264_vm3, %v11518_v32 }
 0x15b   : > { %595 = vst.msk [vmem:[#allocation2 + $0xa50] sm:$0xff] %vm264_vm3, %v11518_v32 }
 0x15c   : > { %596 = vst.msk [vmem:[#allocation2 + $0xa58] sm:$0xff] %vm264_vm3, %v11518_v32 }
 0x15d   : > { %597 = vst.msk [vmem:[#allocation2 + $0xa60] sm:$0xff] %vm264_vm3, %v11518_v32 }
 0x15e   : > { %598 = vst.msk [vmem:[#allocation2 + $0xa68] sm:$0xff] %vm264_vm3, %v11518_v32 }
 0x15f   : > { %599 = vst.msk [vmem:[#allocation2 + $0xa70] sm:$0xff] %vm264_vm3, %v11518_v32 }
 0x160   : > { %600 = vst.msk [vmem:[#allocation2 + $0xa78] sm:$0xff] %vm264_vm3, %v11518_v32 }
 0x161   : > { %601 = vst.msk [vmem:[#allocation2 + $0xa80] sm:$0xff] %vm264_vm3, %v11518_v32 }
 0x162   : > { %602 = vst.msk [vmem:[#allocation2 + $0xa88] sm:$0xff] %vm264_vm3, %v11518_v32 }
 0x163   : > { %603 = vst.msk [vmem:[#allocation2 + $0xa90] sm:$0xff] %vm264_vm3, %v11518_v32 }
 0x164   : > { %604 = vst.msk [vmem:[#allocation2 + $0xa98] sm:$0xff] %vm264_vm3, %v11518_v32 }
 0x165   : > { %605 = vst.msk [vmem:[#allocation2 + $0xaa0] sm:$0xff] %vm264_vm3, %v11518_v32 }
 0x166   : > { %606 = vst.msk [vmem:[#allocation2 + $0xaa8] sm:$0xff] %vm264_vm3, %v11518_v32 }
 0x167   : > { %607 = vst.msk [vmem:[#allocation2 + $0xab0] sm:$0xff] %vm264_vm3, %v11518_v32 }
 0x168   : > { %608 = vst.msk [vmem:[#allocation2 + $0xab8] sm:$0xff] %vm264_vm3, %v11518_v32 }
 0x169   : > { %609 = vst.msk [vmem:[#allocation2 + $0xac0] sm:$0xff] %vm264_vm3, %v11518_v32 }
 0x16a   : > { %610 = vst.msk [vmem:[#allocation2 + $0xac8] sm:$0xff] %vm264_vm3, %v11518_v32 }
 0x16b   : > { %611 = vst.msk [vmem:[#allocation2 + $0xad0] sm:$0xff] %vm264_vm3, %v11518_v32 }
 0x16c   : > { %612 = vst.msk [vmem:[#allocation2 + $0xad8] sm:$0xff] %vm264_vm3, %v11518_v32 }
 0x16d   : > { %613 = vst.msk [vmem:[#allocation2 + $0xae0] sm:$0xff] %vm264_vm3, %v11518_v32 }
 0x16e   : > { %614 = vst.msk [vmem:[#allocation2 + $0xae8] sm:$0xff] %vm264_vm3, %v11518_v32 }
 0x16f   : > { %615 = vst.msk [vmem:[#allocation2 + $0xaf0] sm:$0xff] %vm264_vm3, %v11518_v32 }
 0x170   : > { %616 = vst.msk [vmem:[#allocation2 + $0xaf8] sm:$0xff] %vm264_vm3, %v11518_v32 }
 0x171   : > { %617 = vst.msk [vmem:[#allocation2 + $0xb00] sm:$0xff] %vm264_vm3, %v11518_v32 }
 0x172   : > { %618 = vst.msk [vmem:[#allocation2 + $0xb08] sm:$0xff] %vm264_vm3, %v11518_v32 }
 0x173   : > { %619 = vst.msk [vmem:[#allocation2 + $0xb10] sm:$0xff] %vm264_vm3, %v11518_v32 }
 0x174   : > { %620 = vst.msk [vmem:[#allocation2 + $0xb18] sm:$0xff] %vm264_vm3, %v11518_v32 }
 0x175   : > { %621 = vst.msk [vmem:[#allocation2 + $0xb20] sm:$0xff] %vm264_vm3, %v11518_v32 }
 0x176   : > { %622 = vst.msk [vmem:[#allocation2 + $0xb28] sm:$0xff] %vm264_vm3, %v11518_v32 }
 0x177   : > { %623 = vst.msk [vmem:[#allocation2 + $0xb30] sm:$0xff] %vm264_vm3, %v11518_v32 }
 0x178   : > { %624 = vst.msk [vmem:[#allocation2 + $0xb38] sm:$0xff] %vm264_vm3, %v11518_v32 }
 0x179   : > { %625 = vst.msk [vmem:[#allocation2 + $0xb40] sm:$0xff] %vm264_vm3, %v11518_v32 }
 0x17a   : > { %626 = vst.msk [vmem:[#allocation2 + $0xb48] sm:$0xff] %vm264_vm3, %v11518_v32 }
 0x17b   : > { %627 = vst.msk [vmem:[#allocation2 + $0xb50] sm:$0xff] %vm264_vm3, %v11518_v32 }
 0x17c   : > { %628 = vst.msk [vmem:[#allocation2 + $0xb58] sm:$0xff] %vm264_vm3, %v11518_v32 }
 0x17d   : > { %629 = vst.msk [vmem:[#allocation2 + $0xb60] sm:$0xff] %vm264_vm3, %v11518_v32 }
 0x17e   : > { %630 = vst.msk [vmem:[#allocation2 + $0xb68] sm:$0xff] %vm264_vm3, %v11518_v32 }
 0x17f   : > { %631 = vst.msk [vmem:[#allocation2 + $0xb70] sm:$0xff] %vm264_vm3, %v11518_v32 }
 0x180   : > { %632 = vst.msk [vmem:[#allocation2 + $0xb78] sm:$0xff] %vm264_vm3, %v11518_v32 }
 0x181   : > { %633 = vst.msk [vmem:[#allocation2 + $0xb80] sm:$0xff] %vm264_vm3, %v11518_v32 }
 0x182   : > { %634 = vst.msk [vmem:[#allocation2 + $0xb88] sm:$0xff] %vm264_vm3, %v11518_v32 }
 0x183   : > { %635 = vst.msk [vmem:[#allocation2 + $0xb90] sm:$0xff] %vm264_vm3, %v11518_v32 }
 0x184   : > { %636 = vst.msk [vmem:[#allocation2 + $0xb98] sm:$0xff] %vm264_vm3, %v11518_v32 }
 0x185   : > { %637 = vst.msk [vmem:[#allocation2 + $0xba0] sm:$0xff] %vm264_vm3, %v11518_v32 }
 0x186   : > { %638 = vst.msk [vmem:[#allocation2 + $0xba8] sm:$0xff] %vm264_vm3, %v11518_v32 }
 0x187   : > { %639 = vst.msk [vmem:[#allocation2 + $0xbb0] sm:$0xff] %vm264_vm3, %v11518_v32 }
 0x188   : > { %640 = vst.msk [vmem:[#allocation2 + $0xbb8] sm:$0xff] %vm264_vm3, %v11518_v32 }
 0x189   : > { %641 = vst.msk [vmem:[#allocation2 + $0xbc0] sm:$0xff] %vm264_vm3, %v11518_v32 }
 0x18a   : > { %642 = vst.msk [vmem:[#allocation2 + $0xbc8] sm:$0xff] %vm264_vm3, %v11518_v32 }
 0x18b   : > { %643 = vst.msk [vmem:[#allocation2 + $0xbd0] sm:$0xff] %vm264_vm3, %v11518_v32 }
 0x18c   : > { %644 = vst.msk [vmem:[#allocation2 + $0xbd8] sm:$0xff] %vm264_vm3, %v11518_v32 }
 0x18d   : > { %645 = vst.msk [vmem:[#allocation2 + $0xbe0] sm:$0xff] %vm264_vm3, %v11518_v32 }
 0x18e   : > { %646 = vst.msk [vmem:[#allocation2 + $0xbe8] sm:$0xff] %vm264_vm3, %v11518_v32 }
 0x18f   : > { %647 = vst.msk [vmem:[#allocation2 + $0xbf0] sm:$0xff] %vm264_vm3, %v11518_v32 }
 0x190   : > { %648 = vst.msk [vmem:[#allocation2 + $0xbf8] sm:$0xff] %vm264_vm3, %v11518_v32 }
 0x191   : > { %649 = vst.msk [vmem:[#allocation2 + $0xc00] sm:$0xff] %vm264_vm3, %v11518_v32 }
 0x192   : > { %650 = vst.msk [vmem:[#allocation2 + $0xc08] sm:$0xff] %vm264_vm3, %v11518_v32 }
 0x193   : > { %651 = vst.msk [vmem:[#allocation2 + $0xc10] sm:$0xff] %vm264_vm3, %v11518_v32 }
 0x194   : > { %652 = vst.msk [vmem:[#allocation2 + $0xc18] sm:$0xff] %vm264_vm3, %v11518_v32 }
 0x195   : > { %653 = vst.msk [vmem:[#allocation2 + $0xc20] sm:$0xff] %vm264_vm3, %v11518_v32 }
 0x196   : > { %654 = vst.msk [vmem:[#allocation2 + $0xc28] sm:$0xff] %vm264_vm3, %v11518_v32 }
 0x197   : > { %655 = vst.msk [vmem:[#allocation2 + $0xc30] sm:$0xff] %vm264_vm3, %v11518_v32 }
 0x198   : > { %656 = vst.msk [vmem:[#allocation2 + $0xc38] sm:$0xff] %vm264_vm3, %v11518_v32  ;;  %v1161_v16 = vld [vmem:[#allocation2 + $0xc00] sm:$0xff] }
 0x199   : > { %657 = vst.msk [vmem:[#allocation2 + $0xc40] sm:$0xff] %vm264_vm3, %v11518_v32  ;;  %v5545_v22 = vadd.f32 %v12625_v56, %v1161_v16  ;;  %v1162_v25 = vld [vmem:[#allocation2 + $0xc08] sm:$0xff]  ;;  %v5420_v56 = vadd.f32 %v12703_v7, %v1036_v43 }
 0x19a   : > { %658 = vst.msk [vmem:[#allocation2 + $0xc48] sm:$0xff] %vm264_vm3, %v11518_v32  ;;  %v5546_v34 = vadd.f32 %v12649_v60, %v1162_v25  ;;  %v1163_v37 = vld [vmem:[#allocation2 + $0xc10] sm:$0xff] }
 0x19b   : > { %659 = vst.msk [vmem:[#allocation2 + $0xc50] sm:$0xff] %vm264_vm3, %v11518_v32  ;;  %v5547_v42 = vadd.f32 %v12681_v4, %v1163_v37  ;;  %v1164_v46 = vld [vmem:[#allocation2 + $0xc18] sm:$0xff] }
 0x19c   : > { %660 = vst.msk [vmem:[#allocation2 + $0xc58] sm:$0xff] %vm264_vm3, %v11518_v32  ;;  %v5548_v60 = vadd.f32 %v12705_v8, %v1164_v46  ;;  %v11265_v8 = vld [vmem:[%s11574_s26 + $0x258] sm:$0xff] }
 0x19d   : > { %661 = vst.msk [vmem:[#allocation2 + $0xc60] sm:$0xff] %vm264_vm3, %v11518_v32  ;;  %11007 = vmatmul.msk.bf16.gmra.mxu1 %vm3096_vm2, %v11265_v8 }
 0x19e   : > { %662 = vst.msk [vmem:[#allocation2 + $0xc68] sm:$0xff] %vm264_vm3, %v11518_v32 }
 0x19f   : > { %663 = vst.msk [vmem:[#allocation2 + $0xc70] sm:$0xff] %vm264_vm3, %v11518_v32 }
 0x1a0   : > { %664 = vst.msk [vmem:[#allocation2 + $0xc78] sm:$0xff] %vm264_vm3, %v11518_v32 }
 0x1a1   : > { %665 = vst.msk [vmem:[#allocation2 + $0xc80] sm:$0xff] %vm264_vm3, %v11518_v32 }
 0x1a2   : > { %666 = vst.msk [vmem:[#allocation2 + $0xc88] sm:$0xff] %vm264_vm3, %v11518_v32 }
 0x1a3   : > { %667 = vst.msk [vmem:[#allocation2 + $0xc90] sm:$0xff] %vm264_vm3, %v11518_v32 }
 0x1a4   : > { %668 = vst.msk [vmem:[#allocation2 + $0xc98] sm:$0xff] %vm264_vm3, %v11518_v32 }
 0x1a5   : > { %669 = vst.msk [vmem:[#allocation2 + $0xca0] sm:$0xff] %vm264_vm3, %v11518_v32 }
 0x1a6   : > { %670 = vst.msk [vmem:[#allocation2 + $0xca8] sm:$0xff] %vm264_vm3, %v11518_v32 }
 0x1a7   : > { %671 = vst.msk [vmem:[#allocation2 + $0xcb0] sm:$0xff] %vm264_vm3, %v11518_v32 }
 0x1a8   : > { %672 = vst.msk [vmem:[#allocation2 + $0xcb8] sm:$0xff] %vm264_vm3, %v11518_v32 }
 0x1a9   : > { %673 = vst.msk [vmem:[#allocation2 + $0xcc0] sm:$0xff] %vm264_vm3, %v11518_v32 }
 0x1aa   : > { %674 = vst.msk [vmem:[#allocation2 + $0xcc8] sm:$0xff] %vm264_vm3, %v11518_v32 }
 0x1ab   : > { %675 = vst.msk [vmem:[#allocation2 + $0xcd0] sm:$0xff] %vm264_vm3, %v11518_v32 }
 0x1ac   : > { %676 = vst.msk [vmem:[#allocation2 + $0xcd8] sm:$0xff] %vm264_vm3, %v11518_v32 }
 0x1ad   : > { %677 = vst.msk [vmem:[#allocation2 + $0xce0] sm:$0xff] %vm264_vm3, %v11518_v32 }
 0x1ae   : > { %678 = vst.msk [vmem:[#allocation2 + $0xce8] sm:$0xff] %vm264_vm3, %v11518_v32 }
 0x1af   : > { %679 = vst.msk [vmem:[#allocation2 + $0xcf0] sm:$0xff] %vm264_vm3, %v11518_v32 }
 0x1b0   : > { %680 = vst.msk [vmem:[#allocation2 + $0xcf8] sm:$0xff] %vm264_vm3, %v11518_v32 }
 0x1b1   : > { %681 = vst.msk [vmem:[#allocation2 + $0xd00] sm:$0xff] %vm264_vm3, %v11518_v32 }
 0x1b2   : > { %682 = vst.msk [vmem:[#allocation2 + $0xd08] sm:$0xff] %vm264_vm3, %v11518_v32 }
 0x1b3   : > { %683 = vst.msk [vmem:[#allocation2 + $0xd10] sm:$0xff] %vm264_vm3, %v11518_v32 }
 0x1b4   : > { %684 = vst.msk [vmem:[#allocation2 + $0xd18] sm:$0xff] %vm264_vm3, %v11518_v32 }
 0x1b5   : > { %685 = vst.msk [vmem:[#allocation2 + $0xd20] sm:$0xff] %vm264_vm3, %v11518_v32 }
 0x1b6   : > { %686 = vst.msk [vmem:[#allocation2 + $0xd28] sm:$0xff] %vm264_vm3, %v11518_v32 }
 0x1b7   : > { %687 = vst.msk [vmem:[#allocation2 + $0xd30] sm:$0xff] %vm264_vm3, %v11518_v32 }
 0x1b8   : > { %688 = vst.msk [vmem:[#allocation2 + $0xd38] sm:$0xff] %vm264_vm3, %v11518_v32 }
 0x1b9   : > { %689 = vst.msk [vmem:[#allocation2 + $0xd40] sm:$0xff] %vm264_vm3, %v11518_v32 }
 0x1ba   : > { %690 = vst.msk [vmem:[#allocation2 + $0xd48] sm:$0xff] %vm264_vm3, %v11518_v32 }
 0x1bb   : > { %691 = vst.msk [vmem:[#allocation2 + $0xd50] sm:$0xff] %vm264_vm3, %v11518_v32 }
 0x1bc   : > { %692 = vst.msk [vmem:[#allocation2 + $0xd58] sm:$0xff] %vm264_vm3, %v11518_v32 }
 0x1bd   : > { %693 = vst.msk [vmem:[#allocation2 + $0xd60] sm:$0xff] %vm264_vm3, %v11518_v32 }
 0x1be   : > { %694 = vst.msk [vmem:[#allocation2 + $0xd68] sm:$0xff] %vm264_vm3, %v11518_v32 }
 0x1bf   : > { %695 = vst.msk [vmem:[#allocation2 + $0xd70] sm:$0xff] %vm264_vm3, %v11518_v32 }
 0x1c0   : > { %696 = vst.msk [vmem:[#allocation2 + $0xd78] sm:$0xff] %vm264_vm3, %v11518_v32 }
 0x1c1   : > { %697 = vst.msk [vmem:[#allocation2 + $0xd80] sm:$0xff] %vm264_vm3, %v11518_v32 }
 0x1c2   : > { %698 = vst.msk [vmem:[#allocation2 + $0xd88] sm:$0xff] %vm264_vm3, %v11518_v32 }
 0x1c3   : > { %699 = vst.msk [vmem:[#allocation2 + $0xd90] sm:$0xff] %vm264_vm3, %v11518_v32 }
 0x1c4   : > { %700 = vst.msk [vmem:[#allocation2 + $0xd98] sm:$0xff] %vm264_vm3, %v11518_v32 }
 0x1c5   : > { %701 = vst.msk [vmem:[#allocation2 + $0xda0] sm:$0xff] %vm264_vm3, %v11518_v32 }
 0x1c6   : > { %702 = vst.msk [vmem:[#allocation2 + $0xda8] sm:$0xff] %vm264_vm3, %v11518_v32 }
 0x1c7   : > { %703 = vst.msk [vmem:[#allocation2 + $0xdb0] sm:$0xff] %vm264_vm3, %v11518_v32 }
 0x1c8   : > { %704 = vst.msk [vmem:[#allocation2 + $0xdb8] sm:$0xff] %vm264_vm3, %v11518_v32 }
 0x1c9   : > { %705 = vst.msk [vmem:[#allocation2 + $0xdc0] sm:$0xff] %vm264_vm3, %v11518_v32 }
 0x1ca   : > { %706 = vst.msk [vmem:[#allocation2 + $0xdc8] sm:$0xff] %vm264_vm3, %v11518_v32 }
 0x1cb   : > { %707 = vst.msk [vmem:[#allocation2 + $0xdd0] sm:$0xff] %vm264_vm3, %v11518_v32 }
 0x1cc   : > { %708 = vst.msk [vmem:[#allocation2 + $0xdd8] sm:$0xff] %vm264_vm3, %v11518_v32 }
 0x1cd   : > { %709 = vst.msk [vmem:[#allocation2 + $0xde0] sm:$0xff] %vm264_vm3, %v11518_v32 }
 0x1ce   : > { %710 = vst.msk [vmem:[#allocation2 + $0xde8] sm:$0xff] %vm264_vm3, %v11518_v32 }
 0x1cf   : > { %711 = vst.msk [vmem:[#allocation2 + $0xdf0] sm:$0xff] %vm264_vm3, %v11518_v32 }
 0x1d0   : > { %712 = vst.msk [vmem:[#allocation2 + $0xdf8] sm:$0xff] %vm264_vm3, %v11518_v32 }
 0x1d1   : > { %713 = vst.msk [vmem:[#allocation2 + $0xe00] sm:$0xff] %vm264_vm3, %v11518_v32 }
 0x1d2   : > { %714 = vst.msk [vmem:[#allocation2 + $0xe08] sm:$0xff] %vm264_vm3, %v11518_v32 }
 0x1d3   : > { %715 = vst.msk [vmem:[#allocation2 + $0xe10] sm:$0xff] %vm264_vm3, %v11518_v32 }
 0x1d4   : > { %716 = vst.msk [vmem:[#allocation2 + $0xe18] sm:$0xff] %vm264_vm3, %v11518_v32 }
 0x1d5   : > { %717 = vst.msk [vmem:[#allocation2 + $0xe20] sm:$0xff] %vm264_vm3, %v11518_v32 }
 0x1d6   : > { %718 = vst.msk [vmem:[#allocation2 + $0xe28] sm:$0xff] %vm264_vm3, %v11518_v32 }
 0x1d7   : > { %719 = vst.msk [vmem:[#allocation2 + $0xe30] sm:$0xff] %vm264_vm3, %v11518_v32 }
 0x1d8   : > { %720 = vst.msk [vmem:[#allocation2 + $0xe38] sm:$0xff] %vm264_vm3, %v11518_v32 }
 0x1d9   : > { %721 = vst.msk [vmem:[#allocation2 + $0xe40] sm:$0xff] %vm264_vm3, %v11518_v32 }
 0x1da   : > { %722 = vst.msk [vmem:[#allocation2 + $0xe48] sm:$0xff] %vm264_vm3, %v11518_v32 }
 0x1db   : > { %723 = vst.msk [vmem:[#allocation2 + $0xe50] sm:$0xff] %vm264_vm3, %v11518_v32 }
 0x1dc   : > { %724 = vst.msk [vmem:[#allocation2 + $0xe58] sm:$0xff] %vm264_vm3, %v11518_v32 }
 0x1dd   : > { %725 = vst.msk [vmem:[#allocation2 + $0xe60] sm:$0xff] %vm264_vm3, %v11518_v32 }
 0x1de   : > { %726 = vst.msk [vmem:[#allocation2 + $0xe68] sm:$0xff] %vm264_vm3, %v11518_v32 }
 0x1df   : > { %727 = vst.msk [vmem:[#allocation2 + $0xe70] sm:$0xff] %vm264_vm3, %v11518_v32 }
 0x1e0   : > { %728 = vst.msk [vmem:[#allocation2 + $0xe78] sm:$0xff] %vm264_vm3, %v11518_v32 }
 0x1e1   : > { %729 = vst.msk [vmem:[#allocation2 + $0xe80] sm:$0xff] %vm264_vm3, %v11518_v32 }
 0x1e2   : > { %730 = vst.msk [vmem:[#allocation2 + $0xe88] sm:$0xff] %vm264_vm3, %v11518_v32 }
 0x1e3   : > { %731 = vst.msk [vmem:[#allocation2 + $0xe90] sm:$0xff] %vm264_vm3, %v11518_v32 }
 0x1e4   : > { %732 = vst.msk [vmem:[#allocation2 + $0xe98] sm:$0xff] %vm264_vm3, %v11518_v32 }
 0x1e5   : > { %733 = vst.msk [vmem:[#allocation2 + $0xea0] sm:$0xff] %vm264_vm3, %v11518_v32 }
 0x1e6   : > { %734 = vst.msk [vmem:[#allocation2 + $0xea8] sm:$0xff] %vm264_vm3, %v11518_v32 }
 0x1e7   : > { %735 = vst.msk [vmem:[#allocation2 + $0xeb0] sm:$0xff] %vm264_vm3, %v11518_v32 }
 0x1e8   : > { %736 = vst.msk [vmem:[#allocation2 + $0xeb8] sm:$0xff] %vm264_vm3, %v11518_v32 }
 0x1e9   : > { %737 = vst.msk [vmem:[#allocation2 + $0xec0] sm:$0xff] %vm264_vm3, %v11518_v32 }
 0x1ea   : > { %738 = vst.msk [vmem:[#allocation2 + $0xec8] sm:$0xff] %vm264_vm3, %v11518_v32 }
 0x1eb   : > { %739 = vst.msk [vmem:[#allocation2 + $0xed0] sm:$0xff] %vm264_vm3, %v11518_v32 }
 0x1ec   : > { %740 = vst.msk [vmem:[#allocation2 + $0xed8] sm:$0xff] %vm264_vm3, %v11518_v32 }
 0x1ed   : > { %741 = vst.msk [vmem:[#allocation2 + $0xee0] sm:$0xff] %vm264_vm3, %v11518_v32 }
 0x1ee   : > { %742 = vst.msk [vmem:[#allocation2 + $0xee8] sm:$0xff] %vm264_vm3, %v11518_v32 }
 0x1ef   : > { %743 = vst.msk [vmem:[#allocation2 + $0xef0] sm:$0xff] %vm264_vm3, %v11518_v32 }
 0x1f0   : > { %744 = vst.msk [vmem:[#allocation2 + $0xef8] sm:$0xff] %vm264_vm3, %v11518_v32 }
 0x1f1   : > { %745 = vst.msk [vmem:[#allocation2 + $0xf00] sm:$0xff] %vm264_vm3, %v11518_v32 }
 0x1f2   : > { %746 = vst.msk [vmem:[#allocation2 + $0xf08] sm:$0xff] %vm264_vm3, %v11518_v32 }
 0x1f3   : > { %747 = vst.msk [vmem:[#allocation2 + $0xf10] sm:$0xff] %vm264_vm3, %v11518_v32 }
 0x1f4   : > { %748 = vst.msk [vmem:[#allocation2 + $0xf18] sm:$0xff] %vm264_vm3, %v11518_v32 }
 0x1f5   : > { %749 = vst.msk [vmem:[#allocation2 + $0xf20] sm:$0xff] %vm264_vm3, %v11518_v32 }
 0x1f6   : > { %750 = vst.msk [vmem:[#allocation2 + $0xf28] sm:$0xff] %vm264_vm3, %v11518_v32 }
 0x1f7   : > { %751 = vst.msk [vmem:[#allocation2 + $0xf30] sm:$0xff] %vm264_vm3, %v11518_v32 }
 0x1f8   : > { %752 = vst.msk [vmem:[#allocation2 + $0xf38] sm:$0xff] %vm264_vm3, %v11518_v32 }
 0x1f9   : > { %753 = vst.msk [vmem:[#allocation2 + $0xf40] sm:$0xff] %vm264_vm3, %v11518_v32 }
 0x1fa   : > { %754 = vst.msk [vmem:[#allocation2 + $0xf48] sm:$0xff] %vm264_vm3, %v11518_v32 }
 0x1fb   : > { %755 = vst.msk [vmem:[#allocation2 + $0xf50] sm:$0xff] %vm264_vm3, %v11518_v32 }
 0x1fc   : > { %756 = vst.msk [vmem:[#allocation2 + $0xf58] sm:$0xff] %vm264_vm3, %v11518_v32 }
 0x1fd   : > { %757 = vst.msk [vmem:[#allocation2 + $0xf60] sm:$0xff] %vm264_vm3, %v11518_v32 }
 0x1fe   : > { %758 = vst.msk [vmem:[#allocation2 + $0xf68] sm:$0xff] %vm264_vm3, %v11518_v32 }
 0x1ff   : > { %759 = vst.msk [vmem:[#allocation2 + $0xf70] sm:$0xff] %vm264_vm3, %v11518_v32 }
 0x200   : > { %760 = vst.msk [vmem:[#allocation2 + $0xf78] sm:$0xff] %vm264_vm3, %v11518_v32 }
 0x201   : > { %761 = vst.msk [vmem:[#allocation2 + $0xf80] sm:$0xff] %vm264_vm3, %v11518_v32 }
 0x202   : > { %762 = vst.msk [vmem:[#allocation2 + $0xf88] sm:$0xff] %vm264_vm3, %v11518_v32 }
 0x203   : > { %763 = vst.msk [vmem:[#allocation2 + $0xf90] sm:$0xff] %vm264_vm3, %v11518_v32 }
 0x204   : > { %764 = vst.msk [vmem:[#allocation2 + $0xf98] sm:$0xff] %vm264_vm3, %v11518_v32 }
 0x205   : > { %765 = vst.msk [vmem:[#allocation2 + $0xfa0] sm:$0xff] %vm264_vm3, %v11518_v32 }
 0x206   : > { %766 = vst.msk [vmem:[#allocation2 + $0xfa8] sm:$0xff] %vm264_vm3, %v11518_v32 }
 0x207   : > { %767 = vst.msk [vmem:[#allocation2 + $0xfb0] sm:$0xff] %vm264_vm3, %v11518_v32 }
 0x208   : > { %768 = vst.msk [vmem:[#allocation2 + $0xfb8] sm:$0xff] %vm264_vm3, %v11518_v32 }
 0x209   : > { %769 = vst.msk [vmem:[#allocation2 + $0xfc0] sm:$0xff] %vm264_vm3, %v11518_v32 }
 0x20a   : > { %770 = vst.msk [vmem:[#allocation2 + $0xfc8] sm:$0xff] %vm264_vm3, %v11518_v32 }
 0x20b   : > { %771 = vst.msk [vmem:[#allocation2 + $0xfd0] sm:$0xff] %vm264_vm3, %v11518_v32 }
 0x20c   : > { %772 = vst.msk [vmem:[#allocation2 + $0xfd8] sm:$0xff] %vm264_vm3, %v11518_v32 }
 0x20d   : > { %773 = vst.msk [vmem:[#allocation2 + $0xfe0] sm:$0xff] %vm264_vm3, %v11518_v32 }
 0x20e   : > { %774 = vst.msk [vmem:[#allocation2 + $0xfe8] sm:$0xff] %vm264_vm3, %v11518_v32 }
 0x20f   : > { %775 = vst.msk [vmem:[#allocation2 + $0xff0] sm:$0xff] %vm264_vm3, %v11518_v32 }
 0x210   : > { %776 = vst.msk [vmem:[#allocation2 + $0xff8] sm:$0xff] %vm264_vm3, %v11518_v32  ;;  %v12749_v32 = vpop.f32.mrf.mxu1 }
 0x211   : > { %5802 = vst.msk [vmem:[#allocation2 + $0x400] sm:$0xff] %vm264_vm3, %v5289_v18 }
 0x212   : > { %5930 = vst.msk [vmem:[#allocation2 + $0x800] sm:$0xff] %vm264_vm3, %v5417_v20 }
 0x213   : > { %6058 = vst.msk [vmem:[#allocation2 + $0xc00] sm:$0xff] %vm264_vm3, %v5545_v22 }
 0x214   : > { %5675 = vst.msk [vmem:[#allocation2 + $0x8] sm:$0xff] %vm264_vm3, %v5162_v24  ;;  %v11393_v24 = vld [vmem:[%s11574_s26 + $0x658] sm:$0xff] }
 0x215   : > { %5803 = vst.msk [vmem:[#allocation2 + $0x408] sm:$0xff] %vm264_vm3, %v5290_v28  ;;  %11135 = vmatmul.msk.bf16.gmra.mxu3 %vm3096_vm2, %v11393_v24  ;;  %v11202_v24 = vld [vmem:[%s11574_s26 + $0x60] sm:$0xff] }
 0x216   : > { %5931 = vst.msk [vmem:[#allocation2 + $0x808] sm:$0xff] %vm264_vm3, %v5418_v30  ;;  %10944 = vmatmul.msk.bf16.gmra.mxu0 %vm3096_vm2, %v11202_v24 }
 0x217   : > { %6059 = vst.msk [vmem:[#allocation2 + $0xc08] sm:$0xff] %vm264_vm3, %v5546_v34  ;;  %v909_v34 = vld [vmem:[#allocation2 + $0x420] sm:$0xff] }
 0x218   : > { %v6317_v44 = vld [vmem:[#allocation2 + $0x400] sm:$0xff]  ;;  %5676 = vst.msk [vmem:[#allocation2 + $0x10] sm:$0xff] %vm264_vm3, %v5163_v36  ;;  %v12783_v62 = vpop.f32.mrf.mxu1  ;;  %v12810_v36 = vpop.f32.mrf.mxu3  ;;  %v5293_v46 = vadd.f32 %v12713_v12, %v909_v34 }
 0x219   : > { %v6833_v48 = vadd.f32 %v12766_v47, %v6317_v44  ;;  %v6445_v49 = vld [vmem:[#allocation2 + $0x800] sm:$0xff]  ;;  %5804 = vst.msk [vmem:[#allocation2 + $0x410] sm:$0xff] %vm264_vm3, %v5291_v38 }
 0x21a   : > { %v6961_v54 = vadd.f32 %v12766_v47, %v6445_v49  ;;  %v6573_v55 = vld [vmem:[#allocation2 + $0xc00] sm:$0xff]  ;;  %5932 = vst.msk [vmem:[#allocation2 + $0x810] sm:$0xff] %vm264_vm3, %v5419_v40 }
 0x21b   : > { %vm7345_vm6 = vcmp.gt.f32.partialorder %v6833_v48, 0.0  ;;  %v7857_v57 = vmul.f32 0.01, %v6833_v48  ;;  %v7089_v58 = vadd.f32 %v12766_v47, %v6573_v55  ;;  %v6190_v59 = vld [vmem:[#allocation2 + $0x8] sm:$0xff]  ;;  %6060 = vst.msk [vmem:[#allocation2 + $0xc10] sm:$0xff] %vm264_vm3, %v5547_v42 }
 0x21c   : > { %vm7473_vm7 = vcmp.gt.f32.partialorder %v6961_v54, 0.0  ;;  %v7985_v63 = vmul.f32 0.01, %v6961_v54  ;;  %v6706_v0 = vadd.f32 %v12766_v47, %v6190_v59  ;;  %v6318_v1 = vld [vmem:[#allocation2 + $0x408] sm:$0xff]  ;;  %5677 = vst.msk [vmem:[#allocation2 + $0x18] sm:$0xff] %vm264_vm3, %v5164_v45 }
 0x21d   : > { %v8369_v4 = vsel %vm7345_vm6, %v6833_v48, %v7857_v57  ;;  %vm7601_vm8 = vcmp.gt.f32.partialorder %v7089_v58, 0.0  ;;  %v8113_v5 = vmul.f32 0.01, %v7089_v58  ;;  %v6834_v6 = vadd.f32 %v12766_v47, %v6318_v1  ;;  %v6446_v7 = vld [vmem:[#allocation2 + $0x808] sm:$0xff]  ;;  %5805 = vst.msk [vmem:[#allocation2 + $0x418] sm:$0xff] %vm264_vm3, %v5292_v50 }
 0x21e   : > { %v8881_v9 = vpack.c.bf16 %v8369_v4, %v8369_v4  ;;  %v8497_v10 = vsel %vm7473_vm7, %v6961_v54, %v7985_v63  ;;  %vm7218_vm9 = vcmp.gt.f32.partialorder %v6706_v0, 0.0  ;;  %v7730_v13 = vmul.f32 0.01, %v6706_v0  ;;  %v6574_v14 = vld [vmem:[#allocation2 + $0xc08] sm:$0xff]  ;;  %5933 = vst.msk [vmem:[#allocation2 + $0x818] sm:$0xff] %vm264_vm3, %v5420_v56 }
 0x21f   : > { %v9009_v15 = vpack.c.bf16 %v8497_v10, %v8497_v10  ;;  %v8625_v16 = vsel %vm7601_vm8, %v7089_v58, %v8113_v5  ;;  %vm7346_vm10 = vcmp.gt.f32.partialorder %v6834_v6, 0.0  ;;  %v7858_v17 = vmul.f32 0.01, %v6834_v6  ;;  %v6191_v18 = vld [vmem:[#allocation2 + $0x10] sm:$0xff]  ;;  %6061 = vst.msk [vmem:[#allocation2 + $0xc18] sm:$0xff] %vm264_vm3, %v5548_v60 }
 0x220   : > { %9394 = vst.msk [vmem:[%s11763_s4 + $0x200] sm:$0xf] %vm9265_vm5, %v8881_v9  ;;  %v9137_v19 = vpack.c.bf16 %v8625_v16, %v8625_v16  ;;  %v8242_v20 = vsel %vm7218_vm9, %v6706_v0, %v7730_v13  ;;  %v6962_v21 = vadd.f32 %v12766_v47, %v6446_v7  ;;  %v7090_v22 = vadd.f32 %v12766_v47, %v6574_v14  ;;  %v6319_v23 = vld [vmem:[#allocation2 + $0x410] sm:$0xff]  ;;  %v12821_v42 = vpop.f32.mrf.mxu1  ;;  %v12842_v9 = vpop.f32.mrf.mxu2 }
 0x221   : > { %9522 = vst.msk [vmem:[%s11763_s4 + $0x400] sm:$0xf] %vm9265_vm5, %v9009_v15  ;;  %v8754_v25 = vpack.c.bf16 %v8242_v20, %v8242_v20  ;;  %v8370_v28 = vsel %vm7346_vm10, %v6834_v6, %v7858_v17  ;;  %v6707_v29 = vadd.f32 %v12766_v47, %v6191_v18  ;;  %v6835_v30 = vadd.f32 %v12766_v47, %v6319_v23  ;;  %v6447_v31 = vld [vmem:[#allocation2 + $0x810] sm:$0xff]  ;;  %v12844_v10 = vpop.f32.mrf.mxu3  ;;  %v1165_v18 = vld [vmem:[#allocation2 + $0xc20] sm:$0xff] }
 0x222   : > { %9650 = vst.msk [vmem:[%s11763_s4 + $0x600] sm:$0xf] %vm9265_vm5, %v9137_v19  ;;  %v8882_v37 = vpack.c.bf16 %v8370_v28, %v8370_v28  ;;  %vm7474_vm11 = vcmp.gt.f32.partialorder %v6962_v21, 0.0  ;;  %v7986_v38 = vmul.f32 0.01, %v6962_v21  ;;  %vm7602_vm12 = vcmp.gt.f32.partialorder %v7090_v22, 0.0  ;;  %v12850_v19 = vpop.f32.mrf.mxu0 }
 0x223   : > { %9267 = vst.msk [vmem:[%s11763_s4 + $0x4] sm:$0xf] %vm9265_vm5, %v8754_v25  ;;  %v8114_v39 = vmul.f32 0.01, %v7090_v22  ;;  %vm7219_vm13 = vcmp.gt.f32.partialorder %v6707_v29, 0.0  ;;  %vm7347_vm14 = vcmp.gt.f32.partialorder %v6835_v30, 0.0  ;;  %v6963_v40 = vadd.f32 %v12766_v47, %v6447_v31 }
 0x224   : > { %9395 = vst.msk [vmem:[%s11763_s4 + $0x204] sm:$0xf] %vm9265_vm5, %v8882_v37  ;;  %v8498_v43 = vsel %vm7474_vm11, %v6962_v21, %v7986_v38  ;;  %v7731_v44 = vmul.f32 0.01, %v6707_v29  ;;  %v7859_v45 = vmul.f32 0.01, %v6835_v30 }
 0x225   : > { %v9010_v48 = vpack.c.bf16 %v8498_v43, %v8498_v43  ;;  %v8626_v49 = vsel %vm7602_vm12, %v7090_v22, %v8114_v39  ;;  %vm7475_vm15 = vcmp.gt.f32.partialorder %v6963_v40, 0.0  ;;  %v7987_v50 = vmul.f32 0.01, %v6963_v40  ;;  %v6575_v51 = vld [vmem:[#allocation2 + $0xc10] sm:$0xff]  ;;  %v6192_v54 = vld [vmem:[#allocation2 + $0x18] sm:$0xff]  ;;  %5678 = vst.msk [vmem:[#allocation2 + $0x20] sm:$0xff] %vm264_vm3, %v12788_v2 }
 0x226   : > { %v6320_v55 = vld [vmem:[#allocation2 + $0x418] sm:$0xff]  ;;  %v9138_v56 = vpack.c.bf16 %v8626_v49, %v8626_v49  ;;  %v8243_v57 = vsel %vm7219_vm13, %v6707_v29, %v7731_v44  ;;  %v8371_v58 = vsel %vm7347_vm14, %v6835_v30, %v7859_v45  ;;  %v7091_v59 = vadd.f32 %v12766_v47, %v6575_v51  ;;  %5806 = vst.msk [vmem:[#allocation2 + $0x420] sm:$0xff] %vm264_vm3, %v5293_v46  ;;  %v11266_v25 = vld [vmem:[%s11574_s26 + $0x260] sm:$0xff]  ;;  %v782_v31 = vld [vmem:[#allocation2 + $0x28] sm:$0xff] }
 0x227   : > { %v6448_v60 = vld [vmem:[#allocation2 + $0x818] sm:$0xff]  ;;  %9523 = vst.msk [vmem:[%s11763_s4 + $0x404] sm:$0xf] %vm9265_vm5, %v9010_v48  ;;  %v8755_v12 = vpack.c.bf16 %v8243_v57, %v8243_v57  ;;  %v8883_v0 = vpack.c.bf16 %v8371_v58, %v8371_v58  ;;  %v8499_v1 = vsel %vm7475_vm15, %v6963_v40, %v7987_v50  ;;  %v6708_v3 = vadd.f32 %v12766_v47, %v6192_v54  ;;  %v11330_v40 = vld [vmem:[%s11574_s26 + $0x460] sm:$0xff]  ;;  %v910_v46 = vld [vmem:[#allocation2 + $0x428] sm:$0xff] }
 0x228   : > { %v6576_v63 = vld [vmem:[#allocation2 + $0xc18] sm:$0xff]  ;;  %9651 = vst.msk [vmem:[%s11763_s4 + $0x604] sm:$0xf] %vm9265_vm5, %v9138_v56  ;;  %v9011_v4 = vpack.c.bf16 %v8499_v1, %v8499_v1  ;;  %vm7603_vm0 = vcmp.gt.f32.partialorder %v7091_v59, 0.0  ;;  %v8115_v5 = vmul.f32 0.01, %v7091_v59  ;;  %v6836_v6 = vadd.f32 %v12766_v47, %v6320_v55  ;;  %v12852_v20 = vpop.f32.mrf.mxu1  ;;  %11008 = vmatmul.msk.bf16.gmra.mxu1 %vm3096_vm2, %v11266_v25  ;;  %v12875_v51 = vpop.f32.mrf.mxu2  ;;  %11072 = vmatmul.msk.bf16.gmra.mxu2 %vm3096_vm2, %v11330_v40 }
 0x229   : > { %9268 = vst.msk [vmem:[%s11763_s4 + $0x8] sm:$0xf] %vm9265_vm5, %v8755_v12  ;;  %vm7220_vm1 = vcmp.gt.f32.partialorder %v6708_v3, 0.0  ;;  %v7732_v2 = vmul.f32 0.01, %v6708_v3  ;;  %v6964_v7 = vadd.f32 %v12766_v47, %v6448_v60  ;;  %v7092_v8 = vadd.f32 %v12766_v47, %v6576_v63  ;;  %v11394_v43 = vld [vmem:[%s11574_s26 + $0x660] sm:$0xff]  ;;  %v12877_v54 = vpop.f32.mrf.mxu3 }
 0x22a   : > { %9396 = vst.msk [vmem:[%s11763_s4 + $0x208] sm:$0xf] %vm9265_vm5, %v8883_v0  ;;  %v8627_v13 = vsel %vm7603_vm0, %v7091_v59, %v8115_v5  ;;  %vm7348_vm4 = vcmp.gt.f32.partialorder %v6836_v6, 0.0  ;;  %v7860_v14 = vmul.f32 0.01, %v6836_v6  ;;  %v5421_v39 = vadd.f32 %v12739_v26, %v1037_v11  ;;  %v1038_v50 = vld [vmem:[#allocation2 + $0x828] sm:$0xff]  ;;  %11136 = vmatmul.msk.bf16.gmra.mxu3 %vm3096_vm2, %v11394_v43  ;;  %v12885_v60 = vpop.f32.mrf.mxu0 }
 0x22b   : > { %9524 = vst.msk [vmem:[%s11763_s4 + $0x408] sm:$0xf] %vm9265_vm5, %v9011_v4  ;;  %v9139_v15 = vpack.c.bf16 %v8627_v13, %v8627_v13  ;;  %v8244_v16 = vsel %vm7220_vm1, %v6708_v3, %v7732_v2  ;;  %vm7476_vm6 = vcmp.gt.f32.partialorder %v6964_v7, 0.0  ;;  %v7988_v17 = vmul.f32 0.01, %v6964_v7  ;;  %v1166_v26 = vld [vmem:[#allocation2 + $0xc28] sm:$0xff] }
 0x22c   : > { %v8756_v21 = vpack.c.bf16 %v8244_v16, %v8244_v16  ;;  %v8372_v22 = vsel %vm7348_vm4, %v6836_v6, %v7860_v14  ;;  %vm7604_vm7 = vcmp.gt.f32.partialorder %v7092_v8, 0.0  ;;  %v8116_v23 = vmul.f32 0.01, %v7092_v8  ;;  %v6193_v30 = vld [vmem:[#allocation2 + $0x20] sm:$0xff]  ;;  %5934 = vst.msk [vmem:[#allocation2 + $0x820] sm:$0xff] %vm264_vm3, %v5421_v39  ;;  %v783_v56 = vld [vmem:[#allocation2 + $0x30] sm:$0xff] }
 0x22d   : > { %9652 = vst.msk [vmem:[%s11763_s4 + $0x608] sm:$0xf] %vm9265_vm5, %v9139_v15  ;;  %v8884_v28 = vpack.c.bf16 %v8372_v22, %v8372_v22  ;;  %v8500_v29 = vsel %vm7476_vm6, %v6964_v7, %v7988_v17  ;;  %v6709_v38 = vadd.f32 %v12766_v47, %v6193_v30  ;;  %v5549_v45 = vadd.f32 %v12741_v27, %v1165_v18  ;;  %v6321_v57 = vld [vmem:[#allocation2 + $0x420] sm:$0xff]  ;;  %v911_v59 = vld [vmem:[#allocation2 + $0x430] sm:$0xff]  ;;  %v784_v5 = vld [vmem:[#allocation2 + $0x38] sm:$0xff] }
 0x22e   : > { %9269 = vst.msk [vmem:[%s11763_s4 + $0xc] sm:$0xf] %vm9265_vm5, %v8756_v21  ;;  %v9012_v34 = vpack.c.bf16 %v8500_v29, %v8500_v29  ;;  %v8628_v37 = vsel %vm7604_vm7, %v7092_v8, %v8116_v23  ;;  %v5166_v49 = vadd.f32 %v12747_v33, %v782_v31  ;;  %v5294_v55 = vadd.f32 %v12749_v32, %v910_v46  ;;  %v1039_v1 = vld [vmem:[#allocation2 + $0x830] sm:$0xff]  ;;  %v912_v2 = vld [vmem:[#allocation2 + $0x438] sm:$0xff]  ;;  %v11203_v25 = vld [vmem:[%s11574_s26 + $0x68] sm:$0xff] }
 0x22f   : > { %9397 = vst.msk [vmem:[%s11763_s4 + $0x20c] sm:$0xf] %vm9265_vm5, %v8884_v28  ;;  %v9140_v44 = vpack.c.bf16 %v8628_v37, %v8628_v37  ;;  %vm7221_vm8 = vcmp.gt.f32.partialorder %v6709_v38, 0.0  ;;  %v7733_v48 = vmul.f32 0.01, %v6709_v38  ;;  %v5422_v58 = vadd.f32 %v12771_v52, %v1038_v50  ;;  %v1167_v4 = vld [vmem:[#allocation2 + $0xc30] sm:$0xff]  ;;  %10945 = vmatmul.msk.bf16.gmra.mxu0 %vm3096_vm2, %v11203_v25 }
 0x230   : > { %9525 = vst.msk [vmem:[%s11763_s4 + $0x40c] sm:$0xf] %vm9265_vm5, %v9012_v34  ;;  %v12887_v63 = vpop.f32.mrf.mxu1  ;;  %v6837_v12 = vadd.f32 %v12766_v47, %v6321_v57  ;;  %v5550_v32 = vadd.f32 %v12773_v53, %v1166_v26  ;;  %v5167_v0 = vadd.f32 %v12781_v61, %v783_v56  ;;  %v5295_v52 = vadd.f32 %v12783_v62, %v911_v59  ;;  %v1040_v13 = vld [vmem:[#allocation2 + $0x838] sm:$0xff]  ;;  %v12902_v14 = vpop.f32.mrf.mxu2  ;;  %v11267_v28 = vld [vmem:[%s11574_s26 + $0x268] sm:$0xff]  ;;  %v1041_v25 = vld [vmem:[#allocation2 + $0x840] sm:$0xff] }
 0x231   : > { %9653 = vst.msk [vmem:[%s11763_s4 + $0x60c] sm:$0xf] %vm9265_vm5, %v9140_v44  ;;  %v8245_v27 = vsel %vm7221_vm8, %v6709_v38, %v7733_v48  ;;  %v5423_v53 = vadd.f32 %v12808_v35, %v1039_v1  ;;  %v5551_v8 = vadd.f32 %v12810_v36, %v1167_v4  ;;  %v12904_v62 = vpop.f32.mrf.mxu3  ;;  %v5168_v35 = vadd.f32 %v12819_v41, %v784_v5  ;;  %v1168_v18 = vld [vmem:[#allocation2 + $0xc38] sm:$0xff]  ;;  %v785_v38 = vld [vmem:[#allocation2 + $0x40] sm:$0xff]  ;;  %v11395_v46 = vld [vmem:[%s11574_s26 + $0x668] sm:$0xff] }
 0x232   : > { %v8757_v33 = vpack.c.bf16 %v8245_v27, %v8245_v27  ;;  %6062 = vst.msk [vmem:[#allocation2 + $0xc20] sm:$0xff] %vm264_vm3, %v5549_v45  ;;  %vm7349_vm9 = vcmp.gt.f32.partialorder %v6837_v12, 0.0  ;;  %v7861_v3 = vmul.f32 0.01, %v6837_v12  ;;  %v5296_v36 = vadd.f32 %v12821_v42, %v912_v2  ;;  %v12913_v21 = vpop.f32.mrf.mxu0  ;;  %v11331_v45 = vld [vmem:[%s11574_s26 + $0x468] sm:$0xff] }
 0x233   : > { %5679 = vst.msk [vmem:[#allocation2 + $0x28] sm:$0xff] %vm264_vm3, %v5166_v49  ;;  %v6449_v61 = vld [vmem:[#allocation2 + $0x820] sm:$0xff]  ;;  %v5424_v41 = vadd.f32 %v12842_v9, %v1040_v13  ;;  %v5552_v44 = vadd.f32 %v12844_v10, %v1168_v18 }
 0x234   : > { %9270 = vst.msk [vmem:[%s11763_s4 + $0x10] sm:$0xf] %vm9265_vm5, %v8757_v33  ;;  %v8373_v6 = vsel %vm7349_vm9, %v6837_v12, %v7861_v3  ;;  %v6965_v11 = vadd.f32 %v12766_v47, %v6449_v61 }
 0x235   : > { %5807 = vst.msk [vmem:[#allocation2 + $0x428] sm:$0xff] %vm264_vm3, %v5294_v55  ;;  %v8885_v7 = vpack.c.bf16 %v8373_v6, %v8373_v6 }
 0x236   : > { %5935 = vst.msk [vmem:[#allocation2 + $0x828] sm:$0xff] %vm264_vm3, %v5422_v58  ;;  %vm7477_vm10 = vcmp.gt.f32.partialorder %v6965_v11, 0.0  ;;  %v7989_v23 = vmul.f32 0.01, %v6965_v11 }
 0x237   : > { %6063 = vst.msk [vmem:[#allocation2 + $0xc28] sm:$0xff] %vm264_vm3, %v5550_v32  ;;  %v5169_v32 = vadd.f32 %v12850_v19, %v785_v38 }
 0x238   : > { %5680 = vst.msk [vmem:[#allocation2 + $0x30] sm:$0xff] %vm264_vm3, %v5167_v0  ;;  %v12915_v22 = vpop.f32.mrf.mxu1  ;;  %v8501_v42 = vsel %vm7477_vm10, %v6965_v11, %v7989_v23  ;;  %11009 = vmatmul.msk.bf16.gmra.mxu1 %vm3096_vm2, %v11267_v28  ;;  %v12936_v33 = vpop.f32.mrf.mxu2  ;;  %v913_v0 = vld [vmem:[#allocation2 + $0x440] sm:$0xff]  ;;  %11073 = vmatmul.msk.bf16.gmra.mxu2 %vm3096_vm2, %v11331_v45 }
 0x239   : > { %v6577_v15 = vld [vmem:[#allocation2 + $0xc20] sm:$0xff]  ;;  %5808 = vst.msk [vmem:[#allocation2 + $0x430] sm:$0xff] %vm264_vm3, %v5295_v52  ;;  %v9013_v39 = vpack.c.bf16 %v8501_v42, %v8501_v42  ;;  %v12938_v57 = vpop.f32.mrf.mxu3 }
 0x23a   : > { %9398 = vst.msk [vmem:[%s11763_s4 + $0x210] sm:$0xf] %vm9265_vm5, %v8885_v7  ;;  %v7093_v16 = vadd.f32 %v12766_v47, %v6577_v15  ;;  %v6194_v17 = vld [vmem:[#allocation2 + $0x28] sm:$0xff]  ;;  %11137 = vmatmul.msk.bf16.gmra.mxu3 %vm3096_vm2, %v11395_v46  ;;  %v12949_v5 = vpop.f32.mrf.mxu0 }
 0x23b   : > { %v6710_v24 = vadd.f32 %v12766_v47, %v6194_v17  ;;  %5936 = vst.msk [vmem:[#allocation2 + $0x830] sm:$0xff] %vm264_vm3, %v5423_v53 }
 0x23c   : > { %vm7605_vm11 = vcmp.gt.f32.partialorder %v7093_v16, 0.0  ;;  %v8117_v29 = vmul.f32 0.01, %v7093_v16  ;;  %v6322_v30 = vld [vmem:[#allocation2 + $0x428] sm:$0xff]  ;;  %6064 = vst.msk [vmem:[#allocation2 + $0xc30] sm:$0xff] %vm264_vm3, %v5551_v8 }
 0x23d   : > { %vm7222_vm12 = vcmp.gt.f32.partialorder %v6710_v24, 0.0  ;;  %v7734_v31 = vmul.f32 0.01, %v6710_v24  ;;  %v6838_v34 = vadd.f32 %v12766_v47, %v6322_v30  ;;  %v6450_v37 = vld [vmem:[#allocation2 + $0x828] sm:$0xff]  ;;  %5681 = vst.msk [vmem:[#allocation2 + $0x38] sm:$0xff] %vm264_vm3, %v5168_v35 }
 0x23e   : > { %v8629_v9 = vsel %vm7605_vm11, %v7093_v16, %v8117_v29  ;;  %v6966_v40 = vadd.f32 %v12766_v47, %v6450_v37  ;;  %v6578_v43 = vld [vmem:[#allocation2 + $0xc28] sm:$0xff]  ;;  %5809 = vst.msk [vmem:[#allocation2 + $0x438] sm:$0xff] %vm264_vm3, %v5296_v36  ;;  %v5297_v36 = vadd.f32 %v12852_v20, %v913_v0 }
 0x23f   : > { %v9141_v48 = vpack.c.bf16 %v8629_v9, %v8629_v9  ;;  %v8246_v49 = vsel %vm7222_vm12, %v6710_v24, %v7734_v31  ;;  %vm7350_vm13 = vcmp.gt.f32.partialorder %v6838_v34, 0.0  ;;  %v7862_v50 = vmul.f32 0.01, %v6838_v34  ;;  %v6195_v26 = vld [vmem:[#allocation2 + $0x30] sm:$0xff]  ;;  %5937 = vst.msk [vmem:[#allocation2 + $0x838] sm:$0xff] %vm264_vm3, %v5424_v41 }
 0x240   : > { %9526 = vst.msk [vmem:[%s11763_s4 + $0x410] sm:$0xf] %vm9265_vm5, %v9013_v39  ;;  %v8758_v27 = vpack.c.bf16 %v8246_v49, %v8246_v49  ;;  %vm7478_vm14 = vcmp.gt.f32.partialorder %v6966_v40, 0.0  ;;  %v7990_v10 = vmul.f32 0.01, %v6966_v40  ;;  %v7094_v55 = vadd.f32 %v12766_v47, %v6578_v43  ;;  %v6323_v56 = vld [vmem:[#allocation2 + $0x430] sm:$0xff]  ;;  %v12951_v6 = vpop.f32.mrf.mxu1 }
 0x241   : > { %9654 = vst.msk [vmem:[%s11763_s4 + $0x610] sm:$0xf] %vm9265_vm5, %v9141_v48  ;;  %v8374_v58 = vsel %vm7350_vm13, %v6838_v34, %v7862_v50  ;;  %v6711_v59 = vadd.f32 %v12766_v47, %v6195_v26  ;;  %v6839_v12 = vadd.f32 %v12766_v47, %v6323_v56  ;;  %v12970_v34 = vpop.f32.mrf.mxu2  ;;  %v12972_v37 = vpop.f32.mrf.mxu3  ;;  %v5425_v9 = vadd.f32 %v12875_v51, %v1041_v25  ;;  %v786_v56 = vld [vmem:[#allocation2 + $0x48] sm:$0xff] }
 0x242   : > { %9271 = vst.msk [vmem:[%s11763_s4 + $0x14] sm:$0xf] %vm9265_vm5, %v8758_v27  ;;  %v8886_v1 = vpack.c.bf16 %v8374_v58, %v8374_v58  ;;  %v8502_v3 = vsel %vm7478_vm14, %v6966_v40, %v7990_v10  ;;  %vm7606_vm15 = vcmp.gt.f32.partialorder %v7094_v55, 0.0  ;;  %v8118_v52 = vmul.f32 0.01, %v7094_v55  ;;  %v6451_v4 = vld [vmem:[#allocation2 + $0x830] sm:$0xff]  ;;  %v12978_v48 = vpop.f32.mrf.mxu0 }
 0x243   : > { %v9014_v53 = vpack.c.bf16 %v8502_v3, %v8502_v3  ;;  %vm7223_vm0 = vcmp.gt.f32.partialorder %v6711_v59, 0.0  ;;  %v7735_v19 = vmul.f32 0.01, %v6711_v59  ;;  %vm7351_vm1 = vcmp.gt.f32.partialorder %v6839_v12, 0.0  ;;  %v6579_v2 = vld [vmem:[#allocation2 + $0xc30] sm:$0xff]  ;;  %6065 = vst.msk [vmem:[#allocation2 + $0xc38] sm:$0xff] %vm264_vm3, %v5552_v44 }
 0x244   : > { %9399 = vst.msk [vmem:[%s11763_s4 + $0x214] sm:$0xf] %vm9265_vm5, %v8886_v1  ;;  %v8630_v7 = vsel %vm7606_vm15, %v7094_v55, %v8118_v52  ;;  %v7863_v61 = vmul.f32 0.01, %v6839_v12  ;;  %v6967_v8 = vadd.f32 %v12766_v47, %v6451_v4  ;;  %v7095_v13 = vadd.f32 %v12766_v47, %v6579_v2  ;;  %v6196_v11 = vld [vmem:[#allocation2 + $0x38] sm:$0xff]  ;;  %v1169_v40 = vld [vmem:[#allocation2 + $0xc40] sm:$0xff] }
 0x245   : > { %9527 = vst.msk [vmem:[%s11763_s4 + $0x414] sm:$0xf] %vm9265_vm5, %v9014_v53  ;;  %v9142_v15 = vpack.c.bf16 %v8630_v7, %v8630_v7  ;;  %v8247_v35 = vsel %vm7223_vm0, %v6711_v59, %v7735_v19  ;;  %v6712_v16 = vadd.f32 %v12766_v47, %v6196_v11  ;;  %v6324_v17 = vld [vmem:[#allocation2 + $0x438] sm:$0xff]  ;;  %v11204_v27 = vld [vmem:[%s11574_s26 + $0x70] sm:$0xff]  ;;  %v5553_v55 = vadd.f32 %v12877_v54, %v1169_v40  ;;  %v914_v58 = vld [vmem:[#allocation2 + $0x448] sm:$0xff] }
 0x246   : > { %v8759_v18 = vpack.c.bf16 %v8247_v35, %v8247_v35  ;;  %v8375_v23 = vsel %vm7351_vm1, %v6839_v12, %v7863_v61  ;;  %vm7479_vm4 = vcmp.gt.f32.partialorder %v6967_v8, 0.0  ;;  %v7991_v24 = vmul.f32 0.01, %v6967_v8  ;;  %v6452_v41 = vld [vmem:[#allocation2 + $0x838] sm:$0xff]  ;;  %5682 = vst.msk [vmem:[#allocation2 + $0x40] sm:$0xff] %vm264_vm3, %v5169_v32  ;;  %v11268_v59 = vld [vmem:[%s11574_s26 + $0x270] sm:$0xff]  ;;  %10946 = vmatmul.msk.bf16.gmra.mxu0 %vm3096_vm2, %v11204_v27 }
 0x247   : > { %9655 = vst.msk [vmem:[%s11763_s4 + $0x614] sm:$0xf] %vm9265_vm5, %v9142_v15  ;;  %v8887_v28 = vpack.c.bf16 %v8375_v23, %v8375_v23  ;;  %vm7607_vm6 = vcmp.gt.f32.partialorder %v7095_v13, 0.0  ;;  %v8119_v29 = vmul.f32 0.01, %v7095_v13  ;;  %vm7224_vm7 = vcmp.gt.f32.partialorder %v6712_v16, 0.0 }
 0x248   : > { %9272 = vst.msk [vmem:[%s11763_s4 + $0x18] sm:$0xf] %vm9265_vm5, %v8759_v18  ;;  %v8503_v30 = vsel %vm7479_vm4, %v6967_v8, %v7991_v24  ;;  %v7736_v20 = vmul.f32 0.01, %v6712_v16  ;;  %v6840_v42 = vadd.f32 %v12766_v47, %v6324_v17  ;;  %v6968_v31 = vadd.f32 %v12766_v47, %v6452_v41  ;;  %v12980_v49 = vpop.f32.mrf.mxu1  ;;  %v11332_v4 = vld [vmem:[%s11574_s26 + $0x470] sm:$0xff]  ;;  %v1042_v2 = vld [vmem:[#allocation2 + $0x848] sm:$0xff]  ;;  %11010 = vmatmul.msk.bf16.gmra.mxu1 %vm3096_vm2, %v11268_v59 }
 0x249   : > { %9400 = vst.msk [vmem:[%s11763_s4 + $0x218] sm:$0xf] %vm9265_vm5, %v8887_v28  ;;  %v9015_v38 = vpack.c.bf16 %v8503_v30, %v8503_v30  ;;  %v8631_v39 = vsel %vm7607_vm6, %v7095_v13, %v8119_v29  ;;  %v11396_v53 = vld [vmem:[%s11574_s26 + $0x670] sm:$0xff]  ;;  %v5170_v19 = vadd.f32 %v12885_v60, %v786_v56  ;;  %v5298_v8 = vadd.f32 %v12887_v63, %v914_v58  ;;  %v1170_v13 = vld [vmem:[#allocation2 + $0xc48] sm:$0xff]  ;;  %v13004_v11 = vpop.f32.mrf.mxu2  ;;  %v13006_v15 = vpop.f32.mrf.mxu3  ;;  %v11205_v59 = vld [vmem:[%s11574_s26 + $0x78] sm:$0xff] }
 0x24a   : > { %v9143_v43 = vpack.c.bf16 %v8631_v39, %v8631_v39  ;;  %v8248_v44 = vsel %vm7224_vm7, %v6712_v16, %v7736_v20  ;;  %vm7352_vm8 = vcmp.gt.f32.partialorder %v6840_v42, 0.0  ;;  %v7864_v45 = vmul.f32 0.01, %v6840_v42  ;;  %v6580_v46 = vld [vmem:[#allocation2 + $0xc38] sm:$0xff]  ;;  %5810 = vst.msk [vmem:[#allocation2 + $0x440] sm:$0xff] %vm264_vm3, %v5297_v36  ;;  %v787_v60 = vld [vmem:[#allocation2 + $0x50] sm:$0xff]  ;;  %11074 = vmatmul.msk.bf16.gmra.mxu2 %vm3096_vm2, %v11332_v4  ;;  %11138 = vmatmul.msk.bf16.gmra.mxu3 %vm3096_vm2, %v11396_v53  ;;  %v13015_v63 = vpop.f32.mrf.mxu0 }
 0x24b   : > { %9528 = vst.msk [vmem:[%s11763_s4 + $0x418] sm:$0xf] %vm9265_vm5, %v9015_v38  ;;  %v8760_v50 = vpack.c.bf16 %v8248_v44, %v8248_v44  ;;  %vm7480_vm9 = vcmp.gt.f32.partialorder %v6968_v31, 0.0  ;;  %v7992_v51 = vmul.f32 0.01, %v6968_v31  ;;  %v7096_v26 = vadd.f32 %v12766_v47, %v6580_v46  ;;  %v915_v41 = vld [vmem:[#allocation2 + $0x450] sm:$0xff] }
 0x24c   : > { %9656 = vst.msk [vmem:[%s11763_s4 + $0x618] sm:$0xf] %vm9265_vm5, %v9143_v43  ;;  %v8376_v10 = vsel %vm7352_vm8, %v6840_v42, %v7864_v45  ;;  %v5426_v36 = vadd.f32 %v12902_v14, %v1042_v2  ;;  %v5554_v24 = vadd.f32 %v12904_v62, %v1170_v13  ;;  %v5171_v14 = vadd.f32 %v12913_v21, %v787_v60  ;;  %v1043_v28 = vld [vmem:[#allocation2 + $0x850] sm:$0xff]  ;;  %v788_v39 = vld [vmem:[#allocation2 + $0x58] sm:$0xff] }
 0x24d   : > { %9273 = vst.msk [vmem:[%s11763_s4 + $0x1c] sm:$0xf] %vm9265_vm5, %v8760_v50  ;;  %v8888_v12 = vpack.c.bf16 %v8376_v10, %v8376_v10  ;;  %v8504_v32 = vsel %vm7480_vm9, %v6968_v31, %v7992_v51  ;;  %vm7608_vm10 = vcmp.gt.f32.partialorder %v7096_v26, 0.0  ;;  %v8120_v0 = vmul.f32 0.01, %v7096_v26  ;;  %v6197_v1 = vld [vmem:[#allocation2 + $0x40] sm:$0xff] }
 0x24e   : > { %v9016_v3 = vpack.c.bf16 %v8504_v32, %v8504_v32  ;;  %v6713_v52 = vadd.f32 %v12766_v47, %v6197_v1  ;;  %5938 = vst.msk [vmem:[#allocation2 + $0x840] sm:$0xff] %vm264_vm3, %v5425_v9  ;;  %v1171_v30 = vld [vmem:[#allocation2 + $0xc50] sm:$0xff]  ;;  %v5299_v62 = vadd.f32 %v12915_v22, %v915_v41  ;;  %v5427_v38 = vadd.f32 %v12936_v33, %v1043_v28  ;;  %v916_v21 = vld [vmem:[#allocation2 + $0x458] sm:$0xff] }
 0x24f   : > { %9401 = vst.msk [vmem:[%s11763_s4 + $0x21c] sm:$0xf] %vm9265_vm5, %v8888_v12  ;;  %v8632_v54 = vsel %vm7608_vm10, %v7096_v26, %v8120_v0  ;;  %v5555_v43 = vadd.f32 %v12938_v57, %v1171_v30  ;;  %v5172_v50 = vadd.f32 %v12949_v5, %v788_v39  ;;  %v5300_v51 = vadd.f32 %v12951_v6, %v916_v21  ;;  %v1044_v57 = vld [vmem:[#allocation2 + $0x858] sm:$0xff]  ;;  %v917_v30 = vld [vmem:[#allocation2 + $0x460] sm:$0xff] }
 0x250   : > { %9529 = vst.msk [vmem:[%s11763_s4 + $0x41c] sm:$0xf] %vm9265_vm5, %v9016_v3  ;;  %v9144_v7 = vpack.c.bf16 %v8632_v54, %v8632_v54  ;;  %vm7225_vm11 = vcmp.gt.f32.partialorder %v6713_v52, 0.0  ;;  %v7737_v61 = vmul.f32 0.01, %v6713_v52  ;;  %v13017_v18 = vpop.f32.mrf.mxu1  ;;  %v1172_v6 = vld [vmem:[#allocation2 + $0xc58] sm:$0xff] }
 0x251   : > { %v6325_v35 = vld [vmem:[#allocation2 + $0x440] sm:$0xff]  ;;  %6066 = vst.msk [vmem:[#allocation2 + $0xc40] sm:$0xff] %vm264_vm3, %v5553_v55  ;;  %v13032_v44 = vpop.f32.mrf.mxu2  ;;  %v13034_v45 = vpop.f32.mrf.mxu3  ;;  %v11269_v12 = vld [vmem:[%s11574_s26 + $0x278] sm:$0xff]  ;;  %v5556_v13 = vadd.f32 %v12972_v37, %v1172_v6 }
 0x252   : > { %9657 = vst.msk [vmem:[%s11763_s4 + $0x61c] sm:$0xf] %vm9265_vm5, %v9144_v7  ;;  %v8249_v16 = vsel %vm7225_vm11, %v6713_v52, %v7737_v61  ;;  %v6841_v17 = vadd.f32 %v12766_v47, %v6325_v35  ;;  %v13042_v26 = vpop.f32.mrf.mxu0  ;;  %v11333_v32 = vld [vmem:[%s11574_s26 + $0x478] sm:$0xff]  ;;  %v5428_v52 = vadd.f32 %v12970_v34, %v1044_v57  ;;  %v789_v35 = vld [vmem:[#allocation2 + $0x60] sm:$0xff] }
 0x253   : > { %v8761_v23 = vpack.c.bf16 %v8249_v16, %v8249_v16  ;;  %5683 = vst.msk [vmem:[#allocation2 + $0x48] sm:$0xff] %vm264_vm3, %v5170_v19  ;;  %v11397_v2 = vld [vmem:[%s11574_s26 + $0x678] sm:$0xff] }
 0x254   : > { %vm7353_vm12 = vcmp.gt.f32.partialorder %v6841_v17, 0.0  ;;  %v7865_v25 = vmul.f32 0.01, %v6841_v17  ;;  %5811 = vst.msk [vmem:[#allocation2 + $0x448] sm:$0xff] %vm264_vm3, %v5298_v8 }
 0x255   : > { %9274 = vst.msk [vmem:[%s11763_s4 + $0x20] sm:$0xf] %vm9265_vm5, %v8761_v23  ;;  %v6453_v29 = vld [vmem:[#allocation2 + $0x840] sm:$0xff] }
 0x256   : > { %v8377_v20 = vsel %vm7353_vm12, %v6841_v17, %v7865_v25  ;;  %v6969_v42 = vadd.f32 %v12766_v47, %v6453_v29  ;;  %5939 = vst.msk [vmem:[#allocation2 + $0x848] sm:$0xff] %vm264_vm3, %v5426_v36  ;;  %10947 = vmatmul.msk.bf16.gmra.mxu0 %vm3096_vm2, %v11205_v59  ;;  %v5173_v29 = vadd.f32 %v12978_v48, %v789_v35  ;;  %v11206_v35 = vld [vmem:[%s11574_s26 + $0x80] sm:$0xff] }
 0x257   : > { %v8889_v31 = vpack.c.bf16 %v8377_v20, %v8377_v20  ;;  %6067 = vst.msk [vmem:[#allocation2 + $0xc48] sm:$0xff] %vm264_vm3, %v5554_v24 }
 0x258   : > { %vm7481_vm13 = vcmp.gt.f32.partialorder %v6969_v42, 0.0  ;;  %v7993_v9 = vmul.f32 0.01, %v6969_v42  ;;  %v6581_v40 = vld [vmem:[#allocation2 + $0xc40] sm:$0xff]  ;;  %5684 = vst.msk [vmem:[#allocation2 + $0x50] sm:$0xff] %vm264_vm3, %v5171_v14  ;;  %v13044_v27 = vpop.f32.mrf.mxu1  ;;  %11011 = vmatmul.msk.bf16.gmra.mxu1 %vm3096_vm2, %v11269_v12 }
 0x259   : > { %9402 = vst.msk [vmem:[%s11763_s4 + $0x220] sm:$0xf] %vm9265_vm5, %v8889_v31  ;;  %v7097_v22 = vadd.f32 %v12766_v47, %v6581_v40  ;;  %v13067_v17 = vpop.f32.mrf.mxu2  ;;  %v13069_v36 = vpop.f32.mrf.mxu3  ;;  %v1173_v12 = vld [vmem:[#allocation2 + $0xc60] sm:$0xff] }
 0x25a   : > { %v8505_v46 = vsel %vm7481_vm13, %v6969_v42, %v7993_v9  ;;  %v6198_v33 = vld [vmem:[#allocation2 + $0x48] sm:$0xff]  ;;  %5812 = vst.msk [vmem:[#allocation2 + $0x450] sm:$0xff] %vm264_vm3, %v5299_v62  ;;  %11075 = vmatmul.msk.bf16.gmra.mxu2 %vm3096_vm2, %v11333_v32  ;;  %11139 = vmatmul.msk.bf16.gmra.mxu3 %vm3096_vm2, %v11397_v2  ;;  %v13079_v20 = vpop.f32.mrf.mxu0 }
 0x25b   : > { %v9017_v10 = vpack.c.bf16 %v8505_v46, %v8505_v46  ;;  %vm7609_vm14 = vcmp.gt.f32.partialorder %v7097_v22, 0.0  ;;  %v8121_v55 = vmul.f32 0.01, %v7097_v22  ;;  %v6714_v56 = vadd.f32 %v12766_v47, %v6198_v33  ;;  %v6326_v58 = vld [vmem:[#allocation2 + $0x448] sm:$0xff]  ;;  %5940 = vst.msk [vmem:[#allocation2 + $0x850] sm:$0xff] %vm264_vm3, %v5427_v38  ;;  %v1045_v33 = vld [vmem:[#allocation2 + $0x860] sm:$0xff] }
 0x25c   : > { %v6842_v5 = vadd.f32 %v12766_v47, %v6326_v58  ;;  %6068 = vst.msk [vmem:[#allocation2 + $0xc50] sm:$0xff] %vm264_vm3, %v5555_v43  ;;  %v5301_v46 = vadd.f32 %v12980_v49, %v917_v30  ;;  %v5429_v6 = vadd.f32 %v13004_v11, %v1045_v33  ;;  %v11398_v30 = vld [vmem:[%s11574_s26 + $0x680] sm:$0xff] }
 0x25d   : > { %9530 = vst.msk [vmem:[%s11763_s4 + $0x420] sm:$0xf] %vm9265_vm5, %v9017_v10  ;;  %v8633_v0 = vsel %vm7609_vm14, %v7097_v22, %v8121_v55  ;;  %vm7226_vm15 = vcmp.gt.f32.partialorder %v6714_v56, 0.0  ;;  %v7738_v1 = vmul.f32 0.01, %v6714_v56  ;;  %v6454_v3 = vld [vmem:[#allocation2 + $0x848] sm:$0xff] }
 0x25e   : > { %v9145_v4 = vpack.c.bf16 %v8633_v0, %v8633_v0  ;;  %vm7354_vm0 = vcmp.gt.f32.partialorder %v6842_v5, 0.0  ;;  %v7866_v53 = vmul.f32 0.01, %v6842_v5  ;;  %v6970_v54 = vadd.f32 %v12766_v47, %v6454_v3  ;;  %v6582_v19 = vld [vmem:[#allocation2 + $0xc48] sm:$0xff]  ;;  %5685 = vst.msk [vmem:[#allocation2 + $0x58] sm:$0xff] %vm264_vm3, %v5172_v50 }
 0x25f   : > { %v8250_v7 = vsel %vm7226_vm15, %v6714_v56, %v7738_v1  ;;  %v7098_v61 = vadd.f32 %v12766_v47, %v6582_v19  ;;  %v6199_v8 = vld [vmem:[#allocation2 + $0x50] sm:$0xff]  ;;  %5813 = vst.msk [vmem:[#allocation2 + $0x458] sm:$0xff] %vm264_vm3, %v5300_v51  ;;  %v918_v19 = vld [vmem:[#allocation2 + $0x468] sm:$0xff] }
 0x260   : > { %9658 = vst.msk [vmem:[%s11763_s4 + $0x620] sm:$0xf] %vm9265_vm5, %v9145_v4  ;;  %v8762_v34 = vpack.c.bf16 %v8250_v7, %v8250_v7  ;;  %v8378_v60 = vsel %vm7354_vm0, %v6842_v5, %v7866_v53  ;;  %vm7482_vm1 = vcmp.gt.f32.partialorder %v6970_v54, 0.0  ;;  %v7994_v16 = vmul.f32 0.01, %v6970_v54  ;;  %v13081_v42 = vpop.f32.mrf.mxu1 }
 0x261   : > { %v8890_v23 = vpack.c.bf16 %v8378_v60, %v8378_v60  ;;  %vm7610_vm4 = vcmp.gt.f32.partialorder %v7098_v61, 0.0  ;;  %v8122_v37 = vmul.f32 0.01, %v7098_v61  ;;  %v6715_v24 = vadd.f32 %v12766_v47, %v6199_v8  ;;  %v6327_v41 = vld [vmem:[#allocation2 + $0x450] sm:$0xff]  ;;  %5941 = vst.msk [vmem:[#allocation2 + $0x858] sm:$0xff] %vm264_vm3, %v5428_v52  ;;  %v13100_v32 = vpop.f32.mrf.mxu2  ;;  %v13102_v0 = vpop.f32.mrf.mxu3 }
 0x262   : > { %9275 = vst.msk [vmem:[%s11763_s4 + $0x24] sm:$0xf] %vm9265_vm5, %v8762_v34  ;;  %v8506_v25 = vsel %vm7482_vm1, %v6970_v54, %v7994_v16  ;;  %v6843_v14 = vadd.f32 %v12766_v47, %v6327_v41  ;;  %v6455_v28 = vld [vmem:[#allocation2 + $0x850] sm:$0xff]  ;;  %v790_v54 = vld [vmem:[#allocation2 + $0x68] sm:$0xff]  ;;  %v13108_v2 = vpop.f32.mrf.mxu0  ;;  %v11270_v34 = vld [vmem:[%s11574_s26 + $0x280] sm:$0xff] }
 0x263   : > { %9403 = vst.msk [vmem:[%s11763_s4 + $0x224] sm:$0xf] %vm9265_vm5, %v8890_v23  ;;  %v9018_v62 = vpack.c.bf16 %v8506_v25, %v8506_v25  ;;  %v8634_v31 = vsel %vm7610_vm4, %v7098_v61, %v8122_v37  ;;  %vm7227_vm6 = vcmp.gt.f32.partialorder %v6715_v24, 0.0  ;;  %v7739_v38 = vmul.f32 0.01, %v6715_v24  ;;  %v6583_v39 = vld [vmem:[#allocation2 + $0xc50] sm:$0xff] }
 0x264   : > { %v9146_v48 = vpack.c.bf16 %v8634_v31, %v8634_v31  ;;  %vm7355_vm7 = vcmp.gt.f32.partialorder %v6843_v14, 0.0  ;;  %v7867_v21 = vmul.f32 0.01, %v6843_v14  ;;  %v6971_v9 = vadd.f32 %v12766_v47, %v6455_v28  ;;  %6069 = vst.msk [vmem:[#allocation2 + $0xc58] sm:$0xff] %vm264_vm3, %v5556_v13  ;;  %v13123_v37 = vld [vmem:[%s16747_s2] ss:$0 sm:$0xff] }
 0x265   : > { %9531 = vst.msk [vmem:[%s11763_s4 + $0x424] sm:$0xf] %vm9265_vm5, %v9018_v62  ;;  %v8251_v40 = vsel %vm7227_vm6, %v6715_v24, %v7739_v38  ;;  %v7099_v43 = vadd.f32 %v12766_v47, %v6583_v39  ;;  %v6200_v22 = vld [vmem:[#allocation2 + $0x58] sm:$0xff]  ;;  %v5557_v13 = vadd.f32 %v13006_v15, %v1173_v12  ;;  %v1046_v24 = vld [vmem:[#allocation2 + $0x868] sm:$0xff]  ;;  %v5302_v28 = vadd.f32 %v13017_v18, %v918_v19 }
 0x266   : > { %9659 = vst.msk [vmem:[%s11763_s4 + $0x624] sm:$0xf] %vm9265_vm5, %v9146_v48  ;;  %v8763_v50 = vpack.c.bf16 %v8251_v40, %v8251_v40  ;;  %v8379_v51 = vsel %vm7355_vm7, %v6843_v14, %v7867_v21  ;;  %vm7483_vm8 = vcmp.gt.f32.partialorder %v6971_v9, 0.0  ;;  %v7995_v57 = vmul.f32 0.01, %v6971_v9  ;;  %v6328_v10 = vld [vmem:[#allocation2 + $0x458] sm:$0xff]  ;;  %10948 = vmatmul.msk.bf16.gmra.mxu0 %vm3096_vm2, %v11206_v35 }
 0x267   : > { %v8891_v55 = vpack.c.bf16 %v8379_v51, %v8379_v51  ;;  %vm7611_vm9 = vcmp.gt.f32.partialorder %v7099_v43, 0.0  ;;  %v8123_v56 = vmul.f32 0.01, %v7099_v43  ;;  %v6716_v58 = vadd.f32 %v12766_v47, %v6200_v22  ;;  %5686 = vst.msk [vmem:[#allocation2 + $0x60] sm:$0xff] %vm264_vm3, %v5173_v29  ;;  %v11334_v29 = vld [vmem:[%s11574_s26 + $0x480] sm:$0xff]  ;;  %v1174_v39 = vld [vmem:[#allocation2 + $0xc68] sm:$0xff] }
 0x268   : > { %9276 = vst.msk [vmem:[%s11763_s4 + $0x28] sm:$0xf] %vm9265_vm5, %v8763_v50  ;;  %v8507_v59 = vsel %vm7483_vm8, %v6971_v9, %v7995_v57  ;;  %v6844_v49 = vadd.f32 %v12766_v47, %v6328_v10  ;;  %v6456_v5 = vld [vmem:[#allocation2 + $0x858] sm:$0xff]  ;;  %v13110_v7 = vpop.f32.mrf.mxu1  ;;  %v5174_v14 = vadd.f32 %v13015_v63, %v790_v54  ;;  %11012 = vmatmul.msk.bf16.gmra.mxu1 %vm3096_vm2, %v11270_v34  ;;  %v791_v63 = vld [vmem:[#allocation2 + $0x70] sm:$0xff] }
 0x269   : > { %9404 = vst.msk [vmem:[%s11763_s4 + $0x228] sm:$0xf] %vm9265_vm5, %v8891_v55  ;;  %v9019_v1 = vpack.c.bf16 %v8507_v59, %v8507_v59  ;;  %v8635_v3 = vsel %vm7611_vm9, %v7099_v43, %v8123_v56  ;;  %vm7228_vm10 = vcmp.gt.f32.partialorder %v6716_v58, 0.0  ;;  %v7740_v52 = vmul.f32 0.01, %v6716_v58  ;;  %v13139_v48 = vpop.f32.mrf.mxu2  ;;  %v13141_v18 = vpop.f32.mrf.mxu3  ;;  %v1047_v10 = vld [vmem:[#allocation2 + $0x870] sm:$0xff] }
 0x26a   : > { %v9147_v4 = vpack.c.bf16 %v8635_v3, %v8635_v3  ;;  %vm7356_vm11 = vcmp.gt.f32.partialorder %v6844_v49, 0.0  ;;  %v7868_v53 = vmul.f32 0.01, %v6844_v49  ;;  %v6972_v11 = vadd.f32 %v12766_v47, %v6456_v5  ;;  %5814 = vst.msk [vmem:[#allocation2 + $0x460] sm:$0xff] %vm264_vm3, %v5301_v46  ;;  %11076 = vmatmul.msk.bf16.gmra.mxu2 %vm3096_vm2, %v11334_v29  ;;  %11140 = vmatmul.msk.bf16.gmra.mxu3 %vm3096_vm2, %v11398_v30  ;;  %v13150_v33 = vpop.f32.mrf.mxu0  ;;  %v792_v12 = vld [vmem:[#allocation2 + $0x78] sm:$0xff] }
 0x26b   : > { %9532 = vst.msk [vmem:[%s11763_s4 + $0x428] sm:$0xf] %vm9265_vm5, %v9019_v1  ;;  %v8252_v61 = vsel %vm7228_vm10, %v6716_v58, %v7740_v52  ;;  %v6584_v8 = vld [vmem:[#allocation2 + $0xc58] sm:$0xff]  ;;  %v5430_v43 = vadd.f32 %v13032_v44, %v1046_v24  ;;  %v5558_v57 = vadd.f32 %v13034_v45, %v1174_v39  ;;  %v919_v44 = vld [vmem:[#allocation2 + $0x470] sm:$0xff]  ;;  %v5175_v59 = vadd.f32 %v13042_v26, %v791_v63  ;;  %v11335_v63 = vld [vmem:[%s11574_s26 + $0x488] sm:$0xff] }
 0x26c   : > { %9660 = vst.msk [vmem:[%s11763_s4 + $0x628] sm:$0xf] %vm9265_vm5, %v9147_v4  ;;  %v8764_v47 = vpack.c.bf16 %v8252_v61, %v8252_v61  ;;  %v8380_v60 = vsel %vm7356_vm11, %v6844_v49, %v7868_v53  ;;  %vm7484_vm12 = vcmp.gt.f32.partialorder %v6972_v11, 0.0  ;;  %v7996_v16 = vmul.f32 0.01, %v6972_v11  ;;  %v1176_v30 = vld [vmem:[#allocation2 + $0xc78] sm:$0xff] }
 0x26d   : > { %v8892_v23 = vpack.c.bf16 %v8380_v60, %v8380_v60  ;;  %v7100_v15 = vadd.f32 %v13123_v37, %v6584_v8  ;;  %5942 = vst.msk [vmem:[#allocation2 + $0x860] sm:$0xff] %vm264_vm3, %v5429_v6  ;;  %v5303_v45 = vadd.f32 %v13044_v27, %v919_v44  ;;  %v1175_v6 = vld [vmem:[#allocation2 + $0xc70] sm:$0xff]  ;;  %v5431_v26 = vadd.f32 %v13067_v17, %v1047_v10  ;;  %v920_v17 = vld [vmem:[#allocation2 + $0x478] sm:$0xff] }
 0x26e   : > { %9277 = vst.msk [vmem:[%s11763_s4 + $0x2c] sm:$0xf] %vm9265_vm5, %v8764_v47  ;;  %v8508_v41 = vsel %vm7484_vm12, %v6972_v11, %v7996_v16  ;;  %v6201_v25 = vld [vmem:[#allocation2 + $0x60] sm:$0xff]  ;;  %v5559_v19 = vadd.f32 %v13069_v36, %v1175_v6  ;;  %v5176_v61 = vadd.f32 %v13079_v20, %v792_v12  ;;  %v1048_v36 = vld [vmem:[#allocation2 + $0x878] sm:$0xff]  ;;  %v11271_v20 = vld [vmem:[%s11574_s26 + $0x288] sm:$0xff] }
 0x26f   : > { %9405 = vst.msk [vmem:[%s11763_s4 + $0x22c] sm:$0xf] %vm9265_vm5, %v8892_v23  ;;  %v9020_v62 = vpack.c.bf16 %v8508_v41, %v8508_v41  ;;  %vm7612_vm13 = vcmp.gt.f32.partialorder %v7100_v15, 0.0  ;;  %v8124_v31 = vmul.f32 0.01, %v7100_v15  ;;  %v6717_v38 = vadd.f32 %v13123_v37, %v6201_v25  ;;  %v11207_v23 = vld [vmem:[%s11574_s26 + $0x88] sm:$0xff] }
 0x270   : > { %6070 = vst.msk [vmem:[#allocation2 + $0xc60] sm:$0xff] %vm264_vm3, %v5557_v13  ;;  %v13152_v50 = vpop.f32.mrf.mxu1  ;;  %v5304_v25 = vadd.f32 %v13081_v42, %v920_v17  ;;  %v5432_v39 = vadd.f32 %v13100_v32, %v1048_v36 }
 0x271   : > { %9533 = vst.msk [vmem:[%s11763_s4 + $0x42c] sm:$0xf] %vm9265_vm5, %v9020_v62  ;;  %v8636_v21 = vsel %vm7612_vm13, %v7100_v15, %v8124_v31  ;;  %vm7229_vm14 = vcmp.gt.f32.partialorder %v6717_v38, 0.0  ;;  %v7741_v9 = vmul.f32 0.01, %v6717_v38  ;;  %v6329_v40 = vld [vmem:[#allocation2 + $0x460] sm:$0xff]  ;;  %v13168_v53 = vpop.f32.mrf.mxu2  ;;  %v13170_v11 = vpop.f32.mrf.mxu3 }
 0x272   : > { %v9148_v22 = vpack.c.bf16 %v8636_v21, %v8636_v21  ;;  %v6845_v46 = vadd.f32 %v13123_v37, %v6329_v40  ;;  %5687 = vst.msk [vmem:[#allocation2 + $0x68] sm:$0xff] %vm264_vm3, %v5174_v14  ;;  %v13178_v47 = vpop.f32.mrf.mxu0  ;;  %v793_v62 = vld [vmem:[#allocation2 + $0x80] sm:$0xff]  ;;  %v11399_v21 = vld [vmem:[%s11574_s26 + $0x688] sm:$0xff] }
 0x273   : > { %v8253_v51 = vsel %vm7229_vm14, %v6717_v38, %v7741_v9  ;;  %5815 = vst.msk [vmem:[#allocation2 + $0x468] sm:$0xff] %vm264_vm3, %v5302_v28 }
 0x274   : > { %9661 = vst.msk [vmem:[%s11763_s4 + $0x62c] sm:$0xf] %vm9265_vm5, %v9148_v22  ;;  %v8765_v55 = vpack.c.bf16 %v8253_v51, %v8253_v51  ;;  %vm7357_vm15 = vcmp.gt.f32.partialorder %v6845_v46, 0.0  ;;  %v7869_v56 = vmul.f32 0.01, %v6845_v46  ;;  %v6457_v58 = vld [vmem:[#allocation2 + $0x860] sm:$0xff] }
 0x275   : > { %v6973_v49 = vadd.f32 %v13123_v37, %v6457_v58  ;;  %5943 = vst.msk [vmem:[#allocation2 + $0x868] sm:$0xff] %vm264_vm3, %v5430_v43  ;;  %v921_v58 = vld [vmem:[#allocation2 + $0x480] sm:$0xff] }
 0x276   : > { %9278 = vst.msk [vmem:[%s11763_s4 + $0x30] sm:$0xf] %vm9265_vm5, %v8765_v55  ;;  %v8381_v5 = vsel %vm7357_vm15, %v6845_v46, %v7869_v56  ;;  %10949 = vmatmul.msk.bf16.gmra.mxu0 %vm3096_vm2, %v11207_v23  ;;  %v5560_v55 = vadd.f32 %v13102_v0, %v1176_v30  ;;  %v5177_v56 = vadd.f32 %v13108_v2, %v793_v62  ;;  %v794_v30 = vld [vmem:[#allocation2 + $0x88] sm:$0xff] }
 0x277   : > { %v8893_v1 = vpack.c.bf16 %v8381_v5, %v8381_v5  ;;  %vm7485_vm0 = vcmp.gt.f32.partialorder %v6973_v49, 0.0  ;;  %v7997_v3 = vmul.f32 0.01, %v6973_v49  ;;  %v6585_v52 = vld [vmem:[#allocation2 + $0xc60] sm:$0xff]  ;;  %6071 = vst.msk [vmem:[#allocation2 + $0xc68] sm:$0xff] %vm264_vm3, %v5558_v57  ;;  %v922_v62 = vld [vmem:[#allocation2 + $0x488] sm:$0xff] }
 0x278   : > { %v7101_v4 = vadd.f32 %v13123_v37, %v6585_v52  ;;  %5688 = vst.msk [vmem:[#allocation2 + $0x70] sm:$0xff] %vm264_vm3, %v5175_v59  ;;  %v13180_v60 = vpop.f32.mrf.mxu1  ;;  %11013 = vmatmul.msk.bf16.gmra.mxu1 %vm3096_vm2, %v11271_v20  ;;  %v5305_v52 = vadd.f32 %v13110_v7, %v921_v58 }
 0x279   : > { %9406 = vst.msk [vmem:[%s11763_s4 + $0x230] sm:$0xf] %vm9265_vm5, %v8893_v1  ;;  %v8509_v27 = vsel %vm7485_vm0, %v6973_v49, %v7997_v3  ;;  %v6202_v54 = vld [vmem:[#allocation2 + $0x68] sm:$0xff]  ;;  %v13202_v51 = vpop.f32.mrf.mxu2  ;;  %v13204_v57 = vpop.f32.mrf.mxu3 }
 0x27a   : > { %v9021_v8 = vpack.c.bf16 %v8509_v27, %v8509_v27  ;;  %vm7613_vm1 = vcmp.gt.f32.partialorder %v7101_v4, 0.0  ;;  %v8125_v13 = vmul.f32 0.01, %v7101_v4  ;;  %v6718_v35 = vadd.f32 %v13123_v37, %v6202_v54  ;;  %v6330_v34 = vld [vmem:[#allocation2 + $0x468] sm:$0xff]  ;;  %5816 = vst.msk [vmem:[#allocation2 + $0x470] sm:$0xff] %vm264_vm3, %v5303_v45  ;;  %11077 = vmatmul.msk.bf16.gmra.mxu2 %vm3096_vm2, %v11335_v63  ;;  %11141 = vmatmul.msk.bf16.gmra.mxu3 %vm3096_vm2, %v11399_v21  ;;  %v13214_v5 = vpop.f32.mrf.mxu0 }
 0x27b   : > { %v6846_v16 = vadd.f32 %v13123_v37, %v6330_v34  ;;  %5944 = vst.msk [vmem:[#allocation2 + $0x870] sm:$0xff] %vm264_vm3, %v5431_v26  ;;  %v1049_v26 = vld [vmem:[#allocation2 + $0x880] sm:$0xff] }
 0x27c   : > { %9534 = vst.msk [vmem:[%s11763_s4 + $0x430] sm:$0xf] %vm9265_vm5, %v9021_v8  ;;  %v8637_v15 = vsel %vm7613_vm1, %v7101_v4, %v8125_v13  ;;  %vm7230_vm4 = vcmp.gt.f32.partialorder %v6718_v35, 0.0  ;;  %v7742_v24 = vmul.f32 0.01, %v6718_v35  ;;  %v6458_v41 = vld [vmem:[#allocation2 + $0x868] sm:$0xff]  ;;  %v5433_v34 = vadd.f32 %v13139_v48, %v1049_v26 }
 0x27d   : > { %v9149_v14 = vpack.c.bf16 %v8637_v15, %v8637_v15  ;;  %vm7358_vm6 = vcmp.gt.f32.partialorder %v6846_v16, 0.0  ;;  %v7870_v28 = vmul.f32 0.01, %v6846_v16  ;;  %v6974_v29 = vadd.f32 %v13123_v37, %v6458_v41  ;;  %6072 = vst.msk [vmem:[#allocation2 + $0xc70] sm:$0xff] %vm264_vm3, %v5559_v19 }
 0x27e   : > { %v8254_v31 = vsel %vm7230_vm4, %v6718_v35, %v7742_v24  ;;  %v6586_v38 = vld [vmem:[#allocation2 + $0xc68] sm:$0xff]  ;;  %5689 = vst.msk [vmem:[#allocation2 + $0x78] sm:$0xff] %vm264_vm3, %v5176_v61 }
 0x27f   : > { %9662 = vst.msk [vmem:[%s11763_s4 + $0x630] sm:$0xf] %vm9265_vm5, %v9149_v14  ;;  %v8766_v42 = vpack.c.bf16 %v8254_v31, %v8254_v31  ;;  %v8382_v9 = vsel %vm7358_vm6, %v6846_v16, %v7870_v28  ;;  %vm7486_vm7 = vcmp.gt.f32.partialorder %v6974_v29, 0.0  ;;  %v7998_v40 = vmul.f32 0.01, %v6974_v29  ;;  %v6203_v43 = vld [vmem:[#allocation2 + $0x70] sm:$0xff] }
 0x280   : > { %v8894_v22 = vpack.c.bf16 %v8382_v9, %v8382_v9  ;;  %v7102_v46 = vadd.f32 %v13123_v37, %v6586_v38  ;;  %v6719_v32 = vadd.f32 %v13123_v37, %v6203_v43  ;;  %5817 = vst.msk [vmem:[#allocation2 + $0x478] sm:$0xff] %vm264_vm3, %v5304_v25  ;;  %v13216_v45 = vpop.f32.mrf.mxu1  ;;  %v1177_v16 = vld [vmem:[#allocation2 + $0xc80] sm:$0xff]  ;;  %v11272_v43 = vld [vmem:[%s11574_s26 + $0x290] sm:$0xff] }
 0x281   : > { %9279 = vst.msk [vmem:[%s11763_s4 + $0x34] sm:$0xf] %vm9265_vm5, %v8766_v42  ;;  %v8510_v44 = vsel %vm7486_vm7, %v6974_v29, %v7998_v40  ;;  %v6331_v10 = vld [vmem:[#allocation2 + $0x470] sm:$0xff]  ;;  %v13234_v15 = vpop.f32.mrf.mxu2  ;;  %v13236_v24 = vpop.f32.mrf.mxu3  ;;  %v5561_v29 = vadd.f32 %v13141_v18, %v1177_v16 }
 0x282   : > { %9407 = vst.msk [vmem:[%s11763_s4 + $0x234] sm:$0xf] %vm9265_vm5, %v8894_v22  ;;  %v9022_v59 = vpack.c.bf16 %v8510_v44, %v8510_v44  ;;  %vm7614_vm8 = vcmp.gt.f32.partialorder %v7102_v46, 0.0  ;;  %v8126_v49 = vmul.f32 0.01, %v7102_v46  ;;  %vm7231_vm9 = vcmp.gt.f32.partialorder %v6719_v32, 0.0  ;;  %v13243_v31 = vpop.f32.mrf.mxu0 }
 0x283   : > { %v7743_v6 = vmul.f32 0.01, %v6719_v32  ;;  %v6847_v0 = vadd.f32 %v13123_v37, %v6331_v10  ;;  %v6459_v12 = vld [vmem:[#allocation2 + $0x870] sm:$0xff]  ;;  %5945 = vst.msk [vmem:[#allocation2 + $0x878] sm:$0xff] %vm264_vm3, %v5432_v39  ;;  %v5178_v44 = vadd.f32 %v13150_v33, %v794_v30  ;;  %v5306_v10 = vadd.f32 %v13152_v50, %v922_v62 }
 0x284   : > { %9535 = vst.msk [vmem:[%s11763_s4 + $0x434] sm:$0xf] %vm9265_vm5, %v9022_v59  ;;  %v8638_v2 = vsel %vm7614_vm8, %v7102_v46, %v8126_v49  ;;  %v6975_v1 = vadd.f32 %v13123_v37, %v6459_v12  ;;  %v6587_v3 = vld [vmem:[#allocation2 + $0xc70] sm:$0xff]  ;;  %v1178_v12 = vld [vmem:[#allocation2 + $0xc88] sm:$0xff] }
 0x285   : > { %v9150_v4 = vpack.c.bf16 %v8638_v2, %v8638_v2  ;;  %v8255_v27 = vsel %vm7231_vm9, %v6719_v32, %v7743_v6  ;;  %vm7359_vm10 = vcmp.gt.f32.partialorder %v6847_v0, 0.0  ;;  %v7871_v54 = vmul.f32 0.01, %v6847_v0  ;;  %v6204_v19 = vld [vmem:[#allocation2 + $0x78] sm:$0xff]  ;;  %6073 = vst.msk [vmem:[#allocation2 + $0xc78] sm:$0xff] %vm264_vm3, %v5560_v55  ;;  %v11208_v42 = vld [vmem:[%s11574_s26 + $0x90] sm:$0xff] }
 0x286   : > { %v8767_v61 = vpack.c.bf16 %v8255_v27, %v8255_v27  ;;  %vm7487_vm11 = vcmp.gt.f32.partialorder %v6975_v1, 0.0  ;;  %v7999_v17 = vmul.f32 0.01, %v6975_v1  ;;  %v7103_v8 = vadd.f32 %v13123_v37, %v6587_v3  ;;  %5690 = vst.msk [vmem:[#allocation2 + $0x80] sm:$0xff] %vm264_vm3, %v5177_v56  ;;  %v11336_v55 = vld [vmem:[%s11574_s26 + $0x490] sm:$0xff]  ;;  %10950 = vmatmul.msk.bf16.gmra.mxu0 %vm3096_vm2, %v11208_v42 }
 0x287   : > { %9663 = vst.msk [vmem:[%s11763_s4 + $0x634] sm:$0xf] %vm9265_vm5, %v9150_v4  ;;  %v8383_v7 = vsel %vm7359_vm10, %v6847_v0, %v7871_v54  ;;  %v6720_v13 = vadd.f32 %v13123_v37, %v6204_v19  ;;  %v6332_v35 = vld [vmem:[#allocation2 + $0x478] sm:$0xff]  ;;  %v11400_v49 = vld [vmem:[%s11574_s26 + $0x690] sm:$0xff]  ;;  %v1050_v0 = vld [vmem:[#allocation2 + $0x888] sm:$0xff]  ;;  %v5562_v16 = vadd.f32 %v13170_v11, %v1178_v12 }
 0x288   : > { %9280 = vst.msk [vmem:[%s11763_s4 + $0x38] sm:$0xf] %vm9265_vm5, %v8767_v61  ;;  %v8895_v36 = vpack.c.bf16 %v8383_v7, %v8383_v7  ;;  %v8511_v23 = vsel %vm7487_vm11, %v6975_v1, %v7999_v17  ;;  %vm7615_vm12 = vcmp.gt.f32.partialorder %v7103_v8, 0.0  ;;  %v8127_v20 = vmul.f32 0.01, %v7103_v8  ;;  %v13245_v38 = vpop.f32.mrf.mxu1  ;;  %11014 = vmatmul.msk.bf16.gmra.mxu1 %vm3096_vm2, %v11272_v43  ;;  %v795_v61 = vld [vmem:[#allocation2 + $0x90] sm:$0xff] }
 0x289   : > { %v9023_v41 = vpack.c.bf16 %v8511_v23, %v8511_v23  ;;  %vm7232_vm13 = vcmp.gt.f32.partialorder %v6720_v13, 0.0  ;;  %v7744_v25 = vmul.f32 0.01, %v6720_v13  ;;  %v6848_v14 = vadd.f32 %v13123_v37, %v6332_v35  ;;  %5818 = vst.msk [vmem:[#allocation2 + $0x480] sm:$0xff] %vm264_vm3, %v5305_v52  ;;  %v13268_v1 = vpop.f32.mrf.mxu2  ;;  %v13270_v3 = vpop.f32.mrf.mxu3  ;;  %v923_v17 = vld [vmem:[#allocation2 + $0x490] sm:$0xff] }
 0x28a   : > { %9408 = vst.msk [vmem:[%s11763_s4 + $0x238] sm:$0xf] %vm9265_vm5, %v8895_v36  ;;  %v8639_v48 = vsel %vm7615_vm12, %v7103_v8, %v8127_v20  ;;  %v6460_v28 = vld [vmem:[#allocation2 + $0x878] sm:$0xff]  ;;  %v5434_v19 = vadd.f32 %v13168_v53, %v1050_v0  ;;  %11078 = vmatmul.msk.bf16.gmra.mxu2 %vm3096_vm2, %v11336_v55  ;;  %11142 = vmatmul.msk.bf16.gmra.mxu3 %vm3096_vm2, %v11400_v49  ;;  %v13278_v8 = vpop.f32.mrf.mxu0  ;;  %v1051_v20 = vld [vmem:[#allocation2 + $0x890] sm:$0xff] }
 0x28b   : > { %9536 = vst.msk [vmem:[%s11763_s4 + $0x438] sm:$0xf] %vm9265_vm5, %v9023_v41  ;;  %v9151_v39 = vpack.c.bf16 %v8639_v48, %v8639_v48  ;;  %v8256_v63 = vsel %vm7232_vm13, %v6720_v13, %v7744_v25  ;;  %vm7360_vm14 = vcmp.gt.f32.partialorder %v6848_v14, 0.0  ;;  %v7872_v21 = vmul.f32 0.01, %v6848_v14  ;;  %v1179_v41 = vld [vmem:[#allocation2 + $0xc90] sm:$0xff] }
 0x28c   : > { %v8768_v9 = vpack.c.bf16 %v8256_v63, %v8256_v63  ;;  %v6976_v40 = vadd.f32 %v13123_v37, %v6460_v28  ;;  %v6588_v18 = vld [vmem:[#allocation2 + $0xc78] sm:$0xff]  ;;  %5946 = vst.msk [vmem:[#allocation2 + $0x880] sm:$0xff] %vm264_vm3, %v5433_v34  ;;  %v5179_v23 = vadd.f32 %v13178_v47, %v795_v61  ;;  %v5307_v11 = vadd.f32 %v13180_v60, %v923_v17 }
 0x28d   : > { %9664 = vst.msk [vmem:[%s11763_s4 + $0x638] sm:$0xf] %vm9265_vm5, %v9151_v39  ;;  %v8384_v22 = vsel %vm7360_vm14, %v6848_v14, %v7872_v21  ;;  %v7104_v46 = vadd.f32 %v13123_v37, %v6588_v18  ;;  %v6205_v32 = vld [vmem:[#allocation2 + $0x80] sm:$0xff]  ;;  %v5435_v47 = vadd.f32 %v13202_v51, %v1051_v20  ;;  %v5563_v62 = vadd.f32 %v13204_v57, %v1179_v41  ;;  %v796_v39 = vld [vmem:[#allocation2 + $0x98] sm:$0xff] }
 0x28e   : > { %9281 = vst.msk [vmem:[%s11763_s4 + $0x3c] sm:$0xf] %vm9265_vm5, %v8768_v9  ;;  %v8896_v56 = vpack.c.bf16 %v8384_v22, %v8384_v22  ;;  %vm7488_vm15 = vcmp.gt.f32.partialorder %v6976_v40, 0.0  ;;  %v8000_v58 = vmul.f32 0.01, %v6976_v40  ;;  %v6721_v59 = vadd.f32 %v13123_v37, %v6205_v32  ;;  %v924_v51 = vld [vmem:[#allocation2 + $0x498] sm:$0xff] }
 0x28f   : > { %vm7616_vm0 = vcmp.gt.f32.partialorder %v7104_v46, 0.0  ;;  %v8128_v6 = vmul.f32 0.01, %v7104_v46  ;;  %6074 = vst.msk [vmem:[#allocation2 + $0xc80] sm:$0xff] %vm264_vm3, %v5561_v29  ;;  %v1052_v32 = vld [vmem:[#allocation2 + $0x898] sm:$0xff] }
 0x290   : > { %9409 = vst.msk [vmem:[%s11763_s4 + $0x23c] sm:$0xf] %vm9265_vm5, %v8896_v56  ;;  %v8512_v33 = vsel %vm7488_vm15, %v6976_v40, %v8000_v58  ;;  %vm7233_vm1 = vcmp.gt.f32.partialorder %v6721_v59, 0.0  ;;  %v7745_v50 = vmul.f32 0.01, %v6721_v59  ;;  %v6333_v2 = vld [vmem:[#allocation2 + $0x480] sm:$0xff]  ;;  %v13280_v7 = vpop.f32.mrf.mxu1 }
 0x291   : > { %v9024_v52 = vpack.c.bf16 %v8512_v33, %v8512_v33  ;;  %v8640_v26 = vsel %vm7616_vm0, %v7104_v46, %v8128_v6  ;;  %v6849_v4 = vadd.f32 %v13123_v37, %v6333_v2  ;;  %5691 = vst.msk [vmem:[#allocation2 + $0x88] sm:$0xff] %vm264_vm3, %v5178_v44  ;;  %v13301_v9 = vpop.f32.mrf.mxu2  ;;  %v13305_v18 = vpop.f32.mrf.mxu3  ;;  %v5180_v46 = vadd.f32 %v13214_v5, %v796_v39  ;;  %v11209_v56 = vld [vmem:[%s11574_s26 + $0x98] sm:$0xff]  ;;  %v1053_v39 = vld [vmem:[#allocation2 + $0x8a0] sm:$0xff] }
 0x292   : > { %v9152_v27 = vpack.c.bf16 %v8640_v26, %v8640_v26  ;;  %v8257_v54 = vsel %vm7233_vm1, %v6721_v59, %v7745_v50  ;;  %5819 = vst.msk [vmem:[#allocation2 + $0x488] sm:$0xff] %vm264_vm3, %v5306_v10  ;;  %v13307_v57 = vpop.f32.mrf.mxu0  ;;  %v11273_v58 = vld [vmem:[%s11574_s26 + $0x298] sm:$0xff]  ;;  %v5308_v50 = vadd.f32 %v13216_v45, %v924_v51 }
 0x293   : > { %9537 = vst.msk [vmem:[%s11763_s4 + $0x43c] sm:$0xf] %vm9265_vm5, %v9024_v52  ;;  %v8769_v13 = vpack.c.bf16 %v8257_v54, %v8257_v54  ;;  %vm7361_vm4 = vcmp.gt.f32.partialorder %v6849_v4, 0.0  ;;  %v7873_v35 = vmul.f32 0.01, %v6849_v4  ;;  %v6461_v34 = vld [vmem:[#allocation2 + $0x880] sm:$0xff] }
 0x294   : > { %9665 = vst.msk [vmem:[%s11763_s4 + $0x63c] sm:$0xf] %vm9265_vm5, %v9152_v27  ;;  %v6977_v53 = vadd.f32 %v13123_v37, %v6461_v34  ;;  %v1180_v6 = vld [vmem:[#allocation2 + $0xc98] sm:$0xff]  ;;  %v5436_v27 = vadd.f32 %v13234_v15, %v1052_v32  ;;  %v797_v54 = vld [vmem:[#allocation2 + $0xa0] sm:$0xff]  ;;  %v798_v32 = vld [vmem:[#allocation2 + $0xa8] sm:$0xff] }
 0x295   : > { %9282 = vst.msk [vmem:[%s11763_s4 + $0x40] sm:$0xf] %vm9265_vm5, %v8769_v13  ;;  %v8385_v36 = vsel %vm7361_vm4, %v6849_v4, %v7873_v35  ;;  %v11337_v2 = vld [vmem:[%s11574_s26 + $0x498] sm:$0xff]  ;;  %v5564_v17 = vadd.f32 %v13236_v24, %v1180_v6 }
 0x296   : > { %v8897_v25 = vpack.c.bf16 %v8385_v36, %v8385_v36  ;;  %vm7489_vm6 = vcmp.gt.f32.partialorder %v6977_v53, 0.0  ;;  %v8001_v14 = vmul.f32 0.01, %v6977_v53  ;;  %v6589_v48 = vld [vmem:[#allocation2 + $0xc80] sm:$0xff]  ;;  %5947 = vst.msk [vmem:[#allocation2 + $0x888] sm:$0xff] %vm264_vm3, %v5434_v19  ;;  %v11401_v52 = vld [vmem:[%s11574_s26 + $0x698] sm:$0xff]  ;;  %10951 = vmatmul.msk.bf16.gmra.mxu0 %vm3096_vm2, %v11209_v56 }
 0x297   : > { %v7105_v28 = vadd.f32 %v13123_v37, %v6589_v48  ;;  %6075 = vst.msk [vmem:[#allocation2 + $0xc88] sm:$0xff] %vm264_vm3, %v5562_v16  ;;  %v5181_v16 = vadd.f32 %v13243_v31, %v797_v54 }
 0x298   : > { %9410 = vst.msk [vmem:[%s11763_s4 + $0x240] sm:$0xf] %vm9265_vm5, %v8897_v25  ;;  %v8513_v29 = vsel %vm7489_vm6, %v6977_v53, %v8001_v14  ;;  %v6206_v30 = vld [vmem:[#allocation2 + $0x88] sm:$0xff]  ;;  %v13312_v44 = vpop.f32.mrf.mxu1  ;;  %11015 = vmatmul.msk.bf16.gmra.mxu1 %vm3096_vm2, %v11273_v58  ;;  %v925_v53 = vld [vmem:[#allocation2 + $0x4a0] sm:$0xff] }
 0x299   : > { %v9025_v63 = vpack.c.bf16 %v8513_v29, %v8513_v29  ;;  %vm7617_vm7 = vcmp.gt.f32.partialorder %v7105_v28, 0.0  ;;  %v8129_v21 = vmul.f32 0.01, %v7105_v28  ;;  %v6722_v42 = vadd.f32 %v13123_v37, %v6206_v30  ;;  %v6334_v60 = vld [vmem:[#allocation2 + $0x488] sm:$0xff]  ;;  %5692 = vst.msk [vmem:[#allocation2 + $0x90] sm:$0xff] %vm264_vm3, %v5179_v23  ;;  %v13349_v29 = vpop.f32.mrf.mxu3 }
 0x29a   : > { %v6850_v40 = vadd.f32 %v13123_v37, %v6334_v60  ;;  %5820 = vst.msk [vmem:[#allocation2 + $0x490] sm:$0xff] %vm264_vm3, %v5307_v11  ;;  %11079 = vmatmul.msk.bf16.gmra.mxu2 %vm3096_vm2, %v11337_v2  ;;  %11143 = vmatmul.msk.bf16.gmra.mxu3 %vm3096_vm2, %v11401_v52  ;;  %v13341_v41 = vpop.f32.mrf.mxu0  ;;  %v11210_v2 = vld [vmem:[%s11574_s26 + $0xa0] sm:$0xff] }
 0x29b   : > { %9538 = vst.msk [vmem:[%s11763_s4 + $0x440] sm:$0xf] %vm9265_vm5, %v9025_v63  ;;  %v8641_v43 = vsel %vm7617_vm7, %v7105_v28, %v8129_v21  ;;  %vm7234_vm8 = vcmp.gt.f32.partialorder %v6722_v42, 0.0  ;;  %v7746_v22 = vmul.f32 0.01, %v6722_v42  ;;  %v13347_v28 = vpop.f32.mrf.mxu2 }
 0x29c   : > { %v9153_v10 = vpack.c.bf16 %v8641_v43, %v8641_v43  ;;  %vm7362_vm9 = vcmp.gt.f32.partialorder %v6850_v40, 0.0  ;;  %v7874_v55 = vmul.f32 0.01, %v6850_v40  ;;  %5948 = vst.msk [vmem:[#allocation2 + $0x890] sm:$0xff] %vm264_vm3, %v5435_v47 }
 0x29d   : > { %v8258_v59 = vsel %vm7234_vm8, %v6722_v42, %v7746_v22  ;;  %v6462_v49 = vld [vmem:[#allocation2 + $0x888] sm:$0xff]  ;;  %6076 = vst.msk [vmem:[#allocation2 + $0xc90] sm:$0xff] %vm264_vm3, %v5563_v62  ;;  %v5309_v62 = vadd.f32 %v13245_v38, %v925_v53  ;;  %v5437_v22 = vadd.f32 %v13268_v1, %v1053_v39 }
 0x29e   : > { %9666 = vst.msk [vmem:[%s11763_s4 + $0x640] sm:$0xf] %vm9265_vm5, %v9153_v10  ;;  %v8770_v5 = vpack.c.bf16 %v8258_v59, %v8258_v59  ;;  %v8386_v0 = vsel %vm7362_vm9, %v6850_v40, %v7874_v55  ;;  %v6978_v12 = vadd.f32 %v13123_v37, %v6462_v49  ;;  %v6590_v33 = vld [vmem:[#allocation2 + $0xc88] sm:$0xff] }
 0x29f   : > { %v8898_v26 = vpack.c.bf16 %v8386_v0, %v8386_v0  ;;  %v7106_v4 = vadd.f32 %v13123_v37, %v6590_v33  ;;  %5693 = vst.msk [vmem:[#allocation2 + $0x98] sm:$0xff] %vm264_vm3, %v5180_v46  ;;  %v1181_v46 = vld [vmem:[#allocation2 + $0xca0] sm:$0xff]  ;;  %v5182_v33 = vadd.f32 %v13278_v8, %v798_v32 }
 0x2a0   : > { %9283 = vst.msk [vmem:[%s11763_s4 + $0x44] sm:$0xf] %vm9265_vm5, %v8770_v5  ;;  %vm7490_vm10 = vcmp.gt.f32.partialorder %v6978_v12, 0.0  ;;  %v8002_v19 = vmul.f32 0.01, %v6978_v12  ;;  %v6207_v61 = vld [vmem:[#allocation2 + $0x90] sm:$0xff]  ;;  %v13343_v25 = vpop.f32.mrf.mxu1 }
 0x2a1   : > { %9411 = vst.msk [vmem:[%s11763_s4 + $0x244] sm:$0xf] %vm9265_vm5, %v8898_v26  ;;  %vm7618_vm11 = vcmp.gt.f32.partialorder %v7106_v4, 0.0  ;;  %v8130_v45 = vmul.f32 0.01, %v7106_v4  ;;  %v6723_v13 = vadd.f32 %v13123_v37, %v6207_v61  ;;  %v6335_v35 = vld [vmem:[#allocation2 + $0x490] sm:$0xff] }
 0x2a2   : > { %v8514_v15 = vsel %vm7490_vm10, %v6978_v12, %v8002_v19  ;;  %v6851_v34 = vadd.f32 %v13123_v37, %v6335_v35  ;;  %5821 = vst.msk [vmem:[#allocation2 + $0x498] sm:$0xff] %vm264_vm3, %v5308_v50  ;;  %v5565_v12 = vadd.f32 %v13270_v3, %v1181_v46  ;;  %v926_v50 = vld [vmem:[#allocation2 + $0x4a8] sm:$0xff]  ;;  %v13377_v19 = vpop.f32.mrf.mxu3  ;;  %v11274_v3 = vld [vmem:[%s11574_s26 + $0x2a0] sm:$0xff]  ;;  %v13381_v61 = vpop.f32.mrf.mxu0 }
 0x2a3   : > { %v9026_v24 = vpack.c.bf16 %v8514_v15, %v8514_v15  ;;  %v8642_v36 = vsel %vm7618_vm11, %v7106_v4, %v8130_v45  ;;  %vm7235_vm12 = vcmp.gt.f32.partialorder %v6723_v13, 0.0  ;;  %v7747_v23 = vmul.f32 0.01, %v6723_v13  ;;  %v6463_v20 = vld [vmem:[#allocation2 + $0x890] sm:$0xff]  ;;  %5949 = vst.msk [vmem:[#allocation2 + $0x898] sm:$0xff] %vm264_vm3, %v5436_v27  ;;  %v1054_v27 = vld [vmem:[#allocation2 + $0x8a8] sm:$0xff]  ;;  %v13375_v54 = vpop.f32.mrf.mxu2 }
 0x2a4   : > { %v9154_v14 = vpack.c.bf16 %v8642_v36, %v8642_v36  ;;  %vm7363_vm13 = vcmp.gt.f32.partialorder %v6851_v34, 0.0  ;;  %v7875_v31 = vmul.f32 0.01, %v6851_v34  ;;  %v6979_v48 = vadd.f32 %v13123_v37, %v6463_v20  ;;  %v6591_v11 = vld [vmem:[#allocation2 + $0xc90] sm:$0xff]  ;;  %6077 = vst.msk [vmem:[#allocation2 + $0xc98] sm:$0xff] %vm264_vm3, %v5564_v17  ;;  %v11338_v45 = vld [vmem:[%s11574_s26 + $0x4a0] sm:$0xff] }
 0x2a5   : > { %9539 = vst.msk [vmem:[%s11763_s4 + $0x444] sm:$0xf] %vm9265_vm5, %v9026_v24  ;;  %v8259_v30 = vsel %vm7235_vm12, %v6723_v13, %v7747_v23  ;;  %v7107_v47 = vadd.f32 %v13123_v37, %v6591_v11  ;;  %v11402_v13 = vld [vmem:[%s11574_s26 + $0x6a0] sm:$0xff]  ;;  %v5310_v20 = vadd.f32 %v13280_v7, %v926_v50 }
 0x2a6   : > { %9667 = vst.msk [vmem:[%s11763_s4 + $0x644] sm:$0xf] %vm9265_vm5, %v9154_v14  ;;  %v8771_v63 = vpack.c.bf16 %v8259_v30, %v8259_v30  ;;  %v8387_v21 = vsel %vm7363_vm13, %v6851_v34, %v7875_v31  ;;  %vm7491_vm14 = vcmp.gt.f32.partialorder %v6979_v48, 0.0  ;;  %v8003_v42 = vmul.f32 0.01, %v6979_v48  ;;  %v6208_v60 = vld [vmem:[#allocation2 + $0x98] sm:$0xff]  ;;  %10952 = vmatmul.msk.bf16.gmra.mxu0 %vm3096_vm2, %v11210_v2 }
 0x2a7   : > { %v8899_v40 = vpack.c.bf16 %v8387_v21, %v8387_v21  ;;  %vm7619_vm15 = vcmp.gt.f32.partialorder %v7107_v47, 0.0  ;;  %v8131_v51 = vmul.f32 0.01, %v7107_v47  ;;  %v6724_v43 = vadd.f32 %v13123_v37, %v6208_v60  ;;  %5694 = vst.msk [vmem:[#allocation2 + $0xa0] sm:$0xff] %vm264_vm3, %v5181_v16  ;;  %v1182_v14 = vld [vmem:[#allocation2 + $0xca8] sm:$0xff]  ;;  %v799_v31 = vld [vmem:[#allocation2 + $0xb0] sm:$0xff] }
 0x2a8   : > { %9284 = vst.msk [vmem:[%s11763_s4 + $0x48] sm:$0xf] %vm9265_vm5, %v8771_v63  ;;  %v8515_v38 = vsel %vm7491_vm14, %v6979_v48, %v8003_v42  ;;  %v13383_v17 = vpop.f32.mrf.mxu1  ;;  %11016 = vmatmul.msk.bf16.gmra.mxu1 %vm3096_vm2, %v11274_v3  ;;  %v5566_v39 = vadd.f32 %v13305_v18, %v1182_v14  ;;  %v927_v63 = vld [vmem:[#allocation2 + $0x4b0] sm:$0xff] }
 0x2a9   : > { %9412 = vst.msk [vmem:[%s11763_s4 + $0x248] sm:$0xf] %vm9265_vm5, %v8899_v40  ;;  %v9027_v10 = vpack.c.bf16 %v8515_v38, %v8515_v38  ;;  %v8643_v55 = vsel %vm7619_vm15, %v7107_v47, %v8131_v51  ;;  %vm7236_vm0 = vcmp.gt.f32.partialorder %v6724_v43, 0.0  ;;  %v7748_v56 = vmul.f32 0.01, %v6724_v43  ;;  %v6336_v58 = vld [vmem:[#allocation2 + $0x498] sm:$0xff] }
 0x2aa   : > { %v9155_v59 = vpack.c.bf16 %v8643_v55, %v8643_v55  ;;  %v6852_v49 = vadd.f32 %v13123_v37, %v6336_v58  ;;  %v6464_v6 = vld [vmem:[#allocation2 + $0x898] sm:$0xff]  ;;  %5822 = vst.msk [vmem:[#allocation2 + $0x4a0] sm:$0xff] %vm264_vm3, %v5309_v62  ;;  %v5438_v47 = vadd.f32 %v13301_v9, %v1054_v27  ;;  %11080 = vmatmul.msk.bf16.gmra.mxu2 %vm3096_vm2, %v11338_v45  ;;  %v1055_v9 = vld [vmem:[#allocation2 + $0x8b0] sm:$0xff] }
 0x2ab   : > { %9540 = vst.msk [vmem:[%s11763_s4 + $0x448] sm:$0xf] %vm9265_vm5, %v9027_v10  ;;  %v8260_v1 = vsel %vm7236_vm0, %v6724_v43, %v7748_v56  ;;  %v6980_v5 = vadd.f32 %v13123_v37, %v6464_v6  ;;  %v6592_v0 = vld [vmem:[#allocation2 + $0xc98] sm:$0xff]  ;;  %11144 = vmatmul.msk.bf16.gmra.mxu3 %vm3096_vm2, %v11402_v13  ;;  %v5183_v40 = vadd.f32 %v13307_v57, %v799_v31  ;;  %v13408_v51 = vpop.f32.mrf.mxu2  ;;  %v1183_v55 = vld [vmem:[#allocation2 + $0xcb0] sm:$0xff] }
 0x2ac   : > { %9668 = vst.msk [vmem:[%s11763_s4 + $0x648] sm:$0xf] %vm9265_vm5, %v9155_v59  ;;  %v8772_v52 = vpack.c.bf16 %v8260_v1, %v8260_v1  ;;  %vm7364_vm1 = vcmp.gt.f32.partialorder %v6852_v49, 0.0  ;;  %v7876_v26 = vmul.f32 0.01, %v6852_v49  ;;  %v7108_v4 = vadd.f32 %v13123_v37, %v6592_v0 }
 0x2ad   : > { %vm7492_vm4 = vcmp.gt.f32.partialorder %v6980_v5, 0.0  ;;  %v8004_v8 = vmul.f32 0.01, %v6980_v5  ;;  %5950 = vst.msk [vmem:[#allocation2 + $0x8a0] sm:$0xff] %vm264_vm3, %v5437_v22  ;;  %v13410_v43 = vpop.f32.mrf.mxu3  ;;  %v13414_v22 = vpop.f32.mrf.mxu0  ;;  %v5311_v10 = vadd.f32 %v13312_v44, %v927_v63  ;;  %v5439_v57 = vadd.f32 %v13347_v28, %v1055_v9 }
 0x2ae   : > { %9285 = vst.msk [vmem:[%s11763_s4 + $0x4c] sm:$0xf] %vm9265_vm5, %v8772_v52  ;;  %v8388_v35 = vsel %vm7364_vm1, %v6852_v49, %v7876_v26  ;;  %vm7620_vm6 = vcmp.gt.f32.partialorder %v7108_v4, 0.0  ;;  %v8132_v15 = vmul.f32 0.01, %v7108_v4  ;;  %v6209_v34 = vld [vmem:[#allocation2 + $0xa0] sm:$0xff]  ;;  %v5567_v28 = vadd.f32 %v13349_v29, %v1183_v55 }
 0x2af   : > { %v8900_v16 = vpack.c.bf16 %v8388_v35, %v8388_v35  ;;  %v8516_v53 = vsel %vm7492_vm4, %v6980_v5, %v8004_v8  ;;  %v6725_v24 = vadd.f32 %v13123_v37, %v6209_v34  ;;  %6078 = vst.msk [vmem:[#allocation2 + $0xca0] sm:$0xff] %vm264_vm3, %v5565_v12  ;;  %v800_v5 = vld [vmem:[#allocation2 + $0xb8] sm:$0xff]  ;;  %v11211_v35 = vld [vmem:[%s11574_s26 + $0xa8] sm:$0xff] }
 0x2b0   : > { %v9028_v36 = vpack.c.bf16 %v8516_v53, %v8516_v53  ;;  %v8644_v23 = vsel %vm7620_vm6, %v7108_v4, %v8132_v15  ;;  %5695 = vst.msk [vmem:[#allocation2 + $0xa8] sm:$0xff] %vm264_vm3, %v5182_v33  ;;  %v13416_v18 = vpop.f32.mrf.mxu1  ;;  %v928_v33 = vld [vmem:[#allocation2 + $0x4b8] sm:$0xff]  ;;  %v5184_v3 = vadd.f32 %v13341_v41, %v800_v5  ;;  %v11339_v41 = vld [vmem:[%s11574_s26 + $0x4a8] sm:$0xff]  ;;  %v1185_v5 = vld [vmem:[#allocation2 + $0xcc0] sm:$0xff] }
 0x2b1   : > { %9413 = vst.msk [vmem:[%s11763_s4 + $0x24c] sm:$0xf] %vm9265_vm5, %v8900_v16  ;;  %v9156_v48 = vpack.c.bf16 %v8644_v23, %v8644_v23  ;;  %vm7237_vm7 = vcmp.gt.f32.partialorder %v6725_v24, 0.0  ;;  %v7749_v11 = vmul.f32 0.01, %v6725_v24  ;;  %v6337_v30 = vld [vmem:[#allocation2 + $0x4a0] sm:$0xff]  ;;  %v5312_v16 = vadd.f32 %v13343_v25, %v928_v33 }
 0x2b2   : > { %9541 = vst.msk [vmem:[%s11763_s4 + $0x44c] sm:$0xf] %vm9265_vm5, %v9028_v36  ;;  %v6853_v62 = vadd.f32 %v13123_v37, %v6337_v30  ;;  %v1056_v52 = vld [vmem:[#allocation2 + $0x8b8] sm:$0xff]  ;;  %v11275_v36 = vld [vmem:[%s11574_s26 + $0x2a8] sm:$0xff] }
 0x2b3   : > { %9669 = vst.msk [vmem:[%s11763_s4 + $0x64c] sm:$0xf] %vm9265_vm5, %v9156_v48  ;;  %v8261_v7 = vsel %vm7237_vm7, %v6725_v24, %v7749_v11  ;;  %v1184_v8 = vld [vmem:[#allocation2 + $0xcb8] sm:$0xff]  ;;  %v13435_v45 = vpop.f32.mrf.mxu2  ;;  %v11403_v23 = vld [vmem:[%s11574_s26 + $0x6a8] sm:$0xff]  ;;  %v5440_v31 = vadd.f32 %v13375_v54, %v1056_v52 }
 0x2b4   : > { %v8773_v21 = vpack.c.bf16 %v8261_v7, %v8261_v7  ;;  %vm7365_vm8 = vcmp.gt.f32.partialorder %v6853_v62, 0.0  ;;  %v7877_v42 = vmul.f32 0.01, %v6853_v62  ;;  %v6465_v60 = vld [vmem:[#allocation2 + $0x8a0] sm:$0xff]  ;;  %5823 = vst.msk [vmem:[#allocation2 + $0x4a8] sm:$0xff] %vm264_vm3, %v5310_v20 }
 0x2b5   : > { %v6981_v38 = vadd.f32 %v13123_v37, %v6465_v60  ;;  %5951 = vst.msk [vmem:[#allocation2 + $0x8a8] sm:$0xff] %vm264_vm3, %v5438_v47  ;;  %v13437_v13 = vpop.f32.mrf.mxu3  ;;  %v13443_v53 = vpop.f32.mrf.mxu0  ;;  %v801_v7 = vld [vmem:[#allocation2 + $0xc0] sm:$0xff] }
 0x2b6   : > { %9286 = vst.msk [vmem:[%s11763_s4 + $0x50] sm:$0xf] %vm9265_vm5, %v8773_v21  ;;  %v8389_v46 = vsel %vm7365_vm8, %v6853_v62, %v7877_v42  ;;  %v6593_v32 = vld [vmem:[#allocation2 + $0xca0] sm:$0xff]  ;;  %v5568_v62 = vadd.f32 %v13377_v19, %v1184_v8  ;;  %10953 = vmatmul.msk.bf16.gmra.mxu0 %vm3096_vm2, %v11211_v35  ;;  %v5569_v35 = vadd.f32 %v13410_v43, %v1185_v5  ;;  %v1059_v5 = vld [vmem:[#allocation2 + $0x8d0] sm:$0xff] }
 0x2b7   : > { %v8901_v56 = vpack.c.bf16 %v8389_v46, %v8389_v46  ;;  %vm7493_vm9 = vcmp.gt.f32.partialorder %v6981_v38, 0.0  ;;  %v8005_v58 = vmul.f32 0.01, %v6981_v38  ;;  %v7109_v59 = vadd.f32 %v13123_v37, %v6593_v32  ;;  %v6210_v49 = vld [vmem:[#allocation2 + $0xa8] sm:$0xff]  ;;  %6079 = vst.msk [vmem:[#allocation2 + $0xca8] sm:$0xff] %vm264_vm3, %v5566_v39  ;;  %v929_v32 = vld [vmem:[#allocation2 + $0x4c0] sm:$0xff] }
 0x2b8   : > { %v6726_v6 = vadd.f32 %v13123_v37, %v6210_v49  ;;  %5696 = vst.msk [vmem:[#allocation2 + $0xb0] sm:$0xff] %vm264_vm3, %v5183_v40  ;;  %v13445_v24 = vpop.f32.mrf.mxu1  ;;  %11017 = vmatmul.msk.bf16.gmra.mxu1 %vm3096_vm2, %v11275_v36 }
 0x2b9   : > { %9414 = vst.msk [vmem:[%s11763_s4 + $0x250] sm:$0xf] %vm9265_vm5, %v8901_v56  ;;  %v8517_v1 = vsel %vm7493_vm9, %v6981_v38, %v8005_v58  ;;  %vm7621_vm10 = vcmp.gt.f32.partialorder %v7109_v59, 0.0  ;;  %v8133_v44 = vmul.f32 0.01, %v7109_v59 }
 0x2ba   : > { %v9029_v0 = vpack.c.bf16 %v8517_v1, %v8517_v1  ;;  %vm7238_vm11 = vcmp.gt.f32.partialorder %v6726_v6, 0.0  ;;  %v7750_v12 = vmul.f32 0.01, %v6726_v6  ;;  %5824 = vst.msk [vmem:[#allocation2 + $0x4b0] sm:$0xff] %vm264_vm3, %v5311_v10  ;;  %11081 = vmatmul.msk.bf16.gmra.mxu2 %vm3096_vm2, %v11339_v41  ;;  %v13471_v38 = vld [vmem:[%s16747_s2] ss:$0 sm:$0xff] }
 0x2bb   : > { %v8645_v50 = vsel %vm7621_vm10, %v7109_v59, %v8133_v44  ;;  %v6338_v2 = vld [vmem:[#allocation2 + $0x4a8] sm:$0xff]  ;;  %5952 = vst.msk [vmem:[#allocation2 + $0x8b0] sm:$0xff] %vm264_vm3, %v5439_v57  ;;  %11145 = vmatmul.msk.bf16.gmra.mxu3 %vm3096_vm2, %v11403_v23  ;;  %v5313_v44 = vadd.f32 %v13383_v17, %v929_v32 }
 0x2bc   : > { %9542 = vst.msk [vmem:[%s11763_s4 + $0x450] sm:$0xf] %vm9265_vm5, %v9029_v0  ;;  %v9157_v26 = vpack.c.bf16 %v8645_v50, %v8645_v50  ;;  %v8262_v4 = vsel %vm7238_vm11, %v6726_v6, %v7750_v12  ;;  %v6854_v29 = vadd.f32 %v13123_v37, %v6338_v2  ;;  %v6466_v27 = vld [vmem:[#allocation2 + $0x8a8] sm:$0xff]  ;;  %v13479_v6 = vpop.f32.mrf.mxu2 }
 0x2bd   : > { %v8774_v15 = vpack.c.bf16 %v8262_v4, %v8262_v4  ;;  %v6982_v34 = vadd.f32 %v13123_v37, %v6466_v27  ;;  %6080 = vst.msk [vmem:[#allocation2 + $0xcb0] sm:$0xff] %vm264_vm3, %v5567_v28  ;;  %v13481_v1 = vpop.f32.mrf.mxu3  ;;  %v1057_v28 = vld [vmem:[#allocation2 + $0x8c0] sm:$0xff]  ;;  %v13486_v0 = vpop.f32.mrf.mxu0  ;;  %v802_v41 = vld [vmem:[#allocation2 + $0xc8] sm:$0xff] }
 0x2be   : > { %9670 = vst.msk [vmem:[%s11763_s4 + $0x650] sm:$0xf] %vm9265_vm5, %v9157_v26  ;;  %vm7366_vm12 = vcmp.gt.f32.partialorder %v6854_v29, 0.0  ;;  %v7878_v20 = vmul.f32 0.01, %v6854_v29  ;;  %v6594_v14 = vld [vmem:[#allocation2 + $0xca8] sm:$0xff]  ;;  %v5441_v8 = vadd.f32 %v13408_v51, %v1057_v28 }
 0x2bf   : > { %9287 = vst.msk [vmem:[%s11763_s4 + $0x54] sm:$0xf] %vm9265_vm5, %v8774_v15  ;;  %vm7494_vm13 = vcmp.gt.f32.partialorder %v6982_v34, 0.0  ;;  %v8006_v48 = vmul.f32 0.01, %v6982_v34  ;;  %v7110_v25 = vadd.f32 %v13123_v37, %v6594_v14  ;;  %v6211_v11 = vld [vmem:[#allocation2 + $0xb0] sm:$0xff] }
 0x2c0   : > { %v8390_v30 = vsel %vm7366_vm12, %v6854_v29, %v7878_v20  ;;  %v6727_v47 = vadd.f32 %v13123_v37, %v6211_v11  ;;  %5697 = vst.msk [vmem:[#allocation2 + $0xb8] sm:$0xff] %vm264_vm3, %v5184_v3  ;;  %v13488_v12 = vpop.f32.mrf.mxu1  ;;  %v930_v23 = vld [vmem:[#allocation2 + $0x4c8] sm:$0xff] }
 0x2c1   : > { %v8902_v39 = vpack.c.bf16 %v8390_v30, %v8390_v30  ;;  %v8518_v63 = vsel %vm7494_vm13, %v6982_v34, %v8006_v48  ;;  %vm7622_vm14 = vcmp.gt.f32.partialorder %v7110_v25, 0.0  ;;  %v8134_v54 = vmul.f32 0.01, %v7110_v25  ;;  %v6339_v9 = vld [vmem:[#allocation2 + $0x4b0] sm:$0xff]  ;;  %5825 = vst.msk [vmem:[#allocation2 + $0x4b8] sm:$0xff] %vm264_vm3, %v5312_v16 }
 0x2c2   : > { %v9030_v21 = vpack.c.bf16 %v8518_v63, %v8518_v63  ;;  %vm7239_vm15 = vcmp.gt.f32.partialorder %v6727_v47, 0.0  ;;  %v7751_v42 = vmul.f32 0.01, %v6727_v47  ;;  %v6855_v60 = vadd.f32 %v13123_v37, %v6339_v9  ;;  %v6467_v19 = vld [vmem:[#allocation2 + $0x8b0] sm:$0xff]  ;;  %5953 = vst.msk [vmem:[#allocation2 + $0x8b8] sm:$0xff] %vm264_vm3, %v5440_v31 }
 0x2c3   : > { %9415 = vst.msk [vmem:[%s11763_s4 + $0x254] sm:$0xf] %vm9265_vm5, %v8902_v39  ;;  %v8646_v40 = vsel %vm7622_vm14, %v7110_v25, %v8134_v54  ;;  %v6983_v46 = vadd.f32 %v13471_v38, %v6467_v19  ;;  %v5185_v37 = vadd.f32 %v13381_v61, %v801_v7  ;;  %v1058_v25 = vld [vmem:[#allocation2 + $0x8c8] sm:$0xff]  ;;  %v5186_v63 = vadd.f32 %v13414_v22, %v802_v41 }
 0x2c4   : > { %9543 = vst.msk [vmem:[%s11763_s4 + $0x454] sm:$0xf] %vm9265_vm5, %v9030_v21  ;;  %v9158_v10 = vpack.c.bf16 %v8646_v40, %v8646_v40  ;;  %v8263_v57 = vsel %vm7239_vm15, %v6727_v47, %v7751_v42  ;;  %vm7367_vm0 = vcmp.gt.f32.partialorder %v6855_v60, 0.0  ;;  %v7879_v55 = vmul.f32 0.01, %v6855_v60  ;;  %v6595_v56 = vld [vmem:[#allocation2 + $0xcb0] sm:$0xff]  ;;  %v13507_v11 = vpop.f32.mrf.mxu2 }
 0x2c5   : > { %v8775_v58 = vpack.c.bf16 %v8263_v57, %v8263_v57  ;;  %vm7495_vm1 = vcmp.gt.f32.partialorder %v6983_v46, 0.0  ;;  %v8007_v59 = vmul.f32 0.01, %v6983_v46  ;;  %v7111_v49 = vadd.f32 %v13471_v38, %v6595_v56  ;;  %6081 = vst.msk [vmem:[#allocation2 + $0xcb8] sm:$0xff] %vm264_vm3, %v5568_v62  ;;  %v13509_v30 = vpop.f32.mrf.mxu3  ;;  %v11212_v47 = vld [vmem:[%s11574_s26 + $0xb0] sm:$0xff]  ;;  %v1186_v54 = vld [vmem:[#allocation2 + $0xcc8] sm:$0xff]  ;;  %v13515_v9 = vpop.f32.mrf.mxu0 }
 0x2c6   : > { %9671 = vst.msk [vmem:[%s11763_s4 + $0x654] sm:$0xf] %vm9265_vm5, %v9158_v10  ;;  %v8391_v61 = vsel %vm7367_vm0, %v6855_v60, %v7879_v55  ;;  %v11276_v62 = vld [vmem:[%s11574_s26 + $0x2b0] sm:$0xff]  ;;  %v5442_v10 = vadd.f32 %v13435_v45, %v1058_v25  ;;  %10954 = vmatmul.msk.bf16.gmra.mxu0 %vm3096_vm2, %v11212_v47 }
 0x2c7   : > { %9288 = vst.msk [vmem:[%s11763_s4 + $0x58] sm:$0xf] %vm9265_vm5, %v8775_v58  ;;  %v8903_v33 = vpack.c.bf16 %v8391_v61, %v8391_v61  ;;  %v8519_v50 = vsel %vm7495_vm1, %v6983_v46, %v8007_v59  ;;  %vm7623_vm4 = vcmp.gt.f32.partialorder %v7111_v49, 0.0  ;;  %v8135_v2 = vmul.f32 0.01, %v7111_v49  ;;  %v6212_v52 = vld [vmem:[#allocation2 + $0xb8] sm:$0xff] }
 0x2c8   : > { %v9031_v26 = vpack.c.bf16 %v8519_v50, %v8519_v50  ;;  %v6728_v4 = vadd.f32 %v13471_v38, %v6212_v52  ;;  %v6340_v29 = vld [vmem:[#allocation2 + $0x4b8] sm:$0xff]  ;;  %5698 = vst.msk [vmem:[#allocation2 + $0xc0] sm:$0xff] %vm264_vm3, %v5185_v37  ;;  %v13517_v21 = vpop.f32.mrf.mxu1  ;;  %v11340_v42 = vld [vmem:[%s11574_s26 + $0x4b0] sm:$0xff]  ;;  %v5314_v37 = vadd.f32 %v13416_v18, %v930_v23  ;;  %11018 = vmatmul.msk.bf16.gmra.mxu1 %vm3096_vm2, %v11276_v62 }
 0x2c9   : > { %9416 = vst.msk [vmem:[%s11763_s4 + $0x258] sm:$0xf] %vm9265_vm5, %v8903_v33  ;;  %v8647_v17 = vsel %vm7623_vm4, %v7111_v49, %v8135_v2  ;;  %v6856_v27 = vadd.f32 %v13471_v38, %v6340_v29  ;;  %v6468_v3 = vld [vmem:[#allocation2 + $0x8b8] sm:$0xff]  ;;  %v11404_v60 = vld [vmem:[%s11574_s26 + $0x6b0] sm:$0xff]  ;;  %v5570_v59 = vadd.f32 %v13437_v13, %v1186_v54 }
 0x2ca   : > { %9544 = vst.msk [vmem:[%s11763_s4 + $0x458] sm:$0xf] %vm9265_vm5, %v9031_v26  ;;  %v9159_v15 = vpack.c.bf16 %v8647_v17, %v8647_v17  ;;  %vm7240_vm6 = vcmp.gt.f32.partialorder %v6728_v4, 0.0  ;;  %v7752_v34 = vmul.f32 0.01, %v6728_v4  ;;  %v6984_v16 = vadd.f32 %v13471_v38, %v6468_v3  ;;  %v803_v57 = vld [vmem:[#allocation2 + $0xd0] sm:$0xff]  ;;  %11082 = vmatmul.msk.bf16.gmra.mxu2 %vm3096_vm2, %v11340_v42 }
 0x2cb   : > { %vm7368_vm7 = vcmp.gt.f32.partialorder %v6856_v27, 0.0  ;;  %v7880_v36 = vmul.f32 0.01, %v6856_v27  ;;  %5826 = vst.msk [vmem:[#allocation2 + $0x4c0] sm:$0xff] %vm264_vm3, %v5313_v44  ;;  %v931_v55 = vld [vmem:[#allocation2 + $0x4d0] sm:$0xff]  ;;  %11146 = vmatmul.msk.bf16.gmra.mxu3 %vm3096_vm2, %v11404_v60  ;;  %v5187_v44 = vadd.f32 %v13443_v53, %v803_v57 }
 0x2cc   : > { %9672 = vst.msk [vmem:[%s11763_s4 + $0x658] sm:$0xf] %vm9265_vm5, %v9159_v15  ;;  %v8264_v51 = vsel %vm7240_vm6, %v6728_v4, %v7752_v34  ;;  %vm7496_vm8 = vcmp.gt.f32.partialorder %v6984_v16, 0.0  ;;  %v8008_v43 = vmul.f32 0.01, %v6984_v16  ;;  %v6596_v20 = vld [vmem:[#allocation2 + $0xcb8] sm:$0xff]  ;;  %v5315_v28 = vadd.f32 %v13445_v24, %v931_v55 }
 0x2cd   : > { %v8776_v14 = vpack.c.bf16 %v8264_v51, %v8264_v51  ;;  %v8392_v31 = vsel %vm7368_vm7, %v6856_v27, %v7880_v36  ;;  %v7112_v48 = vadd.f32 %v13471_v38, %v6596_v20  ;;  %5954 = vst.msk [vmem:[#allocation2 + $0x8c0] sm:$0xff] %vm264_vm3, %v5441_v8  ;;  %v13544_v52 = vpop.f32.mrf.mxu2  ;;  %v13546_v26 = vpop.f32.mrf.mxu3  ;;  %v5443_v27 = vadd.f32 %v13479_v6, %v1059_v5  ;;  %v1187_v3 = vld [vmem:[#allocation2 + $0xcd0] sm:$0xff]  ;;  %v804_v15 = vld [vmem:[#allocation2 + $0xd8] sm:$0xff] }
 0x2ce   : > { %v8904_v7 = vpack.c.bf16 %v8392_v31, %v8392_v31  ;;  %v8520_v39 = vsel %vm7496_vm8, %v6984_v16, %v8008_v43  ;;  %6082 = vst.msk [vmem:[#allocation2 + $0xcc0] sm:$0xff] %vm264_vm3, %v5569_v35  ;;  %v13550_v53 = vpop.f32.mrf.mxu0  ;;  %v932_v36 = vld [vmem:[#allocation2 + $0x4d8] sm:$0xff]  ;;  %v5571_v43 = vadd.f32 %v13481_v1, %v1187_v3  ;;  %v5188_v31 = vadd.f32 %v13486_v0, %v804_v15 }
 0x2cf   : > { %9289 = vst.msk [vmem:[%s11763_s4 + $0x5c] sm:$0xf] %vm9265_vm5, %v8776_v14  ;;  %v9032_v19 = vpack.c.bf16 %v8520_v39, %v8520_v39  ;;  %vm7624_vm9 = vcmp.gt.f32.partialorder %v7112_v48, 0.0  ;;  %v8136_v40 = vmul.f32 0.01, %v7112_v48  ;;  %v6213_v46 = vld [vmem:[#allocation2 + $0xc0] sm:$0xff]  ;;  %v5316_v62 = vadd.f32 %v13488_v12, %v932_v36 }
 0x2d0   : > { %9417 = vst.msk [vmem:[%s11763_s4 + $0x25c] sm:$0xf] %vm9265_vm5, %v8904_v7  ;;  %v6729_v32 = vadd.f32 %v13471_v38, %v6213_v46  ;;  %v13552_v24 = vpop.f32.mrf.mxu1  ;;  %v1188_v7 = vld [vmem:[#allocation2 + $0xcd8] sm:$0xff] }
 0x2d1   : > { %9545 = vst.msk [vmem:[%s11763_s4 + $0x45c] sm:$0xf] %vm9265_vm5, %v9032_v19  ;;  %v8648_v22 = vsel %vm7624_vm9, %v7112_v48, %v8136_v40  ;;  %v1060_v48 = vld [vmem:[#allocation2 + $0x8d8] sm:$0xff] }
 0x2d2   : > { %v9160_v56 = vpack.c.bf16 %v8648_v22, %v8648_v22  ;;  %vm7241_vm10 = vcmp.gt.f32.partialorder %v6729_v32, 0.0  ;;  %v7753_v58 = vmul.f32 0.01, %v6729_v32  ;;  %v6341_v18 = vld [vmem:[#allocation2 + $0x4c0] sm:$0xff]  ;;  %5699 = vst.msk [vmem:[#allocation2 + $0xc8] sm:$0xff] %vm264_vm3, %v5186_v63  ;;  %v5444_v12 = vadd.f32 %v13507_v11, %v1060_v48  ;;  %v11213_v46 = vld [vmem:[%s11574_s26 + $0xb8] sm:$0xff] }
 0x2d3   : > { %v6857_v45 = vadd.f32 %v13471_v38, %v6341_v18  ;;  %5827 = vst.msk [vmem:[#allocation2 + $0x4c8] sm:$0xff] %vm264_vm3, %v5314_v37  ;;  %v11277_v37 = vld [vmem:[%s11574_s26 + $0x2b8] sm:$0xff] }
 0x2d4   : > { %9673 = vst.msk [vmem:[%s11763_s4 + $0x65c] sm:$0xf] %vm9265_vm5, %v9160_v56  ;;  %v8265_v49 = vsel %vm7241_vm10, %v6729_v32, %v7753_v58  ;;  %v6469_v61 = vld [vmem:[#allocation2 + $0x8c0] sm:$0xff]  ;;  %v11341_v32 = vld [vmem:[%s11574_s26 + $0x4b8] sm:$0xff] }
 0x2d5   : > { %v8777_v33 = vpack.c.bf16 %v8265_v49, %v8265_v49  ;;  %vm7369_vm11 = vcmp.gt.f32.partialorder %v6857_v45, 0.0  ;;  %v7881_v13 = vmul.f32 0.01, %v6857_v45  ;;  %v6985_v50 = vadd.f32 %v13471_v38, %v6469_v61  ;;  %v6597_v2 = vld [vmem:[#allocation2 + $0xcc0] sm:$0xff]  ;;  %5955 = vst.msk [vmem:[#allocation2 + $0x8c8] sm:$0xff] %vm264_vm3, %v5442_v10  ;;  %v13572_v0 = vpop.f32.mrf.mxu2  ;;  %v13574_v54 = vpop.f32.mrf.mxu3  ;;  %v11405_v56 = vld [vmem:[%s11574_s26 + $0x6b8] sm:$0xff] }
 0x2d6   : > { %v7113_v4 = vadd.f32 %v13471_v38, %v6597_v2  ;;  %6083 = vst.msk [vmem:[#allocation2 + $0xcc8] sm:$0xff] %vm264_vm3, %v5570_v59  ;;  %v13579_v19 = vpop.f32.mrf.mxu0  ;;  %v5572_v61 = vadd.f32 %v13509_v30, %v1188_v7  ;;  %10955 = vmatmul.msk.bf16.gmra.mxu0 %vm3096_vm2, %v11213_v46  ;;  %v1189_v7 = vld [vmem:[#allocation2 + $0xce0] sm:$0xff] }
 0x2d7   : > { %9290 = vst.msk [vmem:[%s11763_s4 + $0x60] sm:$0xf] %vm9265_vm5, %v8777_v33  ;;  %v8393_v29 = vsel %vm7369_vm11, %v6857_v45, %v7881_v13  ;;  %vm7497_vm12 = vcmp.gt.f32.partialorder %v6985_v50, 0.0  ;;  %v8009_v17 = vmul.f32 0.01, %v6985_v50 }
 0x2d8   : > { %v8905_v8 = vpack.c.bf16 %v8393_v29, %v8393_v29  ;;  %vm7625_vm13 = vcmp.gt.f32.partialorder %v7113_v4, 0.0  ;;  %v8137_v35 = vmul.f32 0.01, %v7113_v4  ;;  %5700 = vst.msk [vmem:[#allocation2 + $0xd0] sm:$0xff] %vm264_vm3, %v5187_v44  ;;  %v13581_v40 = vpop.f32.mrf.mxu1  ;;  %v805_v44 = vld [vmem:[#allocation2 + $0xe0] sm:$0xff]  ;;  %11019 = vmatmul.msk.bf16.gmra.mxu1 %vm3096_vm2, %v11277_v37  ;;  %v5573_v37 = vadd.f32 %v13546_v26, %v1189_v7 }
 0x2d9   : > { %v8521_v34 = vsel %vm7497_vm12, %v6985_v50, %v8009_v17  ;;  %v6214_v16 = vld [vmem:[#allocation2 + $0xc8] sm:$0xff]  ;;  %5828 = vst.msk [vmem:[#allocation2 + $0x4d0] sm:$0xff] %vm264_vm3, %v5315_v28  ;;  %v5189_v29 = vadd.f32 %v13515_v9, %v805_v44  ;;  %v933_v17 = vld [vmem:[#allocation2 + $0x4e0] sm:$0xff] }
 0x2da   : > { %9418 = vst.msk [vmem:[%s11763_s4 + $0x260] sm:$0xf] %vm9265_vm5, %v8905_v8  ;;  %v9033_v41 = vpack.c.bf16 %v8521_v34, %v8521_v34  ;;  %v8649_v23 = vsel %vm7625_vm13, %v7113_v4, %v8137_v35  ;;  %v6730_v6 = vadd.f32 %v13471_v38, %v6214_v16  ;;  %v6342_v51 = vld [vmem:[#allocation2 + $0x4c8] sm:$0xff]  ;;  %11083 = vmatmul.msk.bf16.gmra.mxu2 %vm3096_vm2, %v11341_v32 }
 0x2db   : > { %v9161_v20 = vpack.c.bf16 %v8649_v23, %v8649_v23  ;;  %v6858_v14 = vadd.f32 %v13471_v38, %v6342_v51  ;;  %5956 = vst.msk [vmem:[#allocation2 + $0x8d0] sm:$0xff] %vm264_vm3, %v5443_v27  ;;  %11147 = vmatmul.msk.bf16.gmra.mxu3 %vm3096_vm2, %v11405_v56  ;;  %v1061_v27 = vld [vmem:[#allocation2 + $0x8e0] sm:$0xff]  ;;  %v934_v32 = vld [vmem:[#allocation2 + $0x4e8] sm:$0xff] }
 0x2dc   : > { %9546 = vst.msk [vmem:[%s11763_s4 + $0x460] sm:$0xf] %vm9265_vm5, %v9033_v41  ;;  %vm7242_vm14 = vcmp.gt.f32.partialorder %v6730_v6, 0.0  ;;  %v7754_v25 = vmul.f32 0.01, %v6730_v6  ;;  %v6470_v47 = vld [vmem:[#allocation2 + $0x8c8] sm:$0xff] }
 0x2dd   : > { %9674 = vst.msk [vmem:[%s11763_s4 + $0x660] sm:$0xf] %vm9265_vm5, %v9161_v20  ;;  %vm7370_vm15 = vcmp.gt.f32.partialorder %v6858_v14, 0.0  ;;  %v7882_v1 = vmul.f32 0.01, %v6858_v14  ;;  %v6986_v39 = vadd.f32 %v13471_v38, %v6470_v47  ;;  %v6598_v63 = vld [vmem:[#allocation2 + $0xcc8] sm:$0xff]  ;;  %v13608_v34 = vpop.f32.mrf.mxu2  ;;  %v13610_v16 = vpop.f32.mrf.mxu3 }
 0x2de   : > { %v8266_v42 = vsel %vm7242_vm14, %v6730_v6, %v7754_v25  ;;  %v7114_v60 = vadd.f32 %v13471_v38, %v6598_v63  ;;  %6084 = vst.msk [vmem:[#allocation2 + $0xcd0] sm:$0xff] %vm264_vm3, %v5571_v43  ;;  %v13614_v9 = vpop.f32.mrf.mxu0 }
 0x2df   : > { %v8778_v22 = vpack.c.bf16 %v8266_v42, %v8266_v42  ;;  %v8394_v10 = vsel %vm7370_vm15, %v6858_v14, %v7882_v1  ;;  %vm7498_vm0 = vcmp.gt.f32.partialorder %v6986_v39, 0.0  ;;  %v8010_v57 = vmul.f32 0.01, %v6986_v39  ;;  %v6215_v55 = vld [vmem:[#allocation2 + $0xd0] sm:$0xff]  ;;  %5701 = vst.msk [vmem:[#allocation2 + $0xd8] sm:$0xff] %vm264_vm3, %v5188_v31  ;;  %v806_v1 = vld [vmem:[#allocation2 + $0xe8] sm:$0xff] }
 0x2e0   : > { %v8906_v58 = vpack.c.bf16 %v8394_v10, %v8394_v10  ;;  %vm7626_vm1 = vcmp.gt.f32.partialorder %v7114_v60, 0.0  ;;  %v8138_v11 = vmul.f32 0.01, %v7114_v60  ;;  %v6731_v18 = vadd.f32 %v13471_v38, %v6215_v55  ;;  %v6343_v59 = vld [vmem:[#allocation2 + $0x4d0] sm:$0xff]  ;;  %5829 = vst.msk [vmem:[#allocation2 + $0x4d8] sm:$0xff] %vm264_vm3, %v5316_v62  ;;  %v13616_v6 = vpop.f32.mrf.mxu1 }
 0x2e1   : > { %9291 = vst.msk [vmem:[%s11763_s4 + $0x64] sm:$0xf] %vm9265_vm5, %v8778_v22  ;;  %v8522_v45 = vsel %vm7498_vm0, %v6986_v39, %v8010_v57  ;;  %v6859_v49 = vadd.f32 %v13471_v38, %v6343_v59  ;;  %v5317_v14 = vadd.f32 %v13517_v21, %v933_v17  ;;  %v5445_v31 = vadd.f32 %v13544_v52, %v1061_v27  ;;  %v1062_v22 = vld [vmem:[#allocation2 + $0x8e8] sm:$0xff] }
 0x2e2   : > { %9419 = vst.msk [vmem:[%s11763_s4 + $0x264] sm:$0xf] %vm9265_vm5, %v8906_v58  ;;  %v9034_v28 = vpack.c.bf16 %v8522_v45, %v8522_v45  ;;  %v8650_v5 = vsel %vm7626_vm1, %v7114_v60, %v8138_v11  ;;  %vm7243_vm4 = vcmp.gt.f32.partialorder %v6731_v18, 0.0  ;;  %v7755_v33 = vmul.f32 0.01, %v6731_v18  ;;  %v6471_v13 = vld [vmem:[#allocation2 + $0x8d0] sm:$0xff] }
 0x2e3   : > { %v9162_v50 = vpack.c.bf16 %v8650_v5, %v8650_v5  ;;  %vm7371_vm6 = vcmp.gt.f32.partialorder %v6859_v49, 0.0  ;;  %v7883_v2 = vmul.f32 0.01, %v6859_v49  ;;  %v6987_v4 = vadd.f32 %v13471_v38, %v6471_v13  ;;  %5957 = vst.msk [vmem:[#allocation2 + $0x8d8] sm:$0xff] %vm264_vm3, %v5444_v12  ;;  %v11342_v5 = vld [vmem:[%s11574_s26 + $0x4c0] sm:$0xff] }
 0x2e4   : > { %9547 = vst.msk [vmem:[%s11763_s4 + $0x464] sm:$0xf] %vm9265_vm5, %v9034_v28  ;;  %v8267_v30 = vsel %vm7243_vm4, %v6731_v18, %v7755_v33  ;;  %v5190_v56 = vadd.f32 %v13550_v53, %v806_v1  ;;  %v1190_v18 = vld [vmem:[#allocation2 + $0xce8] sm:$0xff]  ;;  %v5318_v53 = vadd.f32 %v13552_v24, %v934_v32  ;;  %v807_v28 = vld [vmem:[#allocation2 + $0xf0] sm:$0xff]  ;;  %v11406_v33 = vld [vmem:[%s11574_s26 + $0x6c0] sm:$0xff] }
 0x2e5   : > { %9675 = vst.msk [vmem:[%s11763_s4 + $0x664] sm:$0xf] %vm9265_vm5, %v9162_v50  ;;  %v8779_v3 = vpack.c.bf16 %v8267_v30, %v8267_v30  ;;  %v8395_v8 = vsel %vm7371_vm6, %v6859_v49, %v7883_v2  ;;  %vm7499_vm7 = vcmp.gt.f32.partialorder %v6987_v4, 0.0  ;;  %v8011_v35 = vmul.f32 0.01, %v6987_v4  ;;  %v6599_v15 = vld [vmem:[#allocation2 + $0xcd0] sm:$0xff]  ;;  %v13636_v58 = vpop.f32.mrf.mxu2  ;;  %v13638_v11 = vpop.f32.mrf.mxu3 }
 0x2e6   : > { %v8907_v36 = vpack.c.bf16 %v8395_v8, %v8395_v8  ;;  %v7115_v41 = vadd.f32 %v13471_v38, %v6599_v15  ;;  %v6216_v23 = vld [vmem:[#allocation2 + $0xd8] sm:$0xff]  ;;  %6085 = vst.msk [vmem:[#allocation2 + $0xcd8] sm:$0xff] %vm264_vm3, %v5572_v61  ;;  %v13643_v59 = vpop.f32.mrf.mxu0  ;;  %v11214_v49 = vld [vmem:[%s11574_s26 + $0xc0] sm:$0xff]  ;;  %v5574_v24 = vadd.f32 %v13574_v54, %v1190_v18  ;;  %v5191_v27 = vadd.f32 %v13579_v19, %v807_v28 }
 0x2e7   : > { %9292 = vst.msk [vmem:[%s11763_s4 + $0x68] sm:$0xf] %vm9265_vm5, %v8779_v3  ;;  %v8523_v51 = vsel %vm7499_vm7, %v6987_v4, %v8011_v35  ;;  %v6732_v43 = vadd.f32 %v13471_v38, %v6216_v23  ;;  %v6344_v20 = vld [vmem:[#allocation2 + $0x4d8] sm:$0xff]  ;;  %v11278_v61 = vld [vmem:[%s11574_s26 + $0x2c0] sm:$0xff]  ;;  %v5446_v4 = vadd.f32 %v13572_v0, %v1062_v22  ;;  %v935_v3 = vld [vmem:[#allocation2 + $0x4f0] sm:$0xff]  ;;  %10956 = vmatmul.msk.bf16.gmra.mxu0 %vm3096_vm2, %v11214_v49 }
 0x2e8   : > { %9420 = vst.msk [vmem:[%s11763_s4 + $0x268] sm:$0xf] %vm9265_vm5, %v8907_v36  ;;  %v9035_v48 = vpack.c.bf16 %v8523_v51, %v8523_v51  ;;  %vm7627_vm8 = vcmp.gt.f32.partialorder %v7115_v41, 0.0  ;;  %v8139_v25 = vmul.f32 0.01, %v7115_v41  ;;  %v6860_v47 = vadd.f32 %v13471_v38, %v6344_v20  ;;  %v13645_v45 = vpop.f32.mrf.mxu1  ;;  %11020 = vmatmul.msk.bf16.gmra.mxu1 %vm3096_vm2, %v11278_v61  ;;  %v1063_v23 = vld [vmem:[#allocation2 + $0x8f0] sm:$0xff] }
 0x2e9   : > { %vm7244_vm9 = vcmp.gt.f32.partialorder %v6732_v43, 0.0  ;;  %v7756_v62 = vmul.f32 0.01, %v6732_v43  ;;  %5702 = vst.msk [vmem:[#allocation2 + $0xe0] sm:$0xff] %vm264_vm3, %v5189_v29 }
 0x2ea   : > { %9548 = vst.msk [vmem:[%s11763_s4 + $0x468] sm:$0xf] %vm9265_vm5, %v9035_v48  ;;  %v8651_v39 = vsel %vm7627_vm8, %v7115_v41, %v8139_v25  ;;  %vm7372_vm10 = vcmp.gt.f32.partialorder %v6860_v47, 0.0  ;;  %v7884_v21 = vmul.f32 0.01, %v6860_v47  ;;  %v6472_v52 = vld [vmem:[#allocation2 + $0x8d8] sm:$0xff]  ;;  %11084 = vmatmul.msk.bf16.gmra.mxu2 %vm3096_vm2, %v11342_v5  ;;  %v5319_v41 = vadd.f32 %v13581_v40, %v935_v3 }
 0x2eb   : > { %v9163_v63 = vpack.c.bf16 %v8651_v39, %v8651_v39  ;;  %v8268_v42 = vsel %vm7244_vm9, %v6732_v43, %v7756_v62  ;;  %v6988_v60 = vadd.f32 %v13471_v38, %v6472_v52  ;;  %5830 = vst.msk [vmem:[#allocation2 + $0x4e0] sm:$0xff] %vm264_vm3, %v5317_v14  ;;  %11148 = vmatmul.msk.bf16.gmra.mxu3 %vm3096_vm2, %v11406_v33  ;;  %v808_v40 = vld [vmem:[#allocation2 + $0xf8] sm:$0xff] }
 0x2ec   : > { %v8780_v12 = vpack.c.bf16 %v8268_v42, %v8268_v42  ;;  %v8396_v46 = vsel %vm7372_vm10, %v6860_v47, %v7884_v21  ;;  %5958 = vst.msk [vmem:[#allocation2 + $0x8e0] sm:$0xff] %vm264_vm3, %v5445_v31  ;;  %v1191_v31 = vld [vmem:[#allocation2 + $0xcf0] sm:$0xff]  ;;  %v5447_v52 = vadd.f32 %v13608_v34, %v1063_v23  ;;  %v5192_v32 = vadd.f32 %v13614_v9, %v808_v40  ;;  %v937_v23 = vld [vmem:[#allocation2 + $0x500] sm:$0xff] }
 0x2ed   : > { %9676 = vst.msk [vmem:[%s11763_s4 + $0x668] sm:$0xf] %vm9265_vm5, %v9163_v63  ;;  %v8908_v10 = vpack.c.bf16 %v8396_v46, %v8396_v46  ;;  %vm7500_vm11 = vcmp.gt.f32.partialorder %v6988_v60, 0.0  ;;  %v8012_v57 = vmul.f32 0.01, %v6988_v60  ;;  %v6600_v55 = vld [vmem:[#allocation2 + $0xcd8] sm:$0xff]  ;;  %v13673_v51 = vpop.f32.mrf.mxu2  ;;  %v13675_v43 = vpop.f32.mrf.mxu3 }
 0x2ee   : > { %9293 = vst.msk [vmem:[%s11763_s4 + $0x6c] sm:$0xf] %vm9265_vm5, %v8780_v12  ;;  %v7116_v26 = vadd.f32 %v13471_v38, %v6600_v55  ;;  %v13678_v48 = vpop.f32.mrf.mxu0  ;;  %v936_v12 = vld [vmem:[#allocation2 + $0x4f8] sm:$0xff] }
 0x2ef   : > { %9421 = vst.msk [vmem:[%s11763_s4 + $0x26c] sm:$0xf] %vm9265_vm5, %v8908_v10  ;;  %v8524_v44 = vsel %vm7500_vm11, %v6988_v60, %v8012_v57  ;;  %v5575_v60 = vadd.f32 %v13610_v16, %v1191_v31  ;;  %v5320_v16 = vadd.f32 %v13616_v6, %v936_v12 }
 0x2f0   : > { %v9036_v13 = vpack.c.bf16 %v8524_v44, %v8524_v44  ;;  %vm7628_vm12 = vcmp.gt.f32.partialorder %v7116_v26, 0.0  ;;  %v8140_v50 = vmul.f32 0.01, %v7116_v26  ;;  %v6217_v2 = vld [vmem:[#allocation2 + $0xe0] sm:$0xff]  ;;  %6086 = vst.msk [vmem:[#allocation2 + $0xce0] sm:$0xff] %vm264_vm3, %v5573_v37  ;;  %v13680_v25 = vpop.f32.mrf.mxu1 }
 0x2f1   : > { %v6733_v30 = vadd.f32 %v13471_v38, %v6217_v2  ;;  %5703 = vst.msk [vmem:[#allocation2 + $0xe8] sm:$0xff] %vm264_vm3, %v5190_v56  ;;  %v1064_v56 = vld [vmem:[#allocation2 + $0x8f8] sm:$0xff]  ;;  %v11279_v2 = vld [vmem:[%s11574_s26 + $0x2c8] sm:$0xff] }
 0x2f2   : > { %9549 = vst.msk [vmem:[%s11763_s4 + $0x46c] sm:$0xf] %vm9265_vm5, %v9036_v13  ;;  %v8652_v29 = vsel %vm7628_vm12, %v7116_v26, %v8140_v50  ;;  %v6345_v17 = vld [vmem:[#allocation2 + $0x4e0] sm:$0xff] }
 0x2f3   : > { %v9164_v8 = vpack.c.bf16 %v8652_v29, %v8652_v29  ;;  %vm7245_vm13 = vcmp.gt.f32.partialorder %v6733_v30, 0.0  ;;  %v7757_v0 = vmul.f32 0.01, %v6733_v30  ;;  %v6861_v35 = vadd.f32 %v13471_v38, %v6345_v17  ;;  %v6473_v15 = vld [vmem:[#allocation2 + $0x8e0] sm:$0xff]  ;;  %5831 = vst.msk [vmem:[#allocation2 + $0x4e8] sm:$0xff] %vm264_vm3, %v5318_v53  ;;  %v11215_v53 = vld [vmem:[%s11574_s26 + $0xc8] sm:$0xff] }
 0x2f4   : > { %v6989_v54 = vadd.f32 %v13471_v38, %v6473_v15  ;;  %5959 = vst.msk [vmem:[#allocation2 + $0x8e8] sm:$0xff] %vm264_vm3, %v5446_v4  ;;  %v5448_v29 = vadd.f32 %v13636_v58, %v1064_v56  ;;  %v1192_v17 = vld [vmem:[#allocation2 + $0xcf8] sm:$0xff] }
 0x2f5   : > { %9677 = vst.msk [vmem:[%s11763_s4 + $0x66c] sm:$0xf] %vm9265_vm5, %v9164_v8  ;;  %v8269_v19 = vsel %vm7245_vm13, %v6733_v30, %v7757_v0  ;;  %vm7373_vm14 = vcmp.gt.f32.partialorder %v6861_v35, 0.0  ;;  %v7885_v36 = vmul.f32 0.01, %v6861_v35  ;;  %v13700_v61 = vpop.f32.mrf.mxu2  ;;  %v13702_v44 = vpop.f32.mrf.mxu3 }
 0x2f6   : > { %v8781_v20 = vpack.c.bf16 %v8269_v19, %v8269_v19  ;;  %vm7501_vm15 = vcmp.gt.f32.partialorder %v6989_v54, 0.0  ;;  %v8013_v14 = vmul.f32 0.01, %v6989_v54  ;;  %6087 = vst.msk [vmem:[#allocation2 + $0xce8] sm:$0xff] %vm264_vm3, %v5574_v24  ;;  %v13707_v13 = vpop.f32.mrf.mxu0  ;;  %v11343_v24 = vld [vmem:[%s11574_s26 + $0x4c8] sm:$0xff] }
 0x2f7   : > { %v8397_v47 = vsel %vm7373_vm14, %v6861_v35, %v7885_v36  ;;  %v6601_v62 = vld [vmem:[#allocation2 + $0xce0] sm:$0xff]  ;;  %5704 = vst.msk [vmem:[#allocation2 + $0xf0] sm:$0xff] %vm264_vm3, %v5191_v27  ;;  %v11407_v27 = vld [vmem:[%s11574_s26 + $0x6c8] sm:$0xff]  ;;  %v5576_v36 = vadd.f32 %v13638_v11, %v1192_v17  ;;  %10957 = vmatmul.msk.bf16.gmra.mxu0 %vm3096_vm2, %v11215_v53 }
 0x2f8   : > { %9294 = vst.msk [vmem:[%s11763_s4 + $0x70] sm:$0xf] %vm9265_vm5, %v8781_v20  ;;  %v8909_v7 = vpack.c.bf16 %v8397_v47, %v8397_v47  ;;  %v8525_v1 = vsel %vm7501_vm15, %v6989_v54, %v8013_v14  ;;  %v7117_v39 = vadd.f32 %v13471_v38, %v6601_v62  ;;  %v6218_v21 = vld [vmem:[#allocation2 + $0xe8] sm:$0xff]  ;;  %v13709_v50 = vpop.f32.mrf.mxu1  ;;  %11021 = vmatmul.msk.bf16.gmra.mxu1 %vm3096_vm2, %v11279_v2 }
 0x2f9   : > { %v9037_v63 = vpack.c.bf16 %v8525_v1, %v8525_v1  ;;  %v6734_v42 = vadd.f32 %v13471_v38, %v6218_v21  ;;  %5832 = vst.msk [vmem:[#allocation2 + $0x4f0] sm:$0xff] %vm264_vm3, %v5319_v41  ;;  %v809_v41 = vld [vmem:[#allocation2 + $0x100] sm:$0xff]  ;;  %v938_v53 = vld [vmem:[#allocation2 + $0x508] sm:$0xff] }
 0x2fa   : > { %9422 = vst.msk [vmem:[%s11763_s4 + $0x270] sm:$0xf] %vm9265_vm5, %v8909_v7  ;;  %vm7629_vm0 = vcmp.gt.f32.partialorder %v7117_v39, 0.0  ;;  %v8141_v46 = vmul.f32 0.01, %v7117_v39  ;;  %v6346_v37 = vld [vmem:[#allocation2 + $0x4e8] sm:$0xff]  ;;  %11085 = vmatmul.msk.bf16.gmra.mxu2 %vm3096_vm2, %v11343_v24  ;;  %v5193_v21 = vadd.f32 %v13643_v59, %v809_v41 }
 0x2fb   : > { %9550 = vst.msk [vmem:[%s11763_s4 + $0x470] sm:$0xf] %vm9265_vm5, %v9037_v63  ;;  %vm7246_vm1 = vcmp.gt.f32.partialorder %v6734_v42, 0.0  ;;  %v7758_v22 = vmul.f32 0.01, %v6734_v42  ;;  %v6862_v34 = vadd.f32 %v13471_v38, %v6346_v37  ;;  %v6474_v10 = vld [vmem:[#allocation2 + $0x8e8] sm:$0xff]  ;;  %11149 = vmatmul.msk.bf16.gmra.mxu3 %vm3096_vm2, %v11407_v27 }
 0x2fc   : > { %v8653_v57 = vsel %vm7629_vm0, %v7117_v39, %v8141_v46  ;;  %v6990_v55 = vadd.f32 %v13471_v38, %v6474_v10  ;;  %5960 = vst.msk [vmem:[#allocation2 + $0x8f0] sm:$0xff] %vm264_vm3, %v5447_v52  ;;  %v5321_v52 = vadd.f32 %v13645_v45, %v937_v23  ;;  %v1065_v45 = vld [vmem:[#allocation2 + $0x900] sm:$0xff] }
 0x2fd   : > { %v9165_v26 = vpack.c.bf16 %v8653_v57, %v8653_v57  ;;  %v8270_v18 = vsel %vm7246_vm1, %v6734_v42, %v7758_v22  ;;  %vm7374_vm4 = vcmp.gt.f32.partialorder %v6862_v34, 0.0  ;;  %v7886_v9 = vmul.f32 0.01, %v6862_v34  ;;  %v6602_v49 = vld [vmem:[#allocation2 + $0xce8] sm:$0xff]  ;;  %6088 = vst.msk [vmem:[#allocation2 + $0xcf0] sm:$0xff] %vm264_vm3, %v5575_v60  ;;  %v13740_v63 = vpop.f32.mrf.mxu2  ;;  %v13742_v42 = vpop.f32.mrf.mxu3  ;;  %v1193_v22 = vld [vmem:[#allocation2 + $0xd00] sm:$0xff] }
 0x2fe   : > { %v8782_v28 = vpack.c.bf16 %v8270_v18, %v8270_v18  ;;  %vm7502_vm6 = vcmp.gt.f32.partialorder %v6990_v55, 0.0  ;;  %v8014_v6 = vmul.f32 0.01, %v6990_v55  ;;  %v7118_v5 = vadd.f32 %v13471_v38, %v6602_v49  ;;  %v6219_v33 = vld [vmem:[#allocation2 + $0xf0] sm:$0xff]  ;;  %5705 = vst.msk [vmem:[#allocation2 + $0xf8] sm:$0xff] %vm264_vm3, %v5192_v32  ;;  %v13747_v37 = vpop.f32.mrf.mxu0  ;;  %v810_v49 = vld [vmem:[#allocation2 + $0x108] sm:$0xff] }
 0x2ff   : > { %9678 = vst.msk [vmem:[%s11763_s4 + $0x670] sm:$0xf] %vm9265_vm5, %v9165_v26  ;;  %v8398_v4 = vsel %vm7374_vm4, %v6862_v34, %v7886_v9  ;;  %v6735_v30 = vadd.f32 %v13471_v38, %v6219_v33  ;;  %v5449_v9 = vadd.f32 %v13673_v51, %v1065_v45  ;;  %v5577_v33 = vadd.f32 %v13675_v43, %v1193_v22  ;;  %v11216_v43 = vld [vmem:[%s11574_s26 + $0xd0] sm:$0xff] }
 0x300   : > { %9295 = vst.msk [vmem:[%s11763_s4 + $0x74] sm:$0xf] %vm9265_vm5, %v8782_v28  ;;  %v8910_v3 = vpack.c.bf16 %v8398_v4, %v8398_v4  ;;  %v8526_v8 = vsel %vm7502_vm6, %v6990_v55, %v8014_v6  ;;  %vm7630_vm7 = vcmp.gt.f32.partialorder %v7118_v5, 0.0  ;;  %v8142_v0 = vmul.f32 0.01, %v7118_v5  ;;  %v6347_v35 = vld [vmem:[#allocation2 + $0x4f0] sm:$0xff]  ;;  %v13749_v32 = vpop.f32.mrf.mxu1 }
 0x301   : > { %v9038_v15 = vpack.c.bf16 %v8526_v8, %v8526_v8  ;;  %vm7247_vm8 = vcmp.gt.f32.partialorder %v6735_v30, 0.0  ;;  %v7759_v54 = vmul.f32 0.01, %v6735_v30  ;;  %v6863_v19 = vadd.f32 %v13471_v38, %v6347_v35  ;;  %5833 = vst.msk [vmem:[#allocation2 + $0x4f8] sm:$0xff] %vm264_vm3, %v5320_v16 }
 0x302   : > { %9423 = vst.msk [vmem:[%s11763_s4 + $0x274] sm:$0xf] %vm9265_vm5, %v8910_v3  ;;  %v8654_v58 = vsel %vm7630_vm7, %v7118_v5, %v8142_v0  ;;  %v5194_v51 = vadd.f32 %v13678_v48, %v810_v49  ;;  %v5322_v0 = vadd.f32 %v13680_v25, %v938_v53 }
 0x303   : > { %9551 = vst.msk [vmem:[%s11763_s4 + $0x474] sm:$0xf] %vm9265_vm5, %v9038_v15  ;;  %v9166_v20 = vpack.c.bf16 %v8654_v58, %v8654_v58  ;;  %v8271_v14 = vsel %vm7247_vm8, %v6735_v30, %v7759_v54  ;;  %vm7375_vm9 = vcmp.gt.f32.partialorder %v6863_v19, 0.0  ;;  %v7887_v31 = vmul.f32 0.01, %v6863_v19  ;;  %v6475_v47 = vld [vmem:[#allocation2 + $0x8f0] sm:$0xff] }
 0x304   : > { %v8783_v11 = vpack.c.bf16 %v8271_v14, %v8271_v14  ;;  %v6991_v62 = vadd.f32 %v13471_v38, %v6475_v47  ;;  %v6603_v40 = vld [vmem:[#allocation2 + $0xcf0] sm:$0xff]  ;;  %5961 = vst.msk [vmem:[#allocation2 + $0x8f8] sm:$0xff] %vm264_vm3, %v5448_v29  ;;  %v1066_v30 = vld [vmem:[#allocation2 + $0x908] sm:$0xff] }
 0x305   : > { %9679 = vst.msk [vmem:[%s11763_s4 + $0x674] sm:$0xf] %vm9265_vm5, %v9166_v20  ;;  %v8399_v7 = vsel %vm7375_vm9, %v6863_v19, %v7887_v31  ;;  %v7119_v1 = vadd.f32 %v13471_v38, %v6603_v40  ;;  %v6220_v39 = vld [vmem:[#allocation2 + $0xf8] sm:$0xff]  ;;  %v1194_v29 = vld [vmem:[#allocation2 + $0xd08] sm:$0xff]  ;;  %v13767_v17 = vpop.f32.mrf.mxu2  ;;  %v13769_v24 = vpop.f32.mrf.mxu3  ;;  %v11280_v15 = vld [vmem:[%s11574_s26 + $0x2d0] sm:$0xff]  ;;  %v5450_v23 = vadd.f32 %v13700_v61, %v1066_v30 }
 0x306   : > { %9296 = vst.msk [vmem:[%s11763_s4 + $0x78] sm:$0xf] %vm9265_vm5, %v8783_v11  ;;  %v8911_v60 = vpack.c.bf16 %v8399_v7, %v8399_v7  ;;  %vm7503_vm10 = vcmp.gt.f32.partialorder %v6991_v62, 0.0  ;;  %v8015_v12 = vmul.f32 0.01, %v6991_v62  ;;  %v6736_v46 = vadd.f32 %v13471_v38, %v6220_v39  ;;  %v13774_v35 = vpop.f32.mrf.mxu0  ;;  %v11344_v19 = vld [vmem:[%s11574_s26 + $0x4d0] sm:$0xff] }
 0x307   : > { %vm7631_vm11 = vcmp.gt.f32.partialorder %v7119_v1, 0.0  ;;  %v8143_v59 = vmul.f32 0.01, %v7119_v1  ;;  %6089 = vst.msk [vmem:[#allocation2 + $0xcf8] sm:$0xff] %vm264_vm3, %v5576_v36  ;;  %v11408_v58 = vld [vmem:[%s11574_s26 + $0x6d0] sm:$0xff]  ;;  %v5578_v25 = vadd.f32 %v13702_v44, %v1194_v29  ;;  %10958 = vmatmul.msk.bf16.gmra.mxu0 %vm3096_vm2, %v11216_v43 }
 0x308   : > { %9424 = vst.msk [vmem:[%s11763_s4 + $0x278] sm:$0xf] %vm9265_vm5, %v8911_v60  ;;  %v8527_v34 = vsel %vm7503_vm10, %v6991_v62, %v8015_v12  ;;  %vm7248_vm12 = vcmp.gt.f32.partialorder %v6736_v46, 0.0  ;;  %v7760_v10 = vmul.f32 0.01, %v6736_v46  ;;  %v6348_v57 = vld [vmem:[#allocation2 + $0x4f8] sm:$0xff]  ;;  %v13776_v48 = vpop.f32.mrf.mxu1  ;;  %11022 = vmatmul.msk.bf16.gmra.mxu1 %vm3096_vm2, %v11280_v15 }
 0x309   : > { %v9039_v55 = vpack.c.bf16 %v8527_v34, %v8527_v34  ;;  %v8655_v16 = vsel %vm7631_vm11, %v7119_v1, %v8143_v59  ;;  %v6864_v56 = vadd.f32 %v13471_v38, %v6348_v57  ;;  %5706 = vst.msk [vmem:[#allocation2 + $0x100] sm:$0xff] %vm264_vm3, %v5193_v21  ;;  %v811_v20 = vld [vmem:[#allocation2 + $0x110] sm:$0xff] }
 0x30a   : > { %v9167_v26 = vpack.c.bf16 %v8655_v16, %v8655_v16  ;;  %v8272_v18 = vsel %vm7248_vm12, %v6736_v46, %v7760_v10  ;;  %5834 = vst.msk [vmem:[#allocation2 + $0x500] sm:$0xff] %vm264_vm3, %v5321_v52  ;;  %v5195_v40 = vadd.f32 %v13707_v13, %v811_v20  ;;  %v939_v7 = vld [vmem:[#allocation2 + $0x510] sm:$0xff]  ;;  %11086 = vmatmul.msk.bf16.gmra.mxu2 %vm3096_vm2, %v11344_v19 }
 0x30b   : > { %9552 = vst.msk [vmem:[%s11763_s4 + $0x478] sm:$0xf] %vm9265_vm5, %v9039_v55  ;;  %v8784_v28 = vpack.c.bf16 %v8272_v18, %v8272_v18  ;;  %vm7376_vm13 = vcmp.gt.f32.partialorder %v6864_v56, 0.0  ;;  %v7888_v6 = vmul.f32 0.01, %v6864_v56  ;;  %v6476_v5 = vld [vmem:[#allocation2 + $0x8f8] sm:$0xff]  ;;  %11150 = vmatmul.msk.bf16.gmra.mxu3 %vm3096_vm2, %v11408_v58  ;;  %v5323_v10 = vadd.f32 %v13709_v50, %v939_v7 }
 0x30c   : > { %9680 = vst.msk [vmem:[%s11763_s4 + $0x678] sm:$0xf] %vm9265_vm5, %v9167_v26  ;;  %v6992_v2 = vadd.f32 %v13471_v38, %v6476_v5  ;;  %v1067_v21 = vld [vmem:[#allocation2 + $0x910] sm:$0xff]  ;;  %v812_v18 = vld [vmem:[#allocation2 + $0x118] sm:$0xff] }
 0x30d   : > { %9297 = vst.msk [vmem:[%s11763_s4 + $0x7c] sm:$0xf] %vm9265_vm5, %v8784_v28  ;;  %v8400_v4 = vsel %vm7376_vm13, %v6864_v56, %v7888_v6  ;;  %v1195_v12 = vld [vmem:[#allocation2 + $0xd10] sm:$0xff]  ;;  %v13800_v46 = vpop.f32.mrf.mxu2  ;;  %v13802_v13 = vpop.f32.mrf.mxu3  ;;  %v5451_v26 = vadd.f32 %v13740_v63, %v1067_v21 }
 0x30e   : > { %v8912_v27 = vpack.c.bf16 %v8400_v4, %v8400_v4  ;;  %vm7504_vm14 = vcmp.gt.f32.partialorder %v6992_v2, 0.0  ;;  %v8016_v3 = vmul.f32 0.01, %v6992_v2  ;;  %v6604_v8 = vld [vmem:[#allocation2 + $0xcf8] sm:$0xff]  ;;  %5962 = vst.msk [vmem:[#allocation2 + $0x900] sm:$0xff] %vm264_vm3, %v5449_v9  ;;  %v13808_v57 = vpop.f32.mrf.mxu0  ;;  %v5579_v53 = vadd.f32 %v13742_v42, %v1195_v12 }
 0x30f   : > { %v7120_v54 = vadd.f32 %v13471_v38, %v6604_v8  ;;  %6090 = vst.msk [vmem:[#allocation2 + $0xd00] sm:$0xff] %vm264_vm3, %v5577_v33  ;;  %v5196_v42 = vadd.f32 %v13747_v37, %v812_v18  ;;  %v940_v33 = vld [vmem:[#allocation2 + $0x518] sm:$0xff] }
 0x310   : > { %9425 = vst.msk [vmem:[%s11763_s4 + $0x27c] sm:$0xf] %vm9265_vm5, %v8912_v27  ;;  %v8528_v36 = vsel %vm7504_vm14, %v6992_v2, %v8016_v3  ;;  %v6221_v41 = vld [vmem:[#allocation2 + $0x100] sm:$0xff]  ;;  %v13810_v55 = vpop.f32.mrf.mxu1  ;;  %v1068_v37 = vld [vmem:[#allocation2 + $0x918] sm:$0xff]  ;;  %v5324_v15 = vadd.f32 %v13749_v32, %v940_v33 }
 0x311   : > { %v9040_v14 = vpack.c.bf16 %v8528_v36, %v8528_v36  ;;  %vm7632_vm15 = vcmp.gt.f32.partialorder %v7120_v54, 0.0  ;;  %v8144_v31 = vmul.f32 0.01, %v7120_v54  ;;  %v6737_v47 = vadd.f32 %v13471_v38, %v6221_v41  ;;  %v6349_v11 = vld [vmem:[#allocation2 + $0x500] sm:$0xff]  ;;  %5707 = vst.msk [vmem:[#allocation2 + $0x108] sm:$0xff] %vm264_vm3, %v5194_v51  ;;  %v11217_v36 = vld [vmem:[%s11574_s26 + $0xd8] sm:$0xff] }
 0x312   : > { %v6865_v62 = vadd.f32 %v13471_v38, %v6349_v11  ;;  %5835 = vst.msk [vmem:[#allocation2 + $0x508] sm:$0xff] %vm264_vm3, %v5322_v0  ;;  %v11281_v41 = vld [vmem:[%s11574_s26 + $0x2d8] sm:$0xff]  ;;  %v5452_v7 = vadd.f32 %v13767_v17, %v1068_v37 }
 0x313   : > { %9553 = vst.msk [vmem:[%s11763_s4 + $0x47c] sm:$0xf] %vm9265_vm5, %v9040_v14  ;;  %v8656_v61 = vsel %vm7632_vm15, %v7120_v54, %v8144_v31  ;;  %vm7249_vm0 = vcmp.gt.f32.partialorder %v6737_v47, 0.0  ;;  %v7761_v44 = vmul.f32 0.01, %v6737_v47  ;;  %v1196_v54 = vld [vmem:[#allocation2 + $0xd18] sm:$0xff] }
 0x314   : > { %v9168_v1 = vpack.c.bf16 %v8656_v61, %v8656_v61  ;;  %vm7377_vm1 = vcmp.gt.f32.partialorder %v6865_v62, 0.0  ;;  %v7889_v39 = vmul.f32 0.01, %v6865_v62  ;;  %5963 = vst.msk [vmem:[#allocation2 + $0x908] sm:$0xff] %vm264_vm3, %v5450_v23  ;;  %v11345_v61 = vld [vmem:[%s11574_s26 + $0x4d8] sm:$0xff] }
 0x315   : > { %v8273_v52 = vsel %vm7249_vm0, %v6737_v47, %v7761_v44  ;;  %v6477_v60 = vld [vmem:[#allocation2 + $0x900] sm:$0xff]  ;;  %6091 = vst.msk [vmem:[#allocation2 + $0xd08] sm:$0xff] %vm264_vm3, %v5578_v25  ;;  %v13836_v19 = vpop.f32.mrf.mxu2  ;;  %v13838_v58 = vpop.f32.mrf.mxu3  ;;  %v11409_v44 = vld [vmem:[%s11574_s26 + $0x6d8] sm:$0xff] }
 0x316   : > { %9681 = vst.msk [vmem:[%s11763_s4 + $0x67c] sm:$0xf] %vm9265_vm5, %v9168_v1  ;;  %v8785_v59 = vpack.c.bf16 %v8273_v52, %v8273_v52  ;;  %v8401_v45 = vsel %vm7377_vm1, %v6865_v62, %v7889_v39  ;;  %v6993_v22 = vadd.f32 %v13471_v38, %v6477_v60  ;;  %v6605_v34 = vld [vmem:[#allocation2 + $0xd00] sm:$0xff]  ;;  %v13845_v32 = vpop.f32.mrf.mxu0 }
 0x317   : > { %v8913_v16 = vpack.c.bf16 %v8401_v45, %v8401_v45  ;;  %v7121_v56 = vadd.f32 %v13471_v38, %v6605_v34  ;;  %5708 = vst.msk [vmem:[#allocation2 + $0x110] sm:$0xff] %vm264_vm3, %v5195_v40  ;;  %v13823_v38 = vld [vmem:[%s16747_s2] ss:$0 sm:$0xff]  ;;  %10959 = vmatmul.msk.bf16.gmra.mxu0 %vm3096_vm2, %v11217_v36  ;;  %v1070_v36 = vld [vmem:[#allocation2 + $0x928] sm:$0xff] }
 0x318   : > { %9298 = vst.msk [vmem:[%s11763_s4 + $0x80] sm:$0xf] %vm9265_vm5, %v8785_v59  ;;  %vm7505_vm4 = vcmp.gt.f32.partialorder %v6993_v22, 0.0  ;;  %v8017_v9 = vmul.f32 0.01, %v6993_v22  ;;  %v6222_v49 = vld [vmem:[#allocation2 + $0x108] sm:$0xff]  ;;  %v13847_v31 = vpop.f32.mrf.mxu1  ;;  %11023 = vmatmul.msk.bf16.gmra.mxu1 %vm3096_vm2, %v11281_v41 }
 0x319   : > { %9426 = vst.msk [vmem:[%s11763_s4 + $0x280] sm:$0xf] %vm9265_vm5, %v8913_v16  ;;  %vm7633_vm6 = vcmp.gt.f32.partialorder %v7121_v56, 0.0  ;;  %v8145_v50 = vmul.f32 0.01, %v7121_v56  ;;  %v6738_v28 = vadd.f32 %v13823_v38, %v6222_v49  ;;  %v6350_v63 = vld [vmem:[#allocation2 + $0x508] sm:$0xff] }
 0x31a   : > { %v8529_v6 = vsel %vm7505_vm4, %v6993_v22, %v8017_v9  ;;  %v6866_v5 = vadd.f32 %v13823_v38, %v6350_v63  ;;  %5836 = vst.msk [vmem:[#allocation2 + $0x510] sm:$0xff] %vm264_vm3, %v5323_v10  ;;  %v813_v1 = vld [vmem:[#allocation2 + $0x120] sm:$0xff]  ;;  %v5580_v22 = vadd.f32 %v13769_v24, %v1196_v54  ;;  %11087 = vmatmul.msk.bf16.gmra.mxu2 %vm3096_vm2, %v11345_v61  ;;  %v942_v54 = vld [vmem:[#allocation2 + $0x528] sm:$0xff] }
 0x31b   : > { %v9041_v2 = vpack.c.bf16 %v8529_v6, %v8529_v6  ;;  %v8657_v4 = vsel %vm7633_vm6, %v7121_v56, %v8145_v50  ;;  %vm7250_vm7 = vcmp.gt.f32.partialorder %v6738_v28, 0.0  ;;  %v7762_v51 = vmul.f32 0.01, %v6738_v28  ;;  %v6478_v30 = vld [vmem:[#allocation2 + $0x908] sm:$0xff]  ;;  %5964 = vst.msk [vmem:[#allocation2 + $0x910] sm:$0xff] %vm264_vm3, %v5451_v26  ;;  %11151 = vmatmul.msk.bf16.gmra.mxu3 %vm3096_vm2, %v11409_v44  ;;  %v941_v9 = vld [vmem:[#allocation2 + $0x520] sm:$0xff] }
 0x31c   : > { %v9169_v29 = vpack.c.bf16 %v8657_v4, %v8657_v4  ;;  %vm7378_vm8 = vcmp.gt.f32.partialorder %v6866_v5, 0.0  ;;  %v7890_v43 = vmul.f32 0.01, %v6866_v5  ;;  %v6994_v27 = vadd.f32 %v13823_v38, %v6478_v30  ;;  %v6606_v3 = vld [vmem:[#allocation2 + $0xd08] sm:$0xff]  ;;  %6092 = vst.msk [vmem:[#allocation2 + $0xd10] sm:$0xff] %vm264_vm3, %v5579_v53  ;;  %v1069_v49 = vld [vmem:[#allocation2 + $0x920] sm:$0xff] }
 0x31d   : > { %9554 = vst.msk [vmem:[%s11763_s4 + $0x480] sm:$0xf] %vm9265_vm5, %v9041_v2  ;;  %v8274_v8 = vsel %vm7250_vm7, %v6738_v28, %v7762_v51  ;;  %v7122_v0 = vadd.f32 %v13823_v38, %v6606_v3  ;;  %v5197_v16 = vadd.f32 %v13774_v35, %v813_v1  ;;  %v13873_v53 = vpop.f32.mrf.mxu2  ;;  %v13875_v35 = vpop.f32.mrf.mxu3  ;;  %v5325_v30 = vadd.f32 %v13776_v48, %v941_v9  ;;  %v11282_v1 = vld [vmem:[%s11574_s26 + $0x2e0] sm:$0xff] }
 0x31e   : > { %9682 = vst.msk [vmem:[%s11763_s4 + $0x680] sm:$0xf] %vm9265_vm5, %v9169_v29  ;;  %v8786_v23 = vpack.c.bf16 %v8274_v8, %v8274_v8  ;;  %v8402_v25 = vsel %vm7378_vm8, %v6866_v5, %v7890_v43  ;;  %vm7506_vm9 = vcmp.gt.f32.partialorder %v6994_v27, 0.0  ;;  %v8018_v20 = vmul.f32 0.01, %v6994_v27  ;;  %v6223_v14 = vld [vmem:[#allocation2 + $0x110] sm:$0xff]  ;;  %v13879_v6 = vpop.f32.mrf.mxu0 }
 0x31f   : > { %v8914_v47 = vpack.c.bf16 %v8402_v25, %v8402_v25  ;;  %vm7634_vm10 = vcmp.gt.f32.partialorder %v7122_v0, 0.0  ;;  %v8146_v11 = vmul.f32 0.01, %v7122_v0  ;;  %v6739_v62 = vadd.f32 %v13823_v38, %v6223_v14  ;;  %5709 = vst.msk [vmem:[#allocation2 + $0x118] sm:$0xff] %vm264_vm3, %v5196_v42  ;;  %v1197_v29 = vld [vmem:[#allocation2 + $0xd20] sm:$0xff]  ;;  %v814_v43 = vld [vmem:[#allocation2 + $0x128] sm:$0xff] }
 0x320   : > { %9299 = vst.msk [vmem:[%s11763_s4 + $0x84] sm:$0xf] %vm9265_vm5, %v8786_v23  ;;  %v8530_v40 = vsel %vm7506_vm9, %v6994_v27, %v8018_v20  ;;  %v13881_v5 = vpop.f32.mrf.mxu1  ;;  %v5453_v8 = vadd.f32 %v13800_v46, %v1069_v49  ;;  %v5581_v48 = vadd.f32 %v13802_v13, %v1197_v29  ;;  %v5198_v46 = vadd.f32 %v13808_v57, %v814_v43  ;;  %v1198_v14 = vld [vmem:[#allocation2 + $0xd28] sm:$0xff] }
 0x321   : > { %9427 = vst.msk [vmem:[%s11763_s4 + $0x284] sm:$0xf] %vm9265_vm5, %v8914_v47  ;;  %v9042_v39 = vpack.c.bf16 %v8530_v40, %v8530_v40  ;;  %v8658_v21 = vsel %vm7634_vm10, %v7122_v0, %v8146_v11  ;;  %vm7251_vm11 = vcmp.gt.f32.partialorder %v6739_v62, 0.0  ;;  %v7763_v52 = vmul.f32 0.01, %v6739_v62  ;;  %v6351_v60 = vld [vmem:[#allocation2 + $0x510] sm:$0xff] }
 0x322   : > { %v9170_v12 = vpack.c.bf16 %v8658_v21, %v8658_v21  ;;  %v6867_v59 = vadd.f32 %v13823_v38, %v6351_v60  ;;  %v6479_v45 = vld [vmem:[#allocation2 + $0x910] sm:$0xff]  ;;  %5837 = vst.msk [vmem:[#allocation2 + $0x518] sm:$0xff] %vm264_vm3, %v5324_v15  ;;  %v11218_v11 = vld [vmem:[%s11574_s26 + $0xe0] sm:$0xff]  ;;  %v5326_v44 = vadd.f32 %v13810_v55, %v942_v54  ;;  %v5454_v57 = vadd.f32 %v13836_v19, %v1070_v36 }
 0x323   : > { %9555 = vst.msk [vmem:[%s11763_s4 + $0x484] sm:$0xf] %vm9265_vm5, %v9042_v39  ;;  %v8275_v17 = vsel %vm7251_vm11, %v6739_v62, %v7763_v52  ;;  %v6995_v34 = vadd.f32 %v13823_v38, %v6479_v45  ;;  %v6607_v10 = vld [vmem:[#allocation2 + $0xd10] sm:$0xff]  ;;  %v11346_v39 = vld [vmem:[%s11574_s26 + $0x4e0] sm:$0xff] }
 0x324   : > { %9683 = vst.msk [vmem:[%s11763_s4 + $0x684] sm:$0xf] %vm9265_vm5, %v9170_v12  ;;  %v8787_v24 = vpack.c.bf16 %v8275_v17, %v8275_v17  ;;  %vm7379_vm12 = vcmp.gt.f32.partialorder %v6867_v59, 0.0  ;;  %v7891_v56 = vmul.f32 0.01, %v6867_v59  ;;  %v7123_v26 = vadd.f32 %v13823_v38, %v6607_v10  ;;  %v815_v17 = vld [vmem:[#allocation2 + $0x130] sm:$0xff] }
 0x325   : > { %vm7507_vm13 = vcmp.gt.f32.partialorder %v6995_v34, 0.0  ;;  %v8019_v18 = vmul.f32 0.01, %v6995_v34  ;;  %5965 = vst.msk [vmem:[#allocation2 + $0x918] sm:$0xff] %vm264_vm3, %v5452_v7  ;;  %v13900_v47 = vpop.f32.mrf.mxu2  ;;  %v13902_v13 = vpop.f32.mrf.mxu3 }
 0x326   : > { %9300 = vst.msk [vmem:[%s11763_s4 + $0x88] sm:$0xf] %vm9265_vm5, %v8787_v24  ;;  %v8403_v50 = vsel %vm7379_vm12, %v6867_v59, %v7891_v56  ;;  %vm7635_vm14 = vcmp.gt.f32.partialorder %v7123_v26, 0.0  ;;  %v8147_v28 = vmul.f32 0.01, %v7123_v26  ;;  %v6224_v63 = vld [vmem:[#allocation2 + $0x118] sm:$0xff]  ;;  %v13909_v40 = vpop.f32.mrf.mxu0 }
 0x327   : > { %v8915_v42 = vpack.c.bf16 %v8403_v50, %v8403_v50  ;;  %v8531_v33 = vsel %vm7507_vm13, %v6995_v34, %v8019_v18  ;;  %v6740_v2 = vadd.f32 %v13823_v38, %v6224_v63  ;;  %6093 = vst.msk [vmem:[#allocation2 + $0xd18] sm:$0xff] %vm264_vm3, %v5580_v22  ;;  %v11410_v59 = vld [vmem:[%s11574_s26 + $0x6e0] sm:$0xff]  ;;  %v5582_v22 = vadd.f32 %v13838_v58, %v1198_v14 }
 0x328   : > { %v9043_v4 = vpack.c.bf16 %v8531_v33, %v8531_v33  ;;  %v8659_v51 = vsel %vm7635_vm14, %v7123_v26, %v8147_v28  ;;  %5710 = vst.msk [vmem:[#allocation2 + $0x120] sm:$0xff] %vm264_vm3, %v5197_v16  ;;  %v13911_v7 = vpop.f32.mrf.mxu1  ;;  %v943_v16 = vld [vmem:[#allocation2 + $0x530] sm:$0xff]  ;;  %10960 = vmatmul.msk.bf16.gmra.mxu0 %vm3096_vm2, %v11218_v11  ;;  %11024 = vmatmul.msk.bf16.gmra.mxu1 %vm3096_vm2, %v11282_v1  ;;  %v944_v11 = vld [vmem:[#allocation2 + $0x538] sm:$0xff] }
 0x329   : > { %9428 = vst.msk [vmem:[%s11763_s4 + $0x288] sm:$0xf] %vm9265_vm5, %v8915_v42  ;;  %v9171_v27 = vpack.c.bf16 %v8659_v51, %v8659_v51  ;;  %vm7252_vm15 = vcmp.gt.f32.partialorder %v6740_v2, 0.0  ;;  %v7764_v3 = vmul.f32 0.01, %v6740_v2  ;;  %v6352_v37 = vld [vmem:[#allocation2 + $0x518] sm:$0xff]  ;;  %v5199_v50 = vadd.f32 %v13845_v32, %v815_v17 }
 0x32a   : > { %9556 = vst.msk [vmem:[%s11763_s4 + $0x488] sm:$0xf] %vm9265_vm5, %v9043_v4  ;;  %v6868_v0 = vadd.f32 %v13823_v38, %v6352_v37  ;;  %v1071_v26 = vld [vmem:[#allocation2 + $0x930] sm:$0xff]  ;;  %11088 = vmatmul.msk.bf16.gmra.mxu2 %vm3096_vm2, %v11346_v39  ;;  %v5327_v42 = vadd.f32 %v13847_v31, %v943_v16  ;;  %v1072_v1 = vld [vmem:[#allocation2 + $0x938] sm:$0xff]  ;;  %v11283_v17 = vld [vmem:[%s11574_s26 + $0x2e8] sm:$0xff] }
 0x32b   : > { %9684 = vst.msk [vmem:[%s11763_s4 + $0x688] sm:$0xf] %vm9265_vm5, %v9171_v27  ;;  %v8276_v15 = vsel %vm7252_vm15, %v6740_v2, %v7764_v3  ;;  %11152 = vmatmul.msk.bf16.gmra.mxu3 %vm3096_vm2, %v11410_v59  ;;  %v1199_v33 = vld [vmem:[#allocation2 + $0xd30] sm:$0xff]  ;;  %v5455_v29 = vadd.f32 %v13873_v53, %v1071_v26  ;;  %v816_v53 = vld [vmem:[#allocation2 + $0x138] sm:$0xff]  ;;  %v11219_v59 = vld [vmem:[%s11574_s26 + $0xe8] sm:$0xff] }
 0x32c   : > { %v8788_v41 = vpack.c.bf16 %v8276_v15, %v8276_v15  ;;  %vm7380_vm0 = vcmp.gt.f32.partialorder %v6868_v0, 0.0  ;;  %v7892_v23 = vmul.f32 0.01, %v6868_v0  ;;  %v6480_v25 = vld [vmem:[#allocation2 + $0x918] sm:$0xff]  ;;  %5838 = vst.msk [vmem:[#allocation2 + $0x520] sm:$0xff] %vm264_vm3, %v5325_v30  ;;  %v5200_v14 = vadd.f32 %v13879_v6, %v816_v53 }
 0x32d   : > { %v6996_v20 = vadd.f32 %v13823_v38, %v6480_v25  ;;  %5966 = vst.msk [vmem:[#allocation2 + $0x920] sm:$0xff] %vm264_vm3, %v5453_v8  ;;  %v13936_v2 = vpop.f32.mrf.mxu2 }
 0x32e   : > { %9301 = vst.msk [vmem:[%s11763_s4 + $0x8c] sm:$0xf] %vm9265_vm5, %v8788_v41  ;;  %v8404_v62 = vsel %vm7380_vm0, %v6868_v0, %v7892_v23  ;;  %v6608_v61 = vld [vmem:[#allocation2 + $0xd18] sm:$0xff]  ;;  %v13938_v4 = vpop.f32.mrf.mxu3  ;;  %v13943_v32 = vpop.f32.mrf.mxu0  ;;  %v5583_v0 = vadd.f32 %v13875_v35, %v1199_v33 }
 0x32f   : > { %v8916_v21 = vpack.c.bf16 %v8404_v62, %v8404_v62  ;;  %vm7508_vm1 = vcmp.gt.f32.partialorder %v6996_v20, 0.0  ;;  %v8020_v52 = vmul.f32 0.01, %v6996_v20  ;;  %v7124_v60 = vadd.f32 %v13823_v38, %v6608_v61  ;;  %v6225_v12 = vld [vmem:[#allocation2 + $0x120] sm:$0xff]  ;;  %6094 = vst.msk [vmem:[#allocation2 + $0xd20] sm:$0xff] %vm264_vm3, %v5581_v48 }
 0x330   : > { %v6741_v45 = vadd.f32 %v13823_v38, %v6225_v12  ;;  %5711 = vst.msk [vmem:[#allocation2 + $0x128] sm:$0xff] %vm264_vm3, %v5198_v46  ;;  %v13945_v43 = vpop.f32.mrf.mxu1 }
 0x331   : > { %9429 = vst.msk [vmem:[%s11763_s4 + $0x28c] sm:$0xf] %vm9265_vm5, %v8916_v21  ;;  %v8532_v55 = vsel %vm7508_vm1, %v6996_v20, %v8020_v52  ;;  %vm7636_vm4 = vcmp.gt.f32.partialorder %v7124_v60, 0.0  ;;  %v8148_v19 = vmul.f32 0.01, %v7124_v60  ;;  %v1200_v52 = vld [vmem:[#allocation2 + $0xd38] sm:$0xff] }
 0x332   : > { %v9044_v34 = vpack.c.bf16 %v8532_v55, %v8532_v55  ;;  %vm7253_vm6 = vcmp.gt.f32.partialorder %v6741_v45, 0.0  ;;  %v7765_v10 = vmul.f32 0.01, %v6741_v45  ;;  %5839 = vst.msk [vmem:[#allocation2 + $0x528] sm:$0xff] %vm264_vm3, %v5326_v44  ;;  %v5328_v55 = vadd.f32 %v13881_v5, %v944_v11 }
 0x333   : > { %v8660_v24 = vsel %vm7636_vm4, %v7124_v60, %v8148_v19  ;;  %v6353_v56 = vld [vmem:[#allocation2 + $0x520] sm:$0xff]  ;;  %5967 = vst.msk [vmem:[#allocation2 + $0x928] sm:$0xff] %vm264_vm3, %v5454_v57 }
 0x334   : > { %9557 = vst.msk [vmem:[%s11763_s4 + $0x48c] sm:$0xf] %vm9265_vm5, %v9044_v34  ;;  %v9172_v58 = vpack.c.bf16 %v8660_v24, %v8660_v24  ;;  %v8277_v18 = vsel %vm7253_vm6, %v6741_v45, %v7765_v10  ;;  %v6869_v9 = vadd.f32 %v13823_v38, %v6353_v56  ;;  %v6481_v49 = vld [vmem:[#allocation2 + $0x920] sm:$0xff]  ;;  %v11347_v34 = vld [vmem:[%s11574_s26 + $0x4e8] sm:$0xff] }
 0x335   : > { %v8789_v28 = vpack.c.bf16 %v8277_v18, %v8277_v18  ;;  %v6997_v63 = vadd.f32 %v13823_v38, %v6481_v49  ;;  %6095 = vst.msk [vmem:[#allocation2 + $0xd28] sm:$0xff] %vm264_vm3, %v5582_v22  ;;  %v13964_v60 = vpop.f32.mrf.mxu2  ;;  %v11411_v10 = vld [vmem:[%s11574_s26 + $0x6e8] sm:$0xff] }
 0x336   : > { %9685 = vst.msk [vmem:[%s11763_s4 + $0x68c] sm:$0xf] %vm9265_vm5, %v9172_v58  ;;  %vm7381_vm7 = vcmp.gt.f32.partialorder %v6869_v9, 0.0  ;;  %v7893_v51 = vmul.f32 0.01, %v6869_v9  ;;  %v6609_v30 = vld [vmem:[#allocation2 + $0xd20] sm:$0xff]  ;;  %v13966_v12 = vpop.f32.mrf.mxu3  ;;  %v13972_v19 = vpop.f32.mrf.mxu0 }
 0x337   : > { %9302 = vst.msk [vmem:[%s11763_s4 + $0x90] sm:$0xf] %vm9265_vm5, %v8789_v28  ;;  %vm7509_vm8 = vcmp.gt.f32.partialorder %v6997_v63, 0.0  ;;  %v8021_v31 = vmul.f32 0.01, %v6997_v63  ;;  %v7125_v27 = vadd.f32 %v13823_v38, %v6609_v30  ;;  %v6226_v3 = vld [vmem:[#allocation2 + $0x128] sm:$0xff]  ;;  %v5456_v28 = vadd.f32 %v13900_v47, %v1072_v1 }
 0x338   : > { %v8405_v37 = vsel %vm7381_vm7, %v6869_v9, %v7893_v51  ;;  %v6742_v8 = vadd.f32 %v13823_v38, %v6226_v3  ;;  %5712 = vst.msk [vmem:[#allocation2 + $0x130] sm:$0xff] %vm264_vm3, %v5199_v50  ;;  %v13974_v22 = vpop.f32.mrf.mxu1  ;;  %10961 = vmatmul.msk.bf16.gmra.mxu0 %vm3096_vm2, %v11219_v59  ;;  %11025 = vmatmul.msk.bf16.gmra.mxu1 %vm3096_vm2, %v11283_v17  ;;  %v945_v47 = vld [vmem:[#allocation2 + $0x540] sm:$0xff] }
 0x339   : > { %v8917_v15 = vpack.c.bf16 %v8405_v37, %v8405_v37  ;;  %v8533_v48 = vsel %vm7509_vm8, %v6997_v63, %v8021_v31  ;;  %vm7637_vm9 = vcmp.gt.f32.partialorder %v7125_v27, 0.0  ;;  %v8149_v54 = vmul.f32 0.01, %v7125_v27  ;;  %v6354_v36 = vld [vmem:[#allocation2 + $0x528] sm:$0xff]  ;;  %5840 = vst.msk [vmem:[#allocation2 + $0x530] sm:$0xff] %vm264_vm3, %v5327_v42 }
 0x33a   : > { %v9045_v41 = vpack.c.bf16 %v8533_v48, %v8533_v48  ;;  %vm7254_vm10 = vcmp.gt.f32.partialorder %v6742_v8, 0.0  ;;  %v7766_v23 = vmul.f32 0.01, %v6742_v8  ;;  %v6870_v25 = vadd.f32 %v13823_v38, %v6354_v36  ;;  %v6482_v46 = vld [vmem:[#allocation2 + $0x928] sm:$0xff]  ;;  %5968 = vst.msk [vmem:[#allocation2 + $0x930] sm:$0xff] %vm264_vm3, %v5455_v29  ;;  %v817_v29 = vld [vmem:[#allocation2 + $0x140] sm:$0xff]  ;;  %11089 = vmatmul.msk.bf16.gmra.mxu2 %vm3096_vm2, %v11347_v34 }
 0x33b   : > { %9430 = vst.msk [vmem:[%s11763_s4 + $0x290] sm:$0xf] %vm9265_vm5, %v8917_v15  ;;  %v8661_v35 = vsel %vm7637_vm9, %v7125_v27, %v8149_v54  ;;  %v6998_v20 = vadd.f32 %v13823_v38, %v6482_v46  ;;  %v5584_v63 = vadd.f32 %v13902_v13, %v1200_v52  ;;  %11153 = vmatmul.msk.bf16.gmra.mxu3 %vm3096_vm2, %v11411_v10  ;;  %v1073_v36 = vld [vmem:[#allocation2 + $0x940] sm:$0xff]  ;;  %v1202_v10 = vld [vmem:[#allocation2 + $0xd48] sm:$0xff] }
 0x33c   : > { %9558 = vst.msk [vmem:[%s11763_s4 + $0x490] sm:$0xf] %vm9265_vm5, %v9045_v41  ;;  %v9173_v62 = vpack.c.bf16 %v8661_v35, %v8661_v35  ;;  %v8278_v61 = vsel %vm7254_vm10, %v6742_v8, %v7766_v23  ;;  %vm7382_vm11 = vcmp.gt.f32.partialorder %v6870_v25, 0.0  ;;  %v7894_v44 = vmul.f32 0.01, %v6870_v25  ;;  %v6610_v57 = vld [vmem:[#allocation2 + $0xd28] sm:$0xff] }
 0x33d   : > { %v8790_v39 = vpack.c.bf16 %v8278_v61, %v8278_v61  ;;  %vm7510_vm12 = vcmp.gt.f32.partialorder %v6998_v20, 0.0  ;;  %v8022_v21 = vmul.f32 0.01, %v6998_v20  ;;  %v7126_v6 = vadd.f32 %v13823_v38, %v6610_v57  ;;  %6096 = vst.msk [vmem:[#allocation2 + $0xd30] sm:$0xff] %vm264_vm3, %v5583_v0  ;;  %v14001_v0 = vpop.f32.mrf.mxu2  ;;  %v1201_v41 = vld [vmem:[#allocation2 + $0xd40] sm:$0xff]  ;;  %v818_v61 = vld [vmem:[#allocation2 + $0x148] sm:$0xff] }
 0x33e   : > { %9686 = vst.msk [vmem:[%s11763_s4 + $0x690] sm:$0xf] %vm9265_vm5, %v9173_v62  ;;  %v8406_v45 = vsel %vm7382_vm11, %v6870_v25, %v7894_v44  ;;  %v14003_v53 = vpop.f32.mrf.mxu3  ;;  %v5201_v54 = vadd.f32 %v13909_v40, %v817_v29  ;;  %v14007_v23 = vpop.f32.mrf.mxu0  ;;  %v5457_v62 = vadd.f32 %v13936_v2, %v1073_v36  ;;  %v946_v44 = vld [vmem:[#allocation2 + $0x548] sm:$0xff]  ;;  %v5202_v2 = vadd.f32 %v13943_v32, %v818_v61  ;;  %v947_v29 = vld [vmem:[#allocation2 + $0x550] sm:$0xff] }
 0x33f   : > { %9303 = vst.msk [vmem:[%s11763_s4 + $0x94] sm:$0xf] %vm9265_vm5, %v8790_v39  ;;  %v8918_v16 = vpack.c.bf16 %v8406_v45, %v8406_v45  ;;  %v8534_v24 = vsel %vm7510_vm12, %v6998_v20, %v8022_v21  ;;  %vm7638_vm13 = vcmp.gt.f32.partialorder %v7126_v6, 0.0  ;;  %v8150_v56 = vmul.f32 0.01, %v7126_v6  ;;  %v6227_v26 = vld [vmem:[#allocation2 + $0x130] sm:$0xff] }
 0x340   : > { %v9046_v58 = vpack.c.bf16 %v8534_v24, %v8534_v24  ;;  %v6743_v5 = vadd.f32 %v13823_v38, %v6227_v26  ;;  %v6355_v18 = vld [vmem:[#allocation2 + $0x530] sm:$0xff]  ;;  %5713 = vst.msk [vmem:[#allocation2 + $0x138] sm:$0xff] %vm264_vm3, %v5200_v14  ;;  %v14009_v25 = vpop.f32.mrf.mxu1  ;;  %v5329_v14 = vadd.f32 %v13911_v7, %v945_v47  ;;  %v5585_v7 = vadd.f32 %v13938_v4, %v1201_v41  ;;  %v1074_v45 = vld [vmem:[#allocation2 + $0x948] sm:$0xff] }
 0x341   : > { %9431 = vst.msk [vmem:[%s11763_s4 + $0x294] sm:$0xf] %vm9265_vm5, %v8918_v16  ;;  %v8662_v9 = vsel %vm7638_vm13, %v7126_v6, %v8150_v56  ;;  %v6871_v49 = vadd.f32 %v13823_v38, %v6355_v18  ;;  %v6483_v50 = vld [vmem:[#allocation2 + $0x930] sm:$0xff]  ;;  %v5330_v59 = vadd.f32 %v13945_v43, %v946_v44 }
 0x342   : > { %9559 = vst.msk [vmem:[%s11763_s4 + $0x494] sm:$0xf] %vm9265_vm5, %v9046_v58  ;;  %v9174_v42 = vpack.c.bf16 %v8662_v9, %v8662_v9  ;;  %vm7255_vm14 = vcmp.gt.f32.partialorder %v6743_v5, 0.0  ;;  %v7767_v33 = vmul.f32 0.01, %v6743_v5  ;;  %v6999_v51 = vadd.f32 %v13823_v38, %v6483_v50  ;;  %v11220_v26 = vld [vmem:[%s11574_s26 + $0xf0] sm:$0xff] }
 0x343   : > { %vm7383_vm15 = vcmp.gt.f32.partialorder %v6871_v49, 0.0  ;;  %v7895_v30 = vmul.f32 0.01, %v6871_v49  ;;  %5841 = vst.msk [vmem:[#allocation2 + $0x538] sm:$0xff] %vm264_vm3, %v5328_v55  ;;  %v11284_v58 = vld [vmem:[%s11574_s26 + $0x2f0] sm:$0xff] }
 0x344   : > { %9687 = vst.msk [vmem:[%s11763_s4 + $0x694] sm:$0xf] %vm9265_vm5, %v9174_v42  ;;  %v8279_v13 = vsel %vm7255_vm14, %v6743_v5, %v7767_v33  ;;  %vm7511_vm0 = vcmp.gt.f32.partialorder %v6999_v51, 0.0  ;;  %v8023_v31 = vmul.f32 0.01, %v6999_v51  ;;  %v6611_v27 = vld [vmem:[#allocation2 + $0xd30] sm:$0xff] }
 0x345   : > { %v8791_v3 = vpack.c.bf16 %v8279_v13, %v8279_v13  ;;  %v8407_v37 = vsel %vm7383_vm15, %v6871_v49, %v7895_v30  ;;  %v7127_v8 = vadd.f32 %v13823_v38, %v6611_v27  ;;  %5969 = vst.msk [vmem:[#allocation2 + $0x938] sm:$0xff] %vm264_vm3, %v5456_v28  ;;  %v14030_v16 = vpop.f32.mrf.mxu2  ;;  %v11348_v5 = vld [vmem:[%s11574_s26 + $0x4f0] sm:$0xff]  ;;  %v5458_v49 = vadd.f32 %v13964_v60, %v1074_v45 }
 0x346   : > { %v8919_v15 = vpack.c.bf16 %v8407_v37, %v8407_v37  ;;  %v8535_v48 = vsel %vm7511_vm0, %v6999_v51, %v8023_v31  ;;  %6097 = vst.msk [vmem:[#allocation2 + $0xd38] sm:$0xff] %vm264_vm3, %v5584_v63  ;;  %v14032_v32 = vpop.f32.mrf.mxu3  ;;  %v14036_v24 = vpop.f32.mrf.mxu0  ;;  %v11412_v50 = vld [vmem:[%s11574_s26 + $0x6f0] sm:$0xff]  ;;  %v5586_v30 = vadd.f32 %v13966_v12, %v1202_v10 }
 0x347   : > { %9304 = vst.msk [vmem:[%s11763_s4 + $0x98] sm:$0xf] %vm9265_vm5, %v8791_v3  ;;  %v9047_v46 = vpack.c.bf16 %v8535_v48, %v8535_v48  ;;  %vm7639_vm1 = vcmp.gt.f32.partialorder %v7127_v8, 0.0  ;;  %v8151_v35 = vmul.f32 0.01, %v7127_v8  ;;  %v6228_v20 = vld [vmem:[#allocation2 + $0x138] sm:$0xff]  ;;  %v5331_v48 = vadd.f32 %v13974_v22, %v947_v29 }
 0x348   : > { %9432 = vst.msk [vmem:[%s11763_s4 + $0x298] sm:$0xf] %vm9265_vm5, %v8919_v15  ;;  %v6744_v11 = vadd.f32 %v13823_v38, %v6228_v20  ;;  %v14038_v56 = vpop.f32.mrf.mxu1  ;;  %v819_v42 = vld [vmem:[#allocation2 + $0x150] sm:$0xff]  ;;  %10962 = vmatmul.msk.bf16.gmra.mxu0 %vm3096_vm2, %v11220_v26  ;;  %11026 = vmatmul.msk.bf16.gmra.mxu1 %vm3096_vm2, %v11284_v58  ;;  %v948_v26 = vld [vmem:[#allocation2 + $0x558] sm:$0xff] }
 0x349   : > { %9560 = vst.msk [vmem:[%s11763_s4 + $0x498] sm:$0xf] %vm9265_vm5, %v9047_v46  ;;  %v8663_v40 = vsel %vm7639_vm1, %v7127_v8, %v8151_v35  ;;  %v5203_v12 = vadd.f32 %v13972_v19, %v819_v42  ;;  %v1075_v37 = vld [vmem:[#allocation2 + $0x950] sm:$0xff]  ;;  %v1076_v58 = vld [vmem:[#allocation2 + $0x958] sm:$0xff] }
 0x34a   : > { %v9175_v57 = vpack.c.bf16 %v8663_v40, %v8663_v40  ;;  %vm7256_vm4 = vcmp.gt.f32.partialorder %v6744_v11, 0.0  ;;  %v7768_v1 = vmul.f32 0.01, %v6744_v11  ;;  %v6356_v39 = vld [vmem:[#allocation2 + $0x538] sm:$0xff]  ;;  %5714 = vst.msk [vmem:[#allocation2 + $0x140] sm:$0xff] %vm264_vm3, %v5201_v54  ;;  %11090 = vmatmul.msk.bf16.gmra.mxu2 %vm3096_vm2, %v11348_v5  ;;  %v1203_v22 = vld [vmem:[#allocation2 + $0xd50] sm:$0xff] }
 0x34b   : > { %v6872_v21 = vadd.f32 %v13823_v38, %v6356_v39  ;;  %5842 = vst.msk [vmem:[#allocation2 + $0x540] sm:$0xff] %vm264_vm3, %v5329_v14  ;;  %11154 = vmatmul.msk.bf16.gmra.mxu3 %vm3096_vm2, %v11412_v50  ;;  %v5459_v14 = vadd.f32 %v14001_v0, %v1075_v37 }
 0x34c   : > { %9688 = vst.msk [vmem:[%s11763_s4 + $0x698] sm:$0xf] %vm9265_vm5, %v9175_v57  ;;  %v8280_v6 = vsel %vm7256_vm4, %v6744_v11, %v7768_v1  ;;  %v6484_v52 = vld [vmem:[#allocation2 + $0x938] sm:$0xff] }
 0x34d   : > { %v8792_v55 = vpack.c.bf16 %v8280_v6, %v8280_v6  ;;  %vm7384_vm6 = vcmp.gt.f32.partialorder %v6872_v21, 0.0  ;;  %v7896_v4 = vmul.f32 0.01, %v6872_v21  ;;  %v7000_v17 = vadd.f32 %v13823_v38, %v6484_v52  ;;  %v6612_v34 = vld [vmem:[#allocation2 + $0xd38] sm:$0xff]  ;;  %5970 = vst.msk [vmem:[#allocation2 + $0x940] sm:$0xff] %vm264_vm3, %v5457_v62  ;;  %v14067_v19 = vpop.f32.mrf.mxu2 }
 0x34e   : > { %v7128_v43 = vadd.f32 %v13823_v38, %v6612_v34  ;;  %6098 = vst.msk [vmem:[#allocation2 + $0xd40] sm:$0xff] %vm264_vm3, %v5585_v7  ;;  %v14069_v46 = vpop.f32.mrf.mxu3  ;;  %v14074_v11 = vpop.f32.mrf.mxu0  ;;  %v5587_v52 = vadd.f32 %v14003_v53, %v1203_v22 }
 0x34f   : > { %9305 = vst.msk [vmem:[%s11763_s4 + $0x9c] sm:$0xf] %vm9265_vm5, %v8792_v55  ;;  %v8408_v18 = vsel %vm7384_vm6, %v6872_v21, %v7896_v4  ;;  %vm7512_vm7 = vcmp.gt.f32.partialorder %v7000_v17, 0.0  ;;  %v8024_v9 = vmul.f32 0.01, %v7000_v17 }
 0x350   : > { %v8920_v28 = vpack.c.bf16 %v8408_v18, %v8408_v18  ;;  %vm7640_vm8 = vcmp.gt.f32.partialorder %v7128_v43, 0.0  ;;  %v8152_v63 = vmul.f32 0.01, %v7128_v43  ;;  %5715 = vst.msk [vmem:[#allocation2 + $0x148] sm:$0xff] %vm264_vm3, %v5202_v2  ;;  %v14076_v40 = vpop.f32.mrf.mxu1  ;;  %v820_v2 = vld [vmem:[#allocation2 + $0x158] sm:$0xff] }
 0x351   : > { %v8536_v33 = vsel %vm7512_vm7, %v7000_v17, %v8024_v9  ;;  %v6229_v51 = vld [vmem:[#allocation2 + $0x140] sm:$0xff]  ;;  %5843 = vst.msk [vmem:[#allocation2 + $0x548] sm:$0xff] %vm264_vm3, %v5330_v59  ;;  %v5204_v53 = vadd.f32 %v14007_v23, %v820_v2 }
 0x352   : > { %9433 = vst.msk [vmem:[%s11763_s4 + $0x29c] sm:$0xf] %vm9265_vm5, %v8920_v28  ;;  %v9048_v47 = vpack.c.bf16 %v8536_v33, %v8536_v33  ;;  %v8664_v13 = vsel %vm7640_vm8, %v7128_v43, %v8152_v63  ;;  %v6745_v60 = vadd.f32 %v13823_v38, %v6229_v51  ;;  %v6357_v31 = vld [vmem:[#allocation2 + $0x540] sm:$0xff]  ;;  %v11221_v33 = vld [vmem:[%s11574_s26 + $0xf8] sm:$0xff] }
 0x353   : > { %v9176_v27 = vpack.c.bf16 %v8664_v13, %v8664_v13  ;;  %v6873_v3 = vadd.f32 %v13823_v38, %v6357_v31  ;;  %5971 = vst.msk [vmem:[#allocation2 + $0x948] sm:$0xff] %vm264_vm3, %v5458_v49  ;;  %v11285_v51 = vld [vmem:[%s11574_s26 + $0x2f8] sm:$0xff]  ;;  %v5332_v13 = vadd.f32 %v14009_v25, %v948_v26 }
 0x354   : > { %9561 = vst.msk [vmem:[%s11763_s4 + $0x49c] sm:$0xf] %vm9265_vm5, %v9048_v47  ;;  %vm7257_vm9 = vcmp.gt.f32.partialorder %v6745_v60, 0.0  ;;  %v7769_v8 = vmul.f32 0.01, %v6745_v60  ;;  %v6485_v15 = vld [vmem:[#allocation2 + $0x940] sm:$0xff] }
 0x355   : > { %9689 = vst.msk [vmem:[%s11763_s4 + $0x69c] sm:$0xf] %vm9265_vm5, %v9176_v27  ;;  %vm7385_vm10 = vcmp.gt.f32.partialorder %v6873_v3, 0.0  ;;  %v7897_v54 = vmul.f32 0.01, %v6873_v3  ;;  %v7001_v36 = vadd.f32 %v13823_v38, %v6485_v15  ;;  %v6613_v41 = vld [vmem:[#allocation2 + $0xd40] sm:$0xff]  ;;  %v14094_v50 = vpop.f32.mrf.mxu2 }
 0x356   : > { %v8281_v35 = vsel %vm7257_vm9, %v6745_v60, %v7769_v8  ;;  %v7129_v20 = vadd.f32 %v13823_v38, %v6613_v41  ;;  %6099 = vst.msk [vmem:[#allocation2 + $0xd48] sm:$0xff] %vm264_vm3, %v5586_v30  ;;  %v14096_v28 = vpop.f32.mrf.mxu3  ;;  %v5460_v60 = vadd.f32 %v14030_v16, %v1076_v58  ;;  %v14107_v31 = vpop.f32.mrf.mxu0  ;;  %v1204_v25 = vld [vmem:[#allocation2 + $0xd58] sm:$0xff] }
 0x357   : > { %v8793_v62 = vpack.c.bf16 %v8281_v35, %v8281_v35  ;;  %v8409_v61 = vsel %vm7385_vm10, %v6873_v3, %v7897_v54  ;;  %vm7513_vm11 = vcmp.gt.f32.partialorder %v7001_v36, 0.0  ;;  %v8025_v44 = vmul.f32 0.01, %v7001_v36  ;;  %v6230_v57 = vld [vmem:[#allocation2 + $0x148] sm:$0xff]  ;;  %5716 = vst.msk [vmem:[#allocation2 + $0x150] sm:$0xff] %vm264_vm3, %v5203_v12  ;;  %v11349_v3 = vld [vmem:[%s11574_s26 + $0x4f8] sm:$0xff] }
 0x358   : > { %v8921_v1 = vpack.c.bf16 %v8409_v61, %v8409_v61  ;;  %vm7641_vm12 = vcmp.gt.f32.partialorder %v7129_v20, 0.0  ;;  %v8153_v39 = vmul.f32 0.01, %v7129_v20  ;;  %v6746_v7 = vadd.f32 %v13823_v38, %v6230_v57  ;;  %v6358_v0 = vld [vmem:[#allocation2 + $0x548] sm:$0xff]  ;;  %5844 = vst.msk [vmem:[#allocation2 + $0x550] sm:$0xff] %vm264_vm3, %v5331_v48  ;;  %v14109_v27 = vpop.f32.mrf.mxu1  ;;  %v11413_v12 = vld [vmem:[%s11574_s26 + $0x6f8] sm:$0xff]  ;;  %10963 = vmatmul.msk.bf16.gmra.mxu0 %vm3096_vm2, %v11221_v33  ;;  %11027 = vmatmul.msk.bf16.gmra.mxu1 %vm3096_vm2, %v11285_v51 }
 0x359   : > { %9306 = vst.msk [vmem:[%s11763_s4 + $0xa0] sm:$0xf] %vm9265_vm5, %v8793_v62  ;;  %v8537_v21 = vsel %vm7513_vm11, %v7001_v36, %v8025_v44  ;;  %v6874_v6 = vadd.f32 %v13823_v38, %v6358_v0  ;;  %v821_v54 = vld [vmem:[#allocation2 + $0x160] sm:$0xff]  ;;  %v5588_v61 = vadd.f32 %v14032_v32, %v1204_v25  ;;  %v823_v51 = vld [vmem:[#allocation2 + $0x170] sm:$0xff] }
 0x35a   : > { %9434 = vst.msk [vmem:[%s11763_s4 + $0x2a0] sm:$0xf] %vm9265_vm5, %v8921_v1  ;;  %v9049_v59 = vpack.c.bf16 %v8537_v21, %v8537_v21  ;;  %v8665_v45 = vsel %vm7641_vm12, %v7129_v20, %v8153_v39  ;;  %vm7258_vm13 = vcmp.gt.f32.partialorder %v6746_v7, 0.0  ;;  %v7770_v55 = vmul.f32 0.01, %v6746_v7  ;;  %v6486_v4 = vld [vmem:[#allocation2 + $0x948] sm:$0xff]  ;;  %11091 = vmatmul.msk.bf16.gmra.mxu2 %vm3096_vm2, %v11349_v3 }
 0x35b   : > { %v9177_v17 = vpack.c.bf16 %v8665_v45, %v8665_v45  ;;  %vm7386_vm14 = vcmp.gt.f32.partialorder %v6874_v6, 0.0  ;;  %v7898_v34 = vmul.f32 0.01, %v6874_v6  ;;  %v7002_v10 = vadd.f32 %v13823_v38, %v6486_v4  ;;  %5972 = vst.msk [vmem:[#allocation2 + $0x950] sm:$0xff] %vm264_vm3, %v5459_v14  ;;  %11155 = vmatmul.msk.bf16.gmra.mxu3 %vm3096_vm2, %v11413_v12  ;;  %v949_v44 = vld [vmem:[#allocation2 + $0x560] sm:$0xff]  ;;  %v822_v45 = vld [vmem:[#allocation2 + $0x168] sm:$0xff] }
 0x35c   : > { %9562 = vst.msk [vmem:[%s11763_s4 + $0x4a0] sm:$0xf] %vm9265_vm5, %v9049_v59  ;;  %v8282_v43 = vsel %vm7258_vm13, %v6746_v7, %v7770_v55  ;;  %v1077_v57 = vld [vmem:[#allocation2 + $0x960] sm:$0xff]  ;;  %v5205_v0 = vadd.f32 %v14036_v24, %v821_v54  ;;  %v5333_v2 = vadd.f32 %v14038_v56, %v949_v44  ;;  %v5206_v58 = vadd.f32 %v14074_v11, %v822_v45 }
 0x35d   : > { %9690 = vst.msk [vmem:[%s11763_s4 + $0x6a0] sm:$0xf] %vm9265_vm5, %v9177_v17  ;;  %v8794_v5 = vpack.c.bf16 %v8282_v43, %v8282_v43  ;;  %v8410_v18 = vsel %vm7386_vm14, %v6874_v6, %v7898_v34  ;;  %vm7514_vm15 = vcmp.gt.f32.partialorder %v7002_v10, 0.0  ;;  %v8026_v9 = vmul.f32 0.01, %v7002_v10  ;;  %v6614_v49 = vld [vmem:[#allocation2 + $0xd48] sm:$0xff]  ;;  %v14133_v6 = vpop.f32.mrf.mxu2 }
 0x35e   : > { %v8922_v63 = vpack.c.bf16 %v8410_v18, %v8410_v18  ;;  %v7130_v23 = vadd.f32 %v13823_v38, %v6614_v49  ;;  %v6231_v42 = vld [vmem:[#allocation2 + $0x150] sm:$0xff]  ;;  %6100 = vst.msk [vmem:[#allocation2 + $0xd50] sm:$0xff] %vm264_vm3, %v5587_v52  ;;  %v14135_v52 = vpop.f32.mrf.mxu3  ;;  %v1205_v59 = vld [vmem:[#allocation2 + $0xd60] sm:$0xff]  ;;  %v14140_v55 = vpop.f32.mrf.mxu0  ;;  %v5207_v44 = vadd.f32 %v14107_v31, %v823_v51 }
 0x35f   : > { %9307 = vst.msk [vmem:[%s11763_s4 + $0xa4] sm:$0xf] %vm9265_vm5, %v8794_v5  ;;  %v8538_v30 = vsel %vm7514_vm15, %v7002_v10, %v8026_v9  ;;  %v6747_v29 = vadd.f32 %v13823_v38, %v6231_v42  ;;  %v6359_v47 = vld [vmem:[#allocation2 + $0x550] sm:$0xff]  ;;  %v5461_v10 = vadd.f32 %v14067_v19, %v1077_v57  ;;  %v5589_v26 = vadd.f32 %v14069_v46, %v1205_v59  ;;  %v950_v5 = vld [vmem:[#allocation2 + $0x568] sm:$0xff]  ;;  %v14179_v54 = vld [vmem:[%s16747_s2] ss:$0 sm:$0xff] }
 0x360   : > { %9435 = vst.msk [vmem:[%s11763_s4 + $0x2a4] sm:$0xf] %vm9265_vm5, %v8922_v63  ;;  %v9050_v37 = vpack.c.bf16 %v8538_v30, %v8538_v30  ;;  %vm7642_vm0 = vcmp.gt.f32.partialorder %v7130_v23, 0.0  ;;  %v8154_v8 = vmul.f32 0.01, %v7130_v23  ;;  %v6875_v15 = vadd.f32 %v13823_v38, %v6359_v47  ;;  %v14142_v4 = vpop.f32.mrf.mxu1  ;;  %v1206_v42 = vld [vmem:[#allocation2 + $0xd68] sm:$0xff] }
 0x361   : > { %vm7259_vm1 = vcmp.gt.f32.partialorder %v6747_v29, 0.0  ;;  %v7771_v48 = vmul.f32 0.01, %v6747_v29  ;;  %5717 = vst.msk [vmem:[#allocation2 + $0x158] sm:$0xff] %vm264_vm3, %v5204_v53  ;;  %v5334_v33 = vadd.f32 %v14076_v40, %v950_v5 }
 0x362   : > { %9563 = vst.msk [vmem:[%s11763_s4 + $0x4a4] sm:$0xf] %vm9265_vm5, %v9050_v37  ;;  %v8666_v16 = vsel %vm7642_vm0, %v7130_v23, %v8154_v8  ;;  %vm7387_vm4 = vcmp.gt.f32.partialorder %v6875_v15, 0.0  ;;  %v7899_v36 = vmul.f32 0.01, %v6875_v15  ;;  %v6487_v41 = vld [vmem:[#allocation2 + $0x950] sm:$0xff] }
 0x363   : > { %v9178_v35 = vpack.c.bf16 %v8666_v16, %v8666_v16  ;;  %v8283_v20 = vsel %vm7259_vm1, %v6747_v29, %v7771_v48  ;;  %v7003_v14 = vadd.f32 %v13823_v38, %v6487_v41  ;;  %5845 = vst.msk [vmem:[#allocation2 + $0x558] sm:$0xff] %vm264_vm3, %v5332_v13  ;;  %v1078_v23 = vld [vmem:[#allocation2 + $0x968] sm:$0xff]  ;;  %v11222_v13 = vld [vmem:[%s11574_s26 + $0x100] sm:$0xff] }
 0x364   : > { %v8795_v22 = vpack.c.bf16 %v8283_v20, %v8283_v20  ;;  %v8411_v62 = vsel %vm7387_vm4, %v6875_v15, %v7899_v36  ;;  %5973 = vst.msk [vmem:[#allocation2 + $0x958] sm:$0xff] %vm264_vm3, %v5460_v60  ;;  %v11286_v60 = vld [vmem:[%s11574_s26 + $0x300] sm:$0xff]  ;;  %v5462_v41 = vadd.f32 %v14094_v50, %v1078_v23 }
 0x365   : > { %9691 = vst.msk [vmem:[%s11763_s4 + $0x6a4] sm:$0xf] %vm9265_vm5, %v9178_v35  ;;  %v8923_v1 = vpack.c.bf16 %v8411_v62, %v8411_v62  ;;  %vm7515_vm6 = vcmp.gt.f32.partialorder %v7003_v14, 0.0  ;;  %v8027_v39 = vmul.f32 0.01, %v7003_v14  ;;  %v6615_v7 = vld [vmem:[#allocation2 + $0xd50] sm:$0xff]  ;;  %v14160_v29 = vpop.f32.mrf.mxu2 }
 0x366   : > { %9308 = vst.msk [vmem:[%s11763_s4 + $0xa8] sm:$0xf] %vm9265_vm5, %v8795_v22  ;;  %v7131_v21 = vadd.f32 %v13823_v38, %v6615_v7  ;;  %v14162_v47 = vpop.f32.mrf.mxu3  ;;  %v14167_v37 = vpop.f32.mrf.mxu0  ;;  %v11350_v8 = vld [vmem:[%s11574_s26 + $0x500] sm:$0xff]  ;;  %v951_v22 = vld [vmem:[#allocation2 + $0x570] sm:$0xff] }
 0x367   : > { %9436 = vst.msk [vmem:[%s11763_s4 + $0x2a8] sm:$0xf] %vm9265_vm5, %v8923_v1  ;;  %v8539_v32 = vsel %vm7515_vm6, %v7003_v14, %v8027_v39  ;;  %v11414_v15 = vld [vmem:[%s11574_s26 + $0x700] sm:$0xff]  ;;  %v5590_v14 = vadd.f32 %v14096_v28, %v1206_v42  ;;  %v5335_v31 = vadd.f32 %v14109_v27, %v951_v22  ;;  %v1079_v7 = vld [vmem:[#allocation2 + $0x970] sm:$0xff] }
 0x368   : > { %v9051_v24 = vpack.c.bf16 %v8539_v32, %v8539_v32  ;;  %vm7643_vm7 = vcmp.gt.f32.partialorder %v7131_v21, 0.0  ;;  %v8155_v17 = vmul.f32 0.01, %v7131_v21  ;;  %v6232_v34 = vld [vmem:[#allocation2 + $0x158] sm:$0xff]  ;;  %6101 = vst.msk [vmem:[#allocation2 + $0xd58] sm:$0xff] %vm264_vm3, %v5588_v61  ;;  %v14169_v40 = vpop.f32.mrf.mxu1  ;;  %10964 = vmatmul.msk.bf16.gmra.mxu0 %vm3096_vm2, %v11222_v13  ;;  %11028 = vmatmul.msk.bf16.gmra.mxu1 %vm3096_vm2, %v11286_v60 }
 0x369   : > { %v6748_v43 = vadd.f32 %v13823_v38, %v6232_v34  ;;  %5718 = vst.msk [vmem:[#allocation2 + $0x160] sm:$0xff] %vm264_vm3, %v5205_v0 }
 0x36a   : > { %9564 = vst.msk [vmem:[%s11763_s4 + $0x4a8] sm:$0xf] %vm9265_vm5, %v9051_v24  ;;  %v8667_v56 = vsel %vm7643_vm7, %v7131_v21, %v8155_v17  ;;  %v6360_v53 = vld [vmem:[#allocation2 + $0x558] sm:$0xff]  ;;  %11092 = vmatmul.msk.bf16.gmra.mxu2 %vm3096_vm2, %v11350_v8 }
 0x36b   : > { %v9179_v18 = vpack.c.bf16 %v8667_v56, %v8667_v56  ;;  %vm7260_vm8 = vcmp.gt.f32.partialorder %v6748_v43, 0.0  ;;  %v7772_v9 = vmul.f32 0.01, %v6748_v43  ;;  %v6876_v49 = vadd.f32 %v13823_v38, %v6360_v53  ;;  %v6488_v19 = vld [vmem:[#allocation2 + $0x958] sm:$0xff]  ;;  %5846 = vst.msk [vmem:[#allocation2 + $0x560] sm:$0xff] %vm264_vm3, %v5333_v2  ;;  %11156 = vmatmul.msk.bf16.gmra.mxu3 %vm3096_vm2, %v11414_v15  ;;  %v1207_v53 = vld [vmem:[#allocation2 + $0xd70] sm:$0xff] }
 0x36c   : > { %v7004_v63 = vadd.f32 %v13823_v38, %v6488_v19  ;;  %5974 = vst.msk [vmem:[#allocation2 + $0x960] sm:$0xff] %vm264_vm3, %v5461_v10  ;;  %v5463_v56 = vadd.f32 %v14133_v6, %v1079_v7  ;;  %v5591_v42 = vadd.f32 %v14135_v52, %v1207_v53  ;;  %v1081_v53 = vld [vmem:[#allocation2 + $0x980] sm:$0xff] }
 0x36d   : > { %9692 = vst.msk [vmem:[%s11763_s4 + $0x6a8] sm:$0xf] %vm9265_vm5, %v9179_v18  ;;  %v8284_v46 = vsel %vm7260_vm8, %v6748_v43, %v7772_v9  ;;  %vm7388_vm9 = vcmp.gt.f32.partialorder %v6876_v49, 0.0  ;;  %v7900_v11 = vmul.f32 0.01, %v6876_v49  ;;  %v14202_v34 = vpop.f32.mrf.mxu2 }
 0x36e   : > { %v8796_v30 = vpack.c.bf16 %v8284_v46, %v8284_v46  ;;  %vm7516_vm10 = vcmp.gt.f32.partialorder %v7004_v63, 0.0  ;;  %v8028_v38 = vmul.f32 0.01, %v7004_v63  ;;  %6102 = vst.msk [vmem:[#allocation2 + $0xd60] sm:$0xff] %vm264_vm3, %v5589_v26  ;;  %v14204_v27 = vpop.f32.mrf.mxu3  ;;  %v14210_v26 = vpop.f32.mrf.mxu0  ;;  %v824_v46 = vld [vmem:[#allocation2 + $0x178] sm:$0xff] }
 0x36f   : > { %v8412_v3 = vsel %vm7388_vm9, %v6876_v49, %v7900_v11  ;;  %v6616_v12 = vld [vmem:[#allocation2 + $0xd58] sm:$0xff]  ;;  %5719 = vst.msk [vmem:[#allocation2 + $0x168] sm:$0xff] %vm264_vm3, %v5206_v58  ;;  %v5208_v15 = vadd.f32 %v14140_v55, %v824_v46  ;;  %v11287_v55 = vld [vmem:[%s11574_s26 + $0x308] sm:$0xff] }
 0x370   : > { %9309 = vst.msk [vmem:[%s11763_s4 + $0xac] sm:$0xf] %vm9265_vm5, %v8796_v30  ;;  %v8924_v48 = vpack.c.bf16 %v8412_v3, %v8412_v3  ;;  %v8540_v25 = vsel %vm7516_vm10, %v7004_v63, %v8028_v38  ;;  %v7132_v16 = vadd.f32 %v14179_v54, %v6616_v12  ;;  %v6233_v36 = vld [vmem:[#allocation2 + $0x160] sm:$0xff]  ;;  %v14212_v58 = vpop.f32.mrf.mxu1  ;;  %v952_v11 = vld [vmem:[#allocation2 + $0x578] sm:$0xff] }
 0x371   : > { %v9052_v35 = vpack.c.bf16 %v8540_v25, %v8540_v25  ;;  %v6749_v20 = vadd.f32 %v14179_v54, %v6233_v36  ;;  %5847 = vst.msk [vmem:[#allocation2 + $0x568] sm:$0xff] %vm264_vm3, %v5334_v33  ;;  %v1080_v25 = vld [vmem:[#allocation2 + $0x978] sm:$0xff] }
 0x372   : > { %9437 = vst.msk [vmem:[%s11763_s4 + $0x2ac] sm:$0xf] %vm9265_vm5, %v8924_v48  ;;  %vm7644_vm11 = vcmp.gt.f32.partialorder %v7132_v16, 0.0  ;;  %v8156_v62 = vmul.f32 0.01, %v7132_v16  ;;  %v6361_v61 = vld [vmem:[#allocation2 + $0x560] sm:$0xff]  ;;  %v5336_v48 = vadd.f32 %v14142_v4, %v952_v11  ;;  %v5465_v11 = vadd.f32 %v14202_v34, %v1081_v53 }
 0x373   : > { %9565 = vst.msk [vmem:[%s11763_s4 + $0x4ac] sm:$0xf] %vm9265_vm5, %v9052_v35  ;;  %vm7261_vm12 = vcmp.gt.f32.partialorder %v6749_v20, 0.0  ;;  %v7773_v50 = vmul.f32 0.01, %v6749_v20  ;;  %v6877_v57 = vadd.f32 %v14179_v54, %v6361_v61  ;;  %v6489_v1 = vld [vmem:[#allocation2 + $0x960] sm:$0xff] }
 0x374   : > { %v8668_v28 = vsel %vm7644_vm11, %v7132_v16, %v8156_v62  ;;  %v7005_v39 = vadd.f32 %v14179_v54, %v6489_v1  ;;  %5975 = vst.msk [vmem:[#allocation2 + $0x968] sm:$0xff] %vm264_vm3, %v5462_v41  ;;  %v11223_v16 = vld [vmem:[%s11574_s26 + $0x108] sm:$0xff] }
 0x375   : > { %v9180_v0 = vpack.c.bf16 %v8668_v28, %v8668_v28  ;;  %v8285_v21 = vsel %vm7261_vm12, %v6749_v20, %v7773_v50  ;;  %vm7389_vm13 = vcmp.gt.f32.partialorder %v6877_v57, 0.0  ;;  %v7901_v32 = vmul.f32 0.01, %v6877_v57  ;;  %v6617_v2 = vld [vmem:[#allocation2 + $0xd60] sm:$0xff]  ;;  %6103 = vst.msk [vmem:[#allocation2 + $0xd68] sm:$0xff] %vm264_vm3, %v5590_v14  ;;  %v1208_v20 = vld [vmem:[#allocation2 + $0xd78] sm:$0xff]  ;;  %v14235_v14 = vpop.f32.mrf.mxu2 }
 0x376   : > { %v8797_v59 = vpack.c.bf16 %v8285_v21, %v8285_v21  ;;  %vm7517_vm14 = vcmp.gt.f32.partialorder %v7005_v39, 0.0  ;;  %v8029_v45 = vmul.f32 0.01, %v7005_v39  ;;  %v7133_v24 = vadd.f32 %v14179_v54, %v6617_v2  ;;  %v6234_v17 = vld [vmem:[#allocation2 + $0x168] sm:$0xff]  ;;  %5720 = vst.msk [vmem:[#allocation2 + $0x170] sm:$0xff] %vm264_vm3, %v5207_v44  ;;  %v14237_v22 = vpop.f32.mrf.mxu3  ;;  %v14241_v62 = vpop.f32.mrf.mxu0  ;;  %v825_v2 = vld [vmem:[#allocation2 + $0x180] sm:$0xff] }
 0x377   : > { %9693 = vst.msk [vmem:[%s11763_s4 + $0x6ac] sm:$0xf] %vm9265_vm5, %v9180_v0  ;;  %v8413_v10 = vsel %vm7389_vm13, %v6877_v57, %v7901_v32  ;;  %v6750_v43 = vadd.f32 %v14179_v54, %v6234_v17  ;;  %v11351_v44 = vld [vmem:[%s11574_s26 + $0x508] sm:$0xff]  ;;  %v5464_v32 = vadd.f32 %v14160_v29, %v1080_v25 }
 0x378   : > { %9310 = vst.msk [vmem:[%s11763_s4 + $0xb0] sm:$0xf] %vm9265_vm5, %v8797_v59  ;;  %v8925_v5 = vpack.c.bf16 %v8413_v10, %v8413_v10  ;;  %v8541_v18 = vsel %vm7517_vm14, %v7005_v39, %v8029_v45  ;;  %vm7645_vm15 = vcmp.gt.f32.partialorder %v7133_v24, 0.0  ;;  %v8157_v9 = vmul.f32 0.01, %v7133_v24  ;;  %v6362_v49 = vld [vmem:[#allocation2 + $0x568] sm:$0xff]  ;;  %v14243_v61 = vpop.f32.mrf.mxu1  ;;  %10965 = vmatmul.msk.bf16.gmra.mxu0 %vm3096_vm2, %v11223_v16  ;;  %11029 = vmatmul.msk.bf16.gmra.mxu1 %vm3096_vm2, %v11287_v55 }
 0x379   : > { %v9053_v19 = vpack.c.bf16 %v8541_v18, %v8541_v18  ;;  %vm7262_vm0 = vcmp.gt.f32.partialorder %v6750_v43, 0.0  ;;  %v7774_v63 = vmul.f32 0.01, %v6750_v43  ;;  %v6878_v23 = vadd.f32 %v14179_v54, %v6362_v49  ;;  %5848 = vst.msk [vmem:[#allocation2 + $0x570] sm:$0xff] %vm264_vm3, %v5335_v31  ;;  %v11415_v50 = vld [vmem:[%s11574_s26 + $0x708] sm:$0xff]  ;;  %v953_v59 = vld [vmem:[#allocation2 + $0x580] sm:$0xff] }
 0x37a   : > { %9438 = vst.msk [vmem:[%s11763_s4 + $0x2b0] sm:$0xf] %vm9265_vm5, %v8925_v5  ;;  %v8669_v6 = vsel %vm7645_vm15, %v7133_v24, %v8157_v9  ;;  %v5592_v10 = vadd.f32 %v14162_v47, %v1208_v20  ;;  %11093 = vmatmul.msk.bf16.gmra.mxu2 %vm3096_vm2, %v11351_v44  ;;  %v1209_v5 = vld [vmem:[#allocation2 + $0xd80] sm:$0xff]  ;;  %v5337_v49 = vadd.f32 %v14169_v40, %v953_v59  ;;  %v1210_v16 = vld [vmem:[#allocation2 + $0xd88] sm:$0xff]  ;;  %v11224_v44 = vld [vmem:[%s11574_s26 + $0x110] sm:$0xff] }
 0x37b   : > { %9566 = vst.msk [vmem:[%s11763_s4 + $0x4b0] sm:$0xf] %vm9265_vm5, %v9053_v19  ;;  %v9181_v33 = vpack.c.bf16 %v8669_v6, %v8669_v6  ;;  %v8286_v51 = vsel %vm7262_vm0, %v6750_v43, %v7774_v63  ;;  %vm7390_vm1 = vcmp.gt.f32.partialorder %v6878_v23, 0.0  ;;  %v7902_v30 = vmul.f32 0.01, %v6878_v23  ;;  %v6490_v38 = vld [vmem:[#allocation2 + $0x968] sm:$0xff]  ;;  %11157 = vmatmul.msk.bf16.gmra.mxu3 %vm3096_vm2, %v11415_v50 }
 0x37c   : > { %v8798_v13 = vpack.c.bf16 %v8286_v51, %v8286_v51  ;;  %v7006_v60 = vadd.f32 %v14179_v54, %v6490_v38  ;;  %v6618_v3 = vld [vmem:[#allocation2 + $0xd68] sm:$0xff]  ;;  %5976 = vst.msk [vmem:[#allocation2 + $0x970] sm:$0xff] %vm264_vm3, %v5463_v56  ;;  %v5209_v56 = vadd.f32 %v14167_v37, %v825_v2  ;;  %v5593_v40 = vadd.f32 %v14204_v27, %v1209_v5  ;;  %v11288_v50 = vld [vmem:[%s11574_s26 + $0x310] sm:$0xff] }
 0x37d   : > { %9694 = vst.msk [vmem:[%s11763_s4 + $0x6b0] sm:$0xf] %vm9265_vm5, %v9181_v33  ;;  %v8414_v52 = vsel %vm7390_vm1, %v6878_v23, %v7902_v30  ;;  %v7134_v12 = vadd.f32 %v14179_v54, %v6618_v3  ;;  %v6235_v8 = vld [vmem:[#allocation2 + $0x170] sm:$0xff]  ;;  %v14268_v19 = vpop.f32.mrf.mxu2  ;;  %v826_v33 = vld [vmem:[#allocation2 + $0x188] sm:$0xff]  ;;  %v5594_v2 = vadd.f32 %v14237_v22, %v1210_v16 }
 0x37e   : > { %9311 = vst.msk [vmem:[%s11763_s4 + $0xb4] sm:$0xf] %vm9265_vm5, %v8798_v13  ;;  %v8926_v36 = vpack.c.bf16 %v8414_v52, %v8414_v52  ;;  %vm7518_vm4 = vcmp.gt.f32.partialorder %v7006_v60, 0.0  ;;  %v8030_v41 = vmul.f32 0.01, %v7006_v60  ;;  %v6751_v35 = vadd.f32 %v14179_v54, %v6235_v8  ;;  %v14270_v63 = vpop.f32.mrf.mxu3  ;;  %v14274_v6 = vpop.f32.mrf.mxu0  ;;  %v954_v52 = vld [vmem:[#allocation2 + $0x588] sm:$0xff] }
 0x37f   : > { %vm7646_vm6 = vcmp.gt.f32.partialorder %v7134_v12, 0.0  ;;  %v8158_v4 = vmul.f32 0.01, %v7134_v12  ;;  %6104 = vst.msk [vmem:[#allocation2 + $0xd70] sm:$0xff] %vm264_vm3, %v5591_v42  ;;  %v5210_v27 = vadd.f32 %v14210_v26, %v826_v33  ;;  %v5338_v20 = vadd.f32 %v14212_v58, %v954_v52  ;;  %v11352_v58 = vld [vmem:[%s11574_s26 + $0x510] sm:$0xff] }
 0x380   : > { %9439 = vst.msk [vmem:[%s11763_s4 + $0x2b4] sm:$0xf] %vm9265_vm5, %v8926_v36  ;;  %v8542_v57 = vsel %vm7518_vm4, %v7006_v60, %v8030_v41  ;;  %vm7263_vm7 = vcmp.gt.f32.partialorder %v6751_v35, 0.0  ;;  %v7775_v1 = vmul.f32 0.01, %v6751_v35  ;;  %v6363_v28 = vld [vmem:[#allocation2 + $0x570] sm:$0xff]  ;;  %v14276_v37 = vpop.f32.mrf.mxu1 }
 0x381   : > { %v9054_v39 = vpack.c.bf16 %v8542_v57, %v8542_v57  ;;  %v8670_v31 = vsel %vm7646_vm6, %v7134_v12, %v8158_v4  ;;  %v6879_v7 = vadd.f32 %v14179_v54, %v6363_v28  ;;  %5721 = vst.msk [vmem:[#allocation2 + $0x178] sm:$0xff] %vm264_vm3, %v5208_v15  ;;  %v1082_v15 = vld [vmem:[#allocation2 + $0x988] sm:$0xff]  ;;  %v1211_v52 = vld [vmem:[#allocation2 + $0xd90] sm:$0xff] }
 0x382   : > { %v9182_v0 = vpack.c.bf16 %v8670_v31, %v8670_v31  ;;  %v8287_v21 = vsel %vm7263_vm7, %v6751_v35, %v7775_v1  ;;  %5849 = vst.msk [vmem:[#allocation2 + $0x578] sm:$0xff] %vm264_vm3, %v5336_v48  ;;  %v5466_v28 = vadd.f32 %v14235_v14, %v1082_v15 }
 0x383   : > { %9567 = vst.msk [vmem:[%s11763_s4 + $0x4b4] sm:$0xf] %vm9265_vm5, %v9054_v39  ;;  %v8799_v45 = vpack.c.bf16 %v8287_v21, %v8287_v21  ;;  %vm7391_vm8 = vcmp.gt.f32.partialorder %v6879_v7, 0.0  ;;  %v7903_v24 = vmul.f32 0.01, %v6879_v7  ;;  %v6491_v17 = vld [vmem:[#allocation2 + $0x970] sm:$0xff] }
 0x384   : > { %9695 = vst.msk [vmem:[%s11763_s4 + $0x6b4] sm:$0xf] %vm9265_vm5, %v9182_v0  ;;  %v7007_v29 = vadd.f32 %v14179_v54, %v6491_v17  ;;  %v827_v39 = vld [vmem:[#allocation2 + $0x190] sm:$0xff] }
 0x385   : > { %9312 = vst.msk [vmem:[%s11763_s4 + $0xb8] sm:$0xf] %vm9265_vm5, %v8799_v45  ;;  %v8415_v43 = vsel %vm7391_vm8, %v6879_v7, %v7903_v24  ;;  %v14295_v55 = vpop.f32.mrf.mxu2  ;;  %v11416_v0 = vld [vmem:[%s11574_s26 + $0x710] sm:$0xff] }
 0x386   : > { %v8927_v18 = vpack.c.bf16 %v8415_v43, %v8415_v43  ;;  %vm7519_vm9 = vcmp.gt.f32.partialorder %v7007_v29, 0.0  ;;  %v8031_v9 = vmul.f32 0.01, %v7007_v29  ;;  %v6619_v47 = vld [vmem:[#allocation2 + $0xd70] sm:$0xff]  ;;  %5977 = vst.msk [vmem:[#allocation2 + $0x978] sm:$0xff] %vm264_vm3, %v5464_v32  ;;  %v14297_v4 = vpop.f32.mrf.mxu3  ;;  %v14304_v31 = vpop.f32.mrf.mxu0 }
 0x387   : > { %v7135_v23 = vadd.f32 %v14179_v54, %v6619_v47  ;;  %6105 = vst.msk [vmem:[#allocation2 + $0xd78] sm:$0xff] %vm264_vm3, %v5592_v10  ;;  %v5211_v10 = vadd.f32 %v14241_v62, %v827_v39  ;;  %v1084_v39 = vld [vmem:[#allocation2 + $0x998] sm:$0xff] }
 0x388   : > { %9440 = vst.msk [vmem:[%s11763_s4 + $0x2b8] sm:$0xf] %vm9265_vm5, %v8927_v18  ;;  %v8543_v42 = vsel %vm7519_vm9, %v7007_v29, %v8031_v9  ;;  %v6236_v46 = vld [vmem:[#allocation2 + $0x178] sm:$0xff]  ;;  %v14306_v7 = vpop.f32.mrf.mxu1  ;;  %v955_v29 = vld [vmem:[#allocation2 + $0x590] sm:$0xff]  ;;  %10966 = vmatmul.msk.bf16.gmra.mxu0 %vm3096_vm2, %v11224_v44  ;;  %11030 = vmatmul.msk.bf16.gmra.mxu1 %vm3096_vm2, %v11288_v50 }
 0x389   : > { %v9055_v51 = vpack.c.bf16 %v8543_v42, %v8543_v42  ;;  %vm7647_vm10 = vcmp.gt.f32.partialorder %v7135_v23, 0.0  ;;  %v8159_v30 = vmul.f32 0.01, %v7135_v23  ;;  %v6752_v38 = vadd.f32 %v14179_v54, %v6236_v46  ;;  %v6364_v13 = vld [vmem:[#allocation2 + $0x578] sm:$0xff]  ;;  %5722 = vst.msk [vmem:[#allocation2 + $0x180] sm:$0xff] %vm264_vm3, %v5209_v56  ;;  %v1083_v42 = vld [vmem:[#allocation2 + $0x990] sm:$0xff] }
 0x38a   : > { %v6880_v60 = vadd.f32 %v14179_v54, %v6364_v13  ;;  %5850 = vst.msk [vmem:[#allocation2 + $0x580] sm:$0xff] %vm264_vm3, %v5337_v49  ;;  %11094 = vmatmul.msk.bf16.gmra.mxu2 %vm3096_vm2, %v11352_v58  ;;  %v956_v50 = vld [vmem:[#allocation2 + $0x598] sm:$0xff] }
 0x38b   : > { %9568 = vst.msk [vmem:[%s11763_s4 + $0x4b8] sm:$0xf] %vm9265_vm5, %v9055_v51  ;;  %v8671_v3 = vsel %vm7647_vm10, %v7135_v23, %v8159_v30  ;;  %vm7264_vm11 = vcmp.gt.f32.partialorder %v6752_v38, 0.0  ;;  %v7776_v34 = vmul.f32 0.01, %v6752_v38  ;;  %11158 = vmatmul.msk.bf16.gmra.mxu3 %vm3096_vm2, %v11416_v0  ;;  %v5339_v23 = vadd.f32 %v14243_v61, %v955_v29  ;;  %v11225_v0 = vld [vmem:[%s11574_s26 + $0x118] sm:$0xff] }
 0x38c   : > { %v9183_v12 = vpack.c.bf16 %v8671_v3, %v8671_v3  ;;  %vm7392_vm12 = vcmp.gt.f32.partialorder %v6880_v60, 0.0  ;;  %v7904_v8 = vmul.f32 0.01, %v6880_v60  ;;  %5978 = vst.msk [vmem:[#allocation2 + $0x980] sm:$0xff] %vm264_vm3, %v5465_v11  ;;  %v11353_v29 = vld [vmem:[%s11574_s26 + $0x518] sm:$0xff] }
 0x38d   : > { %v8288_v48 = vsel %vm7264_vm11, %v6752_v38, %v7776_v34  ;;  %v6492_v25 = vld [vmem:[#allocation2 + $0x978] sm:$0xff]  ;;  %6106 = vst.msk [vmem:[#allocation2 + $0xd80] sm:$0xff] %vm264_vm3, %v5593_v40  ;;  %v14332_v51 = vpop.f32.mrf.mxu2 }
 0x38e   : > { %9696 = vst.msk [vmem:[%s11763_s4 + $0x6b8] sm:$0xf] %vm9265_vm5, %v9183_v12  ;;  %v8800_v36 = vpack.c.bf16 %v8288_v48, %v8288_v48  ;;  %v8416_v41 = vsel %vm7392_vm12, %v6880_v60, %v7904_v8  ;;  %v7008_v26 = vadd.f32 %v14179_v54, %v6492_v25  ;;  %v6620_v35 = vld [vmem:[#allocation2 + $0xd78] sm:$0xff]  ;;  %v14334_v30 = vpop.f32.mrf.mxu3  ;;  %v14338_v61 = vpop.f32.mrf.mxu0 }
 0x38f   : > { %v8928_v57 = vpack.c.bf16 %v8416_v41, %v8416_v41  ;;  %v7136_v1 = vadd.f32 %v14179_v54, %v6620_v35  ;;  %5723 = vst.msk [vmem:[#allocation2 + $0x188] sm:$0xff] %vm264_vm3, %v5210_v27  ;;  %v5467_v27 = vadd.f32 %v14268_v19, %v1083_v42  ;;  %v828_v12 = vld [vmem:[#allocation2 + $0x198] sm:$0xff] }
 0x390   : > { %9313 = vst.msk [vmem:[%s11763_s4 + $0xbc] sm:$0xf] %vm9265_vm5, %v8800_v36  ;;  %vm7520_vm13 = vcmp.gt.f32.partialorder %v7008_v26, 0.0  ;;  %v8032_v21 = vmul.f32 0.01, %v7008_v26  ;;  %v6237_v32 = vld [vmem:[#allocation2 + $0x180] sm:$0xff]  ;;  %v14340_v3 = vpop.f32.mrf.mxu1  ;;  %v5212_v44 = vadd.f32 %v14274_v6, %v828_v12 }
 0x391   : > { %9441 = vst.msk [vmem:[%s11763_s4 + $0x2bc] sm:$0xf] %vm9265_vm5, %v8928_v57  ;;  %vm7648_vm14 = vcmp.gt.f32.partialorder %v7136_v1, 0.0  ;;  %v8160_v59 = vmul.f32 0.01, %v7136_v1  ;;  %v6753_v14 = vadd.f32 %v14179_v54, %v6237_v32  ;;  %v6365_v45 = vld [vmem:[#allocation2 + $0x580] sm:$0xff] }
 0x392   : > { %v8544_v24 = vsel %vm7520_vm13, %v7008_v26, %v8032_v21  ;;  %v6881_v17 = vadd.f32 %v14179_v54, %v6365_v45  ;;  %5851 = vst.msk [vmem:[#allocation2 + $0x588] sm:$0xff] %vm264_vm3, %v5338_v20  ;;  %v5595_v20 = vadd.f32 %v14270_v63, %v1211_v52  ;;  %v11289_v21 = vld [vmem:[%s11574_s26 + $0x318] sm:$0xff]  ;;  %v1213_v52 = vld [vmem:[#allocation2 + $0xda0] sm:$0xff] }
 0x393   : > { %v9056_v22 = vpack.c.bf16 %v8544_v24, %v8544_v24  ;;  %v8672_v43 = vsel %vm7648_vm14, %v7136_v1, %v8160_v59  ;;  %vm7265_vm15 = vcmp.gt.f32.partialorder %v6753_v14, 0.0  ;;  %v7777_v56 = vmul.f32 0.01, %v6753_v14  ;;  %v6493_v53 = vld [vmem:[#allocation2 + $0x980] sm:$0xff]  ;;  %5979 = vst.msk [vmem:[#allocation2 + $0x988] sm:$0xff] %vm264_vm3, %v5466_v28 }
 0x394   : > { %v9184_v5 = vpack.c.bf16 %v8672_v43, %v8672_v43  ;;  %vm7393_vm0 = vcmp.gt.f32.partialorder %v6881_v17, 0.0  ;;  %v7905_v62 = vmul.f32 0.01, %v6881_v17  ;;  %v7009_v18 = vadd.f32 %v14179_v54, %v6493_v53  ;;  %v6621_v9 = vld [vmem:[#allocation2 + $0xd80] sm:$0xff]  ;;  %6107 = vst.msk [vmem:[#allocation2 + $0xd88] sm:$0xff] %vm264_vm3, %v5594_v2 }
 0x395   : > { %9569 = vst.msk [vmem:[%s11763_s4 + $0x4bc] sm:$0xf] %vm9265_vm5, %v9056_v22  ;;  %v8289_v47 = vsel %vm7265_vm15, %v6753_v14, %v7777_v56  ;;  %v7137_v49 = vadd.f32 %v14179_v54, %v6621_v9  ;;  %v14362_v2 = vpop.f32.mrf.mxu2  ;;  %v11417_v22 = vld [vmem:[%s11574_s26 + $0x718] sm:$0xff]  ;;  %v5340_v53 = vadd.f32 %v14276_v37, %v956_v50 }
 0x396   : > { %9697 = vst.msk [vmem:[%s11763_s4 + $0x6bc] sm:$0xf] %vm9265_vm5, %v9184_v5  ;;  %v8801_v46 = vpack.c.bf16 %v8289_v47, %v8289_v47  ;;  %v8417_v11 = vsel %vm7393_vm0, %v6881_v17, %v7905_v62  ;;  %vm7521_vm1 = vcmp.gt.f32.partialorder %v7009_v18, 0.0  ;;  %v8033_v40 = vmul.f32 0.01, %v7009_v18  ;;  %v6238_v33 = vld [vmem:[#allocation2 + $0x188] sm:$0xff]  ;;  %v14364_v59 = vpop.f32.mrf.mxu3  ;;  %v14368_v17 = vpop.f32.mrf.mxu0 }
 0x397   : > { %v8929_v38 = vpack.c.bf16 %v8417_v11, %v8417_v11  ;;  %vm7649_vm4 = vcmp.gt.f32.partialorder %v7137_v49, 0.0  ;;  %v8161_v13 = vmul.f32 0.01, %v7137_v49  ;;  %v6754_v60 = vadd.f32 %v14179_v54, %v6238_v33  ;;  %5724 = vst.msk [vmem:[#allocation2 + $0x190] sm:$0xff] %vm264_vm3, %v5211_v10  ;;  %v1212_v5 = vld [vmem:[#allocation2 + $0xd98] sm:$0xff]  ;;  %v829_v62 = vld [vmem:[#allocation2 + $0x1a0] sm:$0xff] }
 0x398   : > { %9314 = vst.msk [vmem:[%s11763_s4 + $0xc0] sm:$0xf] %vm9265_vm5, %v8801_v46  ;;  %v8545_v34 = vsel %vm7521_vm1, %v7009_v18, %v8033_v40  ;;  %v14370_v10 = vpop.f32.mrf.mxu1  ;;  %10967 = vmatmul.msk.bf16.gmra.mxu0 %vm3096_vm2, %v11225_v0  ;;  %11031 = vmatmul.msk.bf16.gmra.mxu1 %vm3096_vm2, %v11289_v21  ;;  %v5596_v42 = vadd.f32 %v14297_v4, %v1212_v5  ;;  %v957_v46 = vld [vmem:[#allocation2 + $0x5a0] sm:$0xff] }
 0x399   : > { %9442 = vst.msk [vmem:[%s11763_s4 + $0x2c0] sm:$0xf] %vm9265_vm5, %v8929_v38  ;;  %v9057_v8 = vpack.c.bf16 %v8545_v34, %v8545_v34  ;;  %v8673_v15 = vsel %vm7649_vm4, %v7137_v49, %v8161_v13  ;;  %vm7266_vm6 = vcmp.gt.f32.partialorder %v6754_v60, 0.0  ;;  %v7778_v48 = vmul.f32 0.01, %v6754_v60  ;;  %v6366_v25 = vld [vmem:[#allocation2 + $0x588] sm:$0xff] }
 0x39a   : > { %v9185_v16 = vpack.c.bf16 %v8673_v15, %v8673_v15  ;;  %v6882_v36 = vadd.f32 %v14179_v54, %v6366_v25  ;;  %v6494_v41 = vld [vmem:[#allocation2 + $0x988] sm:$0xff]  ;;  %5852 = vst.msk [vmem:[#allocation2 + $0x590] sm:$0xff] %vm264_vm3, %v5339_v23  ;;  %v5468_v49 = vadd.f32 %v14295_v55, %v1084_v39  ;;  %v1085_v11 = vld [vmem:[#allocation2 + $0x9a0] sm:$0xff]  ;;  %11095 = vmatmul.msk.bf16.gmra.mxu2 %vm3096_vm2, %v11353_v29 }
 0x39b   : > { %9570 = vst.msk [vmem:[%s11763_s4 + $0x4c0] sm:$0xf] %vm9265_vm5, %v9057_v8  ;;  %v8290_v19 = vsel %vm7266_vm6, %v6754_v60, %v7778_v48  ;;  %v7010_v26 = vadd.f32 %v14179_v54, %v6494_v41  ;;  %v6622_v35 = vld [vmem:[#allocation2 + $0xd88] sm:$0xff]  ;;  %11159 = vmatmul.msk.bf16.gmra.mxu3 %vm3096_vm2, %v11417_v22  ;;  %v5213_v38 = vadd.f32 %v14304_v31, %v829_v62 }
 0x39c   : > { %9698 = vst.msk [vmem:[%s11763_s4 + $0x6c0] sm:$0xf] %vm9265_vm5, %v9185_v16  ;;  %v8802_v57 = vpack.c.bf16 %v8290_v19, %v8290_v19  ;;  %vm7394_vm7 = vcmp.gt.f32.partialorder %v6882_v36, 0.0  ;;  %v7906_v1 = vmul.f32 0.01, %v6882_v36  ;;  %v7138_v28 = vadd.f32 %v14179_v54, %v6622_v35 }
 0x39d   : > { %vm7522_vm8 = vcmp.gt.f32.partialorder %v7010_v26, 0.0  ;;  %v8034_v58 = vmul.f32 0.01, %v7010_v26  ;;  %5980 = vst.msk [vmem:[#allocation2 + $0x990] sm:$0xff] %vm264_vm3, %v5467_v27  ;;  %v5341_v34 = vadd.f32 %v14306_v7, %v957_v46  ;;  %v5469_v27 = vadd.f32 %v14332_v51, %v1085_v11  ;;  %v14397_v12 = vpop.f32.mrf.mxu2 }
 0x39e   : > { %9315 = vst.msk [vmem:[%s11763_s4 + $0xc4] sm:$0xf] %vm9265_vm5, %v8802_v57  ;;  %v8418_v63 = vsel %vm7394_vm7, %v6882_v36, %v7906_v1  ;;  %vm7650_vm9 = vcmp.gt.f32.partialorder %v7138_v28, 0.0  ;;  %v8162_v6 = vmul.f32 0.01, %v7138_v28  ;;  %v6239_v32 = vld [vmem:[#allocation2 + $0x190] sm:$0xff]  ;;  %v14399_v8 = vpop.f32.mrf.mxu3  ;;  %v14403_v16 = vpop.f32.mrf.mxu0  ;;  %v5597_v19 = vadd.f32 %v14334_v30, %v1213_v52 }
 0x39f   : > { %v8930_v14 = vpack.c.bf16 %v8418_v63, %v8418_v63  ;;  %v8546_v45 = vsel %vm7522_vm8, %v7010_v26, %v8034_v58  ;;  %v6755_v24 = vadd.f32 %v14179_v54, %v6239_v32  ;;  %6108 = vst.msk [vmem:[#allocation2 + $0xd90] sm:$0xff] %vm264_vm3, %v5595_v20  ;;  %v830_v26 = vld [vmem:[#allocation2 + $0x1a8] sm:$0xff] }
 0x3a0   : > { %v9058_v43 = vpack.c.bf16 %v8546_v45, %v8546_v45  ;;  %v8674_v56 = vsel %vm7650_vm9, %v7138_v28, %v8162_v6  ;;  %5725 = vst.msk [vmem:[#allocation2 + $0x198] sm:$0xff] %vm264_vm3, %v5212_v44  ;;  %v14405_v36 = vpop.f32.mrf.mxu1  ;;  %v958_v44 = vld [vmem:[#allocation2 + $0x5a8] sm:$0xff]  ;;  %v5214_v0 = vadd.f32 %v14338_v61, %v830_v26  ;;  %v11290_v45 = vld [vmem:[%s11574_s26 + $0x320] sm:$0xff] }
 0x3a1   : > { %9443 = vst.msk [vmem:[%s11763_s4 + $0x2c4] sm:$0xf] %vm9265_vm5, %v8930_v14  ;;  %v9186_v18 = vpack.c.bf16 %v8674_v56, %v8674_v56  ;;  %vm7267_vm10 = vcmp.gt.f32.partialorder %v6755_v24, 0.0  ;;  %v7779_v9 = vmul.f32 0.01, %v6755_v24  ;;  %v6367_v47 = vld [vmem:[#allocation2 + $0x590] sm:$0xff]  ;;  %v5342_v6 = vadd.f32 %v14340_v3, %v958_v44 }
 0x3a2   : > { %9571 = vst.msk [vmem:[%s11763_s4 + $0x4c4] sm:$0xf] %vm9265_vm5, %v9058_v43  ;;  %v6883_v23 = vadd.f32 %v14179_v54, %v6367_v47  ;;  %v1086_v1 = vld [vmem:[#allocation2 + $0x9a8] sm:$0xff]  ;;  %v11226_v14 = vld [vmem:[%s11574_s26 + $0x120] sm:$0xff]  ;;  %v831_v47 = vld [vmem:[#allocation2 + $0x1b0] sm:$0xff] }
 0x3a3   : > { %9699 = vst.msk [vmem:[%s11763_s4 + $0x6c4] sm:$0xf] %vm9265_vm5, %v9186_v18  ;;  %v8291_v37 = vsel %vm7267_vm10, %v6755_v24, %v7779_v9  ;;  %v1214_v32 = vld [vmem:[#allocation2 + $0xda8] sm:$0xff]  ;;  %v5470_v22 = vadd.f32 %v14362_v2, %v1086_v1 }
 0x3a4   : > { %v8803_v55 = vpack.c.bf16 %v8291_v37, %v8291_v37  ;;  %vm7395_vm11 = vcmp.gt.f32.partialorder %v6883_v23, 0.0  ;;  %v7907_v40 = vmul.f32 0.01, %v6883_v23  ;;  %v6495_v33 = vld [vmem:[#allocation2 + $0x990] sm:$0xff]  ;;  %5853 = vst.msk [vmem:[#allocation2 + $0x598] sm:$0xff] %vm264_vm3, %v5340_v53  ;;  %v5598_v2 = vadd.f32 %v14364_v59, %v1214_v32 }
 0x3a5   : > { %v7011_v13 = vadd.f32 %v14179_v54, %v6495_v33  ;;  %5981 = vst.msk [vmem:[#allocation2 + $0x998] sm:$0xff] %vm264_vm3, %v5468_v49  ;;  %v14426_v61 = vpop.f32.mrf.mxu2  ;;  %v11354_v49 = vld [vmem:[%s11574_s26 + $0x520] sm:$0xff] }
 0x3a6   : > { %9316 = vst.msk [vmem:[%s11763_s4 + $0xc8] sm:$0xf] %vm9265_vm5, %v8803_v55  ;;  %v8419_v4 = vsel %vm7395_vm11, %v6883_v23, %v7907_v40  ;;  %v6623_v60 = vld [vmem:[#allocation2 + $0xd90] sm:$0xff]  ;;  %v14428_v43 = vpop.f32.mrf.mxu3  ;;  %v14433_v5 = vpop.f32.mrf.mxu0  ;;  %v11418_v23 = vld [vmem:[%s11574_s26 + $0x720] sm:$0xff] }
 0x3a7   : > { %v8931_v15 = vpack.c.bf16 %v8419_v4, %v8419_v4  ;;  %vm7523_vm12 = vcmp.gt.f32.partialorder %v7011_v13, 0.0  ;;  %v8035_v31 = vmul.f32 0.01, %v7011_v13  ;;  %v7139_v48 = vadd.f32 %v14179_v54, %v6623_v60  ;;  %v6240_v25 = vld [vmem:[#allocation2 + $0x198] sm:$0xff]  ;;  %6109 = vst.msk [vmem:[#allocation2 + $0xd98] sm:$0xff] %vm264_vm3, %v5596_v42  ;;  %v959_v60 = vld [vmem:[#allocation2 + $0x5b0] sm:$0xff] }
 0x3a8   : > { %v6756_v7 = vadd.f32 %v14179_v54, %v6240_v25  ;;  %5726 = vst.msk [vmem:[#allocation2 + $0x1a0] sm:$0xff] %vm264_vm3, %v5213_v38  ;;  %v14435_v62 = vpop.f32.mrf.mxu1  ;;  %10968 = vmatmul.msk.bf16.gmra.mxu0 %vm3096_vm2, %v11226_v14  ;;  %11032 = vmatmul.msk.bf16.gmra.mxu1 %vm3096_vm2, %v11290_v45  ;;  %v5215_v4 = vadd.f32 %v14368_v17, %v831_v47 }
 0x3a9   : > { %9444 = vst.msk [vmem:[%s11763_s4 + $0x2c8] sm:$0xf] %vm9265_vm5, %v8931_v15  ;;  %v8547_v51 = vsel %vm7523_vm12, %v7011_v13, %v8035_v31  ;;  %vm7651_vm13 = vcmp.gt.f32.partialorder %v7139_v48, 0.0  ;;  %v8163_v41 = vmul.f32 0.01, %v7139_v48 }
 0x3aa   : > { %v9059_v35 = vpack.c.bf16 %v8547_v51, %v8547_v51  ;;  %vm7268_vm14 = vcmp.gt.f32.partialorder %v6756_v7, 0.0  ;;  %v7780_v20 = vmul.f32 0.01, %v6756_v7  ;;  %5854 = vst.msk [vmem:[#allocation2 + $0x5a0] sm:$0xff] %vm264_vm3, %v5341_v34  ;;  %11096 = vmatmul.msk.bf16.gmra.mxu2 %vm3096_vm2, %v11354_v49  ;;  %v1087_v51 = vld [vmem:[#allocation2 + $0x9b0] sm:$0xff]  ;;  %v1216_v49 = vld [vmem:[#allocation2 + $0xdb8] sm:$0xff] }
 0x3ab   : > { %v8675_v50 = vsel %vm7651_vm13, %v7139_v48, %v8163_v41  ;;  %v6368_v57 = vld [vmem:[#allocation2 + $0x598] sm:$0xff]  ;;  %5982 = vst.msk [vmem:[#allocation2 + $0x9a0] sm:$0xff] %vm264_vm3, %v5469_v27  ;;  %11160 = vmatmul.msk.bf16.gmra.mxu3 %vm3096_vm2, %v11418_v23  ;;  %v1215_v41 = vld [vmem:[#allocation2 + $0xdb0] sm:$0xff] }
 0x3ac   : > { %9572 = vst.msk [vmem:[%s11763_s4 + $0x4c8] sm:$0xf] %vm9265_vm5, %v9059_v35  ;;  %v9187_v28 = vpack.c.bf16 %v8675_v50, %v8675_v50  ;;  %v8292_v39 = vsel %vm7268_vm14, %v6756_v7, %v7780_v20  ;;  %v6884_v30 = vadd.f32 %v14179_v54, %v6368_v57  ;;  %v6496_v58 = vld [vmem:[#allocation2 + $0x998] sm:$0xff]  ;;  %v5343_v7 = vadd.f32 %v14370_v10, %v959_v60 }
 0x3ad   : > { %v8804_v21 = vpack.c.bf16 %v8292_v39, %v8292_v39  ;;  %v7012_v63 = vadd.f32 %v14179_v54, %v6496_v58  ;;  %6110 = vst.msk [vmem:[#allocation2 + $0xda0] sm:$0xff] %vm264_vm3, %v5597_v19  ;;  %v14460_v19 = vpop.f32.mrf.mxu2 }
 0x3ae   : > { %9700 = vst.msk [vmem:[%s11763_s4 + $0x6c8] sm:$0xf] %vm9265_vm5, %v9187_v28  ;;  %vm7396_vm15 = vcmp.gt.f32.partialorder %v6884_v30, 0.0  ;;  %v7908_v24 = vmul.f32 0.01, %v6884_v30  ;;  %v6624_v29 = vld [vmem:[#allocation2 + $0xd98] sm:$0xff]  ;;  %v14462_v26 = vpop.f32.mrf.mxu3  ;;  %v14466_v57 = vpop.f32.mrf.mxu0 }
 0x3af   : > { %9317 = vst.msk [vmem:[%s11763_s4 + $0xcc] sm:$0xf] %vm9265_vm5, %v8804_v21  ;;  %vm7524_vm0 = vcmp.gt.f32.partialorder %v7012_v63, 0.0  ;;  %v8036_v3 = vmul.f32 0.01, %v7012_v63  ;;  %v7140_v56 = vadd.f32 %v14179_v54, %v6624_v29  ;;  %v6241_v53 = vld [vmem:[#allocation2 + $0x1a0] sm:$0xff]  ;;  %v5471_v21 = vadd.f32 %v14397_v12, %v1087_v51 }
 0x3b0   : > { %v8420_v18 = vsel %vm7396_vm15, %v6884_v30, %v7908_v24  ;;  %v6757_v9 = vadd.f32 %v14179_v54, %v6241_v53  ;;  %5727 = vst.msk [vmem:[#allocation2 + $0x1a8] sm:$0xff] %vm264_vm3, %v5214_v0  ;;  %v14468_v1 = vpop.f32.mrf.mxu1  ;;  %v832_v24 = vld [vmem:[#allocation2 + $0x1b8] sm:$0xff] }
 0x3b1   : > { %v8932_v37 = vpack.c.bf16 %v8420_v18, %v8420_v18  ;;  %v8548_v42 = vsel %vm7524_vm0, %v7012_v63, %v8036_v3  ;;  %vm7652_vm1 = vcmp.gt.f32.partialorder %v7140_v56, 0.0  ;;  %v8164_v46 = vmul.f32 0.01, %v7140_v56  ;;  %v6369_v11 = vld [vmem:[#allocation2 + $0x5a0] sm:$0xff]  ;;  %5855 = vst.msk [vmem:[#allocation2 + $0x5a8] sm:$0xff] %vm264_vm3, %v5342_v6  ;;  %v960_v29 = vld [vmem:[#allocation2 + $0x5b8] sm:$0xff] }
 0x3b2   : > { %v9060_v55 = vpack.c.bf16 %v8548_v42, %v8548_v42  ;;  %vm7269_vm4 = vcmp.gt.f32.partialorder %v6757_v9, 0.0  ;;  %v7781_v40 = vmul.f32 0.01, %v6757_v9  ;;  %v6885_v33 = vadd.f32 %v14179_v54, %v6369_v11  ;;  %v6497_v38 = vld [vmem:[#allocation2 + $0x9a0] sm:$0xff]  ;;  %5983 = vst.msk [vmem:[#allocation2 + $0x9a8] sm:$0xff] %vm264_vm3, %v5470_v22  ;;  %v1088_v18 = vld [vmem:[#allocation2 + $0x9b8] sm:$0xff] }
 0x3b3   : > { %9445 = vst.msk [vmem:[%s11763_s4 + $0x2cc] sm:$0xf] %vm9265_vm5, %v8932_v37  ;;  %v8676_v59 = vsel %vm7652_vm1, %v7140_v56, %v8164_v46  ;;  %v7013_v13 = vadd.f32 %v14179_v54, %v6497_v38  ;;  %v5599_v63 = vadd.f32 %v14399_v8, %v1215_v41  ;;  %v5216_v47 = vadd.f32 %v14403_v16, %v832_v24  ;;  %v11227_v42 = vld [vmem:[%s11574_s26 + $0x128] sm:$0xff]  ;;  %v1089_v41 = vld [vmem:[#allocation2 + $0x9c0] sm:$0xff] }
 0x3b4   : > { %9573 = vst.msk [vmem:[%s11763_s4 + $0x4cc] sm:$0xf] %vm9265_vm5, %v9060_v55  ;;  %v9188_v34 = vpack.c.bf16 %v8676_v59, %v8676_v59  ;;  %v8293_v27 = vsel %vm7269_vm4, %v6757_v9, %v7781_v40  ;;  %vm7397_vm6 = vcmp.gt.f32.partialorder %v6885_v33, 0.0  ;;  %v7909_v52 = vmul.f32 0.01, %v6885_v33  ;;  %v6625_v15 = vld [vmem:[#allocation2 + $0xda0] sm:$0xff] }
 0x3b5   : > { %v8805_v31 = vpack.c.bf16 %v8293_v27, %v8293_v27  ;;  %vm7525_vm7 = vcmp.gt.f32.partialorder %v7013_v13, 0.0  ;;  %v8037_v48 = vmul.f32 0.01, %v7013_v13  ;;  %v7141_v25 = vadd.f32 %v14179_v54, %v6625_v15  ;;  %6111 = vst.msk [vmem:[#allocation2 + $0xda8] sm:$0xff] %vm264_vm3, %v5598_v2  ;;  %v14487_v23 = vpop.f32.mrf.mxu2  ;;  %v11291_v46 = vld [vmem:[%s11574_s26 + $0x328] sm:$0xff]  ;;  %v833_v27 = vld [vmem:[#allocation2 + $0x1c0] sm:$0xff] }
 0x3b6   : > { %9701 = vst.msk [vmem:[%s11763_s4 + $0x6cc] sm:$0xf] %vm9265_vm5, %v9188_v34  ;;  %v8421_v17 = vsel %vm7397_vm6, %v6885_v33, %v7909_v52  ;;  %v14489_v37 = vpop.f32.mrf.mxu3  ;;  %v5344_v33 = vadd.f32 %v14405_v36, %v960_v29  ;;  %v14496_v38 = vpop.f32.mrf.mxu0  ;;  %v5472_v34 = vadd.f32 %v14426_v61, %v1088_v18  ;;  %v961_v52 = vld [vmem:[#allocation2 + $0x5c0] sm:$0xff] }
 0x3b7   : > { %9318 = vst.msk [vmem:[%s11763_s4 + $0xd0] sm:$0xf] %vm9265_vm5, %v8805_v31  ;;  %v8933_v35 = vpack.c.bf16 %v8421_v17, %v8421_v17  ;;  %v8549_v20 = vsel %vm7525_vm7, %v7013_v13, %v8037_v48  ;;  %vm7653_vm8 = vcmp.gt.f32.partialorder %v7141_v25, 0.0  ;;  %v8165_v44 = vmul.f32 0.01, %v7141_v25  ;;  %v6242_v50 = vld [vmem:[#allocation2 + $0x1a8] sm:$0xff] }
 0x3b8   : > { %v9061_v10 = vpack.c.bf16 %v8549_v20, %v8549_v20  ;;  %v6758_v28 = vadd.f32 %v14179_v54, %v6242_v50  ;;  %v6370_v39 = vld [vmem:[#allocation2 + $0x5a8] sm:$0xff]  ;;  %5728 = vst.msk [vmem:[#allocation2 + $0x1b0] sm:$0xff] %vm264_vm3, %v5215_v4  ;;  %v14498_v16 = vpop.f32.mrf.mxu1  ;;  %v5600_v48 = vadd.f32 %v14428_v43, %v1216_v49  ;;  %10969 = vmatmul.msk.bf16.gmra.mxu0 %vm3096_vm2, %v11227_v42 }
 0x3b9   : > { %9446 = vst.msk [vmem:[%s11763_s4 + $0x2d0] sm:$0xf] %vm9265_vm5, %v8933_v35  ;;  %v8677_v30 = vsel %vm7653_vm8, %v7141_v25, %v8165_v44  ;;  %v6886_v58 = vadd.f32 %v14179_v54, %v6370_v39  ;;  %v6498_v0 = vld [vmem:[#allocation2 + $0x9a8] sm:$0xff]  ;;  %11033 = vmatmul.msk.bf16.gmra.mxu1 %vm3096_vm2, %v11291_v46  ;;  %v5345_v51 = vadd.f32 %v14435_v62, %v961_v52 }
 0x3ba   : > { %9574 = vst.msk [vmem:[%s11763_s4 + $0x4d0] sm:$0xf] %vm9265_vm5, %v9061_v10  ;;  %v9189_v6 = vpack.c.bf16 %v8677_v30, %v8677_v30  ;;  %vm7270_vm9 = vcmp.gt.f32.partialorder %v6758_v28, 0.0  ;;  %v7782_v32 = vmul.f32 0.01, %v6758_v28  ;;  %v7014_v14 = vadd.f32 %v14179_v54, %v6498_v0  ;;  %v11355_v13 = vld [vmem:[%s11574_s26 + $0x528] sm:$0xff] }
 0x3bb   : > { %vm7398_vm10 = vcmp.gt.f32.partialorder %v6886_v58, 0.0  ;;  %v7910_v45 = vmul.f32 0.01, %v6886_v58  ;;  %5856 = vst.msk [vmem:[#allocation2 + $0x5b0] sm:$0xff] %vm264_vm3, %v5343_v7  ;;  %v11419_v4 = vld [vmem:[%s11574_s26 + $0x728] sm:$0xff]  ;;  %v5217_v7 = vadd.f32 %v14433_v5, %v833_v27  ;;  %11097 = vmatmul.msk.bf16.gmra.mxu2 %vm3096_vm2, %v11355_v13  ;;  %v5473_v39 = vadd.f32 %v14460_v19, %v1089_v41  ;;  %v1217_v30 = vld [vmem:[#allocation2 + $0xdc0] sm:$0xff] }
 0x3bc   : > { %9702 = vst.msk [vmem:[%s11763_s4 + $0x6d0] sm:$0xf] %vm9265_vm5, %v9189_v6  ;;  %v8294_v22 = vsel %vm7270_vm9, %v6758_v28, %v7782_v32  ;;  %vm7526_vm11 = vcmp.gt.f32.partialorder %v7014_v14, 0.0  ;;  %v8038_v12 = vmul.f32 0.01, %v7014_v14  ;;  %v6626_v8 = vld [vmem:[#allocation2 + $0xda8] sm:$0xff]  ;;  %11161 = vmatmul.msk.bf16.gmra.mxu3 %vm3096_vm2, %v11419_v4 }
 0x3bd   : > { %v8806_v3 = vpack.c.bf16 %v8294_v22, %v8294_v22  ;;  %v8422_v56 = vsel %vm7398_vm10, %v6886_v58, %v7910_v45  ;;  %v7142_v53 = vadd.f32 %v14179_v54, %v6626_v8  ;;  %5984 = vst.msk [vmem:[#allocation2 + $0x9b0] sm:$0xff] %vm264_vm3, %v5471_v21  ;;  %v14525_v5 = vld [vmem:[%s16747_s2] ss:$0 sm:$0xff]  ;;  %v14529_v50 = vpop.f32.mrf.mxu2  ;;  %v834_v6 = vld [vmem:[#allocation2 + $0x1c8] sm:$0xff]  ;;  %v11356_v27 = vld [vmem:[%s11574_s26 + $0x530] sm:$0xff] }
 0x3be   : > { %v8934_v9 = vpack.c.bf16 %v8422_v56, %v8422_v56  ;;  %v8550_v2 = vsel %vm7526_vm11, %v7014_v14, %v8038_v12  ;;  %6112 = vst.msk [vmem:[#allocation2 + $0xdb0] sm:$0xff] %vm264_vm3, %v5599_v63  ;;  %v14531_v10 = vpop.f32.mrf.mxu3  ;;  %v14536_v58 = vpop.f32.mrf.mxu0  ;;  %v962_v45 = vld [vmem:[#allocation2 + $0x5c8] sm:$0xff]  ;;  %v5601_v12 = vadd.f32 %v14462_v26, %v1217_v30  ;;  %v5218_v56 = vadd.f32 %v14466_v57, %v834_v6 }
 0x3bf   : > { %9319 = vst.msk [vmem:[%s11763_s4 + $0xd4] sm:$0xf] %vm9265_vm5, %v8806_v3  ;;  %v9062_v11 = vpack.c.bf16 %v8550_v2, %v8550_v2  ;;  %vm7654_vm12 = vcmp.gt.f32.partialorder %v7142_v53, 0.0  ;;  %v8166_v55 = vmul.f32 0.01, %v7142_v53  ;;  %v6243_v40 = vld [vmem:[#allocation2 + $0x1b0] sm:$0xff]  ;;  %v5346_v2 = vadd.f32 %v14468_v1, %v962_v45 }
 0x3c0   : > { %9447 = vst.msk [vmem:[%s11763_s4 + $0x2d4] sm:$0xf] %vm9265_vm5, %v8934_v9  ;;  %v6759_v59 = vadd.f32 %v14179_v54, %v6243_v40  ;;  %v14538_v0 = vpop.f32.mrf.mxu1  ;;  %v11228_v1 = vld [vmem:[%s11574_s26 + $0x130] sm:$0xff] }
 0x3c1   : > { %9575 = vst.msk [vmem:[%s11763_s4 + $0x4d4] sm:$0xf] %vm9265_vm5, %v9062_v11  ;;  %v8678_v60 = vsel %vm7654_vm12, %v7142_v53, %v8166_v55  ;;  %v1090_v53 = vld [vmem:[#allocation2 + $0x9c8] sm:$0xff] }
 0x3c2   : > { %v9190_v15 = vpack.c.bf16 %v8678_v60, %v8678_v60  ;;  %vm7271_vm13 = vcmp.gt.f32.partialorder %v6759_v59, 0.0  ;;  %v7783_v36 = vmul.f32 0.01, %v6759_v59  ;;  %v6371_v31 = vld [vmem:[#allocation2 + $0x5b0] sm:$0xff]  ;;  %5729 = vst.msk [vmem:[#allocation2 + $0x1b8] sm:$0xff] %vm264_vm3, %v5216_v47  ;;  %v5474_v46 = vadd.f32 %v14487_v23, %v1090_v53  ;;  %v1218_v11 = vld [vmem:[#allocation2 + $0xdc8] sm:$0xff] }
 0x3c3   : > { %v6887_v25 = vadd.f32 %v14179_v54, %v6371_v31  ;;  %5857 = vst.msk [vmem:[#allocation2 + $0x5b8] sm:$0xff] %vm264_vm3, %v5344_v33  ;;  %v11292_v33 = vld [vmem:[%s11574_s26 + $0x330] sm:$0xff] }
 0x3c4   : > { %9703 = vst.msk [vmem:[%s11763_s4 + $0x6d4] sm:$0xf] %vm9265_vm5, %v9190_v15  ;;  %v8295_v61 = vsel %vm7271_vm13, %v6759_v59, %v7783_v36  ;;  %v6499_v17 = vld [vmem:[#allocation2 + $0x9b0] sm:$0xff] }
 0x3c5   : > { %v8807_v43 = vpack.c.bf16 %v8295_v61, %v8295_v61  ;;  %vm7399_vm14 = vcmp.gt.f32.partialorder %v6887_v25, 0.0  ;;  %v7911_v35 = vmul.f32 0.01, %v6887_v25  ;;  %v7015_v20 = vadd.f32 %v14179_v54, %v6499_v17  ;;  %v6627_v44 = vld [vmem:[#allocation2 + $0xdb0] sm:$0xff]  ;;  %5985 = vst.msk [vmem:[#allocation2 + $0x9b8] sm:$0xff] %vm264_vm3, %v5472_v34  ;;  %v14558_v55 = vpop.f32.mrf.mxu2 }
 0x3c6   : > { %v7143_v62 = vadd.f32 %v14525_v5, %v6627_v44  ;;  %6113 = vst.msk [vmem:[#allocation2 + $0xdb8] sm:$0xff] %vm264_vm3, %v5600_v48  ;;  %v14560_v40 = vpop.f32.mrf.mxu3  ;;  %v14565_v34 = vpop.f32.mrf.mxu0  ;;  %v11420_v48 = vld [vmem:[%s11574_s26 + $0x730] sm:$0xff]  ;;  %v5602_v17 = vadd.f32 %v14489_v37, %v1218_v11 }
 0x3c7   : > { %9320 = vst.msk [vmem:[%s11763_s4 + $0xd8] sm:$0xf] %vm9265_vm5, %v8807_v43  ;;  %v8423_v28 = vsel %vm7399_vm14, %v6887_v25, %v7911_v35  ;;  %vm7527_vm15 = vcmp.gt.f32.partialorder %v7015_v20, 0.0  ;;  %v8039_v54 = vmul.f32 0.01, %v7015_v20 }
 0x3c8   : > { %v8935_v21 = vpack.c.bf16 %v8423_v28, %v8423_v28  ;;  %vm7655_vm0 = vcmp.gt.f32.partialorder %v7143_v62, 0.0  ;;  %v8167_v63 = vmul.f32 0.01, %v7143_v62  ;;  %5730 = vst.msk [vmem:[#allocation2 + $0x1c0] sm:$0xff] %vm264_vm3, %v5217_v7  ;;  %v14567_v23 = vpop.f32.mrf.mxu1  ;;  %v835_v7 = vld [vmem:[#allocation2 + $0x1d0] sm:$0xff]  ;;  %10970 = vmatmul.msk.bf16.gmra.mxu0 %vm3096_vm2, %v11228_v1 }
 0x3c9   : > { %v8551_v32 = vsel %vm7527_vm15, %v7015_v20, %v8039_v54  ;;  %v6244_v14 = vld [vmem:[#allocation2 + $0x1b8] sm:$0xff]  ;;  %5858 = vst.msk [vmem:[#allocation2 + $0x5c0] sm:$0xff] %vm264_vm3, %v5345_v51  ;;  %11034 = vmatmul.msk.bf16.gmra.mxu1 %vm3096_vm2, %v11292_v33  ;;  %v5219_v28 = vadd.f32 %v14496_v38, %v835_v7  ;;  %v963_v54 = vld [vmem:[#allocation2 + $0x5d0] sm:$0xff]  ;;  %v837_v7 = vld [vmem:[#allocation2 + $0x1e0] sm:$0xff] }
 0x3ca   : > { %9448 = vst.msk [vmem:[%s11763_s4 + $0x2d8] sm:$0xf] %vm9265_vm5, %v8935_v21  ;;  %v9063_v19 = vpack.c.bf16 %v8551_v32, %v8551_v32  ;;  %v8679_v24 = vsel %vm7655_vm0, %v7143_v62, %v8167_v63  ;;  %v6760_v29 = vadd.f32 %v14525_v5, %v6244_v14  ;;  %v6372_v22 = vld [vmem:[#allocation2 + $0x5b8] sm:$0xff] }
 0x3cb   : > { %v9191_v8 = vpack.c.bf16 %v8679_v24, %v8679_v24  ;;  %v6888_v3 = vadd.f32 %v14525_v5, %v6372_v22  ;;  %5986 = vst.msk [vmem:[#allocation2 + $0x9c0] sm:$0xff] %vm264_vm3, %v5473_v39  ;;  %v1091_v39 = vld [vmem:[#allocation2 + $0x9d0] sm:$0xff]  ;;  %11098 = vmatmul.msk.bf16.gmra.mxu2 %vm3096_vm2, %v11356_v27 }
 0x3cc   : > { %9576 = vst.msk [vmem:[%s11763_s4 + $0x4d8] sm:$0xf] %vm9265_vm5, %v9063_v19  ;;  %vm7272_vm1 = vcmp.gt.f32.partialorder %v6760_v29, 0.0  ;;  %v7784_v18 = vmul.f32 0.01, %v6760_v29  ;;  %v6500_v9 = vld [vmem:[#allocation2 + $0x9b8] sm:$0xff]  ;;  %11162 = vmatmul.msk.bf16.gmra.mxu3 %vm3096_vm2, %v11420_v48 }
 0x3cd   : > { %9704 = vst.msk [vmem:[%s11763_s4 + $0x6d8] sm:$0xf] %vm9265_vm5, %v9191_v8  ;;  %vm7400_vm4 = vcmp.gt.f32.partialorder %v6888_v3, 0.0  ;;  %v7912_v26 = vmul.f32 0.01, %v6888_v3  ;;  %v7016_v47 = vadd.f32 %v14525_v5, %v6500_v9  ;;  %v6628_v49 = vld [vmem:[#allocation2 + $0xdb8] sm:$0xff]  ;;  %v14592_v38 = vpop.f32.mrf.mxu2  ;;  %v5475_v8 = vadd.f32 %v14529_v50, %v1091_v39 }
 0x3ce   : > { %v8296_v42 = vsel %vm7272_vm1, %v6760_v29, %v7784_v18  ;;  %v7144_v57 = vadd.f32 %v14525_v5, %v6628_v49  ;;  %6114 = vst.msk [vmem:[#allocation2 + $0xdc0] sm:$0xff] %vm264_vm3, %v5601_v12  ;;  %v14594_v19 = vpop.f32.mrf.mxu3  ;;  %v5347_v12 = vadd.f32 %v14498_v16, %v963_v54  ;;  %v11293_v48 = vld [vmem:[%s11574_s26 + $0x338] sm:$0xff]  ;;  %v5221_v39 = vadd.f32 %v14565_v34, %v837_v7 }
 0x3cf   : > { %v8808_v59 = vpack.c.bf16 %v8296_v42, %v8296_v42  ;;  %v8424_v13 = vsel %vm7400_vm4, %v6888_v3, %v7912_v26  ;;  %vm7528_vm6 = vcmp.gt.f32.partialorder %v7016_v47, 0.0  ;;  %v8040_v4 = vmul.f32 0.01, %v7016_v47  ;;  %v6245_v60 = vld [vmem:[#allocation2 + $0x1c0] sm:$0xff]  ;;  %5731 = vst.msk [vmem:[#allocation2 + $0x1c8] sm:$0xff] %vm264_vm3, %v5218_v56  ;;  %v14601_v3 = vpop.f32.mrf.mxu0  ;;  %v1219_v26 = vld [vmem:[#allocation2 + $0xdd0] sm:$0xff] }
 0x3d0   : > { %v8936_v52 = vpack.c.bf16 %v8424_v13, %v8424_v13  ;;  %vm7656_vm7 = vcmp.gt.f32.partialorder %v7144_v57, 0.0  ;;  %v8168_v15 = vmul.f32 0.01, %v7144_v57  ;;  %v6761_v36 = vadd.f32 %v14525_v5, %v6245_v60  ;;  %v6373_v31 = vld [vmem:[#allocation2 + $0x5c0] sm:$0xff]  ;;  %5859 = vst.msk [vmem:[#allocation2 + $0x5c8] sm:$0xff] %vm264_vm3, %v5346_v2  ;;  %v14603_v56 = vpop.f32.mrf.mxu1  ;;  %v1092_v13 = vld [vmem:[#allocation2 + $0x9d8] sm:$0xff] }
 0x3d1   : > { %9321 = vst.msk [vmem:[%s11763_s4 + $0xdc] sm:$0xf] %vm9265_vm5, %v8808_v59  ;;  %v8552_v25 = vsel %vm7528_vm6, %v7016_v47, %v8040_v4  ;;  %v6889_v61 = vadd.f32 %v14525_v5, %v6373_v31  ;;  %v836_v47 = vld [vmem:[#allocation2 + $0x1d8] sm:$0xff]  ;;  %v5603_v33 = vadd.f32 %v14531_v10, %v1219_v26 }
 0x3d2   : > { %9449 = vst.msk [vmem:[%s11763_s4 + $0x2dc] sm:$0xf] %vm9265_vm5, %v8936_v52  ;;  %v9064_v51 = vpack.c.bf16 %v8552_v25, %v8552_v25  ;;  %v8680_v41 = vsel %vm7656_vm7, %v7144_v57, %v8168_v15  ;;  %vm7273_vm8 = vcmp.gt.f32.partialorder %v6761_v36, 0.0  ;;  %v7785_v43 = vmul.f32 0.01, %v6761_v36  ;;  %v6501_v35 = vld [vmem:[#allocation2 + $0x9c0] sm:$0xff] }
 0x3d3   : > { %v9192_v20 = vpack.c.bf16 %v8680_v41, %v8680_v41  ;;  %vm7401_vm9 = vcmp.gt.f32.partialorder %v6889_v61, 0.0  ;;  %v7913_v44 = vmul.f32 0.01, %v6889_v61  ;;  %v7017_v62 = vadd.f32 %v14525_v5, %v6501_v35  ;;  %5987 = vst.msk [vmem:[#allocation2 + $0x9c8] sm:$0xff] %vm264_vm3, %v5474_v46  ;;  %v964_v59 = vld [vmem:[#allocation2 + $0x5d8] sm:$0xff] }
 0x3d4   : > { %9577 = vst.msk [vmem:[%s11763_s4 + $0x4dc] sm:$0xf] %vm9265_vm5, %v9064_v51  ;;  %v8297_v37 = vsel %vm7273_vm8, %v6761_v36, %v7785_v43  ;;  %v5220_v52 = vadd.f32 %v14536_v58, %v836_v47  ;;  %v11229_v10 = vld [vmem:[%s11574_s26 + $0x138] sm:$0xff] }
 0x3d5   : > { %9705 = vst.msk [vmem:[%s11763_s4 + $0x6dc] sm:$0xf] %vm9265_vm5, %v9192_v20  ;;  %v8809_v30 = vpack.c.bf16 %v8297_v37, %v8297_v37  ;;  %v8425_v21 = vsel %vm7401_vm9, %v6889_v61, %v7913_v44  ;;  %vm7529_vm10 = vcmp.gt.f32.partialorder %v7017_v62, 0.0  ;;  %v8041_v63 = vmul.f32 0.01, %v7017_v62  ;;  %v6629_v6 = vld [vmem:[#allocation2 + $0xdc0] sm:$0xff]  ;;  %v14621_v36 = vpop.f32.mrf.mxu2 }
 0x3d6   : > { %v8937_v32 = vpack.c.bf16 %v8425_v21, %v8425_v21  ;;  %v7145_v14 = vadd.f32 %v14525_v5, %v6629_v6  ;;  %v6246_v45 = vld [vmem:[#allocation2 + $0x1c8] sm:$0xff]  ;;  %6115 = vst.msk [vmem:[#allocation2 + $0xdc8] sm:$0xff] %vm264_vm3, %v5602_v17  ;;  %v14623_v31 = vpop.f32.mrf.mxu3  ;;  %v5348_v61 = vadd.f32 %v14538_v0, %v964_v59  ;;  %v1220_v17 = vld [vmem:[#allocation2 + $0xdd8] sm:$0xff]  ;;  %v5476_v44 = vadd.f32 %v14558_v55, %v1092_v13 }
 0x3d7   : > { %9322 = vst.msk [vmem:[%s11763_s4 + $0xe0] sm:$0xf] %vm9265_vm5, %v8809_v30  ;;  %v8553_v24 = vsel %vm7529_vm10, %v7017_v62, %v8041_v63  ;;  %v6762_v29 = vadd.f32 %v14525_v5, %v6246_v45  ;;  %v6374_v22 = vld [vmem:[#allocation2 + $0x5c8] sm:$0xff]  ;;  %v14630_v58 = vpop.f32.mrf.mxu0  ;;  %v11357_v41 = vld [vmem:[%s11574_s26 + $0x538] sm:$0xff]  ;;  %v5604_v54 = vadd.f32 %v14560_v40, %v1220_v17  ;;  %v965_v30 = vld [vmem:[#allocation2 + $0x5e0] sm:$0xff] }
 0x3d8   : > { %9450 = vst.msk [vmem:[%s11763_s4 + $0x2e0] sm:$0xf] %vm9265_vm5, %v8937_v32  ;;  %v9065_v53 = vpack.c.bf16 %v8553_v24, %v8553_v24  ;;  %vm7657_vm11 = vcmp.gt.f32.partialorder %v7145_v14, 0.0  ;;  %v8169_v18 = vmul.f32 0.01, %v7145_v14  ;;  %v6890_v9 = vadd.f32 %v14525_v5, %v6374_v22  ;;  %v14632_v51 = vpop.f32.mrf.mxu1  ;;  %v11421_v62 = vld [vmem:[%s11574_s26 + $0x738] sm:$0xff]  ;;  %10971 = vmatmul.msk.bf16.gmra.mxu0 %vm3096_vm2, %v11229_v10 }
 0x3d9   : > { %vm7274_vm12 = vcmp.gt.f32.partialorder %v6762_v29, 0.0  ;;  %v7786_v2 = vmul.f32 0.01, %v6762_v29  ;;  %5732 = vst.msk [vmem:[#allocation2 + $0x1d0] sm:$0xff] %vm264_vm3, %v5219_v28  ;;  %11035 = vmatmul.msk.bf16.gmra.mxu1 %vm3096_vm2, %v11293_v48  ;;  %v1093_v45 = vld [vmem:[#allocation2 + $0x9e0] sm:$0xff] }
 0x3da   : > { %9578 = vst.msk [vmem:[%s11763_s4 + $0x4e0] sm:$0xf] %vm9265_vm5, %v9065_v53  ;;  %v8681_v16 = vsel %vm7657_vm11, %v7145_v14, %v8169_v18  ;;  %vm7402_vm13 = vcmp.gt.f32.partialorder %v6890_v9, 0.0  ;;  %v7914_v50 = vmul.f32 0.01, %v6890_v9  ;;  %v6502_v49 = vld [vmem:[#allocation2 + $0x9c8] sm:$0xff]  ;;  %v5349_v14 = vadd.f32 %v14567_v23, %v965_v30 }
 0x3db   : > { %v9193_v42 = vpack.c.bf16 %v8681_v16, %v8681_v16  ;;  %v8298_v57 = vsel %vm7274_vm12, %v6762_v29, %v7786_v2  ;;  %v7018_v46 = vadd.f32 %v14525_v5, %v6502_v49  ;;  %5860 = vst.msk [vmem:[#allocation2 + $0x5d0] sm:$0xff] %vm264_vm3, %v5347_v12  ;;  %11099 = vmatmul.msk.bf16.gmra.mxu2 %vm3096_vm2, %v11357_v41  ;;  %v1221_v22 = vld [vmem:[#allocation2 + $0xde0] sm:$0xff] }
 0x3dc   : > { %v8810_v11 = vpack.c.bf16 %v8298_v57, %v8298_v57  ;;  %v8426_v1 = vsel %vm7402_vm13, %v6890_v9, %v7914_v50  ;;  %5988 = vst.msk [vmem:[#allocation2 + $0x9d0] sm:$0xff] %vm264_vm3, %v5475_v8  ;;  %11163 = vmatmul.msk.bf16.gmra.mxu3 %vm3096_vm2, %v11421_v62  ;;  %v838_v9 = vld [vmem:[#allocation2 + $0x1e8] sm:$0xff]  ;;  %v5477_v49 = vadd.f32 %v14592_v38, %v1093_v45  ;;  %v967_v45 = vld [vmem:[#allocation2 + $0x5f0] sm:$0xff] }
 0x3dd   : > { %9706 = vst.msk [vmem:[%s11763_s4 + $0x6e0] sm:$0xf] %vm9265_vm5, %v9193_v42  ;;  %v8938_v4 = vpack.c.bf16 %v8426_v1, %v8426_v1  ;;  %vm7530_vm14 = vcmp.gt.f32.partialorder %v7018_v46, 0.0  ;;  %v8042_v60 = vmul.f32 0.01, %v7018_v46  ;;  %v6630_v27 = vld [vmem:[#allocation2 + $0xdc8] sm:$0xff]  ;;  %v14656_v12 = vpop.f32.mrf.mxu2  ;;  %v5222_v59 = vadd.f32 %v14601_v3, %v838_v9 }
 0x3de   : > { %9323 = vst.msk [vmem:[%s11763_s4 + $0xe4] sm:$0xf] %vm9265_vm5, %v8810_v11  ;;  %v7146_v15 = vadd.f32 %v14525_v5, %v6630_v27  ;;  %v14658_v8 = vpop.f32.mrf.mxu3  ;;  %v966_v11 = vld [vmem:[#allocation2 + $0x5e8] sm:$0xff] }
 0x3df   : > { %9451 = vst.msk [vmem:[%s11763_s4 + $0x2e4] sm:$0xf] %vm9265_vm5, %v8938_v4  ;;  %v8554_v25 = vsel %vm7530_vm14, %v7018_v46, %v8042_v60  ;;  %v14661_v2 = vpop.f32.mrf.mxu0  ;;  %v5605_v46 = vadd.f32 %v14594_v19, %v1221_v22  ;;  %v5350_v19 = vadd.f32 %v14603_v56, %v966_v11 }
 0x3e0   : > { %v9066_v43 = vpack.c.bf16 %v8554_v25, %v8554_v25  ;;  %vm7658_vm15 = vcmp.gt.f32.partialorder %v7146_v15, 0.0  ;;  %v8170_v35 = vmul.f32 0.01, %v7146_v15  ;;  %v6247_v20 = vld [vmem:[#allocation2 + $0x1d0] sm:$0xff]  ;;  %6116 = vst.msk [vmem:[#allocation2 + $0xdd0] sm:$0xff] %vm264_vm3, %v5603_v33  ;;  %v14663_v23 = vpop.f32.mrf.mxu1  ;;  %v11230_v25 = vld [vmem:[%s11574_s26 + $0x140] sm:$0xff] }
 0x3e1   : > { %v6763_v37 = vadd.f32 %v14525_v5, %v6247_v20  ;;  %5733 = vst.msk [vmem:[#allocation2 + $0x1d8] sm:$0xff] %vm264_vm3, %v5220_v52  ;;  %v1094_v52 = vld [vmem:[#allocation2 + $0x9e8] sm:$0xff] }
 0x3e2   : > { %9579 = vst.msk [vmem:[%s11763_s4 + $0x4e4] sm:$0xf] %vm9265_vm5, %v9066_v43  ;;  %v8682_v0 = vsel %vm7658_vm15, %v7146_v15, %v8170_v35  ;;  %v6375_v28 = vld [vmem:[#allocation2 + $0x5d0] sm:$0xff]  ;;  %v11294_v35 = vld [vmem:[%s11574_s26 + $0x340] sm:$0xff]  ;;  %v5478_v62 = vadd.f32 %v14621_v36, %v1094_v52 }
 0x3e3   : > { %v9194_v55 = vpack.c.bf16 %v8682_v0, %v8682_v0  ;;  %vm7275_vm0 = vcmp.gt.f32.partialorder %v6763_v37, 0.0  ;;  %v7787_v21 = vmul.f32 0.01, %v6763_v37  ;;  %v6891_v63 = vadd.f32 %v14525_v5, %v6375_v28  ;;  %v6503_v6 = vld [vmem:[#allocation2 + $0x9d0] sm:$0xff]  ;;  %5861 = vst.msk [vmem:[#allocation2 + $0x5d8] sm:$0xff] %vm264_vm3, %v5348_v61 }
 0x3e4   : > { %v7019_v32 = vadd.f32 %v14525_v5, %v6503_v6  ;;  %5989 = vst.msk [vmem:[#allocation2 + $0x9d8] sm:$0xff] %vm264_vm3, %v5476_v44 }
 0x3e5   : > { %9707 = vst.msk [vmem:[%s11763_s4 + $0x6e4] sm:$0xf] %vm9265_vm5, %v9194_v55  ;;  %v8299_v40 = vsel %vm7275_vm0, %v6763_v37, %v7787_v21  ;;  %vm7403_vm1 = vcmp.gt.f32.partialorder %v6891_v63, 0.0  ;;  %v7915_v34 = vmul.f32 0.01, %v6891_v63  ;;  %v14685_v41 = vpop.f32.mrf.mxu2  ;;  %v1222_v37 = vld [vmem:[#allocation2 + $0xde8] sm:$0xff] }
 0x3e6   : > { %v8811_v24 = vpack.c.bf16 %v8299_v40, %v8299_v40  ;;  %vm7531_vm4 = vcmp.gt.f32.partialorder %v7019_v32, 0.0  ;;  %v8043_v29 = vmul.f32 0.01, %v7019_v32  ;;  %6117 = vst.msk [vmem:[#allocation2 + $0xdd8] sm:$0xff] %vm264_vm3, %v5604_v54  ;;  %v14687_v43 = vpop.f32.mrf.mxu3  ;;  %v11358_v54 = vld [vmem:[%s11574_s26 + $0x540] sm:$0xff] }
 0x3e7   : > { %v8427_v53 = vsel %vm7403_vm1, %v6891_v63, %v7915_v34  ;;  %v6631_v18 = vld [vmem:[#allocation2 + $0xdd0] sm:$0xff]  ;;  %5734 = vst.msk [vmem:[#allocation2 + $0x1e0] sm:$0xff] %vm264_vm3, %v5221_v39  ;;  %v14694_v0 = vpop.f32.mrf.mxu0  ;;  %v11422_v39 = vld [vmem:[%s11574_s26 + $0x740] sm:$0xff]  ;;  %v5606_v34 = vadd.f32 %v14623_v31, %v1222_v37  ;;  %v11231_v37 = vld [vmem:[%s11574_s26 + $0x148] sm:$0xff] }
 0x3e8   : > { %9324 = vst.msk [vmem:[%s11763_s4 + $0xe8] sm:$0xf] %vm9265_vm5, %v8811_v24  ;;  %v8939_v26 = vpack.c.bf16 %v8427_v53, %v8427_v53  ;;  %v8555_v47 = vsel %vm7531_vm4, %v7019_v32, %v8043_v29  ;;  %v7147_v16 = vadd.f32 %v14525_v5, %v6631_v18  ;;  %v6248_v50 = vld [vmem:[#allocation2 + $0x1d8] sm:$0xff]  ;;  %v14696_v28 = vpop.f32.mrf.mxu1  ;;  %10972 = vmatmul.msk.bf16.gmra.mxu0 %vm3096_vm2, %v11230_v25 }
 0x3e9   : > { %v9067_v42 = vpack.c.bf16 %v8555_v47, %v8555_v47  ;;  %v6764_v57 = vadd.f32 %v14525_v5, %v6248_v50  ;;  %5862 = vst.msk [vmem:[#allocation2 + $0x5e0] sm:$0xff] %vm264_vm3, %v5349_v14  ;;  %v839_v14 = vld [vmem:[#allocation2 + $0x1f0] sm:$0xff]  ;;  %11036 = vmatmul.msk.bf16.gmra.mxu1 %vm3096_vm2, %v11294_v35  ;;  %v968_v25 = vld [vmem:[#allocation2 + $0x5f8] sm:$0xff] }
 0x3ea   : > { %9452 = vst.msk [vmem:[%s11763_s4 + $0x2e8] sm:$0xf] %vm9265_vm5, %v8939_v26  ;;  %vm7659_vm6 = vcmp.gt.f32.partialorder %v7147_v16, 0.0  ;;  %v8171_v1 = vmul.f32 0.01, %v7147_v16  ;;  %v6376_v33 = vld [vmem:[#allocation2 + $0x5d8] sm:$0xff]  ;;  %v5223_v50 = vadd.f32 %v14630_v58, %v839_v14 }
 0x3eb   : > { %9580 = vst.msk [vmem:[%s11763_s4 + $0x4e8] sm:$0xf] %vm9265_vm5, %v9067_v42  ;;  %vm7276_vm7 = vcmp.gt.f32.partialorder %v6764_v57, 0.0  ;;  %v7788_v38 = vmul.f32 0.01, %v6764_v57  ;;  %v6892_v13 = vadd.f32 %v14525_v5, %v6376_v33  ;;  %v6504_v4 = vld [vmem:[#allocation2 + $0x9d8] sm:$0xff]  ;;  %11100 = vmatmul.msk.bf16.gmra.mxu2 %vm3096_vm2, %v11358_v54 }
 0x3ec   : > { %v8683_v60 = vsel %vm7659_vm6, %v7147_v16, %v8171_v1  ;;  %v7020_v27 = vadd.f32 %v14525_v5, %v6504_v4  ;;  %5990 = vst.msk [vmem:[#allocation2 + $0x9e0] sm:$0xff] %vm264_vm3, %v5477_v49  ;;  %11164 = vmatmul.msk.bf16.gmra.mxu3 %vm3096_vm2, %v11422_v39  ;;  %v5351_v49 = vadd.f32 %v14632_v51, %v967_v45  ;;  %v1223_v58 = vld [vmem:[#allocation2 + $0xdf0] sm:$0xff]  ;;  %v11359_v45 = vld [vmem:[%s11574_s26 + $0x548] sm:$0xff] }
 0x3ed   : > { %v9195_v15 = vpack.c.bf16 %v8683_v60, %v8683_v60  ;;  %v8300_v3 = vsel %vm7276_vm7, %v6764_v57, %v7788_v38  ;;  %vm7404_vm8 = vcmp.gt.f32.partialorder %v6892_v13, 0.0  ;;  %v7916_v10 = vmul.f32 0.01, %v6892_v13  ;;  %v6632_v48 = vld [vmem:[#allocation2 + $0xdd8] sm:$0xff]  ;;  %6118 = vst.msk [vmem:[#allocation2 + $0xde0] sm:$0xff] %vm264_vm3, %v5605_v46  ;;  %v14724_v11 = vpop.f32.mrf.mxu2 }
 0x3ee   : > { %v8812_v61 = vpack.c.bf16 %v8300_v3, %v8300_v3  ;;  %vm7532_vm9 = vcmp.gt.f32.partialorder %v7020_v27, 0.0  ;;  %v8044_v17 = vmul.f32 0.01, %v7020_v27  ;;  %v7148_v7 = vadd.f32 %v14525_v5, %v6632_v48  ;;  %v6249_v56 = vld [vmem:[#allocation2 + $0x1e0] sm:$0xff]  ;;  %5735 = vst.msk [vmem:[#allocation2 + $0x1e8] sm:$0xff] %vm264_vm3, %v5222_v59  ;;  %v14726_v1 = vpop.f32.mrf.mxu3  ;;  %v1095_v59 = vld [vmem:[#allocation2 + $0x9f0] sm:$0xff] }
 0x3ef   : > { %9708 = vst.msk [vmem:[%s11763_s4 + $0x6e8] sm:$0xf] %vm9265_vm5, %v9195_v15  ;;  %v8428_v20 = vsel %vm7404_vm8, %v6892_v13, %v7916_v10  ;;  %v6765_v44 = vadd.f32 %v14525_v5, %v6249_v56  ;;  %v14729_v38 = vpop.f32.mrf.mxu0  ;;  %v5479_v10 = vadd.f32 %v14656_v12, %v1095_v59  ;;  %v840_v48 = vld [vmem:[#allocation2 + $0x1f8] sm:$0xff]  ;;  %v5607_v56 = vadd.f32 %v14658_v8, %v1223_v58 }
 0x3f0   : > { %9325 = vst.msk [vmem:[%s11763_s4 + $0xec] sm:$0xf] %vm9265_vm5, %v8812_v61  ;;  %v8940_v30 = vpack.c.bf16 %v8428_v20, %v8428_v20  ;;  %v8556_v55 = vsel %vm7532_vm9, %v7020_v27, %v8044_v17  ;;  %vm7660_vm10 = vcmp.gt.f32.partialorder %v7148_v7, 0.0  ;;  %v8172_v21 = vmul.f32 0.01, %v7148_v7  ;;  %v6377_v63 = vld [vmem:[#allocation2 + $0x5e0] sm:$0xff]  ;;  %v14731_v51 = vpop.f32.mrf.mxu1 }
 0x3f1   : > { %v9068_v6 = vpack.c.bf16 %v8556_v55, %v8556_v55  ;;  %vm7277_vm11 = vcmp.gt.f32.partialorder %v6765_v44, 0.0  ;;  %v7789_v36 = vmul.f32 0.01, %v6765_v44  ;;  %v6893_v32 = vadd.f32 %v14525_v5, %v6377_v63  ;;  %5863 = vst.msk [vmem:[#allocation2 + $0x5e8] sm:$0xff] %vm264_vm3, %v5350_v19  ;;  %v11295_v63 = vld [vmem:[%s11574_s26 + $0x348] sm:$0xff] }
 0x3f2   : > { %9453 = vst.msk [vmem:[%s11763_s4 + $0x2ec] sm:$0xf] %vm9265_vm5, %v8940_v30  ;;  %v8684_v40 = vsel %vm7660_vm10, %v7148_v7, %v8172_v21  ;;  %v5224_v12 = vadd.f32 %v14661_v2, %v840_v48  ;;  %v5352_v8 = vadd.f32 %v14663_v23, %v968_v25 }
 0x3f3   : > { %9581 = vst.msk [vmem:[%s11763_s4 + $0x4ec] sm:$0xf] %vm9265_vm5, %v9068_v6  ;;  %v9196_v24 = vpack.c.bf16 %v8684_v40, %v8684_v40  ;;  %v8301_v29 = vsel %vm7277_vm11, %v6765_v44, %v7789_v36  ;;  %vm7405_vm12 = vcmp.gt.f32.partialorder %v6893_v32, 0.0  ;;  %v7917_v22 = vmul.f32 0.01, %v6893_v32  ;;  %v6505_v53 = vld [vmem:[#allocation2 + $0x9e0] sm:$0xff] }
 0x3f4   : > { %v8813_v18 = vpack.c.bf16 %v8301_v29, %v8301_v29  ;;  %v7021_v9 = vadd.f32 %v14525_v5, %v6505_v53  ;;  %v6633_v26 = vld [vmem:[#allocation2 + $0xde0] sm:$0xff]  ;;  %5991 = vst.msk [vmem:[#allocation2 + $0x9e8] sm:$0xff] %vm264_vm3, %v5478_v62  ;;  %v1096_v44 = vld [vmem:[#allocation2 + $0x9f8] sm:$0xff] }
 0x3f5   : > { %9709 = vst.msk [vmem:[%s11763_s4 + $0x6ec] sm:$0xf] %vm9265_vm5, %v9196_v24  ;;  %v8429_v31 = vsel %vm7405_vm12, %v6893_v32, %v7917_v22  ;;  %v7149_v47 = vadd.f32 %v14525_v5, %v6633_v26  ;;  %v6250_v16 = vld [vmem:[#allocation2 + $0x1e8] sm:$0xff]  ;;  %v1224_v62 = vld [vmem:[#allocation2 + $0xdf8] sm:$0xff]  ;;  %v14751_v55 = vpop.f32.mrf.mxu2  ;;  %v841_v6 = vld [vmem:[#allocation2 + $0x200] sm:$0xff]  ;;  %v5480_v23 = vadd.f32 %v14685_v41, %v1096_v44 }
 0x3f6   : > { %9326 = vst.msk [vmem:[%s11763_s4 + $0xf0] sm:$0xf] %vm9265_vm5, %v8813_v18  ;;  %v8941_v42 = vpack.c.bf16 %v8429_v31, %v8429_v31  ;;  %vm7533_vm13 = vcmp.gt.f32.partialorder %v7021_v9, 0.0  ;;  %v8045_v57 = vmul.f32 0.01, %v7021_v9  ;;  %v6766_v46 = vadd.f32 %v14525_v5, %v6250_v16  ;;  %v14753_v21 = vpop.f32.mrf.mxu3  ;;  %v11423_v24 = vld [vmem:[%s11574_s26 + $0x748] sm:$0xff] }
 0x3f7   : > { %vm7661_vm14 = vcmp.gt.f32.partialorder %v7149_v47, 0.0  ;;  %v8173_v33 = vmul.f32 0.01, %v7149_v47  ;;  %6119 = vst.msk [vmem:[#allocation2 + $0xde8] sm:$0xff] %vm264_vm3, %v5606_v34  ;;  %v14758_v36 = vpop.f32.mrf.mxu0  ;;  %v5608_v14 = vadd.f32 %v14687_v43, %v1224_v62  ;;  %v5225_v26 = vadd.f32 %v14694_v0, %v841_v6  ;;  %v969_v31 = vld [vmem:[#allocation2 + $0x600] sm:$0xff]  ;;  %v11296_v6 = vld [vmem:[%s11574_s26 + $0x350] sm:$0xff] }
 0x3f8   : > { %9454 = vst.msk [vmem:[%s11763_s4 + $0x2f0] sm:$0xf] %vm9265_vm5, %v8941_v42  ;;  %v8557_v13 = vsel %vm7533_vm13, %v7021_v9, %v8045_v57  ;;  %vm7278_vm15 = vcmp.gt.f32.partialorder %v6766_v46, 0.0  ;;  %v7790_v4 = vmul.f32 0.01, %v6766_v46  ;;  %v6378_v60 = vld [vmem:[#allocation2 + $0x5e8] sm:$0xff]  ;;  %v14760_v32 = vpop.f32.mrf.mxu1  ;;  %10973 = vmatmul.msk.bf16.gmra.mxu0 %vm3096_vm2, %v11231_v37  ;;  %v5353_v58 = vadd.f32 %v14696_v28, %v969_v31 }
 0x3f9   : > { %v9069_v27 = vpack.c.bf16 %v8557_v13, %v8557_v13  ;;  %v8685_v19 = vsel %vm7661_vm14, %v7149_v47, %v8173_v33  ;;  %v6894_v52 = vadd.f32 %v14525_v5, %v6378_v60  ;;  %5736 = vst.msk [vmem:[#allocation2 + $0x1f0] sm:$0xff] %vm264_vm3, %v5223_v50  ;;  %11037 = vmatmul.msk.bf16.gmra.mxu1 %vm3096_vm2, %v11295_v63  ;;  %v1097_v50 = vld [vmem:[#allocation2 + $0xa00] sm:$0xff]  ;;  %v1098_v63 = vld [vmem:[#allocation2 + $0xa08] sm:$0xff]  ;;  %v11360_v31 = vld [vmem:[%s11574_s26 + $0x550] sm:$0xff] }
 0x3fa   : > { %v9197_v15 = vpack.c.bf16 %v8685_v19, %v8685_v19  ;;  %v8302_v3 = vsel %vm7278_vm15, %v6766_v46, %v7790_v4  ;;  %5864 = vst.msk [vmem:[#allocation2 + $0x5f0] sm:$0xff] %vm264_vm3, %v5351_v49  ;;  %v1225_v57 = vld [vmem:[#allocation2 + $0xe00] sm:$0xff]  ;;  %v5481_v19 = vadd.f32 %v14724_v11, %v1097_v50 }
 0x3fb   : > { %9582 = vst.msk [vmem:[%s11763_s4 + $0x4f0] sm:$0xf] %vm9265_vm5, %v9069_v27  ;;  %v8814_v61 = vpack.c.bf16 %v8302_v3, %v8302_v3  ;;  %vm7406_vm0 = vcmp.gt.f32.partialorder %v6894_v52, 0.0  ;;  %v7918_v17 = vmul.f32 0.01, %v6894_v52  ;;  %v6506_v7 = vld [vmem:[#allocation2 + $0x9e8] sm:$0xff]  ;;  %11101 = vmatmul.msk.bf16.gmra.mxu2 %vm3096_vm2, %v11359_v45  ;;  %v5609_v48 = vadd.f32 %v14726_v1, %v1225_v57 }
 0x3fc   : > { %9710 = vst.msk [vmem:[%s11763_s4 + $0x6f0] sm:$0xf] %vm9265_vm5, %v9197_v15  ;;  %v7022_v35 = vadd.f32 %v14525_v5, %v6506_v7  ;;  %11165 = vmatmul.msk.bf16.gmra.mxu3 %vm3096_vm2, %v11423_v24 }
 0x3fd   : > { %9327 = vst.msk [vmem:[%s11763_s4 + $0xf4] sm:$0xf] %vm9265_vm5, %v8814_v61  ;;  %v8430_v20 = vsel %vm7406_vm0, %v6894_v52, %v7918_v17  ;;  %v14785_v13 = vpop.f32.mrf.mxu2  ;;  %v842_v52 = vld [vmem:[#allocation2 + $0x208] sm:$0xff] }
 0x3fe   : > { %v8942_v54 = vpack.c.bf16 %v8430_v20, %v8430_v20  ;;  %vm7534_vm1 = vcmp.gt.f32.partialorder %v7022_v35, 0.0  ;;  %v8046_v39 = vmul.f32 0.01, %v7022_v35  ;;  %v6634_v30 = vld [vmem:[#allocation2 + $0xde8] sm:$0xff]  ;;  %5992 = vst.msk [vmem:[#allocation2 + $0x9f0] sm:$0xff] %vm264_vm3, %v5479_v10  ;;  %v14787_v4 = vpop.f32.mrf.mxu3 }
 0x3ff   : > { %v7150_v2 = vadd.f32 %v14525_v5, %v6634_v30  ;;  %6120 = vst.msk [vmem:[#allocation2 + $0xdf0] sm:$0xff] %vm264_vm3, %v5607_v56  ;;  %v14792_v15 = vpop.f32.mrf.mxu0  ;;  %v5226_v56 = vadd.f32 %v14729_v38, %v842_v52 }
 0x400   : > { %9455 = vst.msk [vmem:[%s11763_s4 + $0x2f4] sm:$0xf] %vm9265_vm5, %v8942_v54  ;;  %v8558_v40 = vsel %vm7534_vm1, %v7022_v35, %v8046_v39  ;;  %v6251_v34 = vld [vmem:[#allocation2 + $0x1f0] sm:$0xff]  ;;  %v14794_v3 = vpop.f32.mrf.mxu1  ;;  %v970_v35 = vld [vmem:[#allocation2 + $0x608] sm:$0xff] }
 0x401   : > { %v9070_v29 = vpack.c.bf16 %v8558_v40, %v8558_v40  ;;  %vm7662_vm4 = vcmp.gt.f32.partialorder %v7150_v2, 0.0  ;;  %v8174_v22 = vmul.f32 0.01, %v7150_v2  ;;  %v6767_v53 = vadd.f32 %v14525_v5, %v6251_v34  ;;  %v6379_v18 = vld [vmem:[#allocation2 + $0x5f0] sm:$0xff]  ;;  %5737 = vst.msk [vmem:[#allocation2 + $0x1f8] sm:$0xff] %vm264_vm3, %v5224_v12 }
 0x402   : > { %v6895_v9 = vadd.f32 %v14525_v5, %v6379_v18  ;;  %5865 = vst.msk [vmem:[#allocation2 + $0x5f8] sm:$0xff] %vm264_vm3, %v5352_v8  ;;  %v5354_v8 = vadd.f32 %v14731_v51, %v970_v35 }
 0x403   : > { %9583 = vst.msk [vmem:[%s11763_s4 + $0x4f4] sm:$0xf] %vm9265_vm5, %v9070_v29  ;;  %v8686_v41 = vsel %vm7662_vm4, %v7150_v2, %v8174_v22  ;;  %vm7279_vm6 = vcmp.gt.f32.partialorder %v6767_v53, 0.0  ;;  %v7791_v43 = vmul.f32 0.01, %v6767_v53  ;;  %v11232_v2 = vld [vmem:[%s11574_s26 + $0x150] sm:$0xff] }
 0x404   : > { %v9198_v47 = vpack.c.bf16 %v8686_v41, %v8686_v41  ;;  %vm7407_vm7 = vcmp.gt.f32.partialorder %v6895_v9, 0.0  ;;  %v7919_v16 = vmul.f32 0.01, %v6895_v9  ;;  %5993 = vst.msk [vmem:[#allocation2 + $0x9f8] sm:$0xff] %vm264_vm3, %v5480_v23 }
 0x405   : > { %v8303_v49 = vsel %vm7279_vm6, %v6767_v53, %v7791_v43  ;;  %v6507_v42 = vld [vmem:[#allocation2 + $0x9f0] sm:$0xff]  ;;  %6121 = vst.msk [vmem:[#allocation2 + $0xdf8] sm:$0xff] %vm264_vm3, %v5608_v14  ;;  %v14816_v45 = vpop.f32.mrf.mxu2  ;;  %v1226_v53 = vld [vmem:[#allocation2 + $0xe08] sm:$0xff]  ;;  %v5482_v43 = vadd.f32 %v14751_v55, %v1098_v63 }
 0x406   : > { %9711 = vst.msk [vmem:[%s11763_s4 + $0x6f4] sm:$0xf] %vm9265_vm5, %v9198_v47  ;;  %v8815_v0 = vpack.c.bf16 %v8303_v49, %v8303_v49  ;;  %v8431_v46 = vsel %vm7407_vm7, %v6895_v9, %v7919_v16  ;;  %v7023_v33 = vadd.f32 %v14525_v5, %v6507_v42  ;;  %v6635_v59 = vld [vmem:[#allocation2 + $0xdf0] sm:$0xff]  ;;  %v14818_v24 = vpop.f32.mrf.mxu3 }
 0x407   : > { %v8943_v60 = vpack.c.bf16 %v8431_v46, %v8431_v46  ;;  %v7151_v27 = vadd.f32 %v14525_v5, %v6635_v59  ;;  %5738 = vst.msk [vmem:[#allocation2 + $0x200] sm:$0xff] %vm264_vm3, %v5225_v26  ;;  %v14822_v18 = vpop.f32.mrf.mxu0  ;;  %v843_v26 = vld [vmem:[#allocation2 + $0x210] sm:$0xff] }
 0x408   : > { %9328 = vst.msk [vmem:[%s11763_s4 + $0xf8] sm:$0xf] %vm9265_vm5, %v8815_v0  ;;  %vm7535_vm8 = vcmp.gt.f32.partialorder %v7023_v33, 0.0  ;;  %v8047_v28 = vmul.f32 0.01, %v7023_v33  ;;  %v6252_v10 = vld [vmem:[#allocation2 + $0x1f8] sm:$0xff]  ;;  %v14824_v9 = vpop.f32.mrf.mxu1  ;;  %10974 = vmatmul.msk.bf16.gmra.mxu0 %vm3096_vm2, %v11232_v2 }
 0x409   : > { %9456 = vst.msk [vmem:[%s11763_s4 + $0x2f8] sm:$0xf] %vm9265_vm5, %v8943_v60  ;;  %vm7663_vm9 = vcmp.gt.f32.partialorder %v7151_v27, 0.0  ;;  %v8175_v25 = vmul.f32 0.01, %v7151_v27  ;;  %v6768_v61 = vadd.f32 %v14525_v5, %v6252_v10  ;;  %v6380_v17 = vld [vmem:[#allocation2 + $0x5f8] sm:$0xff]  ;;  %11038 = vmatmul.msk.bf16.gmra.mxu1 %vm3096_vm2, %v11296_v6  ;;  %v5227_v60 = vadd.f32 %v14758_v36, %v843_v26 }
 0x40a   : > { %v8559_v11 = vsel %vm7535_vm8, %v7023_v33, %v8047_v28  ;;  %v6896_v7 = vadd.f32 %v14525_v5, %v6380_v17  ;;  %5866 = vst.msk [vmem:[#allocation2 + $0x600] sm:$0xff] %vm264_vm3, %v5353_v58  ;;  %v11424_v47 = vld [vmem:[%s11574_s26 + $0x750] sm:$0xff]  ;;  %v5610_v58 = vadd.f32 %v14753_v21, %v1226_v53  ;;  %v972_v2 = vld [vmem:[#allocation2 + $0x618] sm:$0xff] }
 0x40b   : > { %v9071_v20 = vpack.c.bf16 %v8559_v11, %v8559_v11  ;;  %v8687_v12 = vsel %vm7663_vm9, %v7151_v27, %v8175_v25  ;;  %vm7280_vm10 = vcmp.gt.f32.partialorder %v6768_v61, 0.0  ;;  %v7792_v1 = vmul.f32 0.01, %v6768_v61  ;;  %v6508_v44 = vld [vmem:[#allocation2 + $0x9f8] sm:$0xff]  ;;  %5994 = vst.msk [vmem:[#allocation2 + $0xa00] sm:$0xff] %vm264_vm3, %v5481_v19  ;;  %11102 = vmatmul.msk.bf16.gmra.mxu2 %vm3096_vm2, %v11360_v31  ;;  %v971_v10 = vld [vmem:[#allocation2 + $0x610] sm:$0xff] }
 0x40c   : > { %v9199_v62 = vpack.c.bf16 %v8687_v12, %v8687_v12  ;;  %vm7408_vm11 = vcmp.gt.f32.partialorder %v6896_v7, 0.0  ;;  %v7920_v37 = vmul.f32 0.01, %v6896_v7  ;;  %v7024_v54 = vadd.f32 %v14525_v5, %v6508_v44  ;;  %v6636_v39 = vld [vmem:[#allocation2 + $0xdf8] sm:$0xff]  ;;  %6122 = vst.msk [vmem:[#allocation2 + $0xe00] sm:$0xff] %vm264_vm3, %v5609_v48  ;;  %11166 = vmatmul.msk.bf16.gmra.mxu3 %vm3096_vm2, %v11424_v47  ;;  %v1099_v48 = vld [vmem:[#allocation2 + $0xa10] sm:$0xff] }
 0x40d   : > { %9584 = vst.msk [vmem:[%s11763_s4 + $0x4f8] sm:$0xf] %vm9265_vm5, %v9071_v20  ;;  %v8304_v38 = vsel %vm7280_vm10, %v6768_v61, %v7792_v1  ;;  %v7152_v30 = vadd.f32 %v14525_v5, %v6636_v39  ;;  %v14850_v61 = vpop.f32.mrf.mxu2  ;;  %v5355_v44 = vadd.f32 %v14760_v32, %v971_v10  ;;  %v1100_v6 = vld [vmem:[#allocation2 + $0xa18] sm:$0xff] }
 0x40e   : > { %9712 = vst.msk [vmem:[%s11763_s4 + $0x6f8] sm:$0xf] %vm9265_vm5, %v9199_v62  ;;  %v8816_v40 = vpack.c.bf16 %v8304_v38, %v8304_v38  ;;  %v8432_v34 = vsel %vm7408_vm11, %v6896_v7, %v7920_v37  ;;  %vm7536_vm12 = vcmp.gt.f32.partialorder %v7024_v54, 0.0  ;;  %v8048_v23 = vmul.f32 0.01, %v7024_v54  ;;  %v6253_v14 = vld [vmem:[#allocation2 + $0x200] sm:$0xff]  ;;  %v14852_v17 = vpop.f32.mrf.mxu3 }
 0x40f   : > { %v8944_v29 = vpack.c.bf16 %v8432_v34, %v8432_v34  ;;  %vm7664_vm13 = vcmp.gt.f32.partialorder %v7152_v30, 0.0  ;;  %v8176_v51 = vmul.f32 0.01, %v7152_v30  ;;  %v6769_v22 = vadd.f32 %v14525_v5, %v6253_v14  ;;  %5739 = vst.msk [vmem:[#allocation2 + $0x208] sm:$0xff] %vm264_vm3, %v5226_v56  ;;  %v14856_v35 = vpop.f32.mrf.mxu0  ;;  %v1227_v62 = vld [vmem:[#allocation2 + $0xe10] sm:$0xff]  ;;  %v844_v37 = vld [vmem:[#allocation2 + $0x218] sm:$0xff] }
 0x410   : > { %9329 = vst.msk [vmem:[%s11763_s4 + $0xfc] sm:$0xf] %vm9265_vm5, %v8816_v40  ;;  %v8560_v41 = vsel %vm7536_vm12, %v7024_v54, %v8048_v23  ;;  %v14858_v20 = vpop.f32.mrf.mxu1  ;;  %v5611_v32 = vadd.f32 %v14787_v4, %v1227_v62  ;;  %v1228_v4 = vld [vmem:[#allocation2 + $0xe18] sm:$0xff]  ;;  %v5484_v53 = vadd.f32 %v14816_v45, %v1100_v6 }
 0x411   : > { %9457 = vst.msk [vmem:[%s11763_s4 + $0x2fc] sm:$0xf] %vm9265_vm5, %v8944_v29  ;;  %v9072_v16 = vpack.c.bf16 %v8560_v41, %v8560_v41  ;;  %v8688_v50 = vsel %vm7664_vm13, %v7152_v30, %v8176_v51  ;;  %vm7281_vm14 = vcmp.gt.f32.partialorder %v6769_v22, 0.0  ;;  %v7793_v49 = vmul.f32 0.01, %v6769_v22  ;;  %v6381_v42 = vld [vmem:[#allocation2 + $0x600] sm:$0xff] }
 0x412   : > { %v9200_v57 = vpack.c.bf16 %v8688_v50, %v8688_v50  ;;  %v6897_v0 = vadd.f32 %v14525_v5, %v6381_v42  ;;  %v6509_v46 = vld [vmem:[#allocation2 + $0xa00] sm:$0xff]  ;;  %5867 = vst.msk [vmem:[#allocation2 + $0x608] sm:$0xff] %vm264_vm3, %v5354_v8  ;;  %v5483_v30 = vadd.f32 %v14785_v13, %v1099_v48  ;;  %v5228_v13 = vadd.f32 %v14792_v15, %v844_v37  ;;  %v11297_v26 = vld [vmem:[%s11574_s26 + $0x358] sm:$0xff] }
 0x413   : > { %9585 = vst.msk [vmem:[%s11763_s4 + $0x4fc] sm:$0xf] %vm9265_vm5, %v9072_v16  ;;  %v8305_v55 = vsel %vm7281_vm14, %v6769_v22, %v7793_v49  ;;  %v7025_v33 = vadd.f32 %v14525_v5, %v6509_v46  ;;  %v6637_v59 = vld [vmem:[#allocation2 + $0xe00] sm:$0xff]  ;;  %v5356_v22 = vadd.f32 %v14794_v3, %v972_v2 }
 0x414   : > { %9713 = vst.msk [vmem:[%s11763_s4 + $0x6fc] sm:$0xf] %vm9265_vm5, %v9200_v57  ;;  %v8817_v27 = vpack.c.bf16 %v8305_v55, %v8305_v55  ;;  %vm7409_vm15 = vcmp.gt.f32.partialorder %v6897_v0, 0.0  ;;  %v7921_v19 = vmul.f32 0.01, %v6897_v0  ;;  %v7153_v52 = vadd.f32 %v14525_v5, %v6637_v59  ;;  %v845_v42 = vld [vmem:[#allocation2 + $0x220] sm:$0xff] }
 0x415   : > { %vm7537_vm0 = vcmp.gt.f32.partialorder %v7025_v33, 0.0  ;;  %v8049_v28 = vmul.f32 0.01, %v7025_v33  ;;  %5995 = vst.msk [vmem:[#allocation2 + $0xa08] sm:$0xff] %vm264_vm3, %v5482_v43  ;;  %v14884_v15 = vpop.f32.mrf.mxu2  ;;  %v11233_v43 = vld [vmem:[%s11574_s26 + $0x158] sm:$0xff] }
 0x416   : > { %9330 = vst.msk [vmem:[%s11763_s4 + $0x100] sm:$0xf] %vm9265_vm5, %v8817_v27  ;;  %v8433_v21 = vsel %vm7409_vm15, %v6897_v0, %v7921_v19  ;;  %vm7665_vm1 = vcmp.gt.f32.partialorder %v7153_v52, 0.0  ;;  %v8177_v36 = vmul.f32 0.01, %v7153_v52  ;;  %v6254_v25 = vld [vmem:[#allocation2 + $0x208] sm:$0xff]  ;;  %v14886_v41 = vpop.f32.mrf.mxu3 }
 0x417   : > { %v8945_v11 = vpack.c.bf16 %v8433_v21, %v8433_v21  ;;  %v8561_v7 = vsel %vm7537_vm0, %v7025_v33, %v8049_v28  ;;  %v6770_v56 = vadd.f32 %v14525_v5, %v6254_v25  ;;  %6123 = vst.msk [vmem:[#allocation2 + $0xe08] sm:$0xff] %vm264_vm3, %v5610_v58  ;;  %v14892_v3 = vpop.f32.mrf.mxu0  ;;  %v11361_v57 = vld [vmem:[%s11574_s26 + $0x558] sm:$0xff]  ;;  %v5612_v33 = vadd.f32 %v14818_v24, %v1228_v4  ;;  %v1101_v28 = vld [vmem:[#allocation2 + $0xa20] sm:$0xff] }
 0x418   : > { %v9073_v12 = vpack.c.bf16 %v8561_v7, %v8561_v7  ;;  %v8689_v1 = vsel %vm7665_vm1, %v7153_v52, %v8177_v36  ;;  %5740 = vst.msk [vmem:[#allocation2 + $0x210] sm:$0xff] %vm264_vm3, %v5227_v60  ;;  %v14894_v45 = vpop.f32.mrf.mxu1  ;;  %v11425_v0 = vld [vmem:[%s11574_s26 + $0x758] sm:$0xff]  ;;  %v973_v60 = vld [vmem:[#allocation2 + $0x620] sm:$0xff]  ;;  %10975 = vmatmul.msk.bf16.gmra.mxu0 %vm3096_vm2, %v11233_v43  ;;  %v5229_v52 = vadd.f32 %v14822_v18, %v845_v42 }
 0x419   : > { %9458 = vst.msk [vmem:[%s11763_s4 + $0x300] sm:$0xf] %vm9265_vm5, %v8945_v11  ;;  %v9201_v54 = vpack.c.bf16 %v8689_v1, %v8689_v1  ;;  %vm7282_vm4 = vcmp.gt.f32.partialorder %v6770_v56, 0.0  ;;  %v7794_v39 = vmul.f32 0.01, %v6770_v56  ;;  %v6382_v38 = vld [vmem:[#allocation2 + $0x608] sm:$0xff]  ;;  %11039 = vmatmul.msk.bf16.gmra.mxu1 %vm3096_vm2, %v11297_v26  ;;  %v5357_v18 = vadd.f32 %v14824_v9, %v973_v60 }
 0x41a   : > { %9586 = vst.msk [vmem:[%s11763_s4 + $0x500] sm:$0xf] %vm9265_vm5, %v9073_v12  ;;  %v6898_v8 = vadd.f32 %v14525_v5, %v6382_v38  ;;  %v14876_v5 = vld [vmem:[%s16747_s2] ss:$0 sm:$0xff]  ;;  %v5485_v12 = vadd.f32 %v14850_v61, %v1101_v28 }
 0x41b   : > { %9714 = vst.msk [vmem:[%s11763_s4 + $0x700] sm:$0xf] %vm9265_vm5, %v9201_v54  ;;  %v8306_v63 = vsel %vm7282_vm4, %v6770_v56, %v7794_v39  ;;  %11103 = vmatmul.msk.bf16.gmra.mxu2 %vm3096_vm2, %v11361_v57  ;;  %v1229_v11 = vld [vmem:[#allocation2 + $0xe20] sm:$0xff] }
 0x41c   : > { %v8818_v40 = vpack.c.bf16 %v8306_v63, %v8306_v63  ;;  %vm7410_vm6 = vcmp.gt.f32.partialorder %v6898_v8, 0.0  ;;  %v7922_v34 = vmul.f32 0.01, %v6898_v8  ;;  %v6510_v23 = vld [vmem:[#allocation2 + $0xa08] sm:$0xff]  ;;  %5868 = vst.msk [vmem:[#allocation2 + $0x610] sm:$0xff] %vm264_vm3, %v5355_v44  ;;  %11167 = vmatmul.msk.bf16.gmra.mxu3 %vm3096_vm2, %v11425_v0  ;;  %v5613_v61 = vadd.f32 %v14852_v17, %v1229_v11  ;;  %v11234_v0 = vld [vmem:[%s11574_s26 + $0x160] sm:$0xff] }
 0x41d   : > { %v7026_v14 = vadd.f32 %v14876_v5, %v6510_v23  ;;  %5996 = vst.msk [vmem:[#allocation2 + $0xa10] sm:$0xff] %vm264_vm3, %v5483_v30  ;;  %v14919_v1 = vpop.f32.mrf.mxu2  ;;  %v11362_v28 = vld [vmem:[%s11574_s26 + $0x560] sm:$0xff] }
 0x41e   : > { %9331 = vst.msk [vmem:[%s11763_s4 + $0x104] sm:$0xf] %vm9265_vm5, %v8818_v40  ;;  %v8434_v29 = vsel %vm7410_vm6, %v6898_v8, %v7922_v34  ;;  %v6638_v51 = vld [vmem:[#allocation2 + $0xe08] sm:$0xff]  ;;  %v14921_v44 = vpop.f32.mrf.mxu3 }
 0x41f   : > { %v8946_v31 = vpack.c.bf16 %v8434_v29, %v8434_v29  ;;  %vm7538_vm7 = vcmp.gt.f32.partialorder %v7026_v14, 0.0  ;;  %v8050_v47 = vmul.f32 0.01, %v7026_v14  ;;  %v7154_v16 = vadd.f32 %v14876_v5, %v6638_v51  ;;  %v6255_v50 = vld [vmem:[#allocation2 + $0x210] sm:$0xff]  ;;  %6124 = vst.msk [vmem:[#allocation2 + $0xe10] sm:$0xff] %vm264_vm3, %v5611_v32  ;;  %v14926_v9 = vpop.f32.mrf.mxu0  ;;  %v846_v8 = vld [vmem:[#allocation2 + $0x228] sm:$0xff] }
 0x420   : > { %v6771_v49 = vadd.f32 %v14876_v5, %v6255_v50  ;;  %5741 = vst.msk [vmem:[#allocation2 + $0x218] sm:$0xff] %vm264_vm3, %v5228_v13  ;;  %v14928_v39 = vpop.f32.mrf.mxu1  ;;  %v5230_v4 = vadd.f32 %v14856_v35, %v846_v8  ;;  %v974_v29 = vld [vmem:[#allocation2 + $0x628] sm:$0xff] }
 0x421   : > { %9459 = vst.msk [vmem:[%s11763_s4 + $0x304] sm:$0xf] %vm9265_vm5, %v8946_v31  ;;  %v8562_v46 = vsel %vm7538_vm7, %v7026_v14, %v8050_v47  ;;  %vm7666_vm8 = vcmp.gt.f32.partialorder %v7154_v16, 0.0  ;;  %v8178_v55 = vmul.f32 0.01, %v7154_v16  ;;  %v5358_v50 = vadd.f32 %v14858_v20, %v974_v29 }
 0x422   : > { %v9074_v59 = vpack.c.bf16 %v8562_v46, %v8562_v46  ;;  %vm7283_vm9 = vcmp.gt.f32.partialorder %v6771_v49, 0.0  ;;  %v7795_v58 = vmul.f32 0.01, %v6771_v49  ;;  %5869 = vst.msk [vmem:[#allocation2 + $0x618] sm:$0xff] %vm264_vm3, %v5356_v22  ;;  %v11298_v46 = vld [vmem:[%s11574_s26 + $0x360] sm:$0xff] }
 0x423   : > { %v8690_v27 = vsel %vm7666_vm8, %v7154_v16, %v8178_v55  ;;  %v6383_v19 = vld [vmem:[#allocation2 + $0x610] sm:$0xff]  ;;  %5997 = vst.msk [vmem:[#allocation2 + $0xa18] sm:$0xff] %vm264_vm3, %v5484_v53  ;;  %v1102_v16 = vld [vmem:[#allocation2 + $0xa28] sm:$0xff] }
 0x424   : > { %9587 = vst.msk [vmem:[%s11763_s4 + $0x504] sm:$0xf] %vm9265_vm5, %v9074_v59  ;;  %v9202_v24 = vpack.c.bf16 %v8690_v27, %v8690_v27  ;;  %v8307_v10 = vsel %vm7283_vm9, %v6771_v49, %v7795_v58  ;;  %v6899_v48 = vadd.f32 %v14876_v5, %v6383_v19  ;;  %v6511_v21 = vld [vmem:[#allocation2 + $0xa10] sm:$0xff]  ;;  %v1230_v49 = vld [vmem:[#allocation2 + $0xe28] sm:$0xff] }
 0x425   : > { %v8819_v36 = vpack.c.bf16 %v8307_v10, %v8307_v10  ;;  %v7027_v25 = vadd.f32 %v14876_v5, %v6511_v21  ;;  %6125 = vst.msk [vmem:[#allocation2 + $0xe18] sm:$0xff] %vm264_vm3, %v5612_v33  ;;  %v14947_v42 = vpop.f32.mrf.mxu2 }
 0x426   : > { %9715 = vst.msk [vmem:[%s11763_s4 + $0x704] sm:$0xf] %vm9265_vm5, %v9202_v24  ;;  %vm7411_vm10 = vcmp.gt.f32.partialorder %v6899_v48, 0.0  ;;  %v7923_v7 = vmul.f32 0.01, %v6899_v48  ;;  %v6639_v56 = vld [vmem:[#allocation2 + $0xe10] sm:$0xff]  ;;  %v14949_v57 = vpop.f32.mrf.mxu3 }
 0x427   : > { %9332 = vst.msk [vmem:[%s11763_s4 + $0x108] sm:$0xf] %vm9265_vm5, %v8819_v36  ;;  %vm7539_vm11 = vcmp.gt.f32.partialorder %v7027_v25, 0.0  ;;  %v8051_v62 = vmul.f32 0.01, %v7027_v25  ;;  %v7155_v37 = vadd.f32 %v14876_v5, %v6639_v56  ;;  %v6256_v54 = vld [vmem:[#allocation2 + $0x218] sm:$0xff]  ;;  %v14955_v60 = vpop.f32.mrf.mxu0  ;;  %v5486_v36 = vadd.f32 %v14884_v15, %v1102_v16 }
 0x428   : > { %v8435_v38 = vsel %vm7411_vm10, %v6899_v48, %v7923_v7  ;;  %v6772_v30 = vadd.f32 %v14876_v5, %v6256_v54  ;;  %5742 = vst.msk [vmem:[#allocation2 + $0x220] sm:$0xff] %vm264_vm3, %v5229_v52  ;;  %v14957_v20 = vpop.f32.mrf.mxu1  ;;  %v11426_v24 = vld [vmem:[%s11574_s26 + $0x760] sm:$0xff]  ;;  %10976 = vmatmul.msk.bf16.gmra.mxu0 %vm3096_vm2, %v11234_v0 }
 0x429   : > { %v8947_v63 = vpack.c.bf16 %v8435_v38, %v8435_v38  ;;  %v8563_v32 = vsel %vm7539_vm11, %v7027_v25, %v8051_v62  ;;  %vm7667_vm12 = vcmp.gt.f32.partialorder %v7155_v37, 0.0  ;;  %v8179_v2 = vmul.f32 0.01, %v7155_v37  ;;  %v6384_v6 = vld [vmem:[#allocation2 + $0x618] sm:$0xff]  ;;  %5870 = vst.msk [vmem:[#allocation2 + $0x620] sm:$0xff] %vm264_vm3, %v5357_v18  ;;  %11040 = vmatmul.msk.bf16.gmra.mxu1 %vm3096_vm2, %v11298_v46  ;;  %v975_v62 = vld [vmem:[#allocation2 + $0x630] sm:$0xff] }
 0x42a   : > { %v9075_v40 = vpack.c.bf16 %v8563_v32, %v8563_v32  ;;  %vm7284_vm13 = vcmp.gt.f32.partialorder %v6772_v30, 0.0  ;;  %v7796_v34 = vmul.f32 0.01, %v6772_v30  ;;  %v6900_v23 = vadd.f32 %v14876_v5, %v6384_v6  ;;  %v6512_v13 = vld [vmem:[#allocation2 + $0xa18] sm:$0xff]  ;;  %5998 = vst.msk [vmem:[#allocation2 + $0xa20] sm:$0xff] %vm264_vm3, %v5485_v12  ;;  %v847_v12 = vld [vmem:[#allocation2 + $0x230] sm:$0xff] }
 0x42b   : > { %9460 = vst.msk [vmem:[%s11763_s4 + $0x308] sm:$0xf] %vm9265_vm5, %v8947_v63  ;;  %v8691_v17 = vsel %vm7667_vm12, %v7155_v37, %v8179_v2  ;;  %v7028_v14 = vadd.f32 %v14876_v5, %v6512_v13  ;;  %v5614_v25 = vadd.f32 %v14886_v41, %v1230_v49  ;;  %11104 = vmatmul.msk.bf16.gmra.mxu2 %vm3096_vm2, %v11362_v28  ;;  %v1103_v32 = vld [vmem:[#allocation2 + $0xa30] sm:$0xff]  ;;  %v1104_v49 = vld [vmem:[#allocation2 + $0xa38] sm:$0xff] }
 0x42c   : > { %9588 = vst.msk [vmem:[%s11763_s4 + $0x508] sm:$0xf] %vm9265_vm5, %v9075_v40  ;;  %v9203_v51 = vpack.c.bf16 %v8691_v17, %v8691_v17  ;;  %v8308_v22 = vsel %vm7284_vm13, %v6772_v30, %v7796_v34  ;;  %vm7412_vm14 = vcmp.gt.f32.partialorder %v6900_v23, 0.0  ;;  %v7924_v53 = vmul.f32 0.01, %v6900_v23  ;;  %v6640_v43 = vld [vmem:[#allocation2 + $0xe18] sm:$0xff]  ;;  %11168 = vmatmul.msk.bf16.gmra.mxu3 %vm3096_vm2, %v11426_v24 }
 0x42d   : > { %v8820_v26 = vpack.c.bf16 %v8308_v22, %v8308_v22  ;;  %vm7540_vm15 = vcmp.gt.f32.partialorder %v7028_v14, 0.0  ;;  %v8052_v31 = vmul.f32 0.01, %v7028_v14  ;;  %v7156_v47 = vadd.f32 %v14876_v5, %v6640_v43  ;;  %6126 = vst.msk [vmem:[#allocation2 + $0xe20] sm:$0xff] %vm264_vm3, %v5613_v61  ;;  %v1231_v2 = vld [vmem:[#allocation2 + $0xe30] sm:$0xff]  ;;  %v14985_v13 = vpop.f32.mrf.mxu2  ;;  %v848_v22 = vld [vmem:[#allocation2 + $0x238] sm:$0xff] }
 0x42e   : > { %9716 = vst.msk [vmem:[%s11763_s4 + $0x708] sm:$0xf] %vm9265_vm5, %v9203_v51  ;;  %v8436_v35 = vsel %vm7412_vm14, %v6900_v23, %v7924_v53  ;;  %v5231_v63 = vadd.f32 %v14892_v3, %v847_v12  ;;  %v5359_v23 = vadd.f32 %v14894_v45, %v975_v62  ;;  %v14987_v17 = vpop.f32.mrf.mxu3  ;;  %v5487_v51 = vadd.f32 %v14919_v1, %v1103_v32  ;;  %v976_v45 = vld [vmem:[#allocation2 + $0x638] sm:$0xff] }
 0x42f   : > { %9333 = vst.msk [vmem:[%s11763_s4 + $0x10c] sm:$0xf] %vm9265_vm5, %v8820_v26  ;;  %v8948_v55 = vpack.c.bf16 %v8436_v35, %v8436_v35  ;;  %v8564_v33 = vsel %vm7540_vm15, %v7028_v14, %v8052_v31  ;;  %vm7668_vm0 = vcmp.gt.f32.partialorder %v7156_v47, 0.0  ;;  %v8180_v59 = vmul.f32 0.01, %v7156_v47  ;;  %v6257_v58 = vld [vmem:[#allocation2 + $0x220] sm:$0xff]  ;;  %v14992_v3 = vpop.f32.mrf.mxu0 }
 0x430   : > { %v9076_v27 = vpack.c.bf16 %v8564_v33, %v8564_v33  ;;  %v6773_v19 = vadd.f32 %v14876_v5, %v6257_v58  ;;  %v6385_v52 = vld [vmem:[#allocation2 + $0x620] sm:$0xff]  ;;  %5743 = vst.msk [vmem:[#allocation2 + $0x228] sm:$0xff] %vm264_vm3, %v5230_v4  ;;  %v14994_v4 = vpop.f32.mrf.mxu1  ;;  %v5615_v31 = vadd.f32 %v14921_v44, %v1231_v2  ;;  %v5232_v35 = vadd.f32 %v14926_v9, %v848_v22  ;;  %v11235_v58 = vld [vmem:[%s11574_s26 + $0x168] sm:$0xff] }
 0x431   : > { %9461 = vst.msk [vmem:[%s11763_s4 + $0x30c] sm:$0xf] %vm9265_vm5, %v8948_v55  ;;  %v8692_v10 = vsel %vm7668_vm0, %v7156_v47, %v8180_v59  ;;  %v6901_v48 = vadd.f32 %v14876_v5, %v6385_v52  ;;  %v6513_v21 = vld [vmem:[#allocation2 + $0xa20] sm:$0xff]  ;;  %v1232_v59 = vld [vmem:[#allocation2 + $0xe38] sm:$0xff] }
 0x432   : > { %9589 = vst.msk [vmem:[%s11763_s4 + $0x50c] sm:$0xf] %vm9265_vm5, %v9076_v27  ;;  %v9204_v18 = vpack.c.bf16 %v8692_v10, %v8692_v10  ;;  %vm7285_vm1 = vcmp.gt.f32.partialorder %v6773_v19, 0.0  ;;  %v7797_v11 = vmul.f32 0.01, %v6773_v19  ;;  %v7029_v7 = vadd.f32 %v14876_v5, %v6513_v21  ;;  %v11299_v27 = vld [vmem:[%s11574_s26 + $0x368] sm:$0xff] }
 0x433   : > { %vm7413_vm4 = vcmp.gt.f32.partialorder %v6901_v48, 0.0  ;;  %v7925_v56 = vmul.f32 0.01, %v6901_v48  ;;  %5871 = vst.msk [vmem:[#allocation2 + $0x628] sm:$0xff] %vm264_vm3, %v5358_v50  ;;  %v5360_v50 = vadd.f32 %v14928_v39, %v976_v45  ;;  %v849_v52 = vld [vmem:[#allocation2 + $0x240] sm:$0xff] }
 0x434   : > { %9717 = vst.msk [vmem:[%s11763_s4 + $0x70c] sm:$0xf] %vm9265_vm5, %v9204_v18  ;;  %v8309_v15 = vsel %vm7285_vm1, %v6773_v19, %v7797_v11  ;;  %vm7541_vm6 = vcmp.gt.f32.partialorder %v7029_v7, 0.0  ;;  %v8053_v41 = vmul.f32 0.01, %v7029_v7  ;;  %v6641_v37 = vld [vmem:[#allocation2 + $0xe20] sm:$0xff]  ;;  %v5488_v19 = vadd.f32 %v14947_v42, %v1104_v49 }
 0x435   : > { %v8821_v54 = vpack.c.bf16 %v8309_v15, %v8309_v15  ;;  %v8437_v38 = vsel %vm7413_vm4, %v6901_v48, %v7925_v56  ;;  %v7157_v30 = vadd.f32 %v14876_v5, %v6641_v37  ;;  %5999 = vst.msk [vmem:[#allocation2 + $0xa28] sm:$0xff] %vm264_vm3, %v5486_v36  ;;  %v15016_v28 = vpop.f32.mrf.mxu2  ;;  %v11427_v18 = vld [vmem:[%s11574_s26 + $0x768] sm:$0xff]  ;;  %v5616_v42 = vadd.f32 %v14949_v57, %v1232_v59  ;;  %v977_v56 = vld [vmem:[#allocation2 + $0x640] sm:$0xff] }
 0x436   : > { %v8949_v61 = vpack.c.bf16 %v8437_v38, %v8437_v38  ;;  %v8565_v8 = vsel %vm7541_vm6, %v7029_v7, %v8053_v41  ;;  %6127 = vst.msk [vmem:[#allocation2 + $0xe28] sm:$0xff] %vm264_vm3, %v5614_v25  ;;  %v15018_v24 = vpop.f32.mrf.mxu3  ;;  %v11363_v25 = vld [vmem:[%s11574_s26 + $0x568] sm:$0xff]  ;;  %v5233_v57 = vadd.f32 %v14955_v60, %v849_v52  ;;  %v1105_v38 = vld [vmem:[#allocation2 + $0xa40] sm:$0xff] }
 0x437   : > { %9334 = vst.msk [vmem:[%s11763_s4 + $0x110] sm:$0xf] %vm9265_vm5, %v8821_v54  ;;  %v9077_v6 = vpack.c.bf16 %v8565_v8, %v8565_v8  ;;  %vm7669_vm7 = vcmp.gt.f32.partialorder %v7157_v30, 0.0  ;;  %v8181_v40 = vmul.f32 0.01, %v7157_v30  ;;  %v6258_v34 = vld [vmem:[#allocation2 + $0x228] sm:$0xff]  ;;  %v15021_v21 = vpop.f32.mrf.mxu0  ;;  %v5361_v8 = vadd.f32 %v14957_v20, %v977_v56 }
 0x438   : > { %9462 = vst.msk [vmem:[%s11763_s4 + $0x310] sm:$0xf] %vm9265_vm5, %v8949_v61  ;;  %v6774_v14 = vadd.f32 %v14876_v5, %v6258_v34  ;;  %v15023_v36 = vpop.f32.mrf.mxu1  ;;  %10977 = vmatmul.msk.bf16.gmra.mxu0 %vm3096_vm2, %v11235_v58  ;;  %v1233_v34 = vld [vmem:[#allocation2 + $0xe40] sm:$0xff]  ;;  %v978_v58 = vld [vmem:[#allocation2 + $0x648] sm:$0xff] }
 0x439   : > { %9590 = vst.msk [vmem:[%s11763_s4 + $0x510] sm:$0xf] %vm9265_vm5, %v9077_v6  ;;  %v8693_v29 = vsel %vm7669_vm7, %v7157_v30, %v8181_v40  ;;  %11041 = vmatmul.msk.bf16.gmra.mxu1 %vm3096_vm2, %v11299_v27  ;;  %v5489_v40 = vadd.f32 %v14985_v13, %v1105_v38  ;;  %v1106_v27 = vld [vmem:[#allocation2 + $0xa48] sm:$0xff]  ;;  %v5362_v56 = vadd.f32 %v14994_v4, %v978_v58  ;;  %v11428_v4 = vld [vmem:[%s11574_s26 + $0x770] sm:$0xff] }
 0x43a   : > { %v9205_v53 = vpack.c.bf16 %v8693_v29, %v8693_v29  ;;  %vm7286_vm8 = vcmp.gt.f32.partialorder %v6774_v14, 0.0  ;;  %v7798_v43 = vmul.f32 0.01, %v6774_v14  ;;  %v6386_v26 = vld [vmem:[#allocation2 + $0x628] sm:$0xff]  ;;  %5744 = vst.msk [vmem:[#allocation2 + $0x230] sm:$0xff] %vm264_vm3, %v5231_v63 }
 0x43b   : > { %v6902_v47 = vadd.f32 %v14876_v5, %v6386_v26  ;;  %5872 = vst.msk [vmem:[#allocation2 + $0x630] sm:$0xff] %vm264_vm3, %v5359_v23  ;;  %11105 = vmatmul.msk.bf16.gmra.mxu2 %vm3096_vm2, %v11363_v25 }
 0x43c   : > { %9718 = vst.msk [vmem:[%s11763_s4 + $0x710] sm:$0xf] %vm9265_vm5, %v9205_v53  ;;  %v8310_v16 = vsel %vm7286_vm8, %v6774_v14, %v7798_v43  ;;  %v6514_v1 = vld [vmem:[#allocation2 + $0xa28] sm:$0xff]  ;;  %11169 = vmatmul.msk.bf16.gmra.mxu3 %vm3096_vm2, %v11427_v18  ;;  %v11236_v18 = vld [vmem:[%s11574_s26 + $0x170] sm:$0xff] }
 0x43d   : > { %v8822_v0 = vpack.c.bf16 %v8310_v16, %v8310_v16  ;;  %vm7414_vm9 = vcmp.gt.f32.partialorder %v6902_v47, 0.0  ;;  %v7926_v46 = vmul.f32 0.01, %v6902_v47  ;;  %v7030_v44 = vadd.f32 %v14876_v5, %v6514_v1  ;;  %v6642_v55 = vld [vmem:[#allocation2 + $0xe28] sm:$0xff]  ;;  %6000 = vst.msk [vmem:[#allocation2 + $0xa30] sm:$0xff] %vm264_vm3, %v5487_v51 }
 0x43e   : > { %v7158_v33 = vadd.f32 %v14876_v5, %v6642_v55  ;;  %6128 = vst.msk [vmem:[#allocation2 + $0xe30] sm:$0xff] %vm264_vm3, %v5615_v31  ;;  %v15049_v51 = vpop.f32.mrf.mxu2  ;;  %v5617_v1 = vadd.f32 %v14987_v17, %v1233_v34 }
 0x43f   : > { %9335 = vst.msk [vmem:[%s11763_s4 + $0x114] sm:$0xf] %vm9265_vm5, %v8822_v0  ;;  %v8438_v9 = vsel %vm7414_vm9, %v6902_v47, %v7926_v46  ;;  %vm7542_vm10 = vcmp.gt.f32.partialorder %v7030_v44, 0.0  ;;  %v8054_v39 = vmul.f32 0.01, %v7030_v44  ;;  %v15051_v22 = vpop.f32.mrf.mxu3  ;;  %v15055_v26 = vpop.f32.mrf.mxu0 }
 0x440   : > { %v8950_v10 = vpack.c.bf16 %v8438_v9, %v8438_v9  ;;  %vm7670_vm11 = vcmp.gt.f32.partialorder %v7158_v33, 0.0  ;;  %v8182_v48 = vmul.f32 0.01, %v7158_v33  ;;  %5745 = vst.msk [vmem:[#allocation2 + $0x238] sm:$0xff] %vm264_vm3, %v5232_v35  ;;  %v15057_v31 = vpop.f32.mrf.mxu1  ;;  %v850_v35 = vld [vmem:[#allocation2 + $0x248] sm:$0xff] }
 0x441   : > { %v8566_v11 = vsel %vm7542_vm10, %v7030_v44, %v8054_v39  ;;  %v6259_v7 = vld [vmem:[#allocation2 + $0x230] sm:$0xff]  ;;  %5873 = vst.msk [vmem:[#allocation2 + $0x638] sm:$0xff] %vm264_vm3, %v5360_v50  ;;  %v5234_v59 = vadd.f32 %v14992_v3, %v850_v35  ;;  %v852_v35 = vld [vmem:[#allocation2 + $0x258] sm:$0xff] }
 0x442   : > { %9463 = vst.msk [vmem:[%s11763_s4 + $0x314] sm:$0xf] %vm9265_vm5, %v8950_v10  ;;  %v9078_v12 = vpack.c.bf16 %v8566_v11, %v8566_v11  ;;  %v8694_v62 = vsel %vm7670_vm11, %v7158_v33, %v8182_v48  ;;  %v6775_v15 = vadd.f32 %v14876_v5, %v6259_v7  ;;  %v6387_v41 = vld [vmem:[#allocation2 + $0x630] sm:$0xff] }
 0x443   : > { %v9206_v37 = vpack.c.bf16 %v8694_v62, %v8694_v62  ;;  %v6903_v54 = vadd.f32 %v14876_v5, %v6387_v41  ;;  %6001 = vst.msk [vmem:[#allocation2 + $0xa38] sm:$0xff] %vm264_vm3, %v5488_v19  ;;  %v11300_v11 = vld [vmem:[%s11574_s26 + $0x370] sm:$0xff] }
 0x444   : > { %9591 = vst.msk [vmem:[%s11763_s4 + $0x514] sm:$0xf] %vm9265_vm5, %v9078_v12  ;;  %vm7287_vm12 = vcmp.gt.f32.partialorder %v6775_v15, 0.0  ;;  %v7799_v30 = vmul.f32 0.01, %v6775_v15  ;;  %v6515_v61 = vld [vmem:[#allocation2 + $0xa30] sm:$0xff]  ;;  %v5490_v12 = vadd.f32 %v15016_v28, %v1106_v27  ;;  %v5236_v27 = vadd.f32 %v15055_v26, %v852_v35 }
 0x445   : > { %9719 = vst.msk [vmem:[%s11763_s4 + $0x714] sm:$0xf] %vm9265_vm5, %v9206_v37  ;;  %vm7415_vm13 = vcmp.gt.f32.partialorder %v6903_v54, 0.0  ;;  %v7927_v63 = vmul.f32 0.01, %v6903_v54  ;;  %v7031_v32 = vadd.f32 %v14876_v5, %v6515_v61  ;;  %v6643_v2 = vld [vmem:[#allocation2 + $0xe30] sm:$0xff] }
 0x446   : > { %v8311_v60 = vsel %vm7287_vm12, %v6775_v15, %v7799_v30  ;;  %v7159_v6 = vadd.f32 %v14876_v5, %v6643_v2  ;;  %6129 = vst.msk [vmem:[#allocation2 + $0xe38] sm:$0xff] %vm264_vm3, %v5616_v42  ;;  %v15081_v62 = vpop.f32.mrf.mxu2  ;;  %v11364_v41 = vld [vmem:[%s11574_s26 + $0x570] sm:$0xff]  ;;  %v1234_v61 = vld [vmem:[#allocation2 + $0xe48] sm:$0xff] }
 0x447   : > { %v8823_v20 = vpack.c.bf16 %v8311_v60, %v8311_v60  ;;  %v8439_v23 = vsel %vm7415_vm13, %v6903_v54, %v7927_v63  ;;  %vm7543_vm14 = vcmp.gt.f32.partialorder %v7031_v32, 0.0  ;;  %v8055_v14 = vmul.f32 0.01, %v7031_v32  ;;  %v6260_v29 = vld [vmem:[#allocation2 + $0x238] sm:$0xff]  ;;  %5746 = vst.msk [vmem:[#allocation2 + $0x240] sm:$0xff] %vm264_vm3, %v5233_v57  ;;  %v15083_v15 = vpop.f32.mrf.mxu3  ;;  %v15089_v38 = vpop.f32.mrf.mxu0 }
 0x448   : > { %v8951_v45 = vpack.c.bf16 %v8439_v23, %v8439_v23  ;;  %vm7671_vm15 = vcmp.gt.f32.partialorder %v7159_v6, 0.0  ;;  %v8183_v53 = vmul.f32 0.01, %v7159_v6  ;;  %v6776_v43 = vadd.f32 %v14876_v5, %v6260_v29  ;;  %v6388_v13 = vld [vmem:[#allocation2 + $0x638] sm:$0xff]  ;;  %5874 = vst.msk [vmem:[#allocation2 + $0x640] sm:$0xff] %vm264_vm3, %v5361_v8  ;;  %v15091_v30 = vpop.f32.mrf.mxu1  ;;  %v851_v8 = vld [vmem:[#allocation2 + $0x250] sm:$0xff]  ;;  %10978 = vmatmul.msk.bf16.gmra.mxu0 %vm3096_vm2, %v11236_v18 }
 0x449   : > { %9336 = vst.msk [vmem:[%s11763_s4 + $0x118] sm:$0xf] %vm9265_vm5, %v8823_v20  ;;  %v8567_v47 = vsel %vm7543_vm14, %v7031_v32, %v8055_v14  ;;  %v6904_v16 = vadd.f32 %v14876_v5, %v6388_v13  ;;  %11042 = vmatmul.msk.bf16.gmra.mxu1 %vm3096_vm2, %v11300_v11  ;;  %v5618_v23 = vadd.f32 %v15018_v24, %v1234_v61  ;;  %v979_v14 = vld [vmem:[#allocation2 + $0x650] sm:$0xff]  ;;  %v1236_v18 = vld [vmem:[#allocation2 + $0xe58] sm:$0xff] }
 0x44a   : > { %9464 = vst.msk [vmem:[%s11763_s4 + $0x318] sm:$0xf] %vm9265_vm5, %v8951_v45  ;;  %v9079_v50 = vpack.c.bf16 %v8567_v47, %v8567_v47  ;;  %v8695_v49 = vsel %vm7671_vm15, %v7159_v6, %v8183_v53  ;;  %vm7288_vm0 = vcmp.gt.f32.partialorder %v6776_v43, 0.0  ;;  %v7800_v0 = vmul.f32 0.01, %v6776_v43  ;;  %v6516_v46 = vld [vmem:[#allocation2 + $0xa38] sm:$0xff] }
 0x44b   : > { %v9207_v44 = vpack.c.bf16 %v8695_v49, %v8695_v49  ;;  %vm7416_vm1 = vcmp.gt.f32.partialorder %v6904_v16, 0.0  ;;  %v7928_v55 = vmul.f32 0.01, %v6904_v16  ;;  %v7032_v33 = vadd.f32 %v14876_v5, %v6516_v46  ;;  %6002 = vst.msk [vmem:[#allocation2 + $0xa40] sm:$0xff] %vm264_vm3, %v5489_v40  ;;  %v1107_v29 = vld [vmem:[#allocation2 + $0xa50] sm:$0xff]  ;;  %11106 = vmatmul.msk.bf16.gmra.mxu2 %vm3096_vm2, %v11364_v41  ;;  %v853_v41 = vld [vmem:[#allocation2 + $0x260] sm:$0xff] }
 0x44c   : > { %9592 = vst.msk [vmem:[%s11763_s4 + $0x518] sm:$0xf] %vm9265_vm5, %v9079_v50  ;;  %v8312_v17 = vsel %vm7288_vm0, %v6776_v43, %v7800_v0  ;;  %11170 = vmatmul.msk.bf16.gmra.mxu3 %vm3096_vm2, %v11428_v4  ;;  %v5235_v13 = vadd.f32 %v15021_v21, %v851_v8 }
 0x44d   : > { %9720 = vst.msk [vmem:[%s11763_s4 + $0x718] sm:$0xf] %vm9265_vm5, %v9207_v44  ;;  %v8824_v9 = vpack.c.bf16 %v8312_v17, %v8312_v17  ;;  %v8440_v39 = vsel %vm7416_vm1, %v6904_v16, %v7928_v55  ;;  %vm7544_vm4 = vcmp.gt.f32.partialorder %v7032_v33, 0.0  ;;  %v8056_v19 = vmul.f32 0.01, %v7032_v33  ;;  %v6644_v52 = vld [vmem:[#allocation2 + $0xe38] sm:$0xff] }
 0x44e   : > { %v8952_v10 = vpack.c.bf16 %v8440_v39, %v8440_v39  ;;  %v7160_v48 = vadd.f32 %v14876_v5, %v6644_v52  ;;  %v6261_v25 = vld [vmem:[#allocation2 + $0x240] sm:$0xff]  ;;  %6130 = vst.msk [vmem:[#allocation2 + $0xe40] sm:$0xff] %vm264_vm3, %v5617_v1  ;;  %v5363_v16 = vadd.f32 %v15023_v36, %v979_v14  ;;  %v1235_v1 = vld [vmem:[#allocation2 + $0xe50] sm:$0xff]  ;;  %v15114_v50 = vpop.f32.mrf.mxu2  ;;  %v5491_v44 = vadd.f32 %v15049_v51, %v1107_v29 }
 0x44f   : > { %9337 = vst.msk [vmem:[%s11763_s4 + $0x11c] sm:$0xf] %vm9265_vm5, %v8824_v9  ;;  %v8568_v3 = vsel %vm7544_vm4, %v7032_v33, %v8056_v19  ;;  %v6777_v7 = vadd.f32 %v14876_v5, %v6261_v25  ;;  %v6389_v42 = vld [vmem:[#allocation2 + $0x640] sm:$0xff]  ;;  %v15116_v49 = vpop.f32.mrf.mxu3  ;;  %v15120_v55 = vpop.f32.mrf.mxu0  ;;  %v5619_v58 = vadd.f32 %v15051_v22, %v1235_v1  ;;  %v980_v9 = vld [vmem:[#allocation2 + $0x658] sm:$0xff] }
 0x450   : > { %9465 = vst.msk [vmem:[%s11763_s4 + $0x31c] sm:$0xf] %vm9265_vm5, %v8952_v10  ;;  %v9080_v37 = vpack.c.bf16 %v8568_v3, %v8568_v3  ;;  %vm7672_vm6 = vcmp.gt.f32.partialorder %v7160_v48, 0.0  ;;  %v8184_v54 = vmul.f32 0.01, %v7160_v48  ;;  %v6905_v57 = vadd.f32 %v14876_v5, %v6389_v42  ;;  %v15122_v33 = vpop.f32.mrf.mxu1  ;;  %v11301_v42 = vld [vmem:[%s11574_s26 + $0x378] sm:$0xff] }
 0x451   : > { %vm7289_vm7 = vcmp.gt.f32.partialorder %v6777_v7, 0.0  ;;  %v7801_v28 = vmul.f32 0.01, %v6777_v7  ;;  %5747 = vst.msk [vmem:[#allocation2 + $0x248] sm:$0xff] %vm264_vm3, %v5234_v59  ;;  %v5364_v25 = vadd.f32 %v15057_v31, %v980_v9 }
 0x452   : > { %9593 = vst.msk [vmem:[%s11763_s4 + $0x51c] sm:$0xf] %vm9265_vm5, %v9080_v37  ;;  %v8696_v63 = vsel %vm7672_vm6, %v7160_v48, %v8184_v54  ;;  %vm7417_vm8 = vcmp.gt.f32.partialorder %v6905_v57, 0.0  ;;  %v7929_v32 = vmul.f32 0.01, %v6905_v57  ;;  %v6517_v2 = vld [vmem:[#allocation2 + $0xa40] sm:$0xff] }
 0x453   : > { %v9208_v60 = vpack.c.bf16 %v8696_v63, %v8696_v63  ;;  %v8313_v6 = vsel %vm7289_vm7, %v6777_v7, %v7801_v28  ;;  %v7033_v40 = vadd.f32 %v14876_v5, %v6517_v2  ;;  %5875 = vst.msk [vmem:[#allocation2 + $0x648] sm:$0xff] %vm264_vm3, %v5362_v56  ;;  %v1108_v48 = vld [vmem:[#allocation2 + $0xa58] sm:$0xff] }
 0x454   : > { %v8825_v34 = vpack.c.bf16 %v8313_v6, %v8313_v6  ;;  %v8441_v20 = vsel %vm7417_vm8, %v6905_v57, %v7929_v32  ;;  %6003 = vst.msk [vmem:[#allocation2 + $0xa48] sm:$0xff] %vm264_vm3, %v5490_v12  ;;  %v11237_v7 = vld [vmem:[%s11574_s26 + $0x178] sm:$0xff]  ;;  %v5492_v61 = vadd.f32 %v15081_v62, %v1108_v48 }
 0x455   : > { %9721 = vst.msk [vmem:[%s11763_s4 + $0x71c] sm:$0xf] %vm9265_vm5, %v9208_v60  ;;  %v8953_v45 = vpack.c.bf16 %v8441_v20, %v8441_v20  ;;  %vm7545_vm9 = vcmp.gt.f32.partialorder %v7033_v40, 0.0  ;;  %v8057_v53 = vmul.f32 0.01, %v7033_v40  ;;  %v6645_v43 = vld [vmem:[#allocation2 + $0xe40] sm:$0xff] }
 0x456   : > { %9338 = vst.msk [vmem:[%s11763_s4 + $0x120] sm:$0xf] %vm9265_vm5, %v8825_v34  ;;  %v7161_v47 = vadd.f32 %v14876_v5, %v6645_v43  ;;  %v15141_v37 = vpop.f32.mrf.mxu2  ;;  %v11365_v32 = vld [vmem:[%s11574_s26 + $0x578] sm:$0xff]  ;;  %v981_v34 = vld [vmem:[#allocation2 + $0x660] sm:$0xff] }
 0x457   : > { %9466 = vst.msk [vmem:[%s11763_s4 + $0x320] sm:$0xf] %vm9265_vm5, %v8953_v45  ;;  %v8569_v24 = vsel %vm7545_vm9, %v7033_v40, %v8057_v53  ;;  %v15143_v54 = vpop.f32.mrf.mxu3  ;;  %v15149_v8 = vpop.f32.mrf.mxu0  ;;  %v11429_v2 = vld [vmem:[%s11574_s26 + $0x778] sm:$0xff]  ;;  %v5620_v40 = vadd.f32 %v15083_v15, %v1236_v18  ;;  %v5365_v43 = vadd.f32 %v15091_v30, %v981_v34 }
 0x458   : > { %v9081_v0 = vpack.c.bf16 %v8569_v24, %v8569_v24  ;;  %vm7673_vm10 = vcmp.gt.f32.partialorder %v7161_v47, 0.0  ;;  %v8185_v46 = vmul.f32 0.01, %v7161_v47  ;;  %v6262_v21 = vld [vmem:[#allocation2 + $0x248] sm:$0xff]  ;;  %6131 = vst.msk [vmem:[#allocation2 + $0xe48] sm:$0xff] %vm264_vm3, %v5618_v23  ;;  %v15151_v63 = vpop.f32.mrf.mxu1  ;;  %v5237_v23 = vadd.f32 %v15089_v38, %v853_v41  ;;  %10979 = vmatmul.msk.bf16.gmra.mxu0 %vm3096_vm2, %v11237_v7  ;;  %v1109_v38 = vld [vmem:[#allocation2 + $0xa60] sm:$0xff] }
 0x459   : > { %v6778_v36 = vadd.f32 %v14876_v5, %v6262_v21  ;;  %5748 = vst.msk [vmem:[#allocation2 + $0x250] sm:$0xff] %vm264_vm3, %v5235_v13  ;;  %11043 = vmatmul.msk.bf16.gmra.mxu1 %vm3096_vm2, %v11301_v42 }
 0x45a   : > { %9594 = vst.msk [vmem:[%s11763_s4 + $0x520] sm:$0xf] %vm9265_vm5, %v9081_v0  ;;  %v8697_v17 = vsel %vm7673_vm10, %v7161_v47, %v8185_v46  ;;  %v6390_v59 = vld [vmem:[#allocation2 + $0x648] sm:$0xff] }
 0x45b   : > { %v9209_v39 = vpack.c.bf16 %v8697_v17, %v8697_v17  ;;  %vm7290_vm11 = vcmp.gt.f32.partialorder %v6778_v36, 0.0  ;;  %v7802_v51 = vmul.f32 0.01, %v6778_v36  ;;  %v6906_v19 = vadd.f32 %v14876_v5, %v6390_v59  ;;  %v6518_v52 = vld [vmem:[#allocation2 + $0xa48] sm:$0xff]  ;;  %5876 = vst.msk [vmem:[#allocation2 + $0x650] sm:$0xff] %vm264_vm3, %v5363_v16  ;;  %11107 = vmatmul.msk.bf16.gmra.mxu2 %vm3096_vm2, %v11365_v32 }
 0x45c   : > { %v7034_v10 = vadd.f32 %v14876_v5, %v6518_v52  ;;  %6004 = vst.msk [vmem:[#allocation2 + $0xa50] sm:$0xff] %vm264_vm3, %v5491_v44  ;;  %11171 = vmatmul.msk.bf16.gmra.mxu3 %vm3096_vm2, %v11429_v2  ;;  %v5493_v44 = vadd.f32 %v15114_v50, %v1109_v38 }
 0x45d   : > { %9722 = vst.msk [vmem:[%s11763_s4 + $0x720] sm:$0xf] %vm9265_vm5, %v9209_v39  ;;  %v8314_v22 = vsel %vm7290_vm11, %v6778_v36, %v7802_v51  ;;  %vm7418_vm12 = vcmp.gt.f32.partialorder %v6906_v19, 0.0  ;;  %v7930_v26 = vmul.f32 0.01, %v6906_v19  ;;  %v1237_v36 = vld [vmem:[#allocation2 + $0xe60] sm:$0xff] }
 0x45e   : > { %v8826_v11 = vpack.c.bf16 %v8314_v22, %v8314_v22  ;;  %vm7546_vm13 = vcmp.gt.f32.partialorder %v7034_v10, 0.0  ;;  %v8058_v3 = vmul.f32 0.01, %v7034_v10  ;;  %6132 = vst.msk [vmem:[#allocation2 + $0xe50] sm:$0xff] %vm264_vm3, %v5619_v58  ;;  %v15178_v17 = vpop.f32.mrf.mxu2  ;;  %v5621_v22 = vadd.f32 %v15116_v49, %v1237_v36  ;;  %v1239_v36 = vld [vmem:[#allocation2 + $0xe70] sm:$0xff] }
 0x45f   : > { %v8442_v56 = vsel %vm7418_vm12, %v6906_v19, %v7930_v26  ;;  %v6646_v12 = vld [vmem:[#allocation2 + $0xe48] sm:$0xff]  ;;  %5749 = vst.msk [vmem:[#allocation2 + $0x258] sm:$0xff] %vm264_vm3, %v5236_v27  ;;  %v15180_v59 = vpop.f32.mrf.mxu3  ;;  %v15184_v51 = vpop.f32.mrf.mxu0 }
 0x460   : > { %9339 = vst.msk [vmem:[%s11763_s4 + $0x124] sm:$0xf] %vm9265_vm5, %v8826_v11  ;;  %v8954_v31 = vpack.c.bf16 %v8442_v56, %v8442_v56  ;;  %v8570_v57 = vsel %vm7546_vm13, %v7034_v10, %v8058_v3  ;;  %v7162_v4 = vadd.f32 %v14876_v5, %v6646_v12  ;;  %v6263_v28 = vld [vmem:[#allocation2 + $0x250] sm:$0xff]  ;;  %v15186_v19 = vpop.f32.mrf.mxu1  ;;  %v854_v26 = vld [vmem:[#allocation2 + $0x268] sm:$0xff] }
 0x461   : > { %v9082_v60 = vpack.c.bf16 %v8570_v57, %v8570_v57  ;;  %v6779_v6 = vadd.f32 %v14876_v5, %v6263_v28  ;;  %5877 = vst.msk [vmem:[#allocation2 + $0x658] sm:$0xff] %vm264_vm3, %v5364_v25  ;;  %v982_v25 = vld [vmem:[#allocation2 + $0x668] sm:$0xff]  ;;  %v5238_v57 = vadd.f32 %v15120_v55, %v854_v26  ;;  %v5623_v26 = vadd.f32 %v15180_v59, %v1239_v36 }
 0x462   : > { %9467 = vst.msk [vmem:[%s11763_s4 + $0x324] sm:$0xf] %vm9265_vm5, %v8954_v31  ;;  %vm7674_vm14 = vcmp.gt.f32.partialorder %v7162_v4, 0.0  ;;  %v8186_v20 = vmul.f32 0.01, %v7162_v4  ;;  %v6391_v62 = vld [vmem:[#allocation2 + $0x650] sm:$0xff] }
 0x463   : > { %9595 = vst.msk [vmem:[%s11763_s4 + $0x524] sm:$0xf] %vm9265_vm5, %v9082_v60  ;;  %vm7291_vm15 = vcmp.gt.f32.partialorder %v6779_v6, 0.0  ;;  %v7803_v14 = vmul.f32 0.01, %v6779_v6  ;;  %v6907_v29 = vadd.f32 %v14876_v5, %v6391_v62  ;;  %v6519_v45 = vld [vmem:[#allocation2 + $0xa50] sm:$0xff] }
 0x464   : > { %v8698_v15 = vsel %vm7674_vm14, %v7162_v4, %v8186_v20  ;;  %v7035_v53 = vadd.f32 %v14876_v5, %v6519_v45  ;;  %6005 = vst.msk [vmem:[#allocation2 + $0xa58] sm:$0xff] %vm264_vm3, %v5492_v61  ;;  %v5366_v4 = vadd.f32 %v15122_v33, %v982_v25  ;;  %v1110_v28 = vld [vmem:[#allocation2 + $0xa68] sm:$0xff]  ;;  %v11238_v61 = vld [vmem:[%s11574_s26 + $0x180] sm:$0xff]  ;;  %v856_v25 = vld [vmem:[#allocation2 + $0x278] sm:$0xff] }
 0x465   : > { %v9210_v13 = vpack.c.bf16 %v8698_v15, %v8698_v15  ;;  %v8315_v47 = vsel %vm7291_vm15, %v6779_v6, %v7803_v14  ;;  %vm7419_vm0 = vcmp.gt.f32.partialorder %v6907_v29, 0.0  ;;  %v7931_v24 = vmul.f32 0.01, %v6907_v29  ;;  %v6647_v16 = vld [vmem:[#allocation2 + $0xe50] sm:$0xff]  ;;  %6133 = vst.msk [vmem:[#allocation2 + $0xe58] sm:$0xff] %vm264_vm3, %v5620_v40  ;;  %v1238_v6 = vld [vmem:[#allocation2 + $0xe68] sm:$0xff] }
 0x466   : > { %v8827_v1 = vpack.c.bf16 %v8315_v47, %v8315_v47  ;;  %vm7547_vm1 = vcmp.gt.f32.partialorder %v7035_v53, 0.0  ;;  %v8059_v35 = vmul.f32 0.01, %v7035_v53  ;;  %v7163_v0 = vadd.f32 %v14876_v5, %v6647_v16  ;;  %v6264_v30 = vld [vmem:[#allocation2 + $0x258] sm:$0xff]  ;;  %5750 = vst.msk [vmem:[#allocation2 + $0x260] sm:$0xff] %vm264_vm3, %v5237_v23  ;;  %v11302_v40 = vld [vmem:[%s11574_s26 + $0x380] sm:$0xff]  ;;  %v15208_v55 = vpop.f32.mrf.mxu2 }
 0x467   : > { %9723 = vst.msk [vmem:[%s11763_s4 + $0x724] sm:$0xf] %vm9265_vm5, %v9210_v13  ;;  %v8443_v46 = vsel %vm7419_vm0, %v6907_v29, %v7931_v24  ;;  %v6780_v21 = vadd.f32 %v14876_v5, %v6264_v30  ;;  %v15210_v33 = vpop.f32.mrf.mxu3  ;;  %v11366_v20 = vld [vmem:[%s11574_s26 + $0x580] sm:$0xff]  ;;  %v15216_v45 = vpop.f32.mrf.mxu0  ;;  %v5494_v24 = vadd.f32 %v15141_v37, %v1110_v28  ;;  %v855_v16 = vld [vmem:[#allocation2 + $0x270] sm:$0xff] }
 0x468   : > { %9340 = vst.msk [vmem:[%s11763_s4 + $0x128] sm:$0xf] %vm9265_vm5, %v8827_v1  ;;  %v8955_v58 = vpack.c.bf16 %v8443_v46, %v8443_v46  ;;  %v8571_v27 = vsel %vm7547_vm1, %v7035_v53, %v8059_v35  ;;  %vm7675_vm4 = vcmp.gt.f32.partialorder %v7163_v0, 0.0  ;;  %v8187_v9 = vmul.f32 0.01, %v7163_v0  ;;  %v6392_v39 = vld [vmem:[#allocation2 + $0x658] sm:$0xff]  ;;  %v15218_v15 = vpop.f32.mrf.mxu1  ;;  %10980 = vmatmul.msk.bf16.gmra.mxu0 %vm3096_vm2, %v11238_v61 }
 0x469   : > { %v9083_v52 = vpack.c.bf16 %v8571_v27, %v8571_v27  ;;  %vm7292_vm6 = vcmp.gt.f32.partialorder %v6780_v21, 0.0  ;;  %v7804_v50 = vmul.f32 0.01, %v6780_v21  ;;  %v6908_v10 = vadd.f32 %v14876_v5, %v6392_v39  ;;  %5878 = vst.msk [vmem:[#allocation2 + $0x660] sm:$0xff] %vm264_vm3, %v5365_v43  ;;  %v11430_v62 = vld [vmem:[%s11574_s26 + $0x780] sm:$0xff]  ;;  %v983_v1 = vld [vmem:[#allocation2 + $0x670] sm:$0xff]  ;;  %11044 = vmatmul.msk.bf16.gmra.mxu1 %vm3096_vm2, %v11302_v40 }
 0x46a   : > { %9468 = vst.msk [vmem:[%s11763_s4 + $0x328] sm:$0xf] %vm9265_vm5, %v8955_v58  ;;  %v8699_v48 = vsel %vm7675_vm4, %v7163_v0, %v8187_v9  ;;  %v15234_v37 = vld [vmem:[%s16747_s2] ss:$0 sm:$0xff]  ;;  %v5367_v39 = vadd.f32 %v15151_v63, %v983_v1  ;;  %v1240_v61 = vld [vmem:[#allocation2 + $0xe78] sm:$0xff] }
 0x46b   : > { %9596 = vst.msk [vmem:[%s11763_s4 + $0x528] sm:$0xf] %vm9265_vm5, %v9083_v52  ;;  %v9211_v18 = vpack.c.bf16 %v8699_v48, %v8699_v48  ;;  %v8316_v11 = vsel %vm7292_vm6, %v6780_v21, %v7804_v50  ;;  %vm7420_vm7 = vcmp.gt.f32.partialorder %v6908_v10, 0.0  ;;  %v7932_v3 = vmul.f32 0.01, %v6908_v10  ;;  %v6520_v7 = vld [vmem:[#allocation2 + $0xa58] sm:$0xff]  ;;  %11108 = vmatmul.msk.bf16.gmra.mxu2 %vm3096_vm2, %v11366_v20 }
 0x46c   : > { %v8828_v42 = vpack.c.bf16 %v8316_v11, %v8316_v11  ;;  %v7036_v56 = vadd.f32 %v14876_v5, %v6520_v7  ;;  %v6648_v12 = vld [vmem:[#allocation2 + $0xe58] sm:$0xff]  ;;  %6006 = vst.msk [vmem:[#allocation2 + $0xa60] sm:$0xff] %vm264_vm3, %v5493_v44  ;;  %11172 = vmatmul.msk.bf16.gmra.mxu3 %vm3096_vm2, %v11430_v62  ;;  %v5239_v21 = vadd.f32 %v15149_v8, %v855_v16  ;;  %v1111_v44 = vld [vmem:[#allocation2 + $0xa70] sm:$0xff]  ;;  %v857_v40 = vld [vmem:[#allocation2 + $0x280] sm:$0xff] }
 0x46d   : > { %9724 = vst.msk [vmem:[%s11763_s4 + $0x728] sm:$0xf] %vm9265_vm5, %v9211_v18  ;;  %v8444_v49 = vsel %vm7420_vm7, %v6908_v10, %v7932_v3  ;;  %v7164_v41 = vadd.f32 %v14876_v5, %v6648_v12  ;;  %v6265_v31 = vld [vmem:[#allocation2 + $0x260] sm:$0xff]  ;;  %v5240_v12 = vadd.f32 %v15184_v51, %v856_v25 }
 0x46e   : > { %9341 = vst.msk [vmem:[%s11763_s4 + $0x12c] sm:$0xf] %vm9265_vm5, %v8828_v42  ;;  %v8956_v32 = vpack.c.bf16 %v8444_v49, %v8444_v49  ;;  %vm7548_vm8 = vcmp.gt.f32.partialorder %v7036_v56, 0.0  ;;  %v8060_v2 = vmul.f32 0.01, %v7036_v56  ;;  %v6781_v60 = vadd.f32 %v14876_v5, %v6265_v31  ;;  %v15246_v50 = vpop.f32.mrf.mxu2  ;;  %v984_v49 = vld [vmem:[#allocation2 + $0x678] sm:$0xff] }
 0x46f   : > { %vm7676_vm9 = vcmp.gt.f32.partialorder %v7164_v41, 0.0  ;;  %v8188_v34 = vmul.f32 0.01, %v7164_v41  ;;  %6134 = vst.msk [vmem:[#allocation2 + $0xe60] sm:$0xff] %vm264_vm3, %v5621_v22  ;;  %v15248_v10 = vpop.f32.mrf.mxu3  ;;  %v5495_v22 = vadd.f32 %v15178_v17, %v1111_v44  ;;  %v15254_v18 = vpop.f32.mrf.mxu0 }
 0x470   : > { %9469 = vst.msk [vmem:[%s11763_s4 + $0x32c] sm:$0xf] %vm9265_vm5, %v8956_v32  ;;  %v8572_v23 = vsel %vm7548_vm8, %v7036_v56, %v8060_v2  ;;  %vm7293_vm10 = vcmp.gt.f32.partialorder %v6781_v60, 0.0  ;;  %v7805_v14 = vmul.f32 0.01, %v6781_v60  ;;  %v6393_v29 = vld [vmem:[#allocation2 + $0x660] sm:$0xff]  ;;  %v15256_v63 = vpop.f32.mrf.mxu1 }
 0x471   : > { %v9084_v53 = vpack.c.bf16 %v8572_v23, %v8572_v23  ;;  %v8700_v43 = vsel %vm7676_vm9, %v7164_v41, %v8188_v34  ;;  %v6909_v38 = vadd.f32 %v14876_v5, %v6393_v29  ;;  %5751 = vst.msk [vmem:[#allocation2 + $0x268] sm:$0xff] %vm264_vm3, %v5238_v57  ;;  %v5622_v5 = vadd.f32 %v15143_v54, %v1238_v6  ;;  %v1112_v57 = vld [vmem:[#allocation2 + $0xa78] sm:$0xff]  ;;  %v11239_v34 = vld [vmem:[%s11574_s26 + $0x188] sm:$0xff] }
 0x472   : > { %v9212_v13 = vpack.c.bf16 %v8700_v43, %v8700_v43  ;;  %v8317_v47 = vsel %vm7293_vm10, %v6781_v60, %v7805_v14  ;;  %5879 = vst.msk [vmem:[#allocation2 + $0x668] sm:$0xff] %vm264_vm3, %v5366_v4  ;;  %v5368_v6 = vadd.f32 %v15186_v19, %v984_v49  ;;  %v5496_v23 = vadd.f32 %v15208_v55, %v1112_v57  ;;  %v11367_v43 = vld [vmem:[%s11574_s26 + $0x588] sm:$0xff] }
 0x473   : > { %9597 = vst.msk [vmem:[%s11763_s4 + $0x52c] sm:$0xf] %vm9265_vm5, %v9084_v53  ;;  %v8829_v35 = vpack.c.bf16 %v8317_v47, %v8317_v47  ;;  %vm7421_vm11 = vcmp.gt.f32.partialorder %v6909_v38, 0.0  ;;  %v7933_v0 = vmul.f32 0.01, %v6909_v38  ;;  %v6521_v30 = vld [vmem:[#allocation2 + $0xa60] sm:$0xff]  ;;  %v5624_v47 = vadd.f32 %v15210_v33, %v1240_v61 }
 0x474   : > { %9725 = vst.msk [vmem:[%s11763_s4 + $0x72c] sm:$0xf] %vm9265_vm5, %v9212_v13  ;;  %v7037_v46 = vadd.f32 %v15234_v37, %v6521_v30  ;;  %v11303_v53 = vld [vmem:[%s11574_s26 + $0x388] sm:$0xff] }
 0x475   : > { %9342 = vst.msk [vmem:[%s11763_s4 + $0x130] sm:$0xf] %vm9265_vm5, %v8829_v35  ;;  %v8445_v54 = vsel %vm7421_vm11, %v6909_v38, %v7933_v0  ;;  %v11431_v38 = vld [vmem:[%s11574_s26 + $0x788] sm:$0xff] }
 0x476   : > { %v8957_v58 = vpack.c.bf16 %v8445_v54, %v8445_v54  ;;  %vm7549_vm12 = vcmp.gt.f32.partialorder %v7037_v46, 0.0  ;;  %v8061_v27 = vmul.f32 0.01, %v7037_v46  ;;  %v6649_v9 = vld [vmem:[#allocation2 + $0xe60] sm:$0xff]  ;;  %6007 = vst.msk [vmem:[#allocation2 + $0xa68] sm:$0xff] %vm264_vm3, %v5494_v24  ;;  %v15275_v14 = vpop.f32.mrf.mxu2 }
 0x477   : > { %v7165_v52 = vadd.f32 %v15234_v37, %v6649_v9  ;;  %6135 = vst.msk [vmem:[#allocation2 + $0xe68] sm:$0xff] %vm264_vm3, %v5622_v5  ;;  %v15277_v29 = vpop.f32.mrf.mxu3  ;;  %v15285_v24 = vpop.f32.mrf.mxu0  ;;  %v5241_v5 = vadd.f32 %v15216_v45, %v857_v40 }
 0x478   : > { %9470 = vst.msk [vmem:[%s11763_s4 + $0x330] sm:$0xf] %vm9265_vm5, %v8957_v58  ;;  %v8573_v8 = vsel %vm7549_vm12, %v7037_v46, %v8061_v27  ;;  %v6266_v48 = vld [vmem:[#allocation2 + $0x268] sm:$0xff]  ;;  %v15287_v16 = vpop.f32.mrf.mxu1  ;;  %v985_v46 = vld [vmem:[#allocation2 + $0x680] sm:$0xff]  ;;  %10981 = vmatmul.msk.bf16.gmra.mxu0 %vm3096_vm2, %v11239_v34 }
 0x479   : > { %v9085_v11 = vpack.c.bf16 %v8573_v8, %v8573_v8  ;;  %vm7677_vm13 = vcmp.gt.f32.partialorder %v7165_v52, 0.0  ;;  %v8189_v3 = vmul.f32 0.01, %v7165_v52  ;;  %v6782_v7 = vadd.f32 %v15234_v37, %v6266_v48  ;;  %v6394_v42 = vld [vmem:[#allocation2 + $0x668] sm:$0xff]  ;;  %5752 = vst.msk [vmem:[#allocation2 + $0x270] sm:$0xff] %vm264_vm3, %v5239_v21  ;;  %11045 = vmatmul.msk.bf16.gmra.mxu1 %vm3096_vm2, %v11303_v53  ;;  %v1113_v8 = vld [vmem:[#allocation2 + $0xa80] sm:$0xff] }
 0x47a   : > { %v6910_v56 = vadd.f32 %v15234_v37, %v6394_v42  ;;  %5880 = vst.msk [vmem:[#allocation2 + $0x670] sm:$0xff] %vm264_vm3, %v5367_v39  ;;  %v986_v53 = vld [vmem:[#allocation2 + $0x688] sm:$0xff] }
 0x47b   : > { %9598 = vst.msk [vmem:[%s11763_s4 + $0x530] sm:$0xf] %vm9265_vm5, %v9085_v11  ;;  %v8701_v17 = vsel %vm7677_vm13, %v7165_v52, %v8189_v3  ;;  %vm7294_vm14 = vcmp.gt.f32.partialorder %v6782_v7, 0.0  ;;  %v7806_v59 = vmul.f32 0.01, %v6782_v7  ;;  %11109 = vmatmul.msk.bf16.gmra.mxu2 %vm3096_vm2, %v11367_v43  ;;  %v5369_v52 = vadd.f32 %v15218_v15, %v985_v46  ;;  %v1114_v43 = vld [vmem:[#allocation2 + $0xa88] sm:$0xff] }
 0x47c   : > { %v9213_v41 = vpack.c.bf16 %v8701_v17, %v8701_v17  ;;  %vm7422_vm15 = vcmp.gt.f32.partialorder %v6910_v56, 0.0  ;;  %v7934_v31 = vmul.f32 0.01, %v6910_v56  ;;  %6008 = vst.msk [vmem:[#allocation2 + $0xa70] sm:$0xff] %vm264_vm3, %v5495_v22  ;;  %11173 = vmatmul.msk.bf16.gmra.mxu3 %vm3096_vm2, %v11431_v38  ;;  %v5497_v17 = vadd.f32 %v15246_v50, %v1113_v8 }
 0x47d   : > { %v8318_v4 = vsel %vm7294_vm14, %v6782_v7, %v7806_v59  ;;  %v6522_v28 = vld [vmem:[#allocation2 + $0xa68] sm:$0xff]  ;;  %6136 = vst.msk [vmem:[#allocation2 + $0xe70] sm:$0xff] %vm264_vm3, %v5623_v26  ;;  %v1241_v59 = vld [vmem:[#allocation2 + $0xe80] sm:$0xff] }
 0x47e   : > { %9726 = vst.msk [vmem:[%s11763_s4 + $0x730] sm:$0xf] %vm9265_vm5, %v9213_v41  ;;  %v8830_v32 = vpack.c.bf16 %v8318_v4, %v8318_v4  ;;  %v8446_v51 = vsel %vm7422_vm15, %v6910_v56, %v7934_v31  ;;  %v7038_v2 = vadd.f32 %v15234_v37, %v6522_v28  ;;  %v6650_v60 = vld [vmem:[#allocation2 + $0xe68] sm:$0xff]  ;;  %v15310_v42 = vpop.f32.mrf.mxu2 }
 0x47f   : > { %v8958_v20 = vpack.c.bf16 %v8446_v51, %v8446_v51  ;;  %v7166_v62 = vadd.f32 %v15234_v37, %v6650_v60  ;;  %5753 = vst.msk [vmem:[#allocation2 + $0x278] sm:$0xff] %vm264_vm3, %v5240_v12  ;;  %v15312_v56 = vpop.f32.mrf.mxu3  ;;  %v858_v12 = vld [vmem:[#allocation2 + $0x288] sm:$0xff]  ;;  %v15317_v49 = vpop.f32.mrf.mxu0 }
 0x480   : > { %9343 = vst.msk [vmem:[%s11763_s4 + $0x134] sm:$0xf] %vm9265_vm5, %v8830_v32  ;;  %vm7550_vm0 = vcmp.gt.f32.partialorder %v7038_v2, 0.0  ;;  %v8062_v19 = vmul.f32 0.01, %v7038_v2  ;;  %v6267_v13 = vld [vmem:[#allocation2 + $0x270] sm:$0xff]  ;;  %v15319_v41 = vpop.f32.mrf.mxu1  ;;  %v5242_v40 = vadd.f32 %v15254_v18, %v858_v12 }
 0x481   : > { %9471 = vst.msk [vmem:[%s11763_s4 + $0x334] sm:$0xf] %vm9265_vm5, %v8958_v20  ;;  %vm7678_vm1 = vcmp.gt.f32.partialorder %v7166_v62, 0.0  ;;  %v8190_v55 = vmul.f32 0.01, %v7166_v62  ;;  %v6783_v1 = vadd.f32 %v15234_v37, %v6267_v13  ;;  %v6395_v35 = vld [vmem:[#allocation2 + $0x670] sm:$0xff] }
 0x482   : > { %v8574_v0 = vsel %vm7550_vm0, %v7038_v2, %v8062_v19  ;;  %v6911_v30 = vadd.f32 %v15234_v37, %v6395_v35  ;;  %5881 = vst.msk [vmem:[#allocation2 + $0x678] sm:$0xff] %vm264_vm3, %v5368_v6  ;;  %v5625_v6 = vadd.f32 %v15248_v10, %v1241_v59  ;;  %v1243_v59 = vld [vmem:[#allocation2 + $0xe90] sm:$0xff] }
 0x483   : > { %v9086_v33 = vpack.c.bf16 %v8574_v0, %v8574_v0  ;;  %v8702_v54 = vsel %vm7678_vm1, %v7166_v62, %v8190_v55  ;;  %vm7295_vm4 = vcmp.gt.f32.partialorder %v6783_v1, 0.0  ;;  %v7807_v21 = vmul.f32 0.01, %v6783_v1  ;;  %v6523_v44 = vld [vmem:[#allocation2 + $0xa70] sm:$0xff]  ;;  %6009 = vst.msk [vmem:[#allocation2 + $0xa78] sm:$0xff] %vm264_vm3, %v5496_v23  ;;  %v1242_v55 = vld [vmem:[#allocation2 + $0xe88] sm:$0xff] }
 0x484   : > { %v9214_v36 = vpack.c.bf16 %v8702_v54, %v8702_v54  ;;  %vm7423_vm6 = vcmp.gt.f32.partialorder %v6911_v30, 0.0  ;;  %v7935_v58 = vmul.f32 0.01, %v6911_v30  ;;  %v7039_v27 = vadd.f32 %v15234_v37, %v6523_v44  ;;  %v6651_v45 = vld [vmem:[#allocation2 + $0xe70] sm:$0xff]  ;;  %6137 = vst.msk [vmem:[#allocation2 + $0xe78] sm:$0xff] %vm264_vm3, %v5624_v47 }
 0x485   : > { %9599 = vst.msk [vmem:[%s11763_s4 + $0x534] sm:$0xf] %vm9265_vm5, %v9086_v33  ;;  %v8319_v9 = vsel %vm7295_vm4, %v6783_v1, %v7807_v21  ;;  %v7167_v39 = vadd.f32 %v15234_v37, %v6651_v45  ;;  %v11240_v0 = vld [vmem:[%s11574_s26 + $0x190] sm:$0xff]  ;;  %v5370_v33 = vadd.f32 %v15256_v63, %v986_v53  ;;  %v5626_v8 = vadd.f32 %v15277_v29, %v1242_v55 }
 0x486   : > { %9727 = vst.msk [vmem:[%s11763_s4 + $0x734] sm:$0xf] %vm9265_vm5, %v9214_v36  ;;  %v8831_v48 = vpack.c.bf16 %v8319_v9, %v8319_v9  ;;  %v8447_v22 = vsel %vm7423_vm6, %v6911_v30, %v7935_v58  ;;  %vm7551_vm7 = vcmp.gt.f32.partialorder %v7039_v27, 0.0  ;;  %v8063_v26 = vmul.f32 0.01, %v7039_v27  ;;  %v6268_v25 = vld [vmem:[#allocation2 + $0x278] sm:$0xff]  ;;  %v15338_v1 = vpop.f32.mrf.mxu2 }
 0x487   : > { %v8959_v11 = vpack.c.bf16 %v8447_v22, %v8447_v22  ;;  %vm7679_vm8 = vcmp.gt.f32.partialorder %v7167_v39, 0.0  ;;  %v8191_v3 = vmul.f32 0.01, %v7167_v39  ;;  %v6784_v7 = vadd.f32 %v15234_v37, %v6268_v25  ;;  %5754 = vst.msk [vmem:[#allocation2 + $0x280] sm:$0xff] %vm264_vm3, %v5241_v5  ;;  %v15340_v35 = vpop.f32.mrf.mxu3  ;;  %v11304_v30 = vld [vmem:[%s11574_s26 + $0x390] sm:$0xff]  ;;  %v15346_v21 = vpop.f32.mrf.mxu0 }
 0x488   : > { %9344 = vst.msk [vmem:[%s11763_s4 + $0x138] sm:$0xf] %vm9265_vm5, %v8831_v48  ;;  %v8575_v15 = vsel %vm7551_vm7, %v7039_v27, %v8063_v26  ;;  %v859_v54 = vld [vmem:[#allocation2 + $0x290] sm:$0xff]  ;;  %v15348_v44 = vpop.f32.mrf.mxu1  ;;  %10982 = vmatmul.msk.bf16.gmra.mxu0 %vm3096_vm2, %v11240_v0 }
 0x489   : > { %9472 = vst.msk [vmem:[%s11763_s4 + $0x338] sm:$0xf] %vm9265_vm5, %v8959_v11  ;;  %v9087_v31 = vpack.c.bf16 %v8575_v15, %v8575_v15  ;;  %v8703_v57 = vsel %vm7679_vm8, %v7167_v39, %v8191_v3  ;;  %vm7296_vm9 = vcmp.gt.f32.partialorder %v6784_v7, 0.0  ;;  %v7808_v4 = vmul.f32 0.01, %v6784_v7  ;;  %v6396_v28 = vld [vmem:[#allocation2 + $0x678] sm:$0xff]  ;;  %11046 = vmatmul.msk.bf16.gmra.mxu1 %vm3096_vm2, %v11304_v30 }
 0x48a   : > { %v9215_v61 = vpack.c.bf16 %v8703_v57, %v8703_v57  ;;  %v6912_v32 = vadd.f32 %v15234_v37, %v6396_v28  ;;  %v6524_v51 = vld [vmem:[#allocation2 + $0xa78] sm:$0xff]  ;;  %5882 = vst.msk [vmem:[#allocation2 + $0x680] sm:$0xff] %vm264_vm3, %v5369_v52  ;;  %v11368_v36 = vld [vmem:[%s11574_s26 + $0x590] sm:$0xff]  ;;  %v5498_v39 = vadd.f32 %v15275_v14, %v1114_v43  ;;  %v5243_v11 = vadd.f32 %v15285_v24, %v859_v54  ;;  %v861_v30 = vld [vmem:[#allocation2 + $0x2a0] sm:$0xff] }
 0x48b   : > { %9600 = vst.msk [vmem:[%s11763_s4 + $0x538] sm:$0xf] %vm9265_vm5, %v9087_v31  ;;  %v8320_v50 = vsel %vm7296_vm9, %v6784_v7, %v7808_v4  ;;  %v7040_v2 = vadd.f32 %v15234_v37, %v6524_v51  ;;  %v6652_v60 = vld [vmem:[#allocation2 + $0xe78] sm:$0xff]  ;;  %v11432_v58 = vld [vmem:[%s11574_s26 + $0x790] sm:$0xff]  ;;  %11110 = vmatmul.msk.bf16.gmra.mxu2 %vm3096_vm2, %v11368_v36 }
 0x48c   : > { %9728 = vst.msk [vmem:[%s11763_s4 + $0x738] sm:$0xf] %vm9265_vm5, %v9215_v61  ;;  %v8832_v34 = vpack.c.bf16 %v8320_v50, %v8320_v50  ;;  %vm7424_vm10 = vcmp.gt.f32.partialorder %v6912_v32, 0.0  ;;  %v7936_v20 = vmul.f32 0.01, %v6912_v32  ;;  %v7168_v62 = vadd.f32 %v15234_v37, %v6652_v60  ;;  %v987_v48 = vld [vmem:[#allocation2 + $0x690] sm:$0xff]  ;;  %11174 = vmatmul.msk.bf16.gmra.mxu3 %vm3096_vm2, %v11432_v58 }
 0x48d   : > { %vm7552_vm11 = vcmp.gt.f32.partialorder %v7040_v2, 0.0  ;;  %v8064_v23 = vmul.f32 0.01, %v7040_v2  ;;  %6010 = vst.msk [vmem:[#allocation2 + $0xa80] sm:$0xff] %vm264_vm3, %v5497_v17  ;;  %v1115_v22 = vld [vmem:[#allocation2 + $0xa90] sm:$0xff]  ;;  %v5371_v15 = vadd.f32 %v15287_v16, %v987_v48  ;;  %v5627_v50 = vadd.f32 %v15312_v56, %v1243_v59 }
 0x48e   : > { %9345 = vst.msk [vmem:[%s11763_s4 + $0x13c] sm:$0xf] %vm9265_vm5, %v8832_v34  ;;  %v8448_v10 = vsel %vm7424_vm10, %v6912_v32, %v7936_v20  ;;  %vm7680_vm12 = vcmp.gt.f32.partialorder %v7168_v62, 0.0  ;;  %v8192_v18 = vmul.f32 0.01, %v7168_v62  ;;  %v6269_v38 = vld [vmem:[#allocation2 + $0x280] sm:$0xff]  ;;  %v5499_v17 = vadd.f32 %v15310_v42, %v1115_v22  ;;  %v15375_v4 = vpop.f32.mrf.mxu2 }
 0x48f   : > { %v8960_v19 = vpack.c.bf16 %v8448_v10, %v8448_v10  ;;  %v8576_v13 = vsel %vm7552_vm11, %v7040_v2, %v8064_v23  ;;  %v6785_v47 = vadd.f32 %v15234_v37, %v6269_v38  ;;  %6138 = vst.msk [vmem:[#allocation2 + $0xe80] sm:$0xff] %vm264_vm3, %v5625_v6  ;;  %v15377_v28 = vpop.f32.mrf.mxu3  ;;  %v15381_v16 = vpop.f32.mrf.mxu0  ;;  %v860_v2 = vld [vmem:[#allocation2 + $0x298] sm:$0xff] }
 0x490   : > { %v9088_v5 = vpack.c.bf16 %v8576_v13, %v8576_v13  ;;  %v8704_v46 = vsel %vm7680_vm12, %v7168_v62, %v8192_v18  ;;  %5755 = vst.msk [vmem:[#allocation2 + $0x288] sm:$0xff] %vm264_vm3, %v5242_v40  ;;  %v15383_v42 = vpop.f32.mrf.mxu1  ;;  %v988_v40 = vld [vmem:[#allocation2 + $0x698] sm:$0xff]  ;;  %v5244_v10 = vadd.f32 %v15317_v49, %v860_v2 }
 0x491   : > { %9473 = vst.msk [vmem:[%s11763_s4 + $0x33c] sm:$0xf] %vm9265_vm5, %v8960_v19  ;;  %v9216_v27 = vpack.c.bf16 %v8704_v46, %v8704_v46  ;;  %vm7297_vm13 = vcmp.gt.f32.partialorder %v6785_v47, 0.0  ;;  %v7809_v45 = vmul.f32 0.01, %v6785_v47  ;;  %v6397_v9 = vld [vmem:[#allocation2 + $0x680] sm:$0xff]  ;;  %v5372_v19 = vadd.f32 %v15319_v41, %v988_v40 }
 0x492   : > { %9601 = vst.msk [vmem:[%s11763_s4 + $0x53c] sm:$0xf] %vm9265_vm5, %v9088_v5  ;;  %v6913_v52 = vadd.f32 %v15234_v37, %v6397_v9  ;;  %v1116_v62 = vld [vmem:[#allocation2 + $0xa98] sm:$0xff] }
 0x493   : > { %9729 = vst.msk [vmem:[%s11763_s4 + $0x73c] sm:$0xf] %vm9265_vm5, %v9216_v27  ;;  %v8321_v63 = vsel %vm7297_vm13, %v6785_v47, %v7809_v45  ;;  %v1244_v13 = vld [vmem:[#allocation2 + $0xe98] sm:$0xff]  ;;  %v5500_v0 = vadd.f32 %v15338_v1, %v1116_v62 }
 0x494   : > { %v8833_v26 = vpack.c.bf16 %v8321_v63, %v8321_v63  ;;  %vm7425_vm14 = vcmp.gt.f32.partialorder %v6913_v52, 0.0  ;;  %v7937_v25 = vmul.f32 0.01, %v6913_v52  ;;  %v6525_v14 = vld [vmem:[#allocation2 + $0xa80] sm:$0xff]  ;;  %5883 = vst.msk [vmem:[#allocation2 + $0x688] sm:$0xff] %vm264_vm3, %v5370_v33  ;;  %v5628_v1 = vadd.f32 %v15340_v35, %v1244_v13  ;;  %v11241_v45 = vld [vmem:[%s11574_s26 + $0x198] sm:$0xff] }
 0x495   : > { %v7041_v29 = vadd.f32 %v15234_v37, %v6525_v14  ;;  %6011 = vst.msk [vmem:[#allocation2 + $0xa88] sm:$0xff] %vm264_vm3, %v5498_v39  ;;  %v11305_v9 = vld [vmem:[%s11574_s26 + $0x398] sm:$0xff] }
 0x496   : > { %9346 = vst.msk [vmem:[%s11763_s4 + $0x140] sm:$0xf] %vm9265_vm5, %v8833_v26  ;;  %v8449_v3 = vsel %vm7425_vm14, %v6913_v52, %v7937_v25  ;;  %v6653_v7 = vld [vmem:[#allocation2 + $0xe80] sm:$0xff]  ;;  %v15403_v41 = vpop.f32.mrf.mxu2  ;;  %v11369_v39 = vld [vmem:[%s11574_s26 + $0x598] sm:$0xff] }
 0x497   : > { %v8961_v12 = vpack.c.bf16 %v8449_v3, %v8449_v3  ;;  %vm7553_vm15 = vcmp.gt.f32.partialorder %v7041_v29, 0.0  ;;  %v8065_v24 = vmul.f32 0.01, %v7041_v29  ;;  %v7169_v31 = vadd.f32 %v15234_v37, %v6653_v7  ;;  %v6270_v57 = vld [vmem:[#allocation2 + $0x288] sm:$0xff]  ;;  %6139 = vst.msk [vmem:[#allocation2 + $0xe88] sm:$0xff] %vm264_vm3, %v5626_v8  ;;  %v15405_v33 = vpop.f32.mrf.mxu3  ;;  %v15410_v58 = vpop.f32.mrf.mxu0  ;;  %v11433_v22 = vld [vmem:[%s11574_s26 + $0x798] sm:$0xff] }
 0x498   : > { %v6786_v61 = vadd.f32 %v15234_v37, %v6270_v57  ;;  %5756 = vst.msk [vmem:[#allocation2 + $0x290] sm:$0xff] %vm264_vm3, %v5243_v11  ;;  %v15412_v27 = vpop.f32.mrf.mxu1  ;;  %v5245_v3 = vadd.f32 %v15346_v21, %v861_v30  ;;  %v989_v7 = vld [vmem:[#allocation2 + $0x6a0] sm:$0xff]  ;;  %10983 = vmatmul.msk.bf16.gmra.mxu0 %vm3096_vm2, %v11241_v45  ;;  %v990_v30 = vld [vmem:[#allocation2 + $0x6a8] sm:$0xff] }
 0x499   : > { %9474 = vst.msk [vmem:[%s11763_s4 + $0x340] sm:$0xf] %vm9265_vm5, %v8961_v12  ;;  %v8577_v32 = vsel %vm7553_vm15, %v7041_v29, %v8065_v24  ;;  %vm7681_vm0 = vcmp.gt.f32.partialorder %v7169_v31, 0.0  ;;  %v8193_v51 = vmul.f32 0.01, %v7169_v31  ;;  %11047 = vmatmul.msk.bf16.gmra.mxu1 %vm3096_vm2, %v11305_v9  ;;  %v1118_v9 = vld [vmem:[#allocation2 + $0xaa8] sm:$0xff] }
 0x49a   : > { %v9089_v60 = vpack.c.bf16 %v8577_v32, %v8577_v32  ;;  %vm7298_vm1 = vcmp.gt.f32.partialorder %v6786_v61, 0.0  ;;  %v7810_v6 = vmul.f32 0.01, %v6786_v61  ;;  %5884 = vst.msk [vmem:[#allocation2 + $0x690] sm:$0xff] %vm264_vm3, %v5371_v15  ;;  %v1117_v32 = vld [vmem:[#allocation2 + $0xaa0] sm:$0xff] }
 0x49b   : > { %v8705_v34 = vsel %vm7681_vm0, %v7169_v31, %v8193_v51  ;;  %v6398_v20 = vld [vmem:[#allocation2 + $0x688] sm:$0xff]  ;;  %6012 = vst.msk [vmem:[#allocation2 + $0xa90] sm:$0xff] %vm264_vm3, %v5499_v17  ;;  %11111 = vmatmul.msk.bf16.gmra.mxu2 %vm3096_vm2, %v11369_v39  ;;  %v1245_v51 = vld [vmem:[#allocation2 + $0xea0] sm:$0xff] }
 0x49c   : > { %9602 = vst.msk [vmem:[%s11763_s4 + $0x540] sm:$0xf] %vm9265_vm5, %v9089_v60  ;;  %v9217_v23 = vpack.c.bf16 %v8705_v34, %v8705_v34  ;;  %v8322_v53 = vsel %vm7298_vm1, %v6786_v61, %v7810_v6  ;;  %v6914_v56 = vadd.f32 %v15234_v37, %v6398_v20  ;;  %v6526_v43 = vld [vmem:[#allocation2 + $0xa88] sm:$0xff]  ;;  %11175 = vmatmul.msk.bf16.gmra.mxu3 %vm3096_vm2, %v11433_v22 }
 0x49d   : > { %v8834_v18 = vpack.c.bf16 %v8322_v53, %v8322_v53  ;;  %v7042_v38 = vadd.f32 %v15234_v37, %v6526_v43  ;;  %6140 = vst.msk [vmem:[#allocation2 + $0xe90] sm:$0xff] %vm264_vm3, %v5627_v50  ;;  %v5373_v61 = vadd.f32 %v15348_v44, %v989_v7  ;;  %v1246_v39 = vld [vmem:[#allocation2 + $0xea8] sm:$0xff]  ;;  %v991_v7 = vld [vmem:[#allocation2 + $0x6b0] sm:$0xff] }
 0x49e   : > { %9730 = vst.msk [vmem:[%s11763_s4 + $0x740] sm:$0xf] %vm9265_vm5, %v9217_v23  ;;  %vm7426_vm4 = vcmp.gt.f32.partialorder %v6914_v56, 0.0  ;;  %v7938_v47 = vmul.f32 0.01, %v6914_v56  ;;  %v6654_v55 = vld [vmem:[#allocation2 + $0xe88] sm:$0xff]  ;;  %v15439_v40 = vpop.f32.mrf.mxu2 }
 0x49f   : > { %9347 = vst.msk [vmem:[%s11763_s4 + $0x144] sm:$0xf] %vm9265_vm5, %v8834_v18  ;;  %vm7554_vm6 = vcmp.gt.f32.partialorder %v7042_v38, 0.0  ;;  %v8066_v49 = vmul.f32 0.01, %v7042_v38  ;;  %v7170_v5 = vadd.f32 %v15234_v37, %v6654_v55  ;;  %v6271_v46 = vld [vmem:[#allocation2 + $0x290] sm:$0xff]  ;;  %v15441_v34 = vpop.f32.mrf.mxu3  ;;  %v15445_v44 = vpop.f32.mrf.mxu0  ;;  %v5501_v18 = vadd.f32 %v15375_v4, %v1117_v32 }
 0x4a0   : > { %v8450_v54 = vsel %vm7426_vm4, %v6914_v56, %v7938_v47  ;;  %v6787_v36 = vadd.f32 %v15234_v37, %v6271_v46  ;;  %5757 = vst.msk [vmem:[#allocation2 + $0x298] sm:$0xff] %vm264_vm3, %v5244_v10  ;;  %v15447_v53 = vpop.f32.mrf.mxu1  ;;  %v5375_v32 = vadd.f32 %v15412_v27, %v991_v7 }
 0x4a1   : > { %v8962_v52 = vpack.c.bf16 %v8450_v54, %v8450_v54  ;;  %v8578_v63 = vsel %vm7554_vm6, %v7042_v38, %v8066_v49  ;;  %vm7682_vm7 = vcmp.gt.f32.partialorder %v7170_v5, 0.0  ;;  %v8194_v8 = vmul.f32 0.01, %v7170_v5  ;;  %v6399_v48 = vld [vmem:[#allocation2 + $0x690] sm:$0xff]  ;;  %5885 = vst.msk [vmem:[#allocation2 + $0x698] sm:$0xff] %vm264_vm3, %v5372_v19 }
 0x4a2   : > { %v9090_v26 = vpack.c.bf16 %v8578_v63, %v8578_v63  ;;  %vm7299_vm8 = vcmp.gt.f32.partialorder %v6787_v36, 0.0  ;;  %v7811_v35 = vmul.f32 0.01, %v6787_v36  ;;  %v6915_v25 = vadd.f32 %v15234_v37, %v6399_v48  ;;  %v6527_v14 = vld [vmem:[#allocation2 + $0xa90] sm:$0xff]  ;;  %6013 = vst.msk [vmem:[#allocation2 + $0xa98] sm:$0xff] %vm264_vm3, %v5500_v0  ;;  %v862_v0 = vld [vmem:[#allocation2 + $0x2a8] sm:$0xff] }
 0x4a3   : > { %9475 = vst.msk [vmem:[%s11763_s4 + $0x344] sm:$0xf] %vm9265_vm5, %v8962_v52  ;;  %v8706_v11 = vsel %vm7682_vm7, %v7170_v5, %v8194_v8  ;;  %v7043_v29 = vadd.f32 %v15234_v37, %v6527_v14  ;;  %v5629_v38 = vadd.f32 %v15377_v28, %v1245_v51  ;;  %v5246_v45 = vadd.f32 %v15381_v16, %v862_v0  ;;  %v1119_v51 = vld [vmem:[#allocation2 + $0xab0] sm:$0xff] }
 0x4a4   : > { %9603 = vst.msk [vmem:[%s11763_s4 + $0x544] sm:$0xf] %vm9265_vm5, %v9090_v26  ;;  %v9218_v15 = vpack.c.bf16 %v8706_v11, %v8706_v11  ;;  %v8323_v17 = vsel %vm7299_vm8, %v6787_v36, %v7811_v35  ;;  %vm7427_vm9 = vcmp.gt.f32.partialorder %v6915_v25, 0.0  ;;  %v7939_v59 = vmul.f32 0.01, %v6915_v25  ;;  %v6655_v12 = vld [vmem:[#allocation2 + $0xe90] sm:$0xff] }
 0x4a5   : > { %v8835_v24 = vpack.c.bf16 %v8323_v17, %v8323_v17  ;;  %vm7555_vm10 = vcmp.gt.f32.partialorder %v7043_v29, 0.0  ;;  %v8067_v31 = vmul.f32 0.01, %v7043_v29  ;;  %v7171_v57 = vadd.f32 %v15234_v37, %v6655_v12  ;;  %6141 = vst.msk [vmem:[#allocation2 + $0xe98] sm:$0xff] %vm264_vm3, %v5628_v1  ;;  %v863_v35 = vld [vmem:[#allocation2 + $0x2b0] sm:$0xff]  ;;  %v11242_v11 = vld [vmem:[%s11574_s26 + $0x1a0] sm:$0xff] }
 0x4a6   : > { %9731 = vst.msk [vmem:[%s11763_s4 + $0x744] sm:$0xf] %vm9265_vm5, %v9218_v15  ;;  %v8451_v21 = vsel %vm7427_vm9, %v6915_v25, %v7939_v59  ;;  %v5374_v48 = vadd.f32 %v15383_v42, %v990_v30  ;;  %v15467_v22 = vpop.f32.mrf.mxu2  ;;  %v5502_v42 = vadd.f32 %v15403_v41, %v1118_v9  ;;  %v11370_v15 = vld [vmem:[%s11574_s26 + $0x5a0] sm:$0xff]  ;;  %v5247_v41 = vadd.f32 %v15410_v58, %v863_v35 }
 0x4a7   : > { %9348 = vst.msk [vmem:[%s11763_s4 + $0x148] sm:$0xf] %vm9265_vm5, %v8835_v24  ;;  %v8963_v50 = vpack.c.bf16 %v8451_v21, %v8451_v21  ;;  %v8579_v2 = vsel %vm7555_vm10, %v7043_v29, %v8067_v31  ;;  %vm7683_vm11 = vcmp.gt.f32.partialorder %v7171_v57, 0.0  ;;  %v8195_v60 = vmul.f32 0.01, %v7171_v57  ;;  %v6272_v6 = vld [vmem:[#allocation2 + $0x298] sm:$0xff]  ;;  %v15469_v26 = vpop.f32.mrf.mxu3  ;;  %v15474_v25 = vpop.f32.mrf.mxu0 }
 0x4a8   : > { %v9091_v20 = vpack.c.bf16 %v8579_v2, %v8579_v2  ;;  %v6788_v62 = vadd.f32 %v15234_v37, %v6272_v6  ;;  %v6400_v23 = vld [vmem:[#allocation2 + $0x698] sm:$0xff]  ;;  %5758 = vst.msk [vmem:[#allocation2 + $0x2a0] sm:$0xff] %vm264_vm3, %v5245_v3  ;;  %v15476_v14 = vpop.f32.mrf.mxu1  ;;  %v11306_v29 = vld [vmem:[%s11574_s26 + $0x3a0] sm:$0xff]  ;;  %v5630_v31 = vadd.f32 %v15405_v33, %v1246_v39  ;;  %10984 = vmatmul.msk.bf16.gmra.mxu0 %vm3096_vm2, %v11242_v11 }
 0x4a9   : > { %9476 = vst.msk [vmem:[%s11763_s4 + $0x348] sm:$0xf] %vm9265_vm5, %v8963_v50  ;;  %v8707_v56 = vsel %vm7683_vm11, %v7171_v57, %v8195_v60  ;;  %v6916_v43 = vadd.f32 %v15234_v37, %v6400_v23  ;;  %v6528_v10 = vld [vmem:[#allocation2 + $0xa98] sm:$0xff]  ;;  %v11434_v17 = vld [vmem:[%s11574_s26 + $0x7a0] sm:$0xff]  ;;  %11048 = vmatmul.msk.bf16.gmra.mxu1 %vm3096_vm2, %v11306_v29 }
 0x4aa   : > { %9604 = vst.msk [vmem:[%s11763_s4 + $0x548] sm:$0xf] %vm9265_vm5, %v9091_v20  ;;  %v9219_v19 = vpack.c.bf16 %v8707_v56, %v8707_v56  ;;  %vm7300_vm12 = vcmp.gt.f32.partialorder %v6788_v62, 0.0  ;;  %v7812_v13 = vmul.f32 0.01, %v6788_v62  ;;  %v7044_v47 = vadd.f32 %v15234_v37, %v6528_v10 }
 0x4ab   : > { %vm7428_vm13 = vcmp.gt.f32.partialorder %v6916_v43, 0.0  ;;  %v7940_v55 = vmul.f32 0.01, %v6916_v43  ;;  %5886 = vst.msk [vmem:[#allocation2 + $0x6a0] sm:$0xff] %vm264_vm3, %v5373_v61  ;;  %11112 = vmatmul.msk.bf16.gmra.mxu2 %vm3096_vm2, %v11370_v15  ;;  %v5503_v20 = vadd.f32 %v15439_v40, %v1119_v51  ;;  %v992_v40 = vld [vmem:[#allocation2 + $0x6b8] sm:$0xff] }
 0x4ac   : > { %9732 = vst.msk [vmem:[%s11763_s4 + $0x748] sm:$0xf] %vm9265_vm5, %v9219_v19  ;;  %v8324_v49 = vsel %vm7300_vm12, %v6788_v62, %v7812_v13  ;;  %vm7556_vm14 = vcmp.gt.f32.partialorder %v7044_v47, 0.0  ;;  %v8068_v4 = vmul.f32 0.01, %v7044_v47  ;;  %v6656_v28 = vld [vmem:[#allocation2 + $0xe98] sm:$0xff]  ;;  %11176 = vmatmul.msk.bf16.gmra.mxu3 %vm3096_vm2, %v11434_v17 }
 0x4ad   : > { %v8836_v5 = vpack.c.bf16 %v8324_v49, %v8324_v49  ;;  %v8452_v46 = vsel %vm7428_vm13, %v6916_v43, %v7940_v55  ;;  %v7172_v54 = vadd.f32 %v15234_v37, %v6656_v28  ;;  %6014 = vst.msk [vmem:[#allocation2 + $0xaa0] sm:$0xff] %vm264_vm3, %v5501_v18  ;;  %v1247_v62 = vld [vmem:[#allocation2 + $0xeb0] sm:$0xff]  ;;  %v864_v18 = vld [vmem:[#allocation2 + $0x2b8] sm:$0xff] }
 0x4ae   : > { %v8964_v36 = vpack.c.bf16 %v8452_v46, %v8452_v46  ;;  %v8580_v1 = vsel %vm7556_vm14, %v7044_v47, %v8068_v4  ;;  %6142 = vst.msk [vmem:[#allocation2 + $0xea0] sm:$0xff] %vm264_vm3, %v5629_v38  ;;  %v15504_v23 = vpop.f32.mrf.mxu2  ;;  %v5631_v4 = vadd.f32 %v15441_v34, %v1247_v62  ;;  %v5248_v46 = vadd.f32 %v15445_v44, %v864_v18 }
 0x4af   : > { %9349 = vst.msk [vmem:[%s11763_s4 + $0x14c] sm:$0xf] %vm9265_vm5, %v8836_v5  ;;  %v9092_v52 = vpack.c.bf16 %v8580_v1, %v8580_v1  ;;  %vm7684_vm15 = vcmp.gt.f32.partialorder %v7172_v54, 0.0  ;;  %v8196_v63 = vmul.f32 0.01, %v7172_v54  ;;  %v6273_v8 = vld [vmem:[#allocation2 + $0x2a0] sm:$0xff]  ;;  %v15506_v56 = vpop.f32.mrf.mxu3  ;;  %v15509_v38 = vpop.f32.mrf.mxu0 }
 0x4b0   : > { %9477 = vst.msk [vmem:[%s11763_s4 + $0x34c] sm:$0xf] %vm9265_vm5, %v8964_v36  ;;  %v6789_v16 = vadd.f32 %v15234_v37, %v6273_v8  ;;  %v15511_v19 = vpop.f32.mrf.mxu1  ;;  %v1248_v8 = vld [vmem:[#allocation2 + $0xeb8] sm:$0xff] }
 0x4b1   : > { %9605 = vst.msk [vmem:[%s11763_s4 + $0x54c] sm:$0xf] %vm9265_vm5, %v9092_v52  ;;  %v8708_v3 = vsel %vm7684_vm15, %v7172_v54, %v8196_v63  ;;  %v1120_v54 = vld [vmem:[#allocation2 + $0xab8] sm:$0xff] }
 0x4b2   : > { %v9220_v59 = vpack.c.bf16 %v8708_v3, %v8708_v3  ;;  %vm7301_vm0 = vcmp.gt.f32.partialorder %v6789_v16, 0.0  ;;  %v7813_v12 = vmul.f32 0.01, %v6789_v16  ;;  %v6401_v24 = vld [vmem:[#allocation2 + $0x6a0] sm:$0xff]  ;;  %5759 = vst.msk [vmem:[#allocation2 + $0x2a8] sm:$0xff] %vm264_vm3, %v5246_v45  ;;  %v5376_v45 = vadd.f32 %v15447_v53, %v992_v40  ;;  %v11243_v3 = vld [vmem:[%s11574_s26 + $0x1a8] sm:$0xff] }
 0x4b3   : > { %v6917_v57 = vadd.f32 %v15234_v37, %v6401_v24  ;;  %5887 = vst.msk [vmem:[#allocation2 + $0x6a8] sm:$0xff] %vm264_vm3, %v5374_v48  ;;  %v5504_v44 = vadd.f32 %v15467_v22, %v1120_v54 }
 0x4b4   : > { %9733 = vst.msk [vmem:[%s11763_s4 + $0x74c] sm:$0xf] %vm9265_vm5, %v9220_v59  ;;  %v8325_v21 = vsel %vm7301_vm0, %v6789_v16, %v7813_v12  ;;  %v6529_v61 = vld [vmem:[#allocation2 + $0xaa0] sm:$0xff]  ;;  %v11307_v12 = vld [vmem:[%s11574_s26 + $0x3a8] sm:$0xff] }
 0x4b5   : > { %v8837_v50 = vpack.c.bf16 %v8325_v21, %v8325_v21  ;;  %vm7429_vm1 = vcmp.gt.f32.partialorder %v6917_v57, 0.0  ;;  %v7941_v33 = vmul.f32 0.01, %v6917_v57  ;;  %v7045_v2 = vadd.f32 %v15234_v37, %v6529_v61  ;;  %v6657_v60 = vld [vmem:[#allocation2 + $0xea0] sm:$0xff]  ;;  %6015 = vst.msk [vmem:[#allocation2 + $0xaa8] sm:$0xff] %vm264_vm3, %v5502_v42  ;;  %v11371_v61 = vld [vmem:[%s11574_s26 + $0x5a8] sm:$0xff] }
 0x4b6   : > { %v7173_v58 = vadd.f32 %v15234_v37, %v6657_v60  ;;  %6143 = vst.msk [vmem:[#allocation2 + $0xea8] sm:$0xff] %vm264_vm3, %v5630_v31  ;;  %v15531_v11 = vpop.f32.mrf.mxu2  ;;  %v865_v21 = vld [vmem:[#allocation2 + $0x2c0] sm:$0xff] }
 0x4b7   : > { %9350 = vst.msk [vmem:[%s11763_s4 + $0x150] sm:$0xf] %vm9265_vm5, %v8837_v50  ;;  %v8453_v27 = vsel %vm7429_vm1, %v6917_v57, %v7941_v33  ;;  %vm7557_vm4 = vcmp.gt.f32.partialorder %v7045_v2, 0.0  ;;  %v8069_v6 = vmul.f32 0.01, %v7045_v2  ;;  %v15533_v29 = vpop.f32.mrf.mxu3  ;;  %v15538_v17 = vpop.f32.mrf.mxu0  ;;  %v5632_v57 = vadd.f32 %v15469_v26, %v1248_v8 }
 0x4b8   : > { %v8965_v43 = vpack.c.bf16 %v8453_v27, %v8453_v27  ;;  %vm7685_vm6 = vcmp.gt.f32.partialorder %v7173_v58, 0.0  ;;  %v8197_v10 = vmul.f32 0.01, %v7173_v58  ;;  %5760 = vst.msk [vmem:[#allocation2 + $0x2b0] sm:$0xff] %vm264_vm3, %v5247_v41  ;;  %v15540_v59 = vpop.f32.mrf.mxu1  ;;  %v11435_v41 = vld [vmem:[%s11574_s26 + $0x7a8] sm:$0xff]  ;;  %v5249_v27 = vadd.f32 %v15474_v25, %v865_v21  ;;  %10985 = vmatmul.msk.bf16.gmra.mxu0 %vm3096_vm2, %v11243_v3 }
 0x4b9   : > { %v8581_v13 = vsel %vm7557_vm4, %v7045_v2, %v8069_v6  ;;  %v6274_v47 = vld [vmem:[#allocation2 + $0x2a8] sm:$0xff]  ;;  %5888 = vst.msk [vmem:[#allocation2 + $0x6b0] sm:$0xff] %vm264_vm3, %v5375_v32  ;;  %v993_v6 = vld [vmem:[#allocation2 + $0x6c0] sm:$0xff]  ;;  %11049 = vmatmul.msk.bf16.gmra.mxu1 %vm3096_vm2, %v11307_v12 }
 0x4ba   : > { %9478 = vst.msk [vmem:[%s11763_s4 + $0x350] sm:$0xf] %vm9265_vm5, %v8965_v43  ;;  %v9093_v55 = vpack.c.bf16 %v8581_v13, %v8581_v13  ;;  %v8709_v0 = vsel %vm7685_vm6, %v7173_v58, %v8197_v10  ;;  %v6790_v30 = vadd.f32 %v15234_v37, %v6274_v47  ;;  %v6402_v49 = vld [vmem:[#allocation2 + $0x6a8] sm:$0xff] }
 0x4bb   : > { %v9221_v28 = vpack.c.bf16 %v8709_v0, %v8709_v0  ;;  %v6918_v5 = vadd.f32 %v15234_v37, %v6402_v49  ;;  %6016 = vst.msk [vmem:[#allocation2 + $0xab0] sm:$0xff] %vm264_vm3, %v5503_v20  ;;  %v1121_v20 = vld [vmem:[#allocation2 + $0xac0] sm:$0xff]  ;;  %11113 = vmatmul.msk.bf16.gmra.mxu2 %vm3096_vm2, %v11371_v61 }
 0x4bc   : > { %9606 = vst.msk [vmem:[%s11763_s4 + $0x550] sm:$0xf] %vm9265_vm5, %v9093_v55  ;;  %vm7302_vm7 = vcmp.gt.f32.partialorder %v6790_v30, 0.0  ;;  %v7814_v36 = vmul.f32 0.01, %v6790_v30  ;;  %v6530_v1 = vld [vmem:[#allocation2 + $0xaa8] sm:$0xff]  ;;  %11177 = vmatmul.msk.bf16.gmra.mxu3 %vm3096_vm2, %v11435_v41  ;;  %v5505_v49 = vadd.f32 %v15504_v23, %v1121_v20 }
 0x4bd   : > { %9734 = vst.msk [vmem:[%s11763_s4 + $0x750] sm:$0xf] %vm9265_vm5, %v9221_v28  ;;  %vm7430_vm8 = vcmp.gt.f32.partialorder %v6918_v5, 0.0  ;;  %v7942_v9 = vmul.f32 0.01, %v6918_v5  ;;  %v7046_v34 = vadd.f32 %v15234_v37, %v6530_v1  ;;  %v6658_v39 = vld [vmem:[#allocation2 + $0xea8] sm:$0xff] }
 0x4be   : > { %v8326_v52 = vsel %vm7302_vm7, %v6790_v30, %v7814_v36  ;;  %v7174_v63 = vadd.f32 %v15234_v37, %v6658_v39  ;;  %6144 = vst.msk [vmem:[#allocation2 + $0xeb0] sm:$0xff] %vm264_vm3, %v5631_v4  ;;  %v5377_v30 = vadd.f32 %v15476_v14, %v993_v6  ;;  %v15571_v4 = vpop.f32.mrf.mxu2  ;;  %v1249_v23 = vld [vmem:[#allocation2 + $0xec0] sm:$0xff]  ;;  %v995_v20 = vld [vmem:[#allocation2 + $0x6d0] sm:$0xff] }
 0x4bf   : > { %v8838_v48 = vpack.c.bf16 %v8326_v52, %v8326_v52  ;;  %v8454_v16 = vsel %vm7430_vm8, %v6918_v5, %v7942_v9  ;;  %vm7558_vm9 = vcmp.gt.f32.partialorder %v7046_v34, 0.0  ;;  %v8070_v53 = vmul.f32 0.01, %v7046_v34  ;;  %v6275_v35 = vld [vmem:[#allocation2 + $0x2b0] sm:$0xff]  ;;  %5761 = vst.msk [vmem:[#allocation2 + $0x2b8] sm:$0xff] %vm264_vm3, %v5248_v46  ;;  %v15573_v28 = vpop.f32.mrf.mxu3  ;;  %v15578_v36 = vpop.f32.mrf.mxu0 }
 0x4c0   : > { %v8966_v42 = vpack.c.bf16 %v8454_v16, %v8454_v16  ;;  %vm7686_vm10 = vcmp.gt.f32.partialorder %v7174_v63, 0.0  ;;  %v8198_v22 = vmul.f32 0.01, %v7174_v63  ;;  %v6791_v7 = vadd.f32 %v15234_v37, %v6275_v35  ;;  %v6403_v15 = vld [vmem:[#allocation2 + $0x6b0] sm:$0xff]  ;;  %5889 = vst.msk [vmem:[#allocation2 + $0x6b8] sm:$0xff] %vm264_vm3, %v5376_v45  ;;  %v15580_v1 = vpop.f32.mrf.mxu1  ;;  %v866_v45 = vld [vmem:[#allocation2 + $0x2c8] sm:$0xff] }
 0x4c1   : > { %9351 = vst.msk [vmem:[%s11763_s4 + $0x154] sm:$0xf] %vm9265_vm5, %v8838_v48  ;;  %v8582_v24 = vsel %vm7558_vm9, %v7046_v34, %v8070_v53  ;;  %v6919_v31 = vadd.f32 %v15234_v37, %v6403_v15  ;;  %v5633_v16 = vadd.f32 %v15506_v56, %v1249_v23  ;;  %v994_v53 = vld [vmem:[#allocation2 + $0x6c8] sm:$0xff] }
 0x4c2   : > { %9479 = vst.msk [vmem:[%s11763_s4 + $0x354] sm:$0xf] %vm9265_vm5, %v8966_v42  ;;  %v9094_v32 = vpack.c.bf16 %v8582_v24, %v8582_v24  ;;  %v8710_v51 = vsel %vm7686_vm10, %v7174_v63, %v8198_v22  ;;  %vm7303_vm11 = vcmp.gt.f32.partialorder %v6791_v7, 0.0  ;;  %v7815_v50 = vmul.f32 0.01, %v6791_v7  ;;  %v6531_v33 = vld [vmem:[#allocation2 + $0xab0] sm:$0xff] }
 0x4c3   : > { %v9222_v2 = vpack.c.bf16 %v8710_v51, %v8710_v51  ;;  %vm7431_vm12 = vcmp.gt.f32.partialorder %v6919_v31, 0.0  ;;  %v7943_v60 = vmul.f32 0.01, %v6919_v31  ;;  %v7047_v58 = vadd.f32 %v15234_v37, %v6531_v33  ;;  %6017 = vst.msk [vmem:[#allocation2 + $0xab8] sm:$0xff] %vm264_vm3, %v5504_v44  ;;  %v1122_v35 = vld [vmem:[#allocation2 + $0xac8] sm:$0xff]  ;;  %v11308_v33 = vld [vmem:[%s11574_s26 + $0x3b0] sm:$0xff] }
 0x4c4   : > { %9607 = vst.msk [vmem:[%s11763_s4 + $0x554] sm:$0xf] %vm9265_vm5, %v9094_v32  ;;  %v8327_v26 = vsel %vm7303_vm11, %v6791_v7, %v7815_v50  ;;  %v5250_v7 = vadd.f32 %v15509_v38, %v866_v45  ;;  %v5378_v56 = vadd.f32 %v15511_v19, %v994_v53  ;;  %v1250_v24 = vld [vmem:[#allocation2 + $0xec8] sm:$0xff]  ;;  %v11244_v38 = vld [vmem:[%s11574_s26 + $0x1b0] sm:$0xff]  ;;  %v5506_v51 = vadd.f32 %v15531_v11, %v1122_v35 }
 0x4c5   : > { %9735 = vst.msk [vmem:[%s11763_s4 + $0x754] sm:$0xf] %vm9265_vm5, %v9222_v2  ;;  %v8839_v62 = vpack.c.bf16 %v8327_v26, %v8327_v26  ;;  %v8455_v43 = vsel %vm7431_vm12, %v6919_v31, %v7943_v60  ;;  %vm7559_vm13 = vcmp.gt.f32.partialorder %v7047_v58, 0.0  ;;  %v8071_v10 = vmul.f32 0.01, %v7047_v58  ;;  %v6659_v18 = vld [vmem:[#allocation2 + $0xeb0] sm:$0xff] }
 0x4c6   : > { %v8967_v25 = vpack.c.bf16 %v8455_v43, %v8455_v43  ;;  %v7175_v13 = vadd.f32 %v15234_v37, %v6659_v18  ;;  %v6276_v47 = vld [vmem:[#allocation2 + $0x2b8] sm:$0xff]  ;;  %6145 = vst.msk [vmem:[#allocation2 + $0xeb8] sm:$0xff] %vm264_vm3, %v5632_v57  ;;  %v867_v31 = vld [vmem:[#allocation2 + $0x2d0] sm:$0xff]  ;;  %v15603_v57 = vpop.f32.mrf.mxu2  ;;  %v5634_v6 = vadd.f32 %v15533_v29, %v1250_v24 }
 0x4c7   : > { %9352 = vst.msk [vmem:[%s11763_s4 + $0x158] sm:$0xf] %vm9265_vm5, %v8839_v62  ;;  %v8583_v40 = vsel %vm7559_vm13, %v7047_v58, %v8071_v10  ;;  %v6792_v55 = vadd.f32 %v15234_v37, %v6276_v47  ;;  %v6404_v0 = vld [vmem:[#allocation2 + $0x6b8] sm:$0xff]  ;;  %v15605_v21 = vpop.f32.mrf.mxu3  ;;  %v15610_v50 = vpop.f32.mrf.mxu0  ;;  %v11372_v60 = vld [vmem:[%s11574_s26 + $0x5b0] sm:$0xff]  ;;  %v5251_v11 = vadd.f32 %v15538_v17, %v867_v31 }
 0x4c8   : > { %9480 = vst.msk [vmem:[%s11763_s4 + $0x358] sm:$0xf] %vm9265_vm5, %v8967_v25  ;;  %v9095_v5 = vpack.c.bf16 %v8583_v40, %v8583_v40  ;;  %vm7687_vm14 = vcmp.gt.f32.partialorder %v7175_v13, 0.0  ;;  %v8199_v46 = vmul.f32 0.01, %v7175_v13  ;;  %v6920_v54 = vadd.f32 %v15234_v37, %v6404_v0  ;;  %v15612_v19 = vpop.f32.mrf.mxu1  ;;  %v11436_v58 = vld [vmem:[%s11574_s26 + $0x7b0] sm:$0xff]  ;;  %10986 = vmatmul.msk.bf16.gmra.mxu0 %vm3096_vm2, %v11244_v38 }
 0x4c9   : > { %vm7304_vm15 = vcmp.gt.f32.partialorder %v6792_v55, 0.0  ;;  %v7816_v14 = vmul.f32 0.01, %v6792_v55  ;;  %5762 = vst.msk [vmem:[#allocation2 + $0x2c0] sm:$0xff] %vm264_vm3, %v5249_v27  ;;  %v15588_v37 = vld [vmem:[%s16747_s2] ss:$0 sm:$0xff]  ;;  %11050 = vmatmul.msk.bf16.gmra.mxu1 %vm3096_vm2, %v11308_v33 }
 0x4ca   : > { %9608 = vst.msk [vmem:[%s11763_s4 + $0x558] sm:$0xf] %vm9265_vm5, %v9095_v5  ;;  %v8711_v9 = vsel %vm7687_vm14, %v7175_v13, %v8199_v46  ;;  %vm7432_vm0 = vcmp.gt.f32.partialorder %v6920_v54, 0.0  ;;  %v7944_v34 = vmul.f32 0.01, %v6920_v54  ;;  %v6532_v39 = vld [vmem:[#allocation2 + $0xab8] sm:$0xff]  ;;  %v5379_v13 = vadd.f32 %v15540_v59, %v995_v20 }
 0x4cb   : > { %v9223_v52 = vpack.c.bf16 %v8711_v9, %v8711_v9  ;;  %v8328_v63 = vsel %vm7304_vm15, %v6792_v55, %v7816_v14  ;;  %v7048_v44 = vadd.f32 %v15588_v37, %v6532_v39  ;;  %5890 = vst.msk [vmem:[#allocation2 + $0x6c0] sm:$0xff] %vm264_vm3, %v5377_v30  ;;  %v1123_v47 = vld [vmem:[#allocation2 + $0xad0] sm:$0xff]  ;;  %11114 = vmatmul.msk.bf16.gmra.mxu2 %vm3096_vm2, %v11372_v60  ;;  %v868_v5 = vld [vmem:[#allocation2 + $0x2d8] sm:$0xff]  ;;  %v869_v33 = vld [vmem:[#allocation2 + $0x2e0] sm:$0xff] }
 0x4cc   : > { %v8840_v8 = vpack.c.bf16 %v8328_v63, %v8328_v63  ;;  %v8456_v48 = vsel %vm7432_vm0, %v6920_v54, %v7944_v34  ;;  %6018 = vst.msk [vmem:[#allocation2 + $0xac0] sm:$0xff] %vm264_vm3, %v5505_v49  ;;  %11178 = vmatmul.msk.bf16.gmra.mxu3 %vm3096_vm2, %v11436_v58  ;;  %v1251_v0 = vld [vmem:[#allocation2 + $0xed0] sm:$0xff]  ;;  %v5507_v9 = vadd.f32 %v15571_v4, %v1123_v47  ;;  %v11245_v58 = vld [vmem:[%s11574_s26 + $0x1b8] sm:$0xff]  ;;  %v997_v47 = vld [vmem:[#allocation2 + $0x6e0] sm:$0xff] }
 0x4cd   : > { %9736 = vst.msk [vmem:[%s11763_s4 + $0x758] sm:$0xf] %vm9265_vm5, %v9223_v52  ;;  %v8968_v3 = vpack.c.bf16 %v8456_v48, %v8456_v48  ;;  %vm7560_vm1 = vcmp.gt.f32.partialorder %v7048_v44, 0.0  ;;  %v8072_v42 = vmul.f32 0.01, %v7048_v44  ;;  %v6660_v22 = vld [vmem:[#allocation2 + $0xeb8] sm:$0xff]  ;;  %v5252_v53 = vadd.f32 %v15578_v36, %v868_v5 }
 0x4ce   : > { %9353 = vst.msk [vmem:[%s11763_s4 + $0x15c] sm:$0xf] %vm9265_vm5, %v8840_v8  ;;  %v7176_v15 = vadd.f32 %v15588_v37, %v6660_v22  ;;  %v15636_v46 = vpop.f32.mrf.mxu2  ;;  %v996_v8 = vld [vmem:[#allocation2 + $0x6d8] sm:$0xff] }
 0x4cf   : > { %9481 = vst.msk [vmem:[%s11763_s4 + $0x35c] sm:$0xf] %vm9265_vm5, %v8968_v3  ;;  %v8584_v12 = vsel %vm7560_vm1, %v7048_v44, %v8072_v42  ;;  %v15638_v59 = vpop.f32.mrf.mxu3  ;;  %v15644_v34 = vpop.f32.mrf.mxu0  ;;  %v5635_v44 = vadd.f32 %v15573_v28, %v1251_v0  ;;  %v5380_v28 = vadd.f32 %v15580_v1, %v996_v8  ;;  %v1252_v1 = vld [vmem:[#allocation2 + $0xed8] sm:$0xff]  ;;  %v1125_v8 = vld [vmem:[#allocation2 + $0xae0] sm:$0xff] }
 0x4d0   : > { %v9096_v61 = vpack.c.bf16 %v8584_v12, %v8584_v12  ;;  %vm7688_vm4 = vcmp.gt.f32.partialorder %v7176_v15, 0.0  ;;  %v8200_v41 = vmul.f32 0.01, %v7176_v15  ;;  %v6277_v32 = vld [vmem:[#allocation2 + $0x2c0] sm:$0xff]  ;;  %6146 = vst.msk [vmem:[#allocation2 + $0xec0] sm:$0xff] %vm264_vm3, %v5633_v16  ;;  %v15646_v39 = vpop.f32.mrf.mxu1 }
 0x4d1   : > { %v6793_v2 = vadd.f32 %v15588_v37, %v6277_v32  ;;  %5763 = vst.msk [vmem:[#allocation2 + $0x2c8] sm:$0xff] %vm264_vm3, %v5250_v7  ;;  %v1124_v7 = vld [vmem:[#allocation2 + $0xad8] sm:$0xff] }
 0x4d2   : > { %9609 = vst.msk [vmem:[%s11763_s4 + $0x55c] sm:$0xf] %vm9265_vm5, %v9096_v61  ;;  %v8712_v26 = vsel %vm7688_vm4, %v7176_v15, %v8200_v41  ;;  %v6405_v27 = vld [vmem:[#allocation2 + $0x6c0] sm:$0xff] }
 0x4d3   : > { %v9224_v62 = vpack.c.bf16 %v8712_v26, %v8712_v26  ;;  %vm7305_vm6 = vcmp.gt.f32.partialorder %v6793_v2, 0.0  ;;  %v7817_v43 = vmul.f32 0.01, %v6793_v2  ;;  %v6921_v10 = vadd.f32 %v15588_v37, %v6405_v27  ;;  %v6533_v18 = vld [vmem:[#allocation2 + $0xac0] sm:$0xff]  ;;  %5891 = vst.msk [vmem:[#allocation2 + $0x6c8] sm:$0xff] %vm264_vm3, %v5378_v56  ;;  %v11309_v26 = vld [vmem:[%s11574_s26 + $0x3b8] sm:$0xff] }
 0x4d4   : > { %v7049_v25 = vadd.f32 %v15588_v37, %v6533_v18  ;;  %6019 = vst.msk [vmem:[#allocation2 + $0xac8] sm:$0xff] %vm264_vm3, %v5506_v51  ;;  %v5508_v51 = vadd.f32 %v15603_v57, %v1124_v7 }
 0x4d5   : > { %9737 = vst.msk [vmem:[%s11763_s4 + $0x75c] sm:$0xf] %vm9265_vm5, %v9224_v62  ;;  %v8329_v29 = vsel %vm7305_vm6, %v6793_v2, %v7817_v43  ;;  %vm7433_vm7 = vcmp.gt.f32.partialorder %v6921_v10, 0.0  ;;  %v7945_v17 = vmul.f32 0.01, %v6921_v10 }
 0x4d6   : > { %v8841_v40 = vpack.c.bf16 %v8329_v29, %v8329_v29  ;;  %vm7561_vm8 = vcmp.gt.f32.partialorder %v7049_v25, 0.0  ;;  %v8073_v55 = vmul.f32 0.01, %v7049_v25  ;;  %6147 = vst.msk [vmem:[#allocation2 + $0xec8] sm:$0xff] %vm264_vm3, %v5634_v6  ;;  %v15667_v2 = vpop.f32.mrf.mxu2  ;;  %v11437_v29 = vld [vmem:[%s11574_s26 + $0x7b8] sm:$0xff] }
 0x4d7   : > { %v8457_v30 = vsel %vm7433_vm7, %v6921_v10, %v7945_v17  ;;  %v6661_v49 = vld [vmem:[#allocation2 + $0xec0] sm:$0xff]  ;;  %5764 = vst.msk [vmem:[#allocation2 + $0x2d0] sm:$0xff] %vm264_vm3, %v5251_v11  ;;  %v15669_v60 = vpop.f32.mrf.mxu3  ;;  %v15676_v57 = vpop.f32.mrf.mxu0 }
 0x4d8   : > { %9354 = vst.msk [vmem:[%s11763_s4 + $0x160] sm:$0xf] %vm9265_vm5, %v8841_v40  ;;  %v8969_v54 = vpack.c.bf16 %v8457_v30, %v8457_v30  ;;  %v8585_v14 = vsel %vm7561_vm8, %v7049_v25, %v8073_v55  ;;  %v7177_v23 = vadd.f32 %v15588_v37, %v6661_v49  ;;  %v6278_v45 = vld [vmem:[#allocation2 + $0x2c8] sm:$0xff]  ;;  %v15678_v62 = vpop.f32.mrf.mxu1  ;;  %v11373_v25 = vld [vmem:[%s11574_s26 + $0x5b8] sm:$0xff]  ;;  %10987 = vmatmul.msk.bf16.gmra.mxu0 %vm3096_vm2, %v11245_v58 }
 0x4d9   : > { %v9097_v52 = vpack.c.bf16 %v8585_v14, %v8585_v14  ;;  %v6794_v63 = vadd.f32 %v15588_v37, %v6278_v45  ;;  %5892 = vst.msk [vmem:[#allocation2 + $0x6d0] sm:$0xff] %vm264_vm3, %v5379_v13  ;;  %v5636_v13 = vadd.f32 %v15605_v21, %v1252_v1  ;;  %v5253_v14 = vadd.f32 %v15610_v50, %v869_v33  ;;  %v1254_v33 = vld [vmem:[#allocation2 + $0xee8] sm:$0xff] }
 0x4da   : > { %9482 = vst.msk [vmem:[%s11763_s4 + $0x360] sm:$0xf] %vm9265_vm5, %v8969_v54  ;;  %vm7689_vm9 = vcmp.gt.f32.partialorder %v7177_v23, 0.0  ;;  %v8201_v48 = vmul.f32 0.01, %v7177_v23  ;;  %v6406_v16 = vld [vmem:[#allocation2 + $0x6c8] sm:$0xff]  ;;  %11051 = vmatmul.msk.bf16.gmra.mxu1 %vm3096_vm2, %v11309_v26 }
 0x4db   : > { %9610 = vst.msk [vmem:[%s11763_s4 + $0x560] sm:$0xf] %vm9265_vm5, %v9097_v52  ;;  %vm7306_vm10 = vcmp.gt.f32.partialorder %v6794_v63, 0.0  ;;  %v7818_v4 = vmul.f32 0.01, %v6794_v63  ;;  %v6922_v35 = vadd.f32 %v15588_v37, %v6406_v16  ;;  %v6534_v3 = vld [vmem:[#allocation2 + $0xac8] sm:$0xff]  ;;  %11115 = vmatmul.msk.bf16.gmra.mxu2 %vm3096_vm2, %v11373_v25 }
 0x4dc   : > { %v8713_v42 = vsel %vm7689_vm9, %v7177_v23, %v8201_v48  ;;  %v7050_v22 = vadd.f32 %v15588_v37, %v6534_v3  ;;  %6020 = vst.msk [vmem:[#allocation2 + $0xad0] sm:$0xff] %vm264_vm3, %v5507_v9  ;;  %v5381_v9 = vadd.f32 %v15612_v19, %v997_v47  ;;  %11179 = vmatmul.msk.bf16.gmra.mxu3 %vm3096_vm2, %v11437_v29  ;;  %v1253_v48 = vld [vmem:[#allocation2 + $0xee0] sm:$0xff] }
 0x4dd   : > { %v9225_v15 = vpack.c.bf16 %v8713_v42, %v8713_v42  ;;  %v8330_v12 = vsel %vm7306_vm10, %v6794_v63, %v7818_v4  ;;  %vm7434_vm11 = vcmp.gt.f32.partialorder %v6922_v35, 0.0  ;;  %v7946_v36 = vmul.f32 0.01, %v6922_v35  ;;  %v6662_v56 = vld [vmem:[#allocation2 + $0xec8] sm:$0xff]  ;;  %6148 = vst.msk [vmem:[#allocation2 + $0xed0] sm:$0xff] %vm264_vm3, %v5635_v44  ;;  %v11374_v47 = vld [vmem:[%s11574_s26 + $0x5c0] sm:$0xff] }
 0x4de   : > { %v8842_v24 = vpack.c.bf16 %v8330_v12, %v8330_v12  ;;  %vm7562_vm12 = vcmp.gt.f32.partialorder %v7050_v22, 0.0  ;;  %v8074_v31 = vmul.f32 0.01, %v7050_v22  ;;  %v7178_v38 = vadd.f32 %v15588_v37, %v6662_v56  ;;  %v6279_v61 = vld [vmem:[#allocation2 + $0x2d0] sm:$0xff]  ;;  %5765 = vst.msk [vmem:[#allocation2 + $0x2d8] sm:$0xff] %vm264_vm3, %v5252_v53  ;;  %v15704_v16 = vpop.f32.mrf.mxu2  ;;  %v870_v56 = vld [vmem:[#allocation2 + $0x2e8] sm:$0xff] }
 0x4df   : > { %9738 = vst.msk [vmem:[%s11763_s4 + $0x760] sm:$0xf] %vm9265_vm5, %v9225_v15  ;;  %v8458_v41 = vsel %vm7434_vm11, %v6922_v35, %v7946_v36  ;;  %v6795_v32 = vadd.f32 %v15588_v37, %v6279_v61  ;;  %v15706_v19 = vpop.f32.mrf.mxu3  ;;  %v15710_v3 = vpop.f32.mrf.mxu0  ;;  %v5509_v36 = vadd.f32 %v15636_v46, %v1125_v8  ;;  %v5637_v1 = vadd.f32 %v15638_v59, %v1253_v48 }
 0x4e0   : > { %9355 = vst.msk [vmem:[%s11763_s4 + $0x164] sm:$0xf] %vm9265_vm5, %v8842_v24  ;;  %v8970_v27 = vpack.c.bf16 %v8458_v41, %v8458_v41  ;;  %v8586_v6 = vsel %vm7562_vm12, %v7050_v22, %v8074_v31  ;;  %vm7690_vm13 = vcmp.gt.f32.partialorder %v7178_v38, 0.0  ;;  %v8202_v11 = vmul.f32 0.01, %v7178_v38  ;;  %v6407_v20 = vld [vmem:[#allocation2 + $0x6d0] sm:$0xff]  ;;  %v15712_v42 = vpop.f32.mrf.mxu1 }
 0x4e1   : > { %v9098_v43 = vpack.c.bf16 %v8586_v6, %v8586_v6  ;;  %vm7307_vm14 = vcmp.gt.f32.partialorder %v6795_v32, 0.0  ;;  %v7819_v10 = vmul.f32 0.01, %v6795_v32  ;;  %v6923_v18 = vadd.f32 %v15588_v37, %v6407_v20  ;;  %5893 = vst.msk [vmem:[#allocation2 + $0x6d8] sm:$0xff] %vm264_vm3, %v5380_v28  ;;  %v998_v24 = vld [vmem:[#allocation2 + $0x6e8] sm:$0xff] }
 0x4e2   : > { %9483 = vst.msk [vmem:[%s11763_s4 + $0x364] sm:$0xf] %vm9265_vm5, %v8970_v27  ;;  %v8714_v17 = vsel %vm7690_vm13, %v7178_v38, %v8202_v11  ;;  %v5254_v46 = vadd.f32 %v15644_v34, %v870_v56  ;;  %v5382_v59 = vadd.f32 %v15646_v39, %v998_v24  ;;  %v871_v11 = vld [vmem:[#allocation2 + $0x2f0] sm:$0xff]  ;;  %v5638_v39 = vadd.f32 %v15669_v60, %v1254_v33 }
 0x4e3   : > { %9611 = vst.msk [vmem:[%s11763_s4 + $0x564] sm:$0xf] %vm9265_vm5, %v9098_v43  ;;  %v9226_v40 = vpack.c.bf16 %v8714_v17, %v8714_v17  ;;  %v8331_v55 = vsel %vm7307_vm14, %v6795_v32, %v7819_v10  ;;  %vm7435_vm15 = vcmp.gt.f32.partialorder %v6923_v18, 0.0  ;;  %v7947_v0 = vmul.f32 0.01, %v6923_v18  ;;  %v6535_v30 = vld [vmem:[#allocation2 + $0xad0] sm:$0xff] }
 0x4e4   : > { %v8843_v49 = vpack.c.bf16 %v8331_v55, %v8331_v55  ;;  %v7051_v5 = vadd.f32 %v15588_v37, %v6535_v30  ;;  %v6663_v54 = vld [vmem:[#allocation2 + $0xed0] sm:$0xff]  ;;  %6021 = vst.msk [vmem:[#allocation2 + $0xad8] sm:$0xff] %vm264_vm3, %v5508_v51  ;;  %v1126_v51 = vld [vmem:[#allocation2 + $0xae8] sm:$0xff]  ;;  %v11246_v43 = vld [vmem:[%s11574_s26 + $0x1c0] sm:$0xff] }
 0x4e5   : > { %9739 = vst.msk [vmem:[%s11763_s4 + $0x764] sm:$0xf] %vm9265_vm5, %v9226_v40  ;;  %v8459_v21 = vsel %vm7435_vm15, %v6923_v18, %v7947_v0  ;;  %v7179_v23 = vadd.f32 %v15588_v37, %v6663_v54  ;;  %v6280_v45 = vld [vmem:[#allocation2 + $0x2d8] sm:$0xff]  ;;  %v5510_v25 = vadd.f32 %v15667_v2, %v1126_v51  ;;  %v5255_v54 = vadd.f32 %v15676_v57, %v871_v11 }
 0x4e6   : > { %9356 = vst.msk [vmem:[%s11763_s4 + $0x168] sm:$0xf] %vm9265_vm5, %v8843_v49  ;;  %v8971_v50 = vpack.c.bf16 %v8459_v21, %v8459_v21  ;;  %vm7563_vm0 = vcmp.gt.f32.partialorder %v7051_v5, 0.0  ;;  %v8075_v52 = vmul.f32 0.01, %v7051_v5  ;;  %v6796_v63 = vadd.f32 %v15588_v37, %v6280_v45  ;;  %v15731_v20 = vpop.f32.mrf.mxu2  ;;  %v11438_v49 = vld [vmem:[%s11574_s26 + $0x7c0] sm:$0xff] }
 0x4e7   : > { %vm7691_vm1 = vcmp.gt.f32.partialorder %v7179_v23, 0.0  ;;  %v8203_v44 = vmul.f32 0.01, %v7179_v23  ;;  %6149 = vst.msk [vmem:[#allocation2 + $0xed8] sm:$0xff] %vm264_vm3, %v5636_v13  ;;  %v15733_v34 = vpop.f32.mrf.mxu3  ;;  %v15740_v29 = vpop.f32.mrf.mxu0  ;;  %v11310_v13 = vld [vmem:[%s11574_s26 + $0x3c0] sm:$0xff]  ;;  %v1127_v45 = vld [vmem:[#allocation2 + $0xaf0] sm:$0xff] }
 0x4e8   : > { %9484 = vst.msk [vmem:[%s11763_s4 + $0x368] sm:$0xf] %vm9265_vm5, %v8971_v50  ;;  %v8587_v53 = vsel %vm7563_vm0, %v7051_v5, %v8075_v52  ;;  %vm7308_vm4 = vcmp.gt.f32.partialorder %v6796_v63, 0.0  ;;  %v7820_v4 = vmul.f32 0.01, %v6796_v63  ;;  %v6408_v35 = vld [vmem:[#allocation2 + $0x6d8] sm:$0xff]  ;;  %v15742_v17 = vpop.f32.mrf.mxu1  ;;  %10988 = vmatmul.msk.bf16.gmra.mxu0 %vm3096_vm2, %v11246_v43 }
 0x4e9   : > { %v9099_v22 = vpack.c.bf16 %v8587_v53, %v8587_v53  ;;  %v8715_v28 = vsel %vm7691_vm1, %v7179_v23, %v8203_v44  ;;  %v6924_v7 = vadd.f32 %v15588_v37, %v6408_v35  ;;  %5766 = vst.msk [vmem:[#allocation2 + $0x2e0] sm:$0xff] %vm264_vm3, %v5253_v14  ;;  %v999_v14 = vld [vmem:[#allocation2 + $0x6f0] sm:$0xff]  ;;  %v5511_v35 = vadd.f32 %v15704_v16, %v1127_v45  ;;  %v1128_v11 = vld [vmem:[#allocation2 + $0xaf8] sm:$0xff] }
 0x4ea   : > { %v9227_v15 = vpack.c.bf16 %v8715_v28, %v8715_v28  ;;  %v8332_v12 = vsel %vm7308_vm4, %v6796_v63, %v7820_v4  ;;  %5894 = vst.msk [vmem:[#allocation2 + $0x6e0] sm:$0xff] %vm264_vm3, %v5381_v9  ;;  %11052 = vmatmul.msk.bf16.gmra.mxu1 %vm3096_vm2, %v11310_v13  ;;  %v1255_v52 = vld [vmem:[#allocation2 + $0xef0] sm:$0xff]  ;;  %v5383_v48 = vadd.f32 %v15678_v62, %v999_v14  ;;  %v11375_v14 = vld [vmem:[%s11574_s26 + $0x5c8] sm:$0xff] }
 0x4eb   : > { %9612 = vst.msk [vmem:[%s11763_s4 + $0x568] sm:$0xf] %vm9265_vm5, %v9099_v22  ;;  %v8844_v31 = vpack.c.bf16 %v8332_v12, %v8332_v12  ;;  %vm7436_vm6 = vcmp.gt.f32.partialorder %v6924_v7, 0.0  ;;  %v7948_v38 = vmul.f32 0.01, %v6924_v7  ;;  %v6536_v61 = vld [vmem:[#allocation2 + $0xad8] sm:$0xff]  ;;  %11116 = vmatmul.msk.bf16.gmra.mxu2 %vm3096_vm2, %v11374_v47 }
 0x4ec   : > { %9740 = vst.msk [vmem:[%s11763_s4 + $0x768] sm:$0xf] %vm9265_vm5, %v9227_v15  ;;  %v7052_v41 = vadd.f32 %v15588_v37, %v6536_v61  ;;  %11180 = vmatmul.msk.bf16.gmra.mxu3 %vm3096_vm2, %v11438_v49  ;;  %v872_v22 = vld [vmem:[#allocation2 + $0x2f8] sm:$0xff] }
 0x4ed   : > { %9357 = vst.msk [vmem:[%s11763_s4 + $0x16c] sm:$0xf] %vm9265_vm5, %v8844_v31  ;;  %v8460_v32 = vsel %vm7436_vm6, %v6924_v7, %v7948_v38 }
 0x4ee   : > { %v8972_v58 = vpack.c.bf16 %v8460_v32, %v8460_v32  ;;  %vm7564_vm7 = vcmp.gt.f32.partialorder %v7052_v41, 0.0  ;;  %v8076_v26 = vmul.f32 0.01, %v7052_v41  ;;  %v6664_v27 = vld [vmem:[#allocation2 + $0xed8] sm:$0xff]  ;;  %6022 = vst.msk [vmem:[#allocation2 + $0xae0] sm:$0xff] %vm264_vm3, %v5509_v36  ;;  %v15767_v28 = vpop.f32.mrf.mxu2  ;;  %v5639_v36 = vadd.f32 %v15706_v19, %v1255_v52 }
 0x4ef   : > { %v7180_v6 = vadd.f32 %v15588_v37, %v6664_v27  ;;  %6150 = vst.msk [vmem:[#allocation2 + $0xee0] sm:$0xff] %vm264_vm3, %v5637_v1  ;;  %v15769_v7 = vpop.f32.mrf.mxu3  ;;  %v15774_v62 = vpop.f32.mrf.mxu0  ;;  %v5256_v1 = vadd.f32 %v15710_v3, %v872_v22  ;;  %v1000_v19 = vld [vmem:[#allocation2 + $0x6f8] sm:$0xff] }
 0x4f0   : > { %9485 = vst.msk [vmem:[%s11763_s4 + $0x36c] sm:$0xf] %vm9265_vm5, %v8972_v58  ;;  %v8588_v10 = vsel %vm7564_vm7, %v7052_v41, %v8076_v26  ;;  %v6281_v18 = vld [vmem:[#allocation2 + $0x2e0] sm:$0xff]  ;;  %v15776_v56 = vpop.f32.mrf.mxu1 }
 0x4f1   : > { %v9100_v40 = vpack.c.bf16 %v8588_v10, %v8588_v10  ;;  %vm7692_vm8 = vcmp.gt.f32.partialorder %v7180_v6, 0.0  ;;  %v8204_v55 = vmul.f32 0.01, %v7180_v6  ;;  %v6797_v0 = vadd.f32 %v15588_v37, %v6281_v18  ;;  %v6409_v30 = vld [vmem:[#allocation2 + $0x6e0] sm:$0xff]  ;;  %5767 = vst.msk [vmem:[#allocation2 + $0x2e8] sm:$0xff] %vm264_vm3, %v5254_v46 }
 0x4f2   : > { %v6925_v5 = vadd.f32 %v15588_v37, %v6409_v30  ;;  %5895 = vst.msk [vmem:[#allocation2 + $0x6e8] sm:$0xff] %vm264_vm3, %v5382_v59  ;;  %v11247_v30 = vld [vmem:[%s11574_s26 + $0x1c8] sm:$0xff] }
 0x4f3   : > { %9613 = vst.msk [vmem:[%s11763_s4 + $0x56c] sm:$0xf] %vm9265_vm5, %v9100_v40  ;;  %v8716_v2 = vsel %vm7692_vm8, %v7180_v6, %v8204_v55  ;;  %vm7309_vm9 = vcmp.gt.f32.partialorder %v6797_v0, 0.0  ;;  %v7821_v60 = vmul.f32 0.01, %v6797_v0  ;;  %v5384_v6 = vadd.f32 %v15712_v42, %v1000_v19  ;;  %v873_v40 = vld [vmem:[#allocation2 + $0x300] sm:$0xff] }
 0x4f4   : > { %v9228_v21 = vpack.c.bf16 %v8716_v2, %v8716_v2  ;;  %vm7437_vm10 = vcmp.gt.f32.partialorder %v6925_v5, 0.0  ;;  %v7949_v23 = vmul.f32 0.01, %v6925_v5  ;;  %6023 = vst.msk [vmem:[#allocation2 + $0xae8] sm:$0xff] %vm264_vm3, %v5510_v25 }
 0x4f5   : > { %v8333_v9 = vsel %vm7309_vm9, %v6797_v0, %v7821_v60  ;;  %v6537_v50 = vld [vmem:[#allocation2 + $0xae0] sm:$0xff]  ;;  %6151 = vst.msk [vmem:[#allocation2 + $0xee8] sm:$0xff] %vm264_vm3, %v5638_v39  ;;  %v1256_v39 = vld [vmem:[#allocation2 + $0xef8] sm:$0xff] }
 0x4f6   : > { %9741 = vst.msk [vmem:[%s11763_s4 + $0x76c] sm:$0xf] %vm9265_vm5, %v9228_v21  ;;  %v8845_v57 = vpack.c.bf16 %v8333_v9, %v8333_v9  ;;  %v8461_v63 = vsel %vm7437_vm10, %v6925_v5, %v7949_v23  ;;  %v7053_v44 = vadd.f32 %v15588_v37, %v6537_v50  ;;  %v6665_v8 = vld [vmem:[#allocation2 + $0xee0] sm:$0xff]  ;;  %v15795_v55 = vpop.f32.mrf.mxu2  ;;  %v5512_v5 = vadd.f32 %v15731_v20, %v1128_v11  ;;  %v11439_v21 = vld [vmem:[%s11574_s26 + $0x7c8] sm:$0xff] }
 0x4f7   : > { %v8973_v53 = vpack.c.bf16 %v8461_v63, %v8461_v63  ;;  %v7181_v4 = vadd.f32 %v15588_v37, %v6665_v8  ;;  %5768 = vst.msk [vmem:[#allocation2 + $0x2f0] sm:$0xff] %vm264_vm3, %v5255_v54  ;;  %v15797_v0 = vpop.f32.mrf.mxu3  ;;  %v15803_v2 = vpop.f32.mrf.mxu0  ;;  %v11311_v54 = vld [vmem:[%s11574_s26 + $0x3c8] sm:$0xff] }
 0x4f8   : > { %9358 = vst.msk [vmem:[%s11763_s4 + $0x170] sm:$0xf] %vm9265_vm5, %v8845_v57  ;;  %vm7565_vm11 = vcmp.gt.f32.partialorder %v7053_v44, 0.0  ;;  %v8077_v15 = vmul.f32 0.01, %v7053_v44  ;;  %v6282_v12 = vld [vmem:[#allocation2 + $0x2e8] sm:$0xff]  ;;  %v15805_v60 = vpop.f32.mrf.mxu1  ;;  %10989 = vmatmul.msk.bf16.gmra.mxu0 %vm3096_vm2, %v11247_v30 }
 0x4f9   : > { %9486 = vst.msk [vmem:[%s11763_s4 + $0x370] sm:$0xf] %vm9265_vm5, %v8973_v53  ;;  %vm7693_vm12 = vcmp.gt.f32.partialorder %v7181_v4, 0.0  ;;  %v8205_v16 = vmul.f32 0.01, %v7181_v4  ;;  %v6798_v24 = vadd.f32 %v15588_v37, %v6282_v12  ;;  %v6410_v31 = vld [vmem:[#allocation2 + $0x6e8] sm:$0xff]  ;;  %v5257_v53 = vadd.f32 %v15740_v29, %v873_v40 }
 0x4fa   : > { %v8589_v38 = vsel %vm7565_vm11, %v7053_v44, %v8077_v15  ;;  %v6926_v61 = vadd.f32 %v15588_v37, %v6410_v31  ;;  %5896 = vst.msk [vmem:[#allocation2 + $0x6f0] sm:$0xff] %vm264_vm3, %v5383_v48  ;;  %v5640_v48 = vadd.f32 %v15733_v34, %v1256_v39  ;;  %11053 = vmatmul.msk.bf16.gmra.mxu1 %vm3096_vm2, %v11311_v54  ;;  %v1001_v12 = vld [vmem:[#allocation2 + $0x700] sm:$0xff]  ;;  %v1258_v30 = vld [vmem:[#allocation2 + $0xf08] sm:$0xff] }
 0x4fb   : > { %v9101_v41 = vpack.c.bf16 %v8589_v38, %v8589_v38  ;;  %v8717_v32 = vsel %vm7693_vm12, %v7181_v4, %v8205_v16  ;;  %vm7310_vm13 = vcmp.gt.f32.partialorder %v6798_v24, 0.0  ;;  %v7822_v46 = vmul.f32 0.01, %v6798_v24  ;;  %v6538_v51 = vld [vmem:[#allocation2 + $0xae8] sm:$0xff]  ;;  %6024 = vst.msk [vmem:[#allocation2 + $0xaf0] sm:$0xff] %vm264_vm3, %v5511_v35  ;;  %v1129_v34 = vld [vmem:[#allocation2 + $0xb00] sm:$0xff]  ;;  %11117 = vmatmul.msk.bf16.gmra.mxu2 %vm3096_vm2, %v11375_v14 }
 0x4fc   : > { %v9229_v33 = vpack.c.bf16 %v8717_v32, %v8717_v32  ;;  %vm7438_vm14 = vcmp.gt.f32.partialorder %v6926_v61, 0.0  ;;  %v7950_v58 = vmul.f32 0.01, %v6926_v61  ;;  %v7054_v26 = vadd.f32 %v15588_v37, %v6538_v51  ;;  %v6666_v27 = vld [vmem:[#allocation2 + $0xee8] sm:$0xff]  ;;  %6152 = vst.msk [vmem:[#allocation2 + $0xef0] sm:$0xff] %vm264_vm3, %v5639_v36  ;;  %11181 = vmatmul.msk.bf16.gmra.mxu3 %vm3096_vm2, %v11439_v21  ;;  %v875_v14 = vld [vmem:[#allocation2 + $0x310] sm:$0xff] }
 0x4fd   : > { %9614 = vst.msk [vmem:[%s11763_s4 + $0x570] sm:$0xf] %vm9265_vm5, %v9101_v41  ;;  %v8334_v3 = vsel %vm7310_vm13, %v6798_v24, %v7822_v46  ;;  %v7182_v59 = vadd.f32 %v15588_v37, %v6666_v27  ;;  %v5385_v32 = vadd.f32 %v15742_v17, %v1001_v12  ;;  %v1257_v46 = vld [vmem:[#allocation2 + $0xf00] sm:$0xff]  ;;  %v874_v51 = vld [vmem:[#allocation2 + $0x308] sm:$0xff] }
 0x4fe   : > { %9742 = vst.msk [vmem:[%s11763_s4 + $0x770] sm:$0xf] %vm9265_vm5, %v9229_v33  ;;  %v8846_v43 = vpack.c.bf16 %v8334_v3, %v8334_v3  ;;  %v8462_v10 = vsel %vm7438_vm14, %v6926_v61, %v7950_v58  ;;  %vm7566_vm15 = vcmp.gt.f32.partialorder %v7054_v26, 0.0  ;;  %v8078_v18 = vmul.f32 0.01, %v7054_v26  ;;  %v6283_v25 = vld [vmem:[#allocation2 + $0x2f0] sm:$0xff]  ;;  %v15832_v61 = vpop.f32.mrf.mxu2 }
 0x4ff   : > { %v8974_v13 = vpack.c.bf16 %v8462_v10, %v8462_v10  ;;  %vm7694_vm0 = vcmp.gt.f32.partialorder %v7182_v59, 0.0  ;;  %v8206_v47 = vmul.f32 0.01, %v7182_v59  ;;  %v6799_v42 = vadd.f32 %v15588_v37, %v6283_v25  ;;  %5769 = vst.msk [vmem:[#allocation2 + $0x2f8] sm:$0xff] %vm264_vm3, %v5256_v1  ;;  %v15834_v1 = vpop.f32.mrf.mxu3  ;;  %v15838_v33 = vpop.f32.mrf.mxu0  ;;  %v1130_v10 = vld [vmem:[#allocation2 + $0xb08] sm:$0xff] }
 0x500   : > { %9359 = vst.msk [vmem:[%s11763_s4 + $0x174] sm:$0xf] %vm9265_vm5, %v8846_v43  ;;  %v8590_v49 = vsel %vm7566_vm15, %v7054_v26, %v8078_v18  ;;  %v15840_v58 = vpop.f32.mrf.mxu1  ;;  %v5641_v11 = vadd.f32 %v15769_v7, %v1257_v46  ;;  %v1002_v43 = vld [vmem:[#allocation2 + $0x708] sm:$0xff]  ;;  %v5514_v40 = vadd.f32 %v15795_v55, %v1130_v10 }
 0x501   : > { %9487 = vst.msk [vmem:[%s11763_s4 + $0x374] sm:$0xf] %vm9265_vm5, %v8974_v13  ;;  %v9102_v23 = vpack.c.bf16 %v8590_v49, %v8590_v49  ;;  %v8718_v45 = vsel %vm7694_vm0, %v7182_v59, %v8206_v47  ;;  %vm7311_vm1 = vcmp.gt.f32.partialorder %v6799_v42, 0.0  ;;  %v7823_v9 = vmul.f32 0.01, %v6799_v42  ;;  %v6411_v50 = vld [vmem:[#allocation2 + $0x6f0] sm:$0xff] }
 0x502   : > { %v9230_v52 = vpack.c.bf16 %v8718_v45, %v8718_v45  ;;  %v6927_v20 = vadd.f32 %v15588_v37, %v6411_v50  ;;  %v6539_v57 = vld [vmem:[#allocation2 + $0xaf0] sm:$0xff]  ;;  %5897 = vst.msk [vmem:[#allocation2 + $0x6f8] sm:$0xff] %vm264_vm3, %v5384_v6  ;;  %v5513_v59 = vadd.f32 %v15767_v28, %v1129_v34  ;;  %v5258_v28 = vadd.f32 %v15774_v62, %v874_v51 }
 0x503   : > { %9615 = vst.msk [vmem:[%s11763_s4 + $0x574] sm:$0xf] %vm9265_vm5, %v9102_v23  ;;  %v8335_v63 = vsel %vm7311_vm1, %v6799_v42, %v7823_v9  ;;  %v7055_v44 = vadd.f32 %v15588_v37, %v6539_v57  ;;  %v6667_v8 = vld [vmem:[#allocation2 + $0xef0] sm:$0xff]  ;;  %v5386_v7 = vadd.f32 %v15776_v56, %v1002_v43 }
 0x504   : > { %9743 = vst.msk [vmem:[%s11763_s4 + $0x774] sm:$0xf] %vm9265_vm5, %v9230_v52  ;;  %v8847_v4 = vpack.c.bf16 %v8335_v63, %v8335_v63  ;;  %vm7439_vm4 = vcmp.gt.f32.partialorder %v6927_v20, 0.0  ;;  %v7951_v35 = vmul.f32 0.01, %v6927_v20  ;;  %v7183_v22 = vadd.f32 %v15588_v37, %v6667_v8  ;;  %v11248_v9 = vld [vmem:[%s11574_s26 + $0x1d0] sm:$0xff] }
 0x505   : > { %vm7567_vm6 = vcmp.gt.f32.partialorder %v7055_v44, 0.0  ;;  %v8079_v15 = vmul.f32 0.01, %v7055_v44  ;;  %6025 = vst.msk [vmem:[#allocation2 + $0xaf8] sm:$0xff] %vm264_vm3, %v5512_v5  ;;  %v11312_v50 = vld [vmem:[%s11574_s26 + $0x3d0] sm:$0xff]  ;;  %v5642_v63 = vadd.f32 %v15797_v0, %v1258_v30 }
 0x506   : > { %9360 = vst.msk [vmem:[%s11763_s4 + $0x178] sm:$0xf] %vm9265_vm5, %v8847_v4  ;;  %v8463_v29 = vsel %vm7439_vm4, %v6927_v20, %v7951_v35  ;;  %vm7695_vm7 = vcmp.gt.f32.partialorder %v7183_v22, 0.0  ;;  %v8207_v36 = vmul.f32 0.01, %v7183_v22  ;;  %v6284_v16 = vld [vmem:[#allocation2 + $0x2f8] sm:$0xff]  ;;  %v15861_v21 = vpop.f32.mrf.mxu2 }
 0x507   : > { %v8975_v24 = vpack.c.bf16 %v8463_v29, %v8463_v29  ;;  %v8591_v31 = vsel %vm7567_vm6, %v7055_v44, %v8079_v15  ;;  %v6800_v38 = vadd.f32 %v15588_v37, %v6284_v16  ;;  %6153 = vst.msk [vmem:[#allocation2 + $0xef8] sm:$0xff] %vm264_vm3, %v5640_v48  ;;  %v15863_v56 = vpop.f32.mrf.mxu3  ;;  %v15867_v23 = vpop.f32.mrf.mxu0  ;;  %v11376_v52 = vld [vmem:[%s11574_s26 + $0x5d0] sm:$0xff] }
 0x508   : > { %v9103_v19 = vpack.c.bf16 %v8591_v31, %v8591_v31  ;;  %v8719_v41 = vsel %vm7695_vm7, %v7183_v22, %v8207_v36  ;;  %5770 = vst.msk [vmem:[#allocation2 + $0x300] sm:$0xff] %vm264_vm3, %v5257_v53  ;;  %v15869_v45 = vpop.f32.mrf.mxu1  ;;  %v11440_v44 = vld [vmem:[%s11574_s26 + $0x7d0] sm:$0xff]  ;;  %v5259_v22 = vadd.f32 %v15803_v2, %v875_v14  ;;  %10990 = vmatmul.msk.bf16.gmra.mxu0 %vm3096_vm2, %v11248_v9  ;;  %v1260_v9 = vld [vmem:[#allocation2 + $0xf18] sm:$0xff] }
 0x509   : > { %9488 = vst.msk [vmem:[%s11763_s4 + $0x378] sm:$0xf] %vm9265_vm5, %v8975_v24  ;;  %v9231_v26 = vpack.c.bf16 %v8719_v41, %v8719_v41  ;;  %vm7312_vm8 = vcmp.gt.f32.partialorder %v6800_v38, 0.0  ;;  %v7824_v27 = vmul.f32 0.01, %v6800_v38  ;;  %v6412_v3 = vld [vmem:[#allocation2 + $0x6f8] sm:$0xff] }
 0x50a   : > { %9616 = vst.msk [vmem:[%s11763_s4 + $0x578] sm:$0xf] %vm9265_vm5, %v9103_v19  ;;  %v6928_v6 = vadd.f32 %v15588_v37, %v6412_v3  ;;  %v1003_v53 = vld [vmem:[#allocation2 + $0x710] sm:$0xff]  ;;  %11054 = vmatmul.msk.bf16.gmra.mxu1 %vm3096_vm2, %v11312_v50 }
 0x50b   : > { %9744 = vst.msk [vmem:[%s11763_s4 + $0x778] sm:$0xf] %vm9265_vm5, %v9231_v26  ;;  %v8336_v17 = vsel %vm7312_vm8, %v6800_v38, %v7824_v27  ;;  %v1131_v15 = vld [vmem:[#allocation2 + $0xb10] sm:$0xff]  ;;  %v5387_v2 = vadd.f32 %v15805_v60, %v1003_v53  ;;  %11118 = vmatmul.msk.bf16.gmra.mxu2 %vm3096_vm2, %v11376_v52  ;;  %v11249_v53 = vld [vmem:[%s11574_s26 + $0x1d8] sm:$0xff] }
 0x50c   : > { %v8848_v18 = vpack.c.bf16 %v8336_v17, %v8336_v17  ;;  %vm7440_vm9 = vcmp.gt.f32.partialorder %v6928_v6, 0.0  ;;  %v7952_v25 = vmul.f32 0.01, %v6928_v6  ;;  %v6540_v39 = vld [vmem:[#allocation2 + $0xaf8] sm:$0xff]  ;;  %5898 = vst.msk [vmem:[#allocation2 + $0x700] sm:$0xff] %vm264_vm3, %v5385_v32  ;;  %v1259_v24 = vld [vmem:[#allocation2 + $0xf10] sm:$0xff]  ;;  %11182 = vmatmul.msk.bf16.gmra.mxu3 %vm3096_vm2, %v11440_v44  ;;  %v5515_v19 = vadd.f32 %v15832_v61, %v1131_v15 }
 0x50d   : > { %v7056_v13 = vadd.f32 %v15588_v37, %v6540_v39  ;;  %6026 = vst.msk [vmem:[#allocation2 + $0xb00] sm:$0xff] %vm264_vm3, %v5513_v59  ;;  %v5643_v3 = vadd.f32 %v15834_v1, %v1259_v24  ;;  %v876_v61 = vld [vmem:[#allocation2 + $0x318] sm:$0xff] }
 0x50e   : > { %9361 = vst.msk [vmem:[%s11763_s4 + $0x17c] sm:$0xf] %vm9265_vm5, %v8848_v18  ;;  %v8464_v47 = vsel %vm7440_vm9, %v6928_v6, %v7952_v25  ;;  %v6668_v42 = vld [vmem:[#allocation2 + $0xef8] sm:$0xff]  ;;  %v15898_v60 = vpop.f32.mrf.mxu2 }
 0x50f   : > { %v8976_v49 = vpack.c.bf16 %v8464_v47, %v8464_v47  ;;  %vm7568_vm10 = vcmp.gt.f32.partialorder %v7056_v13, 0.0  ;;  %v8080_v62 = vmul.f32 0.01, %v7056_v13  ;;  %v7184_v5 = vadd.f32 %v15588_v37, %v6668_v42  ;;  %v6285_v54 = vld [vmem:[#allocation2 + $0x300] sm:$0xff]  ;;  %6154 = vst.msk [vmem:[#allocation2 + $0xf00] sm:$0xff] %vm264_vm3, %v5641_v11  ;;  %v15900_v51 = vpop.f32.mrf.mxu3  ;;  %v15905_v59 = vpop.f32.mrf.mxu0  ;;  %v1004_v42 = vld [vmem:[#allocation2 + $0x718] sm:$0xff] }
 0x510   : > { %v6801_v55 = vadd.f32 %v15588_v37, %v6285_v54  ;;  %5771 = vst.msk [vmem:[#allocation2 + $0x308] sm:$0xff] %vm264_vm3, %v5258_v28  ;;  %v15907_v6 = vpop.f32.mrf.mxu1  ;;  %v5260_v47 = vadd.f32 %v15838_v33, %v876_v61  ;;  %v5388_v33 = vadd.f32 %v15840_v58, %v1004_v42  ;;  %v878_v42 = vld [vmem:[#allocation2 + $0x328] sm:$0xff] }
 0x511   : > { %9489 = vst.msk [vmem:[%s11763_s4 + $0x37c] sm:$0xf] %vm9265_vm5, %v8976_v49  ;;  %v8592_v20 = vsel %vm7568_vm10, %v7056_v13, %v8080_v62  ;;  %vm7696_vm11 = vcmp.gt.f32.partialorder %v7184_v5, 0.0  ;;  %v8208_v57 = vmul.f32 0.01, %v7184_v5 }
 0x512   : > { %v9104_v8 = vpack.c.bf16 %v8592_v20, %v8592_v20  ;;  %vm7313_vm12 = vcmp.gt.f32.partialorder %v6801_v55, 0.0  ;;  %v7825_v48 = vmul.f32 0.01, %v6801_v55  ;;  %5899 = vst.msk [vmem:[#allocation2 + $0x708] sm:$0xff] %vm264_vm3, %v5386_v7 }
 0x513   : > { %v8720_v4 = vsel %vm7696_vm11, %v7184_v5, %v8208_v57  ;;  %v6413_v35 = vld [vmem:[#allocation2 + $0x700] sm:$0xff]  ;;  %6027 = vst.msk [vmem:[#allocation2 + $0xb08] sm:$0xff] %vm264_vm3, %v5514_v40 }
 0x514   : > { %9617 = vst.msk [vmem:[%s11763_s4 + $0x57c] sm:$0xf] %vm9265_vm5, %v9104_v8  ;;  %v9232_v12 = vpack.c.bf16 %v8720_v4, %v8720_v4  ;;  %v8337_v34 = vsel %vm7313_vm12, %v6801_v55, %v7825_v48  ;;  %v6929_v0 = vadd.f32 %v15588_v37, %v6413_v35  ;;  %v6541_v29 = vld [vmem:[#allocation2 + $0xb00] sm:$0xff]  ;;  %v1132_v55 = vld [vmem:[#allocation2 + $0xb18] sm:$0xff] }
 0x515   : > { %v8849_v36 = vpack.c.bf16 %v8337_v34, %v8337_v34  ;;  %v7057_v16 = vadd.f32 %v15588_v37, %v6541_v29  ;;  %6155 = vst.msk [vmem:[#allocation2 + $0xf08] sm:$0xff] %vm264_vm3, %v5642_v63  ;;  %v11313_v4 = vld [vmem:[%s11574_s26 + $0x3d8] sm:$0xff]  ;;  %v5516_v34 = vadd.f32 %v15861_v21, %v1132_v55  ;;  %v877_v21 = vld [vmem:[#allocation2 + $0x320] sm:$0xff] }
 0x516   : > { %9745 = vst.msk [vmem:[%s11763_s4 + $0x77c] sm:$0xf] %vm9265_vm5, %v9232_v12  ;;  %vm7441_vm13 = vcmp.gt.f32.partialorder %v6929_v0, 0.0  ;;  %v7953_v31 = vmul.f32 0.01, %v6929_v0  ;;  %v6669_v38 = vld [vmem:[#allocation2 + $0xf00] sm:$0xff]  ;;  %v15925_v63 = vpop.f32.mrf.mxu2 }
 0x517   : > { %9362 = vst.msk [vmem:[%s11763_s4 + $0x180] sm:$0xf] %vm9265_vm5, %v8849_v36  ;;  %vm7569_vm14 = vcmp.gt.f32.partialorder %v7057_v16, 0.0  ;;  %v8081_v41 = vmul.f32 0.01, %v7057_v16  ;;  %v7185_v32 = vadd.f32 %v15588_v37, %v6669_v38  ;;  %v6286_v46 = vld [vmem:[#allocation2 + $0x308] sm:$0xff]  ;;  %v15927_v44 = vpop.f32.mrf.mxu3 }
 0x518   : > { %v8465_v26 = vsel %vm7441_vm13, %v6929_v0, %v7953_v31  ;;  %v6802_v27 = vadd.f32 %v15588_v37, %v6286_v46  ;;  %5772 = vst.msk [vmem:[#allocation2 + $0x310] sm:$0xff] %vm264_vm3, %v5259_v22  ;;  %v15938_v22 = vld [vmem:[%s16747_s2] ss:$0 sm:$0xff]  ;;  %v15943_v0 = vpop.f32.mrf.mxu0  ;;  %v15945_v29 = vpop.f32.mrf.mxu1  ;;  %v11377_v36 = vld [vmem:[%s11574_s26 + $0x5d8] sm:$0xff]  ;;  %10991 = vmatmul.msk.bf16.gmra.mxu0 %vm3096_vm2, %v11249_v53  ;;  %v1007_v53 = vld [vmem:[#allocation2 + $0x730] sm:$0xff] }
 0x519   : > { %v8977_v17 = vpack.c.bf16 %v8465_v26, %v8465_v26  ;;  %v8593_v11 = vsel %vm7569_vm14, %v7057_v16, %v8081_v41  ;;  %vm7697_vm15 = vcmp.gt.f32.partialorder %v7185_v32, 0.0  ;;  %v8209_v43 = vmul.f32 0.01, %v7185_v32  ;;  %v6414_v10 = vld [vmem:[#allocation2 + $0x708] sm:$0xff]  ;;  %5900 = vst.msk [vmem:[#allocation2 + $0x710] sm:$0xff] %vm264_vm3, %v5387_v2  ;;  %v11441_v16 = vld [vmem:[%s11574_s26 + $0x7d8] sm:$0xff] }
 0x51a   : > { %v9105_v18 = vpack.c.bf16 %v8593_v11, %v8593_v11  ;;  %vm7314_vm0 = vcmp.gt.f32.partialorder %v6802_v27, 0.0  ;;  %v7826_v25 = vmul.f32 0.01, %v6802_v27  ;;  %v6930_v39 = vadd.f32 %v15588_v37, %v6414_v10  ;;  %v6542_v1 = vld [vmem:[#allocation2 + $0xb08] sm:$0xff]  ;;  %6028 = vst.msk [vmem:[#allocation2 + $0xb10] sm:$0xff] %vm264_vm3, %v5515_v19  ;;  %v1005_v19 = vld [vmem:[#allocation2 + $0x720] sm:$0xff]  ;;  %11055 = vmatmul.msk.bf16.gmra.mxu1 %vm3096_vm2, %v11313_v4 }
 0x51b   : > { %9490 = vst.msk [vmem:[%s11763_s4 + $0x380] sm:$0xf] %vm9265_vm5, %v8977_v17  ;;  %v8721_v28 = vsel %vm7697_vm15, %v7185_v32, %v8209_v43  ;;  %v7058_v13 = vadd.f32 %v15588_v37, %v6542_v1  ;;  %11119 = vmatmul.msk.bf16.gmra.mxu2 %vm3096_vm2, %v11377_v36  ;;  %v5261_v17 = vadd.f32 %v15867_v23, %v877_v21  ;;  %v1133_v11 = vld [vmem:[#allocation2 + $0xb20] sm:$0xff] }
 0x51c   : > { %9618 = vst.msk [vmem:[%s11763_s4 + $0x580] sm:$0xf] %vm9265_vm5, %v9105_v18  ;;  %v9233_v7 = vpack.c.bf16 %v8721_v28, %v8721_v28  ;;  %v8338_v40 = vsel %vm7314_vm0, %v6802_v27, %v7826_v25  ;;  %vm7442_vm1 = vcmp.gt.f32.partialorder %v6930_v39, 0.0  ;;  %v7954_v30 = vmul.f32 0.01, %v6930_v39  ;;  %v6670_v49 = vld [vmem:[#allocation2 + $0xf08] sm:$0xff]  ;;  %11183 = vmatmul.msk.bf16.gmra.mxu3 %vm3096_vm2, %v11441_v16 }
 0x51d   : > { %v8850_v62 = vpack.c.bf16 %v8338_v40, %v8338_v40  ;;  %vm7570_vm4 = vcmp.gt.f32.partialorder %v7058_v13, 0.0  ;;  %v8082_v5 = vmul.f32 0.01, %v7058_v13  ;;  %v7186_v54 = vadd.f32 %v15588_v37, %v6670_v49  ;;  %6156 = vst.msk [vmem:[#allocation2 + $0xf10] sm:$0xff] %vm264_vm3, %v5643_v3  ;;  %v1261_v43 = vld [vmem:[#allocation2 + $0xf20] sm:$0xff] }
 0x51e   : > { %9746 = vst.msk [vmem:[%s11763_s4 + $0x780] sm:$0xf] %vm9265_vm5, %v9233_v7  ;;  %v8466_v14 = vsel %vm7442_vm1, %v6930_v39, %v7954_v30  ;;  %v5389_v39 = vadd.f32 %v15869_v45, %v1005_v19  ;;  %v15969_v28 = vpop.f32.mrf.mxu2  ;;  %v1006_v7 = vld [vmem:[#allocation2 + $0x728] sm:$0xff] }
 0x51f   : > { %9363 = vst.msk [vmem:[%s11763_s4 + $0x184] sm:$0xf] %vm9265_vm5, %v8850_v62  ;;  %v8978_v50 = vpack.c.bf16 %v8466_v14, %v8466_v14  ;;  %v8594_v52 = vsel %vm7570_vm4, %v7058_v13, %v8082_v5  ;;  %vm7698_vm6 = vcmp.gt.f32.partialorder %v7186_v54, 0.0  ;;  %v8210_v20 = vmul.f32 0.01, %v7186_v54  ;;  %v6287_v57 = vld [vmem:[#allocation2 + $0x310] sm:$0xff]  ;;  %v15971_v13 = vpop.f32.mrf.mxu3 }
 0x520   : > { %v9106_v8 = vpack.c.bf16 %v8594_v52, %v8594_v52  ;;  %v6803_v58 = vadd.f32 %v15588_v37, %v6287_v57  ;;  %v6415_v48 = vld [vmem:[#allocation2 + $0x710] sm:$0xff]  ;;  %5773 = vst.msk [vmem:[#allocation2 + $0x318] sm:$0xff] %vm264_vm3, %v5260_v47  ;;  %v5644_v37 = vadd.f32 %v15863_v56, %v1260_v9  ;;  %v5517_v47 = vadd.f32 %v15898_v60, %v1133_v11  ;;  %v15976_v40 = vpop.f32.mrf.mxu0  ;;  %v15978_v30 = vpop.f32.mrf.mxu1  ;;  %v1134_v9 = vld [vmem:[#allocation2 + $0xb28] sm:$0xff] }
 0x521   : > { %9491 = vst.msk [vmem:[%s11763_s4 + $0x384] sm:$0xf] %vm9265_vm5, %v8978_v50  ;;  %v8722_v35 = vsel %vm7698_vm6, %v7186_v54, %v8210_v20  ;;  %v6931_v15 = vadd.f32 %v15938_v22, %v6415_v48  ;;  %v6543_v12 = vld [vmem:[#allocation2 + $0xb10] sm:$0xff]  ;;  %v5645_v5 = vadd.f32 %v15900_v51, %v1261_v43  ;;  %v5390_v55 = vadd.f32 %v15907_v6, %v1006_v7 }
 0x522   : > { %9619 = vst.msk [vmem:[%s11763_s4 + $0x584] sm:$0xf] %vm9265_vm5, %v9106_v8  ;;  %v9234_v2 = vpack.c.bf16 %v8722_v35, %v8722_v35  ;;  %vm7315_vm7 = vcmp.gt.f32.partialorder %v6803_v58, 0.0  ;;  %v7827_v24 = vmul.f32 0.01, %v6803_v58  ;;  %v7059_v31 = vadd.f32 %v15938_v22, %v6543_v12  ;;  %v1262_v8 = vld [vmem:[#allocation2 + $0xf28] sm:$0xff] }
 0x523   : > { %vm7443_vm8 = vcmp.gt.f32.partialorder %v6931_v15, 0.0  ;;  %v7955_v38 = vmul.f32 0.01, %v6931_v15  ;;  %5901 = vst.msk [vmem:[#allocation2 + $0x718] sm:$0xff] %vm264_vm3, %v5388_v33  ;;  %v5262_v33 = vadd.f32 %v15905_v59, %v878_v42  ;;  %v5518_v48 = vadd.f32 %v15925_v63, %v1134_v9 }
 0x524   : > { %9747 = vst.msk [vmem:[%s11763_s4 + $0x784] sm:$0xf] %vm9265_vm5, %v9234_v2  ;;  %v8339_v56 = vsel %vm7315_vm7, %v6803_v58, %v7827_v24  ;;  %vm7571_vm9 = vcmp.gt.f32.partialorder %v7059_v31, 0.0  ;;  %v8083_v41 = vmul.f32 0.01, %v7059_v31  ;;  %v6671_v32 = vld [vmem:[#allocation2 + $0xf10] sm:$0xff] }
 0x525   : > { %v8851_v46 = vpack.c.bf16 %v8339_v56, %v8339_v56  ;;  %v8467_v26 = vsel %vm7443_vm8, %v6931_v15, %v7955_v38  ;;  %v7187_v27 = vadd.f32 %v15938_v22, %v6671_v32  ;;  %6029 = vst.msk [vmem:[#allocation2 + $0xb18] sm:$0xff] %vm264_vm3, %v5516_v34  ;;  %v879_v58 = vld [vmem:[#allocation2 + $0x330] sm:$0xff]  ;;  %v11250_v34 = vld [vmem:[%s11574_s26 + $0x1e0] sm:$0xff] }
 0x526   : > { %v8979_v3 = vpack.c.bf16 %v8467_v26, %v8467_v26  ;;  %v8595_v61 = vsel %vm7571_vm9, %v7059_v31, %v8083_v41  ;;  %6157 = vst.msk [vmem:[#allocation2 + $0xf18] sm:$0xff] %vm264_vm3, %v5644_v37  ;;  %v15996_v15 = vpop.f32.mrf.mxu2  ;;  %v11314_v37 = vld [vmem:[%s11574_s26 + $0x3e0] sm:$0xff]  ;;  %v5646_v41 = vadd.f32 %v15927_v44, %v1262_v8  ;;  %v5263_v26 = vadd.f32 %v15943_v0, %v879_v58  ;;  %v1008_v58 = vld [vmem:[#allocation2 + $0x738] sm:$0xff] }
 0x527   : > { %9364 = vst.msk [vmem:[%s11763_s4 + $0x188] sm:$0xf] %vm9265_vm5, %v8851_v46  ;;  %v9107_v10 = vpack.c.bf16 %v8595_v61, %v8595_v61  ;;  %vm7699_vm10 = vcmp.gt.f32.partialorder %v7187_v27, 0.0  ;;  %v8211_v18 = vmul.f32 0.01, %v7187_v27  ;;  %v6288_v25 = vld [vmem:[#allocation2 + $0x318] sm:$0xff]  ;;  %v15998_v12 = vpop.f32.mrf.mxu3 }
 0x528   : > { %9492 = vst.msk [vmem:[%s11763_s4 + $0x388] sm:$0xf] %vm9265_vm5, %v8979_v3  ;;  %v6804_v1 = vadd.f32 %v15938_v22, %v6288_v25  ;;  %v16003_v63 = vpop.f32.mrf.mxu0  ;;  %v16005_v2 = vpop.f32.mrf.mxu1  ;;  %v11378_v24 = vld [vmem:[%s11574_s26 + $0x5e0] sm:$0xff]  ;;  %10992 = vmatmul.msk.bf16.gmra.mxu0 %vm3096_vm2, %v11250_v34 }
 0x529   : > { %9620 = vst.msk [vmem:[%s11763_s4 + $0x588] sm:$0xf] %vm9265_vm5, %v9107_v10  ;;  %v8723_v23 = vsel %vm7699_vm10, %v7187_v27, %v8211_v18  ;;  %v11442_v31 = vld [vmem:[%s11574_s26 + $0x7e0] sm:$0xff]  ;;  %v1135_v27 = vld [vmem:[#allocation2 + $0xb30] sm:$0xff] }
 0x52a   : > { %v9235_v45 = vpack.c.bf16 %v8723_v23, %v8723_v23  ;;  %vm7316_vm11 = vcmp.gt.f32.partialorder %v6804_v1, 0.0  ;;  %v7828_v49 = vmul.f32 0.01, %v6804_v1  ;;  %v6416_v62 = vld [vmem:[#allocation2 + $0x718] sm:$0xff]  ;;  %5774 = vst.msk [vmem:[#allocation2 + $0x320] sm:$0xff] %vm264_vm3, %v5261_v17  ;;  %v5391_v17 = vadd.f32 %v15945_v29, %v1007_v53  ;;  %11056 = vmatmul.msk.bf16.gmra.mxu1 %vm3096_vm2, %v11314_v37  ;;  %v1263_v18 = vld [vmem:[#allocation2 + $0xf30] sm:$0xff] }
 0x52b   : > { %v6932_v54 = vadd.f32 %v15938_v22, %v6416_v62  ;;  %5902 = vst.msk [vmem:[#allocation2 + $0x720] sm:$0xff] %vm264_vm3, %v5389_v39  ;;  %11120 = vmatmul.msk.bf16.gmra.mxu2 %vm3096_vm2, %v11378_v24  ;;  %v5519_v29 = vadd.f32 %v15969_v28, %v1135_v27  ;;  %v5392_v24 = vadd.f32 %v15978_v30, %v1008_v58  ;;  %v11315_v30 = vld [vmem:[%s11574_s26 + $0x3e8] sm:$0xff] }
 0x52c   : > { %9748 = vst.msk [vmem:[%s11763_s4 + $0x788] sm:$0xf] %vm9265_vm5, %v9235_v45  ;;  %v8340_v60 = vsel %vm7316_vm11, %v6804_v1, %v7828_v49  ;;  %v6544_v14 = vld [vmem:[#allocation2 + $0xb18] sm:$0xff]  ;;  %11184 = vmatmul.msk.bf16.gmra.mxu3 %vm3096_vm2, %v11442_v31 }
 0x52d   : > { %v8852_v50 = vpack.c.bf16 %v8340_v60, %v8340_v60  ;;  %vm7444_vm12 = vcmp.gt.f32.partialorder %v6932_v54, 0.0  ;;  %v7956_v52 = vmul.f32 0.01, %v6932_v54  ;;  %v7060_v20 = vadd.f32 %v15938_v22, %v6544_v14  ;;  %v6672_v51 = vld [vmem:[#allocation2 + $0xf18] sm:$0xff]  ;;  %6030 = vst.msk [vmem:[#allocation2 + $0xb20] sm:$0xff] %vm264_vm3, %v5517_v47 }
 0x52e   : > { %v7188_v57 = vadd.f32 %v15938_v22, %v6672_v51  ;;  %6158 = vst.msk [vmem:[#allocation2 + $0xf20] sm:$0xff] %vm264_vm3, %v5645_v5  ;;  %v16033_v49 = vpop.f32.mrf.mxu2  ;;  %v880_v60 = vld [vmem:[#allocation2 + $0x338] sm:$0xff] }
 0x52f   : > { %9365 = vst.msk [vmem:[%s11763_s4 + $0x18c] sm:$0xf] %vm9265_vm5, %v8852_v50  ;;  %v8468_v59 = vsel %vm7444_vm12, %v6932_v54, %v7956_v52  ;;  %vm7572_vm13 = vcmp.gt.f32.partialorder %v7060_v20, 0.0  ;;  %v8084_v6 = vmul.f32 0.01, %v7060_v20  ;;  %v16035_v28 = vpop.f32.mrf.mxu3  ;;  %v5647_v54 = vadd.f32 %v15971_v13, %v1263_v18 }
 0x530   : > { %v8980_v4 = vpack.c.bf16 %v8468_v59, %v8468_v59  ;;  %vm7700_vm14 = vcmp.gt.f32.partialorder %v7188_v57, 0.0  ;;  %v8212_v35 = vmul.f32 0.01, %v7188_v57  ;;  %5775 = vst.msk [vmem:[#allocation2 + $0x328] sm:$0xff] %vm264_vm3, %v5262_v33  ;;  %v16041_v14 = vpop.f32.mrf.mxu0  ;;  %v16043_v33 = vpop.f32.mrf.mxu1  ;;  %v5264_v8 = vadd.f32 %v15976_v40, %v880_v60  ;;  %v1136_v59 = vld [vmem:[#allocation2 + $0xb38] sm:$0xff]  ;;  %v882_v60 = vld [vmem:[#allocation2 + $0x348] sm:$0xff] }
 0x531   : > { %v8596_v36 = vsel %vm7572_vm13, %v7060_v20, %v8084_v6  ;;  %v6289_v16 = vld [vmem:[#allocation2 + $0x320] sm:$0xff]  ;;  %5903 = vst.msk [vmem:[#allocation2 + $0x728] sm:$0xff] %vm264_vm3, %v5390_v55  ;;  %v5520_v31 = vadd.f32 %v15996_v15, %v1136_v59  ;;  %v1010_v59 = vld [vmem:[#allocation2 + $0x748] sm:$0xff] }
 0x532   : > { %9493 = vst.msk [vmem:[%s11763_s4 + $0x38c] sm:$0xf] %vm9265_vm5, %v8980_v4  ;;  %v9108_v38 = vpack.c.bf16 %v8596_v36, %v8596_v36  ;;  %v8724_v21 = vsel %vm7700_vm14, %v7188_v57, %v8212_v35  ;;  %v6805_v19 = vadd.f32 %v15938_v22, %v6289_v16  ;;  %v6417_v56 = vld [vmem:[#allocation2 + $0x720] sm:$0xff] }
 0x533   : > { %v9236_v32 = vpack.c.bf16 %v8724_v21, %v8724_v21  ;;  %v6933_v46 = vadd.f32 %v15938_v22, %v6417_v56  ;;  %6031 = vst.msk [vmem:[#allocation2 + $0xb28] sm:$0xff] %vm264_vm3, %v5518_v48  ;;  %v11251_v21 = vld [vmem:[%s11574_s26 + $0x1e8] sm:$0xff] }
 0x534   : > { %9621 = vst.msk [vmem:[%s11763_s4 + $0x58c] sm:$0xf] %vm9265_vm5, %v9108_v38  ;;  %vm7317_vm15 = vcmp.gt.f32.partialorder %v6805_v19, 0.0  ;;  %v7829_v3 = vmul.f32 0.01, %v6805_v19  ;;  %v6545_v61 = vld [vmem:[#allocation2 + $0xb20] sm:$0xff] }
 0x535   : > { %9749 = vst.msk [vmem:[%s11763_s4 + $0x78c] sm:$0xf] %vm9265_vm5, %v9236_v32  ;;  %vm7445_vm0 = vcmp.gt.f32.partialorder %v6933_v46, 0.0  ;;  %v7957_v44 = vmul.f32 0.01, %v6933_v46  ;;  %v7061_v11 = vadd.f32 %v15938_v22, %v6545_v61  ;;  %v6673_v43 = vld [vmem:[#allocation2 + $0xf20] sm:$0xff] }
 0x536   : > { %v8341_v0 = vsel %vm7317_vm15, %v6805_v19, %v7829_v3  ;;  %v7189_v10 = vadd.f32 %v15938_v22, %v6673_v43  ;;  %6159 = vst.msk [vmem:[#allocation2 + $0xf28] sm:$0xff] %vm264_vm3, %v5646_v41  ;;  %v1264_v38 = vld [vmem:[#allocation2 + $0xf38] sm:$0xff]  ;;  %v881_v32 = vld [vmem:[#allocation2 + $0x340] sm:$0xff]  ;;  %v11379_v61 = vld [vmem:[%s11574_s26 + $0x5e8] sm:$0xff] }
 0x537   : > { %v8853_v25 = vpack.c.bf16 %v8341_v0, %v8341_v0  ;;  %v8469_v39 = vsel %vm7445_vm0, %v6933_v46, %v7957_v44  ;;  %vm7573_vm1 = vcmp.gt.f32.partialorder %v7061_v11, 0.0  ;;  %v8085_v1 = vmul.f32 0.01, %v7061_v11  ;;  %v6290_v23 = vld [vmem:[#allocation2 + $0x328] sm:$0xff]  ;;  %5776 = vst.msk [vmem:[#allocation2 + $0x330] sm:$0xff] %vm264_vm3, %v5263_v26  ;;  %v16066_v46 = vpop.f32.mrf.mxu2  ;;  %v16068_v26 = vpop.f32.mrf.mxu3 }
 0x538   : > { %v8981_v47 = vpack.c.bf16 %v8469_v39, %v8469_v39  ;;  %vm7701_vm4 = vcmp.gt.f32.partialorder %v7189_v10, 0.0  ;;  %v8213_v42 = vmul.f32 0.01, %v7189_v10  ;;  %v6806_v7 = vadd.f32 %v15938_v22, %v6290_v23  ;;  %v6418_v45 = vld [vmem:[#allocation2 + $0x728] sm:$0xff]  ;;  %5904 = vst.msk [vmem:[#allocation2 + $0x730] sm:$0xff] %vm264_vm3, %v5391_v17  ;;  %v16072_v27 = vpop.f32.mrf.mxu0  ;;  %v16074_v3 = vpop.f32.mrf.mxu1  ;;  %v1137_v23 = vld [vmem:[#allocation2 + $0xb40] sm:$0xff]  ;;  %10993 = vmatmul.msk.bf16.gmra.mxu0 %vm3096_vm2, %v11251_v21 }
 0x539   : > { %9366 = vst.msk [vmem:[%s11763_s4 + $0x190] sm:$0xf] %vm9265_vm5, %v8853_v25  ;;  %v8597_v62 = vsel %vm7573_vm1, %v7061_v11, %v8085_v1  ;;  %v6934_v5 = vadd.f32 %v15938_v22, %v6418_v45  ;;  %v11443_v17 = vld [vmem:[%s11574_s26 + $0x7e8] sm:$0xff]  ;;  %v5648_v39 = vadd.f32 %v15998_v12, %v1264_v38  ;;  %v1009_v1 = vld [vmem:[#allocation2 + $0x740] sm:$0xff]  ;;  %v5265_v45 = vadd.f32 %v16003_v63, %v881_v32  ;;  %v883_v38 = vld [vmem:[#allocation2 + $0x350] sm:$0xff] }
 0x53a   : > { %9494 = vst.msk [vmem:[%s11763_s4 + $0x390] sm:$0xf] %vm9265_vm5, %v8981_v47  ;;  %v9109_v55 = vpack.c.bf16 %v8597_v62, %v8597_v62  ;;  %v8725_v9 = vsel %vm7701_vm4, %v7189_v10, %v8213_v42  ;;  %vm7318_vm6 = vcmp.gt.f32.partialorder %v6806_v7, 0.0  ;;  %v7830_v50 = vmul.f32 0.01, %v6806_v7  ;;  %v6546_v52 = vld [vmem:[#allocation2 + $0xb28] sm:$0xff]  ;;  %11057 = vmatmul.msk.bf16.gmra.mxu1 %vm3096_vm2, %v11315_v30 }
 0x53b   : > { %v9237_v20 = vpack.c.bf16 %v8725_v9, %v8725_v9  ;;  %vm7446_vm7 = vcmp.gt.f32.partialorder %v6934_v5, 0.0  ;;  %v7958_v51 = vmul.f32 0.01, %v6934_v5  ;;  %v7062_v57 = vadd.f32 %v15938_v22, %v6546_v52  ;;  %6032 = vst.msk [vmem:[#allocation2 + $0xb30] sm:$0xff] %vm264_vm3, %v5519_v29  ;;  %11121 = vmatmul.msk.bf16.gmra.mxu2 %vm3096_vm2, %v11379_v61  ;;  %v11316_v61 = vld [vmem:[%s11574_s26 + $0x3f0] sm:$0xff] }
 0x53c   : > { %9622 = vst.msk [vmem:[%s11763_s4 + $0x590] sm:$0xf] %vm9265_vm5, %v9109_v55  ;;  %v8342_v13 = vsel %vm7318_vm6, %v6806_v7, %v7830_v50  ;;  %11185 = vmatmul.msk.bf16.gmra.mxu3 %vm3096_vm2, %v11443_v17  ;;  %v5521_v50 = vadd.f32 %v16033_v49, %v1137_v23  ;;  %v5266_v49 = vadd.f32 %v16041_v14, %v882_v60 }
 0x53d   : > { %9750 = vst.msk [vmem:[%s11763_s4 + $0x790] sm:$0xf] %vm9265_vm5, %v9237_v20  ;;  %v8854_v6 = vpack.c.bf16 %v8342_v13, %v8342_v13  ;;  %v8470_v48 = vsel %vm7446_vm7, %v6934_v5, %v7958_v51  ;;  %vm7574_vm8 = vcmp.gt.f32.partialorder %v7062_v57, 0.0  ;;  %v8086_v53 = vmul.f32 0.01, %v7062_v57  ;;  %v6674_v4 = vld [vmem:[#allocation2 + $0xf28] sm:$0xff] }
 0x53e   : > { %v8982_v35 = vpack.c.bf16 %v8470_v48, %v8470_v48  ;;  %v7190_v34 = vadd.f32 %v15938_v22, %v6674_v4  ;;  %v6291_v37 = vld [vmem:[#allocation2 + $0x330] sm:$0xff]  ;;  %6160 = vst.msk [vmem:[#allocation2 + $0xf30] sm:$0xff] %vm264_vm3, %v5647_v54  ;;  %v5393_v5 = vadd.f32 %v16005_v2, %v1009_v1  ;;  %v1265_v54 = vld [vmem:[#allocation2 + $0xf40] sm:$0xff]  ;;  %v5394_v14 = vadd.f32 %v16043_v33, %v1010_v59 }
 0x53f   : > { %9367 = vst.msk [vmem:[%s11763_s4 + $0x194] sm:$0xf] %vm9265_vm5, %v8854_v6  ;;  %v8598_v40 = vsel %vm7574_vm8, %v7062_v57, %v8086_v53  ;;  %v6807_v36 = vadd.f32 %v15938_v22, %v6291_v37  ;;  %v6419_v16 = vld [vmem:[#allocation2 + $0x730] sm:$0xff]  ;;  %v16099_v52 = vpop.f32.mrf.mxu2  ;;  %v16101_v20 = vpop.f32.mrf.mxu3  ;;  %v5649_v58 = vadd.f32 %v16035_v28, %v1265_v54  ;;  %v1138_v37 = vld [vmem:[#allocation2 + $0xb48] sm:$0xff] }
 0x540   : > { %9495 = vst.msk [vmem:[%s11763_s4 + $0x394] sm:$0xf] %vm9265_vm5, %v8982_v35  ;;  %v9110_v19 = vpack.c.bf16 %v8598_v40, %v8598_v40  ;;  %vm7702_vm9 = vcmp.gt.f32.partialorder %v7190_v34, 0.0  ;;  %v8214_v56 = vmul.f32 0.01, %v7190_v34  ;;  %v6935_v41 = vadd.f32 %v15938_v22, %v6419_v16  ;;  %v16105_v57 = vpop.f32.mrf.mxu0  ;;  %v16107_v2 = vpop.f32.mrf.mxu1  ;;  %v1266_v16 = vld [vmem:[#allocation2 + $0xf48] sm:$0xff] }
 0x541   : > { %vm7319_vm10 = vcmp.gt.f32.partialorder %v6807_v36, 0.0  ;;  %v7831_v15 = vmul.f32 0.01, %v6807_v36  ;;  %5777 = vst.msk [vmem:[#allocation2 + $0x338] sm:$0xff] %vm264_vm3, %v5264_v8 }
 0x542   : > { %9623 = vst.msk [vmem:[%s11763_s4 + $0x594] sm:$0xf] %vm9265_vm5, %v9110_v19  ;;  %v8726_v44 = vsel %vm7702_vm9, %v7190_v34, %v8214_v56  ;;  %vm7447_vm11 = vcmp.gt.f32.partialorder %v6935_v41, 0.0  ;;  %v7959_v11 = vmul.f32 0.01, %v6935_v41  ;;  %v6547_v43 = vld [vmem:[#allocation2 + $0xb30] sm:$0xff] }
 0x543   : > { %v9238_v0 = vpack.c.bf16 %v8726_v44, %v8726_v44  ;;  %v8343_v10 = vsel %vm7319_vm10, %v6807_v36, %v7831_v15  ;;  %v7063_v29 = vadd.f32 %v15938_v22, %v6547_v43  ;;  %5905 = vst.msk [vmem:[#allocation2 + $0x738] sm:$0xff] %vm264_vm3, %v5392_v24  ;;  %v11252_v15 = vld [vmem:[%s11574_s26 + $0x1f0] sm:$0xff] }
 0x544   : > { %v8855_v18 = vpack.c.bf16 %v8343_v10, %v8343_v10  ;;  %v8471_v25 = vsel %vm7447_vm11, %v6935_v41, %v7959_v11  ;;  %6033 = vst.msk [vmem:[#allocation2 + $0xb38] sm:$0xff] %vm264_vm3, %v5520_v31  ;;  %v5522_v41 = vadd.f32 %v16066_v46, %v1138_v37  ;;  %v5650_v11 = vadd.f32 %v16068_v26, %v1266_v16  ;;  %v1011_v43 = vld [vmem:[#allocation2 + $0x750] sm:$0xff]  ;;  %v1012_v37 = vld [vmem:[#allocation2 + $0x758] sm:$0xff] }
 0x545   : > { %9751 = vst.msk [vmem:[%s11763_s4 + $0x794] sm:$0xf] %vm9265_vm5, %v9238_v0  ;;  %v8983_v47 = vpack.c.bf16 %v8471_v25, %v8471_v25  ;;  %vm7575_vm12 = vcmp.gt.f32.partialorder %v7063_v29, 0.0  ;;  %v8087_v42 = vmul.f32 0.01, %v7063_v29  ;;  %v6675_v7 = vld [vmem:[#allocation2 + $0xf30] sm:$0xff] }
 0x546   : > { %9368 = vst.msk [vmem:[%s11763_s4 + $0x198] sm:$0xf] %vm9265_vm5, %v8855_v18  ;;  %v7191_v12 = vadd.f32 %v15938_v22, %v6675_v7  ;;  %v11380_v46 = vld [vmem:[%s11574_s26 + $0x5f0] sm:$0xff]  ;;  %v5395_v7 = vadd.f32 %v16074_v3, %v1011_v43 }
 0x547   : > { %9496 = vst.msk [vmem:[%s11763_s4 + $0x398] sm:$0xf] %vm9265_vm5, %v8983_v47  ;;  %v8599_v62 = vsel %vm7575_vm12, %v7063_v29, %v8087_v42  ;;  %v16126_v32 = vpop.f32.mrf.mxu2  ;;  %v16128_v30 = vpop.f32.mrf.mxu3  ;;  %v11444_v29 = vld [vmem:[%s11574_s26 + $0x7f0] sm:$0xff] }
 0x548   : > { %v9111_v55 = vpack.c.bf16 %v8599_v62, %v8599_v62  ;;  %vm7703_vm13 = vcmp.gt.f32.partialorder %v7191_v12, 0.0  ;;  %v8215_v9 = vmul.f32 0.01, %v7191_v12  ;;  %v6292_v63 = vld [vmem:[#allocation2 + $0x338] sm:$0xff]  ;;  %6161 = vst.msk [vmem:[#allocation2 + $0xf38] sm:$0xff] %vm264_vm3, %v5648_v39  ;;  %v16135_v0 = vpop.f32.mrf.mxu0  ;;  %v16137_v10 = vpop.f32.mrf.mxu1  ;;  %v5267_v39 = vadd.f32 %v16072_v27, %v883_v38  ;;  %10994 = vmatmul.msk.bf16.gmra.mxu0 %vm3096_vm2, %v11252_v15 }
 0x549   : > { %v6808_v51 = vadd.f32 %v15938_v22, %v6292_v63  ;;  %5778 = vst.msk [vmem:[#allocation2 + $0x340] sm:$0xff] %vm264_vm3, %v5265_v45  ;;  %v1139_v45 = vld [vmem:[#allocation2 + $0xb50] sm:$0xff]  ;;  %v1140_v15 = vld [vmem:[#allocation2 + $0xb58] sm:$0xff] }
 0x54a   : > { %9624 = vst.msk [vmem:[%s11763_s4 + $0x598] sm:$0xf] %vm9265_vm5, %v9111_v55  ;;  %v8727_v13 = vsel %vm7703_vm13, %v7191_v12, %v8215_v9  ;;  %v6420_v8 = vld [vmem:[#allocation2 + $0x738] sm:$0xff]  ;;  %11058 = vmatmul.msk.bf16.gmra.mxu1 %vm3096_vm2, %v11316_v61 }
 0x54b   : > { %v9239_v6 = vpack.c.bf16 %v8727_v13, %v8727_v13  ;;  %vm7320_vm14 = vcmp.gt.f32.partialorder %v6808_v51, 0.0  ;;  %v7832_v48 = vmul.f32 0.01, %v6808_v51  ;;  %v6936_v53 = vadd.f32 %v15938_v22, %v6420_v8  ;;  %v6548_v4 = vld [vmem:[#allocation2 + $0xb38] sm:$0xff]  ;;  %5906 = vst.msk [vmem:[#allocation2 + $0x740] sm:$0xff] %vm264_vm3, %v5393_v5  ;;  %11122 = vmatmul.msk.bf16.gmra.mxu2 %vm3096_vm2, %v11380_v46 }
 0x54c   : > { %v7064_v35 = vadd.f32 %v15938_v22, %v6548_v4  ;;  %6034 = vst.msk [vmem:[#allocation2 + $0xb40] sm:$0xff] %vm264_vm3, %v5521_v50  ;;  %11186 = vmatmul.msk.bf16.gmra.mxu3 %vm3096_vm2, %v11444_v29  ;;  %v5523_v50 = vadd.f32 %v16099_v52, %v1139_v45  ;;  %v11253_v46 = vld [vmem:[%s11574_s26 + $0x1f8] sm:$0xff] }
 0x54d   : > { %9752 = vst.msk [vmem:[%s11763_s4 + $0x798] sm:$0xf] %vm9265_vm5, %v9239_v6  ;;  %v8344_v34 = vsel %vm7320_vm14, %v6808_v51, %v7832_v48  ;;  %vm7448_vm15 = vcmp.gt.f32.partialorder %v6936_v53, 0.0  ;;  %v7960_v28 = vmul.f32 0.01, %v6936_v53  ;;  %v1267_v51 = vld [vmem:[#allocation2 + $0xf50] sm:$0xff] }
 0x54e   : > { %v8856_v40 = vpack.c.bf16 %v8344_v34, %v8344_v34  ;;  %vm7576_vm0 = vcmp.gt.f32.partialorder %v7064_v35, 0.0  ;;  %v8088_v36 = vmul.f32 0.01, %v7064_v35  ;;  %6162 = vst.msk [vmem:[#allocation2 + $0xf40] sm:$0xff] %vm264_vm3, %v5649_v58  ;;  %v11317_v29 = vld [vmem:[%s11574_s26 + $0x3f8] sm:$0xff] }
 0x54f   : > { %v8472_v24 = vsel %vm7448_vm15, %v6936_v53, %v7960_v28  ;;  %v6676_v31 = vld [vmem:[#allocation2 + $0xf38] sm:$0xff]  ;;  %5779 = vst.msk [vmem:[#allocation2 + $0x348] sm:$0xff] %vm264_vm3, %v5266_v49  ;;  %v16163_v59 = vpop.f32.mrf.mxu2  ;;  %v16165_v6 = vpop.f32.mrf.mxu3  ;;  %v5651_v28 = vadd.f32 %v16101_v20, %v1267_v51  ;;  %v1141_v51 = vld [vmem:[#allocation2 + $0xb60] sm:$0xff] }
 0x550   : > { %9369 = vst.msk [vmem:[%s11763_s4 + $0x19c] sm:$0xf] %vm9265_vm5, %v8856_v40  ;;  %v8984_v21 = vpack.c.bf16 %v8472_v24, %v8472_v24  ;;  %v8600_v19 = vsel %vm7576_vm0, %v7064_v35, %v8088_v36  ;;  %v7192_v33 = vadd.f32 %v15938_v22, %v6676_v31  ;;  %v6293_v56 = vld [vmem:[#allocation2 + $0x340] sm:$0xff]  ;;  %v16169_v52 = vpop.f32.mrf.mxu0  ;;  %v16171_v35 = vpop.f32.mrf.mxu1  ;;  %v11445_v45 = vld [vmem:[%s11574_s26 + $0x7f8] sm:$0xff] }
 0x551   : > { %v9112_v17 = vpack.c.bf16 %v8600_v19, %v8600_v19  ;;  %v6809_v44 = vadd.f32 %v15938_v22, %v6293_v56  ;;  %5907 = vst.msk [vmem:[#allocation2 + $0x748] sm:$0xff] %vm264_vm3, %v5394_v14  ;;  %v884_v14 = vld [vmem:[#allocation2 + $0x358] sm:$0xff] }
 0x552   : > { %9497 = vst.msk [vmem:[%s11763_s4 + $0x39c] sm:$0xf] %vm9265_vm5, %v8984_v21  ;;  %vm7704_vm1 = vcmp.gt.f32.partialorder %v7192_v33, 0.0  ;;  %v8216_v18 = vmul.f32 0.01, %v7192_v33  ;;  %v6421_v25 = vld [vmem:[#allocation2 + $0x740] sm:$0xff]  ;;  %v5268_v56 = vadd.f32 %v16105_v57, %v884_v14 }
 0x553   : > { %9625 = vst.msk [vmem:[%s11763_s4 + $0x59c] sm:$0xf] %vm9265_vm5, %v9112_v17  ;;  %vm7321_vm4 = vcmp.gt.f32.partialorder %v6809_v44, 0.0  ;;  %v7833_v1 = vmul.f32 0.01, %v6809_v44  ;;  %v6937_v26 = vadd.f32 %v15938_v22, %v6421_v25  ;;  %v6549_v23 = vld [vmem:[#allocation2 + $0xb40] sm:$0xff] }
 0x554   : > { %v8728_v47 = vsel %vm7704_vm1, %v7192_v33, %v8216_v18  ;;  %v7065_v42 = vadd.f32 %v15938_v22, %v6549_v23  ;;  %6035 = vst.msk [vmem:[#allocation2 + $0xb48] sm:$0xff] %vm264_vm3, %v5522_v41  ;;  %v5396_v41 = vadd.f32 %v16107_v2, %v1012_v37 }
 0x555   : > { %v9240_v27 = vpack.c.bf16 %v8728_v47, %v8728_v47  ;;  %v8345_v12 = vsel %vm7321_vm4, %v6809_v44, %v7833_v1  ;;  %vm7449_vm6 = vcmp.gt.f32.partialorder %v6937_v26, 0.0  ;;  %v7961_v62 = vmul.f32 0.01, %v6937_v26  ;;  %v6677_v5 = vld [vmem:[#allocation2 + $0xf40] sm:$0xff]  ;;  %6163 = vst.msk [vmem:[#allocation2 + $0xf48] sm:$0xff] %vm264_vm3, %v5650_v11  ;;  %v1268_v11 = vld [vmem:[#allocation2 + $0xf58] sm:$0xff] }
 0x556   : > { %v8857_v54 = vpack.c.bf16 %v8345_v12, %v8345_v12  ;;  %vm7577_vm7 = vcmp.gt.f32.partialorder %v7065_v42, 0.0  ;;  %v8089_v3 = vmul.f32 0.01, %v7065_v42  ;;  %v7193_v60 = vadd.f32 %v15938_v22, %v6677_v5  ;;  %v6294_v55 = vld [vmem:[#allocation2 + $0x348] sm:$0xff]  ;;  %5780 = vst.msk [vmem:[#allocation2 + $0x350] sm:$0xff] %vm264_vm3, %v5267_v39  ;;  %v885_v5 = vld [vmem:[#allocation2 + $0x360] sm:$0xff] }
 0x557   : > { %9753 = vst.msk [vmem:[%s11763_s4 + $0x79c] sm:$0xf] %vm9265_vm5, %v9240_v27  ;;  %v8473_v9 = vsel %vm7449_vm6, %v6937_v26, %v7961_v62  ;;  %v6810_v63 = vadd.f32 %v15938_v22, %v6294_v55  ;;  %v16193_v25 = vpop.f32.mrf.mxu2  ;;  %v16195_v39 = vpop.f32.mrf.mxu3  ;;  %v5524_v62 = vadd.f32 %v16126_v32, %v1140_v15 }
 0x558   : > { %9370 = vst.msk [vmem:[%s11763_s4 + $0x1a0] sm:$0xf] %vm9265_vm5, %v8857_v54  ;;  %v8985_v13 = vpack.c.bf16 %v8473_v9, %v8473_v9  ;;  %v8601_v8 = vsel %vm7577_vm7, %v7065_v42, %v8089_v3  ;;  %vm7705_vm8 = vcmp.gt.f32.partialorder %v7193_v60, 0.0  ;;  %v8217_v58 = vmul.f32 0.01, %v7193_v60  ;;  %v6422_v49 = vld [vmem:[#allocation2 + $0x748] sm:$0xff]  ;;  %v16199_v47 = vpop.f32.mrf.mxu0  ;;  %v16201_v42 = vpop.f32.mrf.mxu1  ;;  %10995 = vmatmul.msk.bf16.gmra.mxu0 %vm3096_vm2, %v11253_v46 }
 0x559   : > { %v9113_v48 = vpack.c.bf16 %v8601_v8, %v8601_v8  ;;  %vm7322_vm9 = vcmp.gt.f32.partialorder %v6810_v63, 0.0  ;;  %v7834_v53 = vmul.f32 0.01, %v6810_v63  ;;  %v6938_v4 = vadd.f32 %v15938_v22, %v6422_v49  ;;  %5908 = vst.msk [vmem:[#allocation2 + $0x750] sm:$0xff] %vm264_vm3, %v5395_v7  ;;  %v11381_v7 = vld [vmem:[%s11574_s26 + $0x5f8] sm:$0xff]  ;;  %v1013_v54 = vld [vmem:[#allocation2 + $0x760] sm:$0xff] }
 0x55a   : > { %9498 = vst.msk [vmem:[%s11763_s4 + $0x3a0] sm:$0xf] %vm9265_vm5, %v8985_v13  ;;  %v8729_v34 = vsel %vm7705_vm8, %v7193_v60, %v8217_v58  ;;  %v5652_v9 = vadd.f32 %v16128_v30, %v1268_v11  ;;  %11059 = vmatmul.msk.bf16.gmra.mxu1 %vm3096_vm2, %v11317_v29  ;;  %v1269_v13 = vld [vmem:[#allocation2 + $0xf60] sm:$0xff]  ;;  %v5397_v49 = vadd.f32 %v16137_v10, %v1013_v54  ;;  %v1015_v54 = vld [vmem:[#allocation2 + $0x770] sm:$0xff] }
 0x55b   : > { %9626 = vst.msk [vmem:[%s11763_s4 + $0x5a0] sm:$0xf] %vm9265_vm5, %v9113_v48  ;;  %v9241_v40 = vpack.c.bf16 %v8729_v34, %v8729_v34  ;;  %v8346_v36 = vsel %vm7322_vm9, %v6810_v63, %v7834_v53  ;;  %vm7450_vm10 = vcmp.gt.f32.partialorder %v6938_v4, 0.0  ;;  %v7962_v16 = vmul.f32 0.01, %v6938_v4  ;;  %v6550_v24 = vld [vmem:[#allocation2 + $0xb48] sm:$0xff]  ;;  %11123 = vmatmul.msk.bf16.gmra.mxu2 %vm3096_vm2, %v11381_v7 }
 0x55c   : > { %v8858_v31 = vpack.c.bf16 %v8346_v36, %v8346_v36  ;;  %v7066_v38 = vadd.f32 %v15938_v22, %v6550_v24  ;;  %v6678_v21 = vld [vmem:[#allocation2 + $0xf48] sm:$0xff]  ;;  %6036 = vst.msk [vmem:[#allocation2 + $0xb50] sm:$0xff] %vm264_vm3, %v5523_v50  ;;  %v5269_v50 = vadd.f32 %v16135_v0, %v885_v5  ;;  %11187 = vmatmul.msk.bf16.gmra.mxu3 %vm3096_vm2, %v11445_v45 }
 0x55d   : > { %9754 = vst.msk [vmem:[%s11763_s4 + $0x7a0] sm:$0xf] %vm9265_vm5, %v9241_v40  ;;  %v8474_v20 = vsel %vm7450_vm10, %v6938_v4, %v7962_v16  ;;  %v7194_v19 = vadd.f32 %v15938_v22, %v6678_v21  ;;  %v6295_v33 = vld [vmem:[#allocation2 + $0x350] sm:$0xff]  ;;  %v5525_v4 = vadd.f32 %v16163_v59, %v1141_v51  ;;  %v5653_v34 = vadd.f32 %v16165_v6, %v1269_v13 }
 0x55e   : > { %9371 = vst.msk [vmem:[%s11763_s4 + $0x1a4] sm:$0xf] %vm9265_vm5, %v8858_v31  ;;  %v8986_v61 = vpack.c.bf16 %v8474_v20, %v8474_v20  ;;  %vm7578_vm11 = vcmp.gt.f32.partialorder %v7066_v38, 0.0  ;;  %v8090_v17 = vmul.f32 0.01, %v7066_v38  ;;  %v6811_v44 = vadd.f32 %v15938_v22, %v6295_v33  ;;  %v1014_v20 = vld [vmem:[#allocation2 + $0x768] sm:$0xff] }
 0x55f   : > { %vm7706_vm12 = vcmp.gt.f32.partialorder %v7194_v19, 0.0  ;;  %v8218_v43 = vmul.f32 0.01, %v7194_v19  ;;  %6164 = vst.msk [vmem:[#allocation2 + $0xf50] sm:$0xff] %vm264_vm3, %v5651_v28  ;;  %v886_v28 = vld [vmem:[#allocation2 + $0x368] sm:$0xff]  ;;  %v16228_v14 = vpop.f32.mrf.mxu2  ;;  %v16230_v37 = vpop.f32.mrf.mxu3 }
 0x560   : > { %9499 = vst.msk [vmem:[%s11763_s4 + $0x3a4] sm:$0xf] %vm9265_vm5, %v8986_v61  ;;  %v8602_v57 = vsel %vm7578_vm11, %v7066_v38, %v8090_v17  ;;  %vm7323_vm13 = vcmp.gt.f32.partialorder %v6811_v44, 0.0  ;;  %v7835_v2 = vmul.f32 0.01, %v6811_v44  ;;  %v6423_v18 = vld [vmem:[#allocation2 + $0x750] sm:$0xff]  ;;  %v16234_v24 = vpop.f32.mrf.mxu0  ;;  %v16236_v31 = vpop.f32.mrf.mxu1  ;;  %v5270_v21 = vadd.f32 %v16169_v52, %v886_v28 }
 0x561   : > { %v9114_v1 = vpack.c.bf16 %v8602_v57, %v8602_v57  ;;  %v8730_v26 = vsel %vm7706_vm12, %v7194_v19, %v8218_v43  ;;  %v6939_v23 = vadd.f32 %v15938_v22, %v6423_v18  ;;  %5781 = vst.msk [vmem:[#allocation2 + $0x358] sm:$0xff] %vm264_vm3, %v5268_v56  ;;  %v1142_v56 = vld [vmem:[#allocation2 + $0xb68] sm:$0xff]  ;;  %v5398_v43 = vadd.f32 %v16171_v35, %v1014_v20 }
 0x562   : > { %v9242_v27 = vpack.c.bf16 %v8730_v26, %v8730_v26  ;;  %v8347_v12 = vsel %vm7323_vm13, %v6811_v44, %v7835_v2  ;;  %5909 = vst.msk [vmem:[#allocation2 + $0x758] sm:$0xff] %vm264_vm3, %v5396_v41  ;;  %v1270_v61 = vld [vmem:[#allocation2 + $0xf68] sm:$0xff]  ;;  %v5526_v57 = vadd.f32 %v16193_v25, %v1142_v56  ;;  %v887_v2 = vld [vmem:[#allocation2 + $0x370] sm:$0xff] }
 0x563   : > { %9627 = vst.msk [vmem:[%s11763_s4 + $0x5a4] sm:$0xf] %vm9265_vm5, %v9114_v1  ;;  %v8859_v3 = vpack.c.bf16 %v8347_v12, %v8347_v12  ;;  %vm7451_vm14 = vcmp.gt.f32.partialorder %v6939_v23, 0.0  ;;  %v7963_v60 = vmul.f32 0.01, %v6939_v23  ;;  %v6551_v55 = vld [vmem:[#allocation2 + $0xb50] sm:$0xff]  ;;  %v5654_v26 = vadd.f32 %v16195_v39, %v1270_v61 }
 0x564   : > { %9755 = vst.msk [vmem:[%s11763_s4 + $0x7a4] sm:$0xf] %vm9265_vm5, %v9242_v27  ;;  %v7067_v63 = vadd.f32 %v15938_v22, %v6551_v55  ;;  %v5271_v39 = vadd.f32 %v16199_v47, %v887_v2 }
 0x565   : > { %9372 = vst.msk [vmem:[%s11763_s4 + $0x1a8] sm:$0xf] %vm9265_vm5, %v8859_v3  ;;  %v8475_v32 = vsel %vm7451_vm14, %v6939_v23, %v7963_v60 }
 0x566   : > { %v8987_v30 = vpack.c.bf16 %v8475_v32, %v8475_v32  ;;  %vm7579_vm15 = vcmp.gt.f32.partialorder %v7067_v63, 0.0  ;;  %v8091_v8 = vmul.f32 0.01, %v7067_v63  ;;  %v6679_v58 = vld [vmem:[#allocation2 + $0xf50] sm:$0xff]  ;;  %6037 = vst.msk [vmem:[#allocation2 + $0xb58] sm:$0xff] %vm264_vm3, %v5524_v62 }
 0x567   : > { %v7195_v48 = vadd.f32 %v15938_v22, %v6679_v58  ;;  %6165 = vst.msk [vmem:[#allocation2 + $0xf58] sm:$0xff] %vm264_vm3, %v5652_v9  ;;  %v16255_v23 = vpop.f32.mrf.mxu2  ;;  %v16257_v7 = vpop.f32.mrf.mxu3 }
 0x568   : > { %9500 = vst.msk [vmem:[%s11763_s4 + $0x3a8] sm:$0xf] %vm9265_vm5, %v8987_v30  ;;  %v8603_v0 = vsel %vm7579_vm15, %v7067_v63, %v8091_v8  ;;  %v6296_v53 = vld [vmem:[#allocation2 + $0x358] sm:$0xff]  ;;  %v16262_v25 = vpop.f32.mrf.mxu0  ;;  %v16264_v12 = vpop.f32.mrf.mxu1  ;;  %v5399_v30 = vadd.f32 %v16201_v42, %v1015_v54  ;;  %v1143_v8 = vld [vmem:[#allocation2 + $0xb70] sm:$0xff] }
 0x569   : > { %v9115_v40 = vpack.c.bf16 %v8603_v0, %v8603_v0  ;;  %vm7707_vm2 = vcmp.gt.f32.partialorder %v7195_v48, 0.0  ;;  %v8219_v10 = vmul.f32 0.01, %v7195_v48  ;;  %v6812_v36 = vadd.f32 %v15938_v22, %v6296_v53  ;;  %v6424_v16 = vld [vmem:[#allocation2 + $0x758] sm:$0xff]  ;;  %5782 = vst.msk [vmem:[#allocation2 + $0x360] sm:$0xff] %vm264_vm3, %v5269_v50 }
 0x56a   : > { %v6940_v59 = vadd.f32 %v15938_v22, %v6424_v16  ;;  %5910 = vst.msk [vmem:[#allocation2 + $0x760] sm:$0xff] %vm264_vm3, %v5397_v49  ;;  %v5527_v42 = vadd.f32 %v16228_v14, %v1143_v8 }
 0x56b   : > { %9628 = vst.msk [vmem:[%s11763_s4 + $0x5a8] sm:$0xf] %vm9265_vm5, %v9115_v40  ;;  %v8731_v6 = vsel %vm7707_vm2, %v7195_v48, %v8219_v10  ;;  %vm7324_vm0 = vcmp.gt.f32.partialorder %v6812_v36, 0.0  ;;  %v7836_v38 = vmul.f32 0.01, %v6812_v36  ;;  %v1271_v40 = vld [vmem:[#allocation2 + $0xf70] sm:$0xff] }
 0x56c   : > { %v9243_v19 = vpack.c.bf16 %v8731_v6, %v8731_v6  ;;  %vm7452_vm1 = vcmp.gt.f32.partialorder %v6940_v59, 0.0  ;;  %v7964_v33 = vmul.f32 0.01, %v6940_v59  ;;  %6038 = vst.msk [vmem:[#allocation2 + $0xb60] sm:$0xff] %vm264_vm3, %v5525_v4  ;;  %v888_v10 = vld [vmem:[#allocation2 + $0x378] sm:$0xff] }
 0x56d   : > { %v8348_v41 = vsel %vm7324_vm0, %v6812_v36, %v7836_v38  ;;  %v6552_v15 = vld [vmem:[#allocation2 + $0xb58] sm:$0xff]  ;;  %6166 = vst.msk [vmem:[#allocation2 + $0xf60] sm:$0xff] %vm264_vm3, %v5653_v34 }
 0x56e   : > { %9756 = vst.msk [vmem:[%s11763_s4 + $0x7a8] sm:$0xf] %vm9265_vm5, %v9243_v19  ;;  %v8860_v17 = vpack.c.bf16 %v8348_v41, %v8348_v41  ;;  %v8476_v44 = vsel %vm7452_vm1, %v6940_v59, %v7964_v33  ;;  %v7068_v52 = vadd.f32 %v15938_v22, %v6552_v15  ;;  %v6680_v11 = vld [vmem:[#allocation2 + $0xf58] sm:$0xff]  ;;  %v16296_v19 = vld [vmem:[%s16747_s2] ss:$0 sm:$0xff] }
 0x56f   : > { %v8988_v46 = vpack.c.bf16 %v8476_v44, %v8476_v44  ;;  %v7196_v29 = vadd.f32 %v15938_v22, %v6680_v11  ;;  %5783 = vst.msk [vmem:[#allocation2 + $0x368] sm:$0xff] %vm264_vm3, %v5270_v21  ;;  %v16283_v36 = vpop.f32.mrf.mxu2  ;;  %v16285_v16 = vpop.f32.mrf.mxu3  ;;  %v5272_v44 = vadd.f32 %v16234_v24, %v888_v10 }
 0x570   : > { %9373 = vst.msk [vmem:[%s11763_s4 + $0x1ac] sm:$0xf] %vm9265_vm5, %v8860_v17  ;;  %vm7580_vm4 = vcmp.gt.f32.partialorder %v7068_v52, 0.0  ;;  %v8092_v18 = vmul.f32 0.01, %v7068_v52  ;;  %v6297_v1 = vld [vmem:[#allocation2 + $0x360] sm:$0xff]  ;;  %v16289_v21 = vpop.f32.mrf.mxu0  ;;  %v16291_v20 = vpop.f32.mrf.mxu1  ;;  %v5655_v17 = vadd.f32 %v16230_v37, %v1271_v40 }
 0x571   : > { %9501 = vst.msk [vmem:[%s11763_s4 + $0x3ac] sm:$0xf] %vm9265_vm5, %v8988_v46  ;;  %vm7708_vm6 = vcmp.gt.f32.partialorder %v7196_v29, 0.0  ;;  %v8220_v35 = vmul.f32 0.01, %v7196_v29  ;;  %v6813_v45 = vadd.f32 %v15938_v22, %v6297_v1  ;;  %v6425_v27 = vld [vmem:[#allocation2 + $0x760] sm:$0xff] }
 0x572   : > { %v8604_v62 = vsel %vm7580_vm4, %v7068_v52, %v8092_v18  ;;  %v6941_v5 = vadd.f32 %v15938_v22, %v6425_v27  ;;  %5911 = vst.msk [vmem:[#allocation2 + $0x768] sm:$0xff] %vm264_vm3, %v5398_v43 }
 0x573   : > { %v9116_v3 = vpack.c.bf16 %v8604_v62, %v8604_v62  ;;  %v8732_v60 = vsel %vm7708_vm6, %v7196_v29, %v8220_v35  ;;  %vm7325_vm7 = vcmp.gt.f32.partialorder %v6813_v45, 0.0  ;;  %v7837_v55 = vmul.f32 0.01, %v6813_v45  ;;  %v6553_v9 = vld [vmem:[#allocation2 + $0xb60] sm:$0xff]  ;;  %6039 = vst.msk [vmem:[#allocation2 + $0xb68] sm:$0xff] %vm264_vm3, %v5526_v57  ;;  %v1016_v29 = vld [vmem:[#allocation2 + $0x778] sm:$0xff] }
 0x574   : > { %v9244_v63 = vpack.c.bf16 %v8732_v60, %v8732_v60  ;;  %vm7453_vm8 = vcmp.gt.f32.partialorder %v6941_v5, 0.0  ;;  %v7965_v32 = vmul.f32 0.01, %v6941_v5  ;;  %v7069_v50 = vadd.f32 %v15938_v22, %v6553_v9  ;;  %v6681_v51 = vld [vmem:[#allocation2 + $0xf60] sm:$0xff]  ;;  %6167 = vst.msk [vmem:[#allocation2 + $0xf68] sm:$0xff] %vm264_vm3, %v5654_v26  ;;  %v1144_v57 = vld [vmem:[#allocation2 + $0xb78] sm:$0xff] }
 0x575   : > { %9629 = vst.msk [vmem:[%s11763_s4 + $0x5ac] sm:$0xf] %vm9265_vm5, %v9116_v3  ;;  %v8349_v47 = vsel %vm7325_vm7, %v6813_v45, %v7837_v55  ;;  %v7197_v13 = vadd.f32 %v15938_v22, %v6681_v51  ;;  %v5400_v27 = vadd.f32 %v16236_v31, %v1016_v29  ;;  %v1272_v62 = vld [vmem:[#allocation2 + $0xf78] sm:$0xff]  ;;  %v5528_v9 = vadd.f32 %v16255_v23, %v1144_v57 }
 0x576   : > { %9757 = vst.msk [vmem:[%s11763_s4 + $0x7ac] sm:$0xf] %vm9265_vm5, %v9244_v63  ;;  %v8861_v58 = vpack.c.bf16 %v8349_v47, %v8349_v47  ;;  %v8477_v49 = vsel %vm7453_vm8, %v6941_v5, %v7965_v32  ;;  %vm7581_vm9 = vcmp.gt.f32.partialorder %v7069_v50, 0.0  ;;  %v8093_v48 = vmul.f32 0.01, %v7069_v50  ;;  %v6298_v0 = vld [vmem:[#allocation2 + $0x368] sm:$0xff] }
 0x577   : > { %v8989_v53 = vpack.c.bf16 %v8477_v49, %v8477_v49  ;;  %vm7709_vm10 = vcmp.gt.f32.partialorder %v7197_v13, 0.0  ;;  %v8221_v4 = vmul.f32 0.01, %v7197_v13  ;;  %v6814_v34 = vadd.f32 %v15938_v22, %v6298_v0  ;;  %5784 = vst.msk [vmem:[#allocation2 + $0x370] sm:$0xff] %vm264_vm3, %v5271_v39  ;;  %v889_v5 = vld [vmem:[#allocation2 + $0x380] sm:$0xff]  ;;  %v16315_v39 = vpop.f32.mrf.mxu2  ;;  %v16317_v54 = vpop.f32.mrf.mxu3 }
 0x578   : > { %9374 = vst.msk [vmem:[%s11763_s4 + $0x1b0] sm:$0xf] %vm9265_vm5, %v8861_v58  ;;  %v8605_v28 = vsel %vm7581_vm9, %v7069_v50, %v8093_v48  ;;  %v16322_v63 = vpop.f32.mrf.mxu0  ;;  %v16324_v32 = vpop.f32.mrf.mxu1  ;;  %v5656_v51 = vadd.f32 %v16257_v7, %v1272_v62  ;;  %v1017_v47 = vld [vmem:[#allocation2 + $0x780] sm:$0xff]  ;;  %v5273_v58 = vadd.f32 %v16262_v25, %v889_v5 }
 0x579   : > { %9502 = vst.msk [vmem:[%s11763_s4 + $0x3b0] sm:$0xf] %vm9265_vm5, %v8989_v53  ;;  %v9117_v59 = vpack.c.bf16 %v8605_v28, %v8605_v28  ;;  %v8733_v6 = vsel %vm7709_vm10, %v7197_v13, %v8221_v4  ;;  %vm7326_vm11 = vcmp.gt.f32.partialorder %v6814_v34, 0.0  ;;  %v7838_v22 = vmul.f32 0.01, %v6814_v34  ;;  %v6426_v38 = vld [vmem:[#allocation2 + $0x768] sm:$0xff] }
 0x57a   : > { %v9245_v14 = vpack.c.bf16 %v8733_v6, %v8733_v6  ;;  %v6942_v33 = vadd.f32 %v16296_v19, %v6426_v38  ;;  %v6554_v56 = vld [vmem:[#allocation2 + $0xb68] sm:$0xff]  ;;  %5912 = vst.msk [vmem:[#allocation2 + $0x770] sm:$0xff] %vm264_vm3, %v5399_v30  ;;  %v1145_v13 = vld [vmem:[#allocation2 + $0xb80] sm:$0xff]  ;;  %v5401_v7 = vadd.f32 %v16264_v12, %v1017_v47 }
 0x57b   : > { %9630 = vst.msk [vmem:[%s11763_s4 + $0x5b0] sm:$0xf] %vm9265_vm5, %v9117_v59  ;;  %v8350_v41 = vsel %vm7326_vm11, %v6814_v34, %v7838_v22  ;;  %v7070_v15 = vadd.f32 %v16296_v19, %v6554_v56  ;;  %v6682_v61 = vld [vmem:[#allocation2 + $0xf68] sm:$0xff]  ;;  %v5529_v53 = vadd.f32 %v16283_v36, %v1145_v13  ;;  %v1273_v4 = vld [vmem:[#allocation2 + $0xf80] sm:$0xff] }
 0x57c   : > { %9758 = vst.msk [vmem:[%s11763_s4 + $0x7b0] sm:$0xf] %vm9265_vm5, %v9245_v14  ;;  %v8862_v52 = vpack.c.bf16 %v8350_v41, %v8350_v41  ;;  %vm7454_vm12 = vcmp.gt.f32.partialorder %v6942_v33, 0.0  ;;  %v7966_v11 = vmul.f32 0.01, %v6942_v33  ;;  %v7198_v43 = vadd.f32 %v16296_v19, %v6682_v61  ;;  %v890_v22 = vld [vmem:[#allocation2 + $0x388] sm:$0xff] }
 0x57d   : > { %vm7582_vm13 = vcmp.gt.f32.partialorder %v7070_v15, 0.0  ;;  %v8094_v46 = vmul.f32 0.01, %v7070_v15  ;;  %6040 = vst.msk [vmem:[#allocation2 + $0xb70] sm:$0xff] %vm264_vm3, %v5527_v42  ;;  %v5657_v6 = vadd.f32 %v16285_v16, %v1273_v4  ;;  %v1018_v41 = vld [vmem:[#allocation2 + $0x788] sm:$0xff] }
 0x57e   : > { %9375 = vst.msk [vmem:[%s11763_s4 + $0x1b4] sm:$0xf] %vm9265_vm5, %v8862_v52  ;;  %v8478_v2 = vsel %vm7454_vm12, %v6942_v33, %v7966_v11  ;;  %vm7710_vm14 = vcmp.gt.f32.partialorder %v7198_v43, 0.0  ;;  %v8222_v37 = vmul.f32 0.01, %v7198_v43  ;;  %v6299_v24 = vld [vmem:[#allocation2 + $0x370] sm:$0xff]  ;;  %v5402_v57 = vadd.f32 %v16291_v20, %v1018_v41 }
 0x57f   : > { %v8990_v18 = vpack.c.bf16 %v8478_v2, %v8478_v2  ;;  %v8606_v1 = vsel %vm7582_vm13, %v7070_v15, %v8094_v46  ;;  %v6815_v26 = vadd.f32 %v16296_v19, %v6299_v24  ;;  %6168 = vst.msk [vmem:[#allocation2 + $0xf70] sm:$0xff] %vm264_vm3, %v5655_v17  ;;  %v16344_v10 = vpop.f32.mrf.mxu2  ;;  %v16346_v59 = vpop.f32.mrf.mxu3  ;;  %v1146_v17 = vld [vmem:[#allocation2 + $0xb88] sm:$0xff] }
 0x580   : > { %v9118_v35 = vpack.c.bf16 %v8606_v1, %v8606_v1  ;;  %v8734_v45 = vsel %vm7710_vm14, %v7198_v43, %v8222_v37  ;;  %5785 = vst.msk [vmem:[#allocation2 + $0x378] sm:$0xff] %vm264_vm3, %v5272_v44  ;;  %v16351_v38 = vpop.f32.mrf.mxu0  ;;  %v16353_v14 = vpop.f32.mrf.mxu1  ;;  %v5274_v43 = vadd.f32 %v16289_v21, %v890_v22  ;;  %v1274_v2 = vld [vmem:[#allocation2 + $0xf88] sm:$0xff] }
 0x581   : > { %9503 = vst.msk [vmem:[%s11763_s4 + $0x3b4] sm:$0xf] %vm9265_vm5, %v8990_v18  ;;  %v9246_v3 = vpack.c.bf16 %v8734_v45, %v8734_v45  ;;  %vm7327_vm15 = vcmp.gt.f32.partialorder %v6815_v26, 0.0  ;;  %v7839_v60 = vmul.f32 0.01, %v6815_v26  ;;  %v6427_v55 = vld [vmem:[#allocation2 + $0x770] sm:$0xff]  ;;  %v5530_v18 = vadd.f32 %v16315_v39, %v1146_v17 }
 0x582   : > { %9631 = vst.msk [vmem:[%s11763_s4 + $0x5b4] sm:$0xf] %vm9265_vm5, %v9118_v35  ;;  %v6943_v31 = vadd.f32 %v16296_v19, %v6427_v55  ;;  %v5658_v20 = vadd.f32 %v16317_v54, %v1274_v2  ;;  %v1020_v2 = vld [vmem:[#allocation2 + $0x798] sm:$0xff] }
 0x583   : > { %9759 = vst.msk [vmem:[%s11763_s4 + $0x7b4] sm:$0xf] %vm9265_vm5, %v9246_v3  ;;  %v8351_v50 = vsel %vm7327_vm15, %v6815_v26, %v7839_v60 }
 0x584   : > { %v8863_v30 = vpack.c.bf16 %v8351_v50, %v8351_v50  ;;  %vm7455_vm2 = vcmp.gt.f32.partialorder %v6943_v31, 0.0  ;;  %v7967_v8 = vmul.f32 0.01, %v6943_v31  ;;  %v6555_v23 = vld [vmem:[#allocation2 + $0xb70] sm:$0xff]  ;;  %5913 = vst.msk [vmem:[#allocation2 + $0x778] sm:$0xff] %vm264_vm3, %v5400_v27 }
 0x585   : > { %v7071_v49 = vadd.f32 %v16296_v19, %v6555_v23  ;;  %6041 = vst.msk [vmem:[#allocation2 + $0xb78] sm:$0xff] %vm264_vm3, %v5528_v9  ;;  %v891_v27 = vld [vmem:[#allocation2 + $0x390] sm:$0xff] }
 0x586   : > { %9376 = vst.msk [vmem:[%s11763_s4 + $0x1b8] sm:$0xf] %vm9265_vm5, %v8863_v30  ;;  %v8479_v48 = vsel %vm7455_vm2, %v6943_v31, %v7967_v8  ;;  %v6683_v0 = vld [vmem:[#allocation2 + $0xf70] sm:$0xff]  ;;  %v5275_v8 = vadd.f32 %v16322_v63, %v891_v27 }
 0x587   : > { %v8991_v34 = vpack.c.bf16 %v8479_v48, %v8479_v48  ;;  %vm7583_vm0 = vcmp.gt.f32.partialorder %v7071_v49, 0.0  ;;  %v8095_v28 = vmul.f32 0.01, %v7071_v49  ;;  %v7199_v42 = vadd.f32 %v16296_v19, %v6683_v0  ;;  %v6300_v25 = vld [vmem:[#allocation2 + $0x378] sm:$0xff]  ;;  %6169 = vst.msk [vmem:[#allocation2 + $0xf78] sm:$0xff] %vm264_vm3, %v5656_v51  ;;  %v16373_v62 = vpop.f32.mrf.mxu2  ;;  %v16375_v5 = vpop.f32.mrf.mxu3  ;;  %v1019_v23 = vld [vmem:[#allocation2 + $0x790] sm:$0xff] }
 0x588   : > { %v6816_v40 = vadd.f32 %v16296_v19, %v6300_v25  ;;  %5786 = vst.msk [vmem:[#allocation2 + $0x380] sm:$0xff] %vm264_vm3, %v5273_v58  ;;  %v16378_v9 = vpop.f32.mrf.mxu0  ;;  %v16380_v31 = vpop.f32.mrf.mxu1  ;;  %v5403_v63 = vadd.f32 %v16324_v32, %v1019_v23 }
 0x589   : > { %9504 = vst.msk [vmem:[%s11763_s4 + $0x3b8] sm:$0xf] %vm9265_vm5, %v8991_v34  ;;  %v8607_v12 = vsel %vm7583_vm0, %v7071_v49, %v8095_v28  ;;  %vm7711_vm1 = vcmp.gt.f32.partialorder %v7199_v42, 0.0  ;;  %v8223_v36 = vmul.f32 0.01, %v7199_v42  ;;  %v1147_v28 = vld [vmem:[#allocation2 + $0xb90] sm:$0xff] }
 0x58a   : > { %v9119_v33 = vpack.c.bf16 %v8607_v12, %v8607_v12  ;;  %vm7328_vm4 = vcmp.gt.f32.partialorder %v6816_v40, 0.0  ;;  %v7840_v56 = vmul.f32 0.01, %v6816_v40  ;;  %5914 = vst.msk [vmem:[#allocation2 + $0x780] sm:$0xff] %vm264_vm3, %v5401_v7  ;;  %v5531_v17 = vadd.f32 %v16344_v10, %v1147_v28 }
 0x58b   : > { %v8735_v15 = vsel %vm7711_vm1, %v7199_v42, %v8223_v36  ;;  %v6428_v61 = vld [vmem:[#allocation2 + $0x778] sm:$0xff]  ;;  %6042 = vst.msk [vmem:[#allocation2 + $0xb80] sm:$0xff] %vm264_vm3, %v5529_v53  ;;  %v1275_v42 = vld [vmem:[#allocation2 + $0xf90] sm:$0xff] }
 0x58c   : > { %9632 = vst.msk [vmem:[%s11763_s4 + $0x5b8] sm:$0xf] %vm9265_vm5, %v9119_v33  ;;  %v9247_v16 = vpack.c.bf16 %v8735_v15, %v8735_v15  ;;  %v8352_v44 = vsel %vm7328_vm4, %v6816_v40, %v7840_v56  ;;  %v6944_v52 = vadd.f32 %v16296_v19, %v6428_v61  ;;  %v6556_v11 = vld [vmem:[#allocation2 + $0xb78] sm:$0xff] }
 0x58d   : > { %v8864_v46 = vpack.c.bf16 %v8352_v44, %v8352_v44  ;;  %v7072_v29 = vadd.f32 %v16296_v19, %v6556_v11  ;;  %6170 = vst.msk [vmem:[#allocation2 + $0xf80] sm:$0xff] %vm264_vm3, %v5657_v6 }
 0x58e   : > { %9760 = vst.msk [vmem:[%s11763_s4 + $0x7b8] sm:$0xf] %vm9265_vm5, %v9247_v16  ;;  %vm7456_vm6 = vcmp.gt.f32.partialorder %v6944_v52, 0.0  ;;  %v7968_v37 = vmul.f32 0.01, %v6944_v52  ;;  %v6684_v24 = vld [vmem:[#allocation2 + $0xf78] sm:$0xff]  ;;  %v5659_v16 = vadd.f32 %v16346_v59, %v1275_v42 }
 0x58f   : > { %9377 = vst.msk [vmem:[%s11763_s4 + $0x1bc] sm:$0xf] %vm9265_vm5, %v8864_v46  ;;  %vm7584_vm7 = vcmp.gt.f32.partialorder %v7072_v29, 0.0  ;;  %v8096_v1 = vmul.f32 0.01, %v7072_v29  ;;  %v7200_v21 = vadd.f32 %v16296_v19, %v6684_v24  ;;  %v6301_v26 = vld [vmem:[#allocation2 + $0x380] sm:$0xff]  ;;  %v16399_v56 = vpop.f32.mrf.mxu2  ;;  %v16401_v41 = vpop.f32.mrf.mxu3 }
 0x590   : > { %v8480_v35 = vsel %vm7456_vm6, %v6944_v52, %v7968_v37  ;;  %v6817_v45 = vadd.f32 %v16296_v19, %v6301_v26  ;;  %5787 = vst.msk [vmem:[#allocation2 + $0x388] sm:$0xff] %vm264_vm3, %v5274_v43  ;;  %v16408_v44 = vpop.f32.mrf.mxu0  ;;  %v16410_v52 = vpop.f32.mrf.mxu1 }
 0x591   : > { %v8992_v39 = vpack.c.bf16 %v8480_v35, %v8480_v35  ;;  %v8608_v3 = vsel %vm7584_vm7, %v7072_v29, %v8096_v1  ;;  %vm7712_vm8 = vcmp.gt.f32.partialorder %v7200_v21, 0.0  ;;  %v8224_v60 = vmul.f32 0.01, %v7200_v21  ;;  %v6429_v55 = vld [vmem:[#allocation2 + $0x780] sm:$0xff]  ;;  %5915 = vst.msk [vmem:[#allocation2 + $0x788] sm:$0xff] %vm264_vm3, %v5402_v57  ;;  %v892_v57 = vld [vmem:[#allocation2 + $0x398] sm:$0xff] }
 0x592   : > { %v9120_v50 = vpack.c.bf16 %v8608_v3, %v8608_v3  ;;  %vm7329_vm9 = vcmp.gt.f32.partialorder %v6817_v45, 0.0  ;;  %v7841_v54 = vmul.f32 0.01, %v6817_v45  ;;  %v6945_v51 = vadd.f32 %v16296_v19, %v6429_v55  ;;  %v6557_v47 = vld [vmem:[#allocation2 + $0xb80] sm:$0xff]  ;;  %6043 = vst.msk [vmem:[#allocation2 + $0xb88] sm:$0xff] %vm264_vm3, %v5530_v18 }
 0x593   : > { %9505 = vst.msk [vmem:[%s11763_s4 + $0x3bc] sm:$0xf] %vm9265_vm5, %v8992_v39  ;;  %v8736_v13 = vsel %vm7712_vm8, %v7200_v21, %v8224_v60  ;;  %v7073_v30 = vadd.f32 %v16296_v19, %v6557_v47  ;;  %v5276_v35 = vadd.f32 %v16351_v38, %v892_v57  ;;  %v5404_v60 = vadd.f32 %v16353_v14, %v1020_v2  ;;  %v893_v47 = vld [vmem:[#allocation2 + $0x3a0] sm:$0xff] }
 0x594   : > { %9633 = vst.msk [vmem:[%s11763_s4 + $0x5bc] sm:$0xf] %vm9265_vm5, %v9120_v50  ;;  %v9248_v58 = vpack.c.bf16 %v8736_v13, %v8736_v13  ;;  %v8353_v49 = vsel %vm7329_vm9, %v6817_v45, %v7841_v54  ;;  %vm7457_vm10 = vcmp.gt.f32.partialorder %v6945_v51, 0.0  ;;  %v7969_v48 = vmul.f32 0.01, %v6945_v51  ;;  %v6685_v0 = vld [vmem:[#allocation2 + $0xf80] sm:$0xff] }
 0x595   : > { %v8865_v7 = vpack.c.bf16 %v8353_v49, %v8353_v49  ;;  %vm7585_vm11 = vcmp.gt.f32.partialorder %v7073_v30, 0.0  ;;  %v8097_v53 = vmul.f32 0.01, %v7073_v30  ;;  %v7201_v4 = vadd.f32 %v16296_v19, %v6685_v0  ;;  %6171 = vst.msk [vmem:[#allocation2 + $0xf88] sm:$0xff] %vm264_vm3, %v5658_v20  ;;  %v1148_v45 = vld [vmem:[#allocation2 + $0xb98] sm:$0xff]  ;;  %v1021_v13 = vld [vmem:[#allocation2 + $0x7a0] sm:$0xff] }
 0x596   : > { %9761 = vst.msk [vmem:[%s11763_s4 + $0x7bc] sm:$0xf] %vm9265_vm5, %v9248_v58  ;;  %v8481_v34 = vsel %vm7457_vm10, %v6945_v51, %v7969_v48  ;;  %v1276_v20 = vld [vmem:[#allocation2 + $0xf98] sm:$0xff]  ;;  %v5532_v51 = vadd.f32 %v16373_v62, %v1148_v45  ;;  %v1278_v45 = vld [vmem:[#allocation2 + $0xfa8] sm:$0xff] }
 0x597   : > { %9378 = vst.msk [vmem:[%s11763_s4 + $0x1c0] sm:$0xf] %vm9265_vm5, %v8865_v7  ;;  %v8993_v25 = vpack.c.bf16 %v8481_v34, %v8481_v34  ;;  %v8609_v40 = vsel %vm7585_vm11, %v7073_v30, %v8097_v53  ;;  %vm7713_vm12 = vcmp.gt.f32.partialorder %v7201_v4, 0.0  ;;  %v8225_v12 = vmul.f32 0.01, %v7201_v4  ;;  %v6302_v36 = vld [vmem:[#allocation2 + $0x388] sm:$0xff]  ;;  %v16428_v50 = vpop.f32.mrf.mxu2  ;;  %v16430_v54 = vpop.f32.mrf.mxu3 }
 0x598   : > { %v9121_v6 = vpack.c.bf16 %v8609_v40, %v8609_v40  ;;  %v6818_v22 = vadd.f32 %v16296_v19, %v6302_v36  ;;  %v6430_v33 = vld [vmem:[#allocation2 + $0x788] sm:$0xff]  ;;  %5788 = vst.msk [vmem:[#allocation2 + $0x390] sm:$0xff] %vm264_vm3, %v5275_v8  ;;  %v16435_v30 = vpop.f32.mrf.mxu0  ;;  %v16437_v8 = vpop.f32.mrf.mxu1  ;;  %v5660_v49 = vadd.f32 %v16375_v5, %v1276_v20  ;;  %v5277_v7 = vadd.f32 %v16378_v9, %v893_v47  ;;  %v1277_v40 = vld [vmem:[#allocation2 + $0xfa0] sm:$0xff] }
 0x599   : > { %9506 = vst.msk [vmem:[%s11763_s4 + $0x3c0] sm:$0xf] %vm9265_vm5, %v8993_v25  ;;  %v8737_v32 = vsel %vm7713_vm12, %v7201_v4, %v8225_v12  ;;  %v6946_v15 = vadd.f32 %v16296_v19, %v6430_v33  ;;  %v6558_v61 = vld [vmem:[#allocation2 + $0xb88] sm:$0xff]  ;;  %v5405_v53 = vadd.f32 %v16380_v31, %v1021_v13  ;;  %v1149_v4 = vld [vmem:[#allocation2 + $0xba0] sm:$0xff] }
 0x59a   : > { %9634 = vst.msk [vmem:[%s11763_s4 + $0x5c0] sm:$0xf] %vm9265_vm5, %v9121_v6  ;;  %v9249_v11 = vpack.c.bf16 %v8737_v32, %v8737_v32  ;;  %vm7330_vm13 = vcmp.gt.f32.partialorder %v6818_v22, 0.0  ;;  %v7842_v43 = vmul.f32 0.01, %v6818_v22  ;;  %v7074_v46 = vadd.f32 %v16296_v19, %v6558_v61  ;;  %v894_v6 = vld [vmem:[#allocation2 + $0x3a8] sm:$0xff] }
 0x59b   : > { %vm7458_vm14 = vcmp.gt.f32.partialorder %v6946_v15, 0.0  ;;  %v7970_v29 = vmul.f32 0.01, %v6946_v15  ;;  %5916 = vst.msk [vmem:[#allocation2 + $0x790] sm:$0xff] %vm264_vm3, %v5403_v63  ;;  %v5533_v31 = vadd.f32 %v16399_v56, %v1149_v4  ;;  %v1022_v61 = vld [vmem:[#allocation2 + $0x7a8] sm:$0xff]  ;;  %v5278_v2 = vadd.f32 %v16408_v44, %v894_v6 }
 0x59c   : > { %9762 = vst.msk [vmem:[%s11763_s4 + $0x7c0] sm:$0xf] %vm9265_vm5, %v9249_v11  ;;  %v8354_v10 = vsel %vm7330_vm13, %v6818_v22, %v7842_v43  ;;  %vm7586_vm15 = vcmp.gt.f32.partialorder %v7074_v46, 0.0  ;;  %v8098_v59 = vmul.f32 0.01, %v7074_v46  ;;  %v6686_v37 = vld [vmem:[#allocation2 + $0xf88] sm:$0xff] }
 0x59d   : > { %v8866_v24 = vpack.c.bf16 %v8354_v10, %v8354_v10  ;;  %v8482_v18 = vsel %vm7458_vm14, %v6946_v15, %v7970_v29  ;;  %v7202_v1 = vadd.f32 %v16296_v19, %v6686_v37  ;;  %6044 = vst.msk [vmem:[#allocation2 + $0xb90] sm:$0xff] %vm264_vm3, %v5531_v17  ;;  %v1150_v10 = vld [vmem:[#allocation2 + $0xba8] sm:$0xff] }
 0x59e   : > { %v8994_v21 = vpack.c.bf16 %v8482_v18, %v8482_v18  ;;  %v8610_v26 = vsel %vm7586_vm15, %v7074_v46, %v8098_v59  ;;  %6172 = vst.msk [vmem:[#allocation2 + $0xf90] sm:$0xff] %vm264_vm3, %v5659_v16  ;;  %v5661_v46 = vadd.f32 %v16401_v41, %v1277_v40  ;;  %v5406_v18 = vadd.f32 %v16410_v52, %v1022_v61 }
 0x59f   : > { %9379 = vst.msk [vmem:[%s11763_s4 + $0x1c4] sm:$0xf] %vm9265_vm5, %v8866_v24  ;;  %v9122_v27 = vpack.c.bf16 %v8610_v26, %v8610_v26  ;;  %vm7714_vm2 = vcmp.gt.f32.partialorder %v7202_v1, 0.0  ;;  %v8226_v39 = vmul.f32 0.01, %v7202_v1  ;;  %v6303_v3 = vld [vmem:[#allocation2 + $0x390] sm:$0xff]  ;;  %v16455_v22 = vpop.f32.mrf.mxu2  ;;  %v16457_v33 = vpop.f32.mrf.mxu3 }
 0x5a0   : > { %9507 = vst.msk [vmem:[%s11763_s4 + $0x3c4] sm:$0xf] %vm9265_vm5, %v8994_v21  ;;  %v6819_v55 = vadd.f32 %v16296_v19, %v6303_v3  ;;  %v16460_v17 = vpop.f32.mrf.mxu0  ;;  %v16469_v59 = vpop.f32.mrf.mxu1 }
 0x5a1   : > { %9635 = vst.msk [vmem:[%s11763_s4 + $0x5c4] sm:$0xf] %vm9265_vm5, %v9122_v27  ;;  %v8738_v38 = vsel %vm7714_vm2, %v7202_v1, %v8226_v39 }
 0x5a2   : > { %v9250_v14 = vpack.c.bf16 %v8738_v38, %v8738_v38  ;;  %vm7331_vm0 = vcmp.gt.f32.partialorder %v6819_v55, 0.0  ;;  %v7843_v23 = vmul.f32 0.01, %v6819_v55  ;;  %v6431_v58 = vld [vmem:[#allocation2 + $0x790] sm:$0xff]  ;;  %5789 = vst.msk [vmem:[#allocation2 + $0x398] sm:$0xff] %vm264_vm3, %v5276_v35  ;;  %v5534_v35 = vadd.f32 %v16428_v50, %v1150_v10 }
 0x5a3   : > { %v6947_v48 = vadd.f32 %v16296_v19, %v6431_v58  ;;  %5917 = vst.msk [vmem:[#allocation2 + $0x798] sm:$0xff] %vm264_vm3, %v5404_v60 }
 0x5a4   : > { %9763 = vst.msk [vmem:[%s11763_s4 + $0x7c4] sm:$0xf] %vm9265_vm5, %v9250_v14  ;;  %v8355_v62 = vsel %vm7331_vm0, %v6819_v55, %v7843_v23  ;;  %v6559_v0 = vld [vmem:[#allocation2 + $0xb90] sm:$0xff]  ;;  %v5662_v14 = vadd.f32 %v16430_v54, %v1278_v45 }
 0x5a5   : > { %v8867_v34 = vpack.c.bf16 %v8355_v62, %v8355_v62  ;;  %vm7459_vm1 = vcmp.gt.f32.partialorder %v6947_v48, 0.0  ;;  %v7971_v63 = vmul.f32 0.01, %v6947_v48  ;;  %v7075_v28 = vadd.f32 %v16296_v19, %v6559_v0  ;;  %v6687_v5 = vld [vmem:[#allocation2 + $0xf90] sm:$0xff]  ;;  %6045 = vst.msk [vmem:[#allocation2 + $0xb98] sm:$0xff] %vm264_vm3, %v5532_v51 }
 0x5a6   : > { %v7203_v42 = vadd.f32 %v16296_v19, %v6687_v5  ;;  %6173 = vst.msk [vmem:[#allocation2 + $0xf98] sm:$0xff] %vm264_vm3, %v5660_v49  ;;  %v895_v23 = vld [vmem:[#allocation2 + $0x3b0] sm:$0xff] }
 0x5a7   : > { %9380 = vst.msk [vmem:[%s11763_s4 + $0x1c8] sm:$0xf] %vm9265_vm5, %v8867_v34  ;;  %v8483_v25 = vsel %vm7459_vm1, %v6947_v48, %v7971_v63  ;;  %vm7587_vm4 = vcmp.gt.f32.partialorder %v7075_v28, 0.0  ;;  %v8099_v9 = vmul.f32 0.01, %v7075_v28  ;;  %v16483_v51 = vpop.f32.mrf.mxu2  ;;  %v16485_v50 = vpop.f32.mrf.mxu3  ;;  %v5279_v34 = vadd.f32 %v16435_v30, %v895_v23  ;;  %v1023_v63 = vld [vmem:[#allocation2 + $0x7b0] sm:$0xff] }
 0x5a8   : > { %v8995_v12 = vpack.c.bf16 %v8483_v25, %v8483_v25  ;;  %vm7715_vm6 = vcmp.gt.f32.partialorder %v7203_v42, 0.0  ;;  %v8227_v36 = vmul.f32 0.01, %v7203_v42  ;;  %5790 = vst.msk [vmem:[#allocation2 + $0x3a0] sm:$0xff] %vm264_vm3, %v5277_v7  ;;  %v16495_v4 = vpop.f32.mrf.mxu0 }
 0x5a9   : > { %v8611_v32 = vsel %vm7587_vm4, %v7075_v28, %v8099_v9  ;;  %v6304_v15 = vld [vmem:[#allocation2 + $0x398] sm:$0xff]  ;;  %5918 = vst.msk [vmem:[#allocation2 + $0x7a0] sm:$0xff] %vm264_vm3, %v5405_v53  ;;  %v1151_v28 = vld [vmem:[#allocation2 + $0xbb0] sm:$0xff] }
 0x5aa   : > { %9508 = vst.msk [vmem:[%s11763_s4 + $0x3c8] sm:$0xf] %vm9265_vm5, %v8995_v12  ;;  %v9123_v56 = vpack.c.bf16 %v8611_v32, %v8611_v32  ;;  %v8739_v16 = vsel %vm7715_vm6, %v7203_v42, %v8227_v36  ;;  %v6820_v11 = vadd.f32 %v16296_v19, %v6304_v15  ;;  %v6432_v43 = vld [vmem:[#allocation2 + $0x798] sm:$0xff]  ;;  %v5407_v15 = vadd.f32 %v16437_v8, %v1023_v63 }
 0x5ab   : > { %v9251_v29 = vpack.c.bf16 %v8739_v16, %v8739_v16  ;;  %v6948_v57 = vadd.f32 %v16296_v19, %v6432_v43  ;;  %6046 = vst.msk [vmem:[#allocation2 + $0xba0] sm:$0xff] %vm264_vm3, %v5533_v31  ;;  %v16502_v31 = vpop.f32.mrf.mxu1  ;;  %v5535_v61 = vadd.f32 %v16455_v22, %v1151_v28 }
 0x5ac   : > { %9636 = vst.msk [vmem:[%s11763_s4 + $0x5c8] sm:$0xf] %vm9265_vm5, %v9123_v56  ;;  %vm7332_vm7 = vcmp.gt.f32.partialorder %v6820_v11, 0.0  ;;  %v7844_v37 = vmul.f32 0.01, %v6820_v11  ;;  %v6560_v24 = vld [vmem:[#allocation2 + $0xb98] sm:$0xff] }
 0x5ad   : > { %9764 = vst.msk [vmem:[%s11763_s4 + $0x7c8] sm:$0xf] %vm9265_vm5, %v9251_v29  ;;  %vm7460_vm8 = vcmp.gt.f32.partialorder %v6948_v57, 0.0  ;;  %v7972_v41 = vmul.f32 0.01, %v6948_v57  ;;  %v7076_v1 = vadd.f32 %v16296_v19, %v6560_v24  ;;  %v6688_v21 = vld [vmem:[#allocation2 + $0xf98] sm:$0xff] }
 0x5ae   : > { %v8356_v26 = vsel %vm7332_vm7, %v6820_v11, %v7844_v37  ;;  %v7204_v44 = vadd.f32 %v16296_v19, %v6688_v21  ;;  %6174 = vst.msk [vmem:[#allocation2 + $0xfa0] sm:$0xff] %vm264_vm3, %v5661_v46 }
 0x5af   : > { %v8868_v20 = vpack.c.bf16 %v8356_v26, %v8356_v26  ;;  %v8484_v27 = vsel %vm7460_vm8, %v6948_v57, %v7972_v41  ;;  %vm7588_vm9 = vcmp.gt.f32.partialorder %v7076_v1, 0.0  ;;  %v8100_v52 = vmul.f32 0.01, %v7076_v1  ;;  %v6305_v39 = vld [vmem:[#allocation2 + $0x3a0] sm:$0xff]  ;;  %5791 = vst.msk [vmem:[#allocation2 + $0x3a8] sm:$0xff] %vm264_vm3, %v5278_v2  ;;  %v16514_v43 = vpop.f32.mrf.mxu2  ;;  %v16516_v46 = vpop.f32.mrf.mxu3  ;;  %v1279_v57 = vld [vmem:[#allocation2 + $0xfb0] sm:$0xff] }
 0x5b0   : > { %v8996_v3 = vpack.c.bf16 %v8484_v27, %v8484_v27  ;;  %vm7716_vm10 = vcmp.gt.f32.partialorder %v7204_v44, 0.0  ;;  %v8228_v60 = vmul.f32 0.01, %v7204_v44  ;;  %v6821_v55 = vadd.f32 %v16296_v19, %v6305_v39  ;;  %v6433_v38 = vld [vmem:[#allocation2 + $0x7a0] sm:$0xff]  ;;  %5919 = vst.msk [vmem:[#allocation2 + $0x7a8] sm:$0xff] %vm264_vm3, %v5406_v18  ;;  %v896_v2 = vld [vmem:[#allocation2 + $0x3b8] sm:$0xff] }
 0x5b1   : > { %9381 = vst.msk [vmem:[%s11763_s4 + $0x1cc] sm:$0xf] %vm9265_vm5, %v8868_v20  ;;  %v8612_v47 = vsel %vm7588_vm9, %v7076_v1, %v8100_v52  ;;  %v6949_v13 = vadd.f32 %v16296_v19, %v6433_v38  ;;  %v5663_v21 = vadd.f32 %v16457_v33, %v1279_v57  ;;  %v1024_v26 = vld [vmem:[#allocation2 + $0x7b8] sm:$0xff]  ;;  %v5280_v27 = vadd.f32 %v16460_v17, %v896_v2  ;;  %v16528_v52 = vpop.f32.mrf.mxu0 }
 0x5b2   : > { %9509 = vst.msk [vmem:[%s11763_s4 + $0x3cc] sm:$0xf] %vm9265_vm5, %v8996_v3  ;;  %v9124_v58 = vpack.c.bf16 %v8612_v47, %v8612_v47  ;;  %v8740_v49 = vsel %vm7716_vm10, %v7204_v44, %v8228_v60  ;;  %vm7333_vm11 = vcmp.gt.f32.partialorder %v6821_v55, 0.0  ;;  %v7845_v48 = vmul.f32 0.01, %v6821_v55  ;;  %v6561_v62 = vld [vmem:[#allocation2 + $0xba0] sm:$0xff] }
 0x5b3   : > { %v9252_v0 = vpack.c.bf16 %v8740_v49, %v8740_v49  ;;  %vm7461_vm12 = vcmp.gt.f32.partialorder %v6949_v13, 0.0  ;;  %v7973_v7 = vmul.f32 0.01, %v6949_v13  ;;  %v7077_v53 = vadd.f32 %v16296_v19, %v6561_v62  ;;  %6047 = vst.msk [vmem:[#allocation2 + $0xba8] sm:$0xff] %vm264_vm3, %v5534_v35  ;;  %v1152_v44 = vld [vmem:[#allocation2 + $0xbb8] sm:$0xff]  ;;  %v16536_v38 = vpop.f32.mrf.mxu1 }
 0x5b4   : > { %9637 = vst.msk [vmem:[%s11763_s4 + $0x5cc] sm:$0xf] %vm9265_vm5, %v9124_v58  ;;  %v8357_v54 = vsel %vm7333_vm11, %v6821_v55, %v7845_v48  ;;  %v5408_v3 = vadd.f32 %v16469_v59, %v1024_v26  ;;  %v1280_v60 = vld [vmem:[#allocation2 + $0xfb8] sm:$0xff]  ;;  %v897_v55 = vld [vmem:[#allocation2 + $0x3c0] sm:$0xff] }
 0x5b5   : > { %9765 = vst.msk [vmem:[%s11763_s4 + $0x7cc] sm:$0xf] %vm9265_vm5, %v9252_v0  ;;  %v8869_v5 = vpack.c.bf16 %v8357_v54, %v8357_v54  ;;  %v8485_v42 = vsel %vm7461_vm12, %v6949_v13, %v7973_v7  ;;  %vm7589_vm13 = vcmp.gt.f32.partialorder %v7077_v53, 0.0  ;;  %v8101_v25 = vmul.f32 0.01, %v7077_v53  ;;  %v6689_v9 = vld [vmem:[#allocation2 + $0xfa0] sm:$0xff] }
 0x5b6   : > { %v8997_v40 = vpack.c.bf16 %v8485_v42, %v8485_v42  ;;  %v7205_v12 = vadd.f32 %v16296_v19, %v6689_v9  ;;  %v6306_v36 = vld [vmem:[#allocation2 + $0x3a8] sm:$0xff]  ;;  %6175 = vst.msk [vmem:[#allocation2 + $0xfa8] sm:$0xff] %vm264_vm3, %v5662_v14  ;;  %v5536_v14 = vadd.f32 %v16483_v51, %v1152_v44  ;;  %v5664_v48 = vadd.f32 %v16485_v50, %v1280_v60  ;;  %v1025_v0 = vld [vmem:[#allocation2 + $0x7c0] sm:$0xff] }
 0x5b7   : > { %9382 = vst.msk [vmem:[%s11763_s4 + $0x1d0] sm:$0xf] %vm9265_vm5, %v8869_v5  ;;  %v8613_v30 = vsel %vm7589_vm13, %v7077_v53, %v8101_v25  ;;  %v6822_v6 = vadd.f32 %v16296_v19, %v6306_v36  ;;  %v6434_v32 = vld [vmem:[#allocation2 + $0x7a8] sm:$0xff]  ;;  %v16540_v23 = vpop.f32.mrf.mxu2  ;;  %v5281_v62 = vadd.f32 %v16495_v4, %v897_v55  ;;  %v16548_v7 = vpop.f32.mrf.mxu3  ;;  %v5409_v28 = vadd.f32 %v16502_v31, %v1025_v0  ;;  %v1153_v5 = vld [vmem:[#allocation2 + $0xbc0] sm:$0xff]  ;;  %v1027_v0 = vld [vmem:[#allocation2 + $0x7d0] sm:$0xff] }
 0x5b8   : > { %9510 = vst.msk [vmem:[%s11763_s4 + $0x3d0] sm:$0xf] %vm9265_vm5, %v8997_v40  ;;  %v9125_v56 = vpack.c.bf16 %v8613_v30, %v8613_v30  ;;  %vm7717_vm14 = vcmp.gt.f32.partialorder %v7205_v12, 0.0  ;;  %v8229_v16 = vmul.f32 0.01, %v7205_v12  ;;  %v6950_v11 = vadd.f32 %v16296_v19, %v6434_v32  ;;  %v1281_v9 = vld [vmem:[#allocation2 + $0xfc0] sm:$0xff] }
 0x5b9   : > { %vm7334_vm15 = vcmp.gt.f32.partialorder %v6822_v6, 0.0  ;;  %v7846_v29 = vmul.f32 0.01, %v6822_v6  ;;  %5792 = vst.msk [vmem:[#allocation2 + $0x3b0] sm:$0xff] %vm264_vm3, %v5279_v34  ;;  %v898_v36 = vld [vmem:[#allocation2 + $0x3c8] sm:$0xff]  ;;  %v16559_v30 = vpop.f32.mrf.mxu0 }
 0x5ba   : > { %9638 = vst.msk [vmem:[%s11763_s4 + $0x5d0] sm:$0xf] %vm9265_vm5, %v9125_v56  ;;  %v8741_v8 = vsel %vm7717_vm14, %v7205_v12, %v8229_v16  ;;  %vm7462_vm2 = vcmp.gt.f32.partialorder %v6950_v11, 0.0  ;;  %v7974_v22 = vmul.f32 0.01, %v6950_v11  ;;  %v6562_v10 = vld [vmem:[#allocation2 + $0xba8] sm:$0xff] }
 0x5bb   : > { %v9253_v37 = vpack.c.bf16 %v8741_v8, %v8741_v8  ;;  %v8358_v24 = vsel %vm7334_vm15, %v6822_v6, %v7846_v29  ;;  %v7078_v18 = vadd.f32 %v16296_v19, %v6562_v10  ;;  %5920 = vst.msk [vmem:[#allocation2 + $0x7b0] sm:$0xff] %vm264_vm3, %v5407_v15  ;;  %v1026_v29 = vld [vmem:[#allocation2 + $0x7c8] sm:$0xff]  ;;  %v16568_v57 = vpop.f32.mrf.mxu1  ;;  %v5282_v10 = vadd.f32 %v16528_v52, %v898_v36 }
 0x5bc   : > { %v8870_v41 = vpack.c.bf16 %v8358_v24, %v8358_v24  ;;  %v8486_v1 = vsel %vm7462_vm2, %v6950_v11, %v7974_v22  ;;  %6048 = vst.msk [vmem:[#allocation2 + $0xbb0] sm:$0xff] %vm264_vm3, %v5535_v61  ;;  %v5537_v61 = vadd.f32 %v16514_v43, %v1153_v5  ;;  %v5665_v11 = vadd.f32 %v16516_v46, %v1281_v9  ;;  %v1282_v55 = vld [vmem:[#allocation2 + $0xfc8] sm:$0xff] }
 0x5bd   : > { %9766 = vst.msk [vmem:[%s11763_s4 + $0x7d0] sm:$0xf] %vm9265_vm5, %v9253_v37  ;;  %v8998_v35 = vpack.c.bf16 %v8486_v1, %v8486_v1  ;;  %vm7590_vm0 = vcmp.gt.f32.partialorder %v7078_v18, 0.0  ;;  %v8102_v45 = vmul.f32 0.01, %v7078_v18  ;;  %v6690_v20 = vld [vmem:[#allocation2 + $0xfa8] sm:$0xff] }
 0x5be   : > { %9383 = vst.msk [vmem:[%s11763_s4 + $0x1d4] sm:$0xf] %vm9265_vm5, %v8870_v41  ;;  %v7206_v39 = vadd.f32 %v16296_v19, %v6690_v20  ;;  %v5410_v41 = vadd.f32 %v16536_v38, %v1026_v29  ;;  %v1154_v1 = vld [vmem:[#allocation2 + $0xbc8] sm:$0xff] }
 0x5bf   : > { %9511 = vst.msk [vmem:[%s11763_s4 + $0x3d4] sm:$0xf] %vm9265_vm5, %v8998_v35  ;;  %v8614_v33 = vsel %vm7590_vm0, %v7078_v18, %v8102_v45  ;;  %v16570_v2 = vpop.f32.mrf.mxu2  ;;  %v5538_v60 = vadd.f32 %v16540_v23, %v1154_v1 }
 0x5c0   : > { %v9126_v47 = vpack.c.bf16 %v8614_v33, %v8614_v33  ;;  %vm7718_vm1 = vcmp.gt.f32.partialorder %v7206_v39, 0.0  ;;  %v8230_v13 = vmul.f32 0.01, %v7206_v39  ;;  %v6307_v17 = vld [vmem:[#allocation2 + $0x3b0] sm:$0xff]  ;;  %6176 = vst.msk [vmem:[#allocation2 + $0xfb0] sm:$0xff] %vm264_vm3, %v5663_v21  ;;  %v16581_v21 = vpop.f32.mrf.mxu3 }
 0x5c1   : > { %v6823_v58 = vadd.f32 %v16296_v19, %v6307_v17  ;;  %5793 = vst.msk [vmem:[#allocation2 + $0x3b8] sm:$0xff] %vm264_vm3, %v5280_v27 }
 0x5c2   : > { %9639 = vst.msk [vmem:[%s11763_s4 + $0x5d4] sm:$0xf] %vm9265_vm5, %v9126_v47  ;;  %v8742_v59 = vsel %vm7718_vm1, %v7206_v39, %v8230_v13  ;;  %v6435_v49 = vld [vmem:[#allocation2 + $0x7b0] sm:$0xff] }
 0x5c3   : > { %v9254_v53 = vpack.c.bf16 %v8742_v59, %v8742_v59  ;;  %vm7335_vm4 = vcmp.gt.f32.partialorder %v6823_v58, 0.0  ;;  %v7847_v51 = vmul.f32 0.01, %v6823_v58  ;;  %v6951_v54 = vadd.f32 %v16296_v19, %v6435_v49  ;;  %v6563_v34 = vld [vmem:[#allocation2 + $0xbb0] sm:$0xff]  ;;  %5921 = vst.msk [vmem:[#allocation2 + $0x7b8] sm:$0xff] %vm264_vm3, %v5408_v3  ;;  %v16594_v49 = vpop.f32.mrf.mxu0 }
 0x5c4   : > { %v7079_v63 = vadd.f32 %v16296_v19, %v6563_v34  ;;  %6049 = vst.msk [vmem:[#allocation2 + $0xbb8] sm:$0xff] %vm264_vm3, %v5536_v14 }
 0x5c5   : > { %9767 = vst.msk [vmem:[%s11763_s4 + $0x7d4] sm:$0xf] %vm9265_vm5, %v9254_v53  ;;  %v8359_v50 = vsel %vm7335_vm4, %v6823_v58, %v7847_v51  ;;  %vm7463_vm6 = vcmp.gt.f32.partialorder %v6951_v54, 0.0  ;;  %v7975_v4 = vmul.f32 0.01, %v6951_v54 }
 0x5c6   : > { %v8871_v42 = vpack.c.bf16 %v8359_v50, %v8359_v50  ;;  %vm7591_vm7 = vcmp.gt.f32.partialorder %v7079_v63, 0.0  ;;  %v8103_v25 = vmul.f32 0.01, %v7079_v63  ;;  %6177 = vst.msk [vmem:[#allocation2 + $0xfb8] sm:$0xff] %vm264_vm3, %v5664_v48  ;;  %v5666_v48 = vadd.f32 %v16548_v7, %v1282_v55 }
 0x5c7   : > { %v8487_v40 = vsel %vm7463_vm6, %v6951_v54, %v7975_v4  ;;  %v6691_v12 = vld [vmem:[#allocation2 + $0xfb0] sm:$0xff]  ;;  %5794 = vst.msk [vmem:[#allocation2 + $0x3c0] sm:$0xff] %vm264_vm3, %v5281_v62  ;;  %v16601_v50 = vpop.f32.mrf.mxu2 }
 0x5c8   : > { %9384 = vst.msk [vmem:[%s11763_s4 + $0x1d8] sm:$0xf] %vm9265_vm5, %v8871_v42  ;;  %v8999_v6 = vpack.c.bf16 %v8487_v40, %v8487_v40  ;;  %v8615_v32 = vsel %vm7591_vm7, %v7079_v63, %v8103_v25  ;;  %v7207_v31 = vadd.f32 %v16296_v19, %v6691_v12  ;;  %v6308_v15 = vld [vmem:[#allocation2 + $0x3b8] sm:$0xff]  ;;  %v899_v62 = vld [vmem:[#allocation2 + $0x3d0] sm:$0xff]  ;;  %v4508_v63 = vpop.f32.mrf.mxu1  ;;  %v5411_v40 = vadd.f32 %v16568_v57, %v1027_v0 }
 0x5c9   : > { %v9127_v56 = vpack.c.bf16 %v8615_v32, %v8615_v32  ;;  %v6824_v16 = vadd.f32 %v16296_v19, %v6308_v15  ;;  %5922 = vst.msk [vmem:[#allocation2 + $0x7c0] sm:$0xff] %vm264_vm3, %v5409_v28  ;;  %v5283_v9 = vadd.f32 %v16559_v30, %v899_v62  ;;  %v5148_v32 = vpop.f32.mrf.mxu3  ;;  %v1155_v15 = vld [vmem:[#allocation2 + $0xbd0] sm:$0xff] }
 0x5ca   : > { %9512 = vst.msk [vmem:[%s11763_s4 + $0x3d8] sm:$0xf] %vm9265_vm5, %v8999_v6  ;;  %vm7719_vm8 = vcmp.gt.f32.partialorder %v7207_v31, 0.0  ;;  %v8231_v8 = vmul.f32 0.01, %v7207_v31  ;;  %v6436_v22 = vld [vmem:[#allocation2 + $0x7b8] sm:$0xff] }
 0x5cb   : > { %9640 = vst.msk [vmem:[%s11763_s4 + $0x5d8] sm:$0xf] %vm9265_vm5, %v9127_v56  ;;  %vm7336_vm9 = vcmp.gt.f32.partialorder %v6824_v16, 0.0  ;;  %v7848_v43 = vmul.f32 0.01, %v6824_v16  ;;  %v6952_v37 = vadd.f32 %v16296_v19, %v6436_v22  ;;  %v6564_v24 = vld [vmem:[#allocation2 + $0xbb8] sm:$0xff]  ;;  %v4191_v1 = vpop.f32.mrf.mxu0 }
 0x5cc   : > { %v8743_v46 = vsel %vm7719_vm8, %v7207_v31, %v8231_v8  ;;  %v7080_v18 = vadd.f32 %v16296_v19, %v6564_v24  ;;  %6050 = vst.msk [vmem:[#allocation2 + $0xbc0] sm:$0xff] %vm264_vm3, %v5537_v61  ;;  %v1283_v61 = vld [vmem:[#allocation2 + $0xfd0] sm:$0xff] }
 0x5cd   : > { %v9255_v26 = vpack.c.bf16 %v8743_v46, %v8743_v46  ;;  %v8360_v44 = vsel %vm7336_vm9, %v6824_v16, %v7848_v43  ;;  %vm7464_vm10 = vcmp.gt.f32.partialorder %v6952_v37, 0.0  ;;  %v7976_v35 = vmul.f32 0.01, %v6952_v37  ;;  %v6692_v45 = vld [vmem:[#allocation2 + $0xfb8] sm:$0xff]  ;;  %6178 = vst.msk [vmem:[#allocation2 + $0xfc0] sm:$0xff] %vm264_vm3, %v5665_v11 }
 0x5ce   : > { %v8872_v20 = vpack.c.bf16 %v8360_v44, %v8360_v44  ;;  %vm7592_vm11 = vcmp.gt.f32.partialorder %v7080_v18, 0.0  ;;  %v8104_v27 = vmul.f32 0.01, %v7080_v18  ;;  %v7208_v52 = vadd.f32 %v16296_v19, %v6692_v45  ;;  %v6309_v39 = vld [vmem:[#allocation2 + $0x3c0] sm:$0xff]  ;;  %5795 = vst.msk [vmem:[#allocation2 + $0x3c8] sm:$0xff] %vm264_vm3, %v5282_v10  ;;  %v900_v43 = vld [vmem:[#allocation2 + $0x3d8] sm:$0xff] }
 0x5cf   : > { %9768 = vst.msk [vmem:[%s11763_s4 + $0x7d8] sm:$0xf] %vm9265_vm5, %v9255_v26  ;;  %v8488_v33 = vsel %vm7464_vm10, %v6952_v37, %v7976_v35  ;;  %v6825_v3 = vadd.f32 %v16296_v19, %v6309_v39  ;;  %v5539_v10 = vadd.f32 %v16570_v2, %v1155_v15  ;;  %v1028_v37 = vld [vmem:[#allocation2 + $0x7d8] sm:$0xff]  ;;  %v5284_v2 = vadd.f32 %v16594_v49, %v900_v43 }
 0x5d0   : > { %9385 = vst.msk [vmem:[%s11763_s4 + $0x1dc] sm:$0xf] %vm9265_vm5, %v8872_v20  ;;  %v9000_v38 = vpack.c.bf16 %v8488_v33, %v8488_v33  ;;  %v8616_v47 = vsel %vm7592_vm11, %v7080_v18, %v8104_v27  ;;  %vm7720_vm12 = vcmp.gt.f32.partialorder %v7208_v52, 0.0  ;;  %v8232_v13 = vmul.f32 0.01, %v7208_v52  ;;  %v6437_v17 = vld [vmem:[#allocation2 + $0x7c0] sm:$0xff]  ;;  %v4511_v20 = vpop.f32.mrf.mxu1  ;;  %v4831_v27 = vpop.f32.mrf.mxu2 }
 0x5d1   : > { %v9128_v14 = vpack.c.bf16 %v8616_v47, %v8616_v47  ;;  %vm7337_vm13 = vcmp.gt.f32.partialorder %v6825_v3, 0.0  ;;  %v7849_v58 = vmul.f32 0.01, %v6825_v3  ;;  %v6953_v59 = vadd.f32 %v16296_v19, %v6437_v17  ;;  %5923 = vst.msk [vmem:[#allocation2 + $0x7c8] sm:$0xff] %vm264_vm3, %v5410_v41  ;;  %v1156_v35 = vld [vmem:[#allocation2 + $0xbd8] sm:$0xff]  ;;  %v5151_v17 = vpop.f32.mrf.mxu3 }
 0x5d2   : > { %9513 = vst.msk [vmem:[%s11763_s4 + $0x3dc] sm:$0xf] %vm9265_vm5, %v9000_v38  ;;  %v8744_v23 = vsel %vm7720_vm12, %v7208_v52, %v8232_v13  ;;  %v5667_v41 = vadd.f32 %v16581_v21, %v1283_v61  ;;  %v1284_v45 = vld [vmem:[#allocation2 + $0xfd8] sm:$0xff]  ;;  %v5412_v21 = vadd.f32 %v4508_v63, %v1028_v37  ;;  %v5540_v38 = vadd.f32 %v16601_v50, %v1156_v35  ;;  %v901_v13 = vld [vmem:[#allocation2 + $0x3e0] sm:$0xff] }
 0x5d3   : > { %9641 = vst.msk [vmem:[%s11763_s4 + $0x5dc] sm:$0xf] %vm9265_vm5, %v9128_v14  ;;  %v9256_v53 = vpack.c.bf16 %v8744_v23, %v8744_v23  ;;  %v8361_v51 = vsel %vm7337_vm13, %v6825_v3, %v7849_v58  ;;  %vm7465_vm14 = vcmp.gt.f32.partialorder %v6953_v59, 0.0  ;;  %v7977_v54 = vmul.f32 0.01, %v6953_v59  ;;  %v6565_v34 = vld [vmem:[#allocation2 + $0xbc0] sm:$0xff] }
 0x5d4   : > { %v8873_v4 = vpack.c.bf16 %v8361_v51, %v8361_v51  ;;  %v7081_v28 = vadd.f32 %v16296_v19, %v6565_v34  ;;  %v6693_v5 = vld [vmem:[#allocation2 + $0xfc0] sm:$0xff]  ;;  %6051 = vst.msk [vmem:[#allocation2 + $0xbc8] sm:$0xff] %vm264_vm3, %v5538_v60  ;;  %v5668_v47 = vadd.f32 %v5148_v32, %v1284_v45  ;;  %v5285_v0 = vadd.f32 %v4191_v1, %v901_v13  ;;  %v1158_v45 = vld [vmem:[#allocation2 + $0xbe8] sm:$0xff]  ;;  %v903_v13 = vld [vmem:[#allocation2 + $0x3f0] sm:$0xff] }
 0x5d5   : > { %9769 = vst.msk [vmem:[%s11763_s4 + $0x7dc] sm:$0xf] %vm9265_vm5, %v9256_v53  ;;  %v8489_v7 = vsel %vm7465_vm14, %v6953_v59, %v7977_v54  ;;  %v7209_v42 = vadd.f32 %v16296_v19, %v6693_v5  ;;  %v6310_v25 = vld [vmem:[#allocation2 + $0x3c8] sm:$0xff]  ;;  %v1029_v53 = vld [vmem:[#allocation2 + $0x7e0] sm:$0xff] }
 0x5d6   : > { %9386 = vst.msk [vmem:[%s11763_s4 + $0x1e0] sm:$0xf] %vm9265_vm5, %v8873_v4  ;;  %v9001_v12 = vpack.c.bf16 %v8489_v7, %v8489_v7  ;;  %vm7593_vm15 = vcmp.gt.f32.partialorder %v7081_v28, 0.0  ;;  %v8105_v36 = vmul.f32 0.01, %v7081_v28  ;;  %v6826_v6 = vadd.f32 %v16296_v19, %v6310_v25  ;;  %v1157_v34 = vld [vmem:[#allocation2 + $0xbe0] sm:$0xff] }
 0x5d7   : > { %vm7721_vm2 = vcmp.gt.f32.partialorder %v7209_v42, 0.0  ;;  %v8233_v31 = vmul.f32 0.01, %v7209_v42  ;;  %6179 = vst.msk [vmem:[#allocation2 + $0xfc8] sm:$0xff] %vm264_vm3, %v5666_v48  ;;  %v16619_v19 = vld [vmem:[%s16747_s2] ss:$0 sm:$0xff] }
 0x5d8   : > { %9514 = vst.msk [vmem:[%s11763_s4 + $0x3e0] sm:$0xf] %vm9265_vm5, %v9001_v12  ;;  %v8617_v30 = vsel %vm7593_vm15, %v7081_v28, %v8105_v36  ;;  %vm7338_vm0 = vcmp.gt.f32.partialorder %v6826_v6, 0.0  ;;  %v7850_v56 = vmul.f32 0.01, %v6826_v6  ;;  %v6438_v16 = vld [vmem:[#allocation2 + $0x7c8] sm:$0xff]  ;;  %v4193_v28 = vpop.f32.mrf.mxu0  ;;  %v5541_v36 = vadd.f32 %v4831_v27, %v1157_v34  ;;  %v4513_v32 = vpop.f32.mrf.mxu1 }
 0x5d9   : > { %v9129_v11 = vpack.c.bf16 %v8617_v30, %v8617_v30  ;;  %v8745_v29 = vsel %vm7721_vm2, %v7209_v42, %v8233_v31  ;;  %v6954_v57 = vadd.f32 %v16619_v19, %v6438_v16  ;;  %5796 = vst.msk [vmem:[#allocation2 + $0x3d0] sm:$0xff] %vm264_vm3, %v5283_v9  ;;  %v1285_v4 = vld [vmem:[#allocation2 + $0xfe0] sm:$0xff]  ;;  %v5413_v9 = vadd.f32 %v4511_v20, %v1029_v53  ;;  %v4833_v31 = vpop.f32.mrf.mxu2 }
 0x5da   : > { %v9257_v8 = vpack.c.bf16 %v8745_v29, %v8745_v29  ;;  %v8362_v22 = vsel %vm7338_vm0, %v6826_v6, %v7850_v56  ;;  %5924 = vst.msk [vmem:[#allocation2 + $0x7d0] sm:$0xff] %vm264_vm3, %v5411_v40  ;;  %v902_v6 = vld [vmem:[#allocation2 + $0x3e8] sm:$0xff]  ;;  %v5669_v30 = vadd.f32 %v5151_v17, %v1285_v4 }
 0x5db   : > { %9642 = vst.msk [vmem:[%s11763_s4 + $0x5e0] sm:$0xf] %vm9265_vm5, %v9129_v11  ;;  %v8874_v24 = vpack.c.bf16 %v8362_v22, %v8362_v22  ;;  %vm7466_vm1 = vcmp.gt.f32.partialorder %v6954_v57, 0.0  ;;  %v7978_v46 = vmul.f32 0.01, %v6954_v57  ;;  %v6566_v18 = vld [vmem:[#allocation2 + $0xbc8] sm:$0xff] }
 0x5dc   : > { %9770 = vst.msk [vmem:[%s11763_s4 + $0x7e0] sm:$0xf] %vm9265_vm5, %v9257_v8  ;;  %v7082_v26 = vadd.f32 %v16619_v19, %v6566_v18  ;;  %v5286_v8 = vadd.f32 %v4193_v28, %v902_v6  ;;  %v1030_v22 = vld [vmem:[#allocation2 + $0x7e8] sm:$0xff] }
 0x5dd   : > { %9387 = vst.msk [vmem:[%s11763_s4 + $0x1e4] sm:$0xf] %vm9265_vm5, %v8874_v24  ;;  %v8490_v44 = vsel %vm7466_vm1, %v6954_v57, %v7978_v46  ;;  %v5414_v35 = vadd.f32 %v4513_v32, %v1030_v22 }
 0x5de   : > { %v9002_v52 = vpack.c.bf16 %v8490_v44, %v8490_v44  ;;  %vm7594_vm4 = vcmp.gt.f32.partialorder %v7082_v26, 0.0  ;;  %v8106_v39 = vmul.f32 0.01, %v7082_v26  ;;  %v6694_v33 = vld [vmem:[#allocation2 + $0xfc8] sm:$0xff]  ;;  %6052 = vst.msk [vmem:[#allocation2 + $0xbd0] sm:$0xff] %vm264_vm3, %v5539_v10  ;;  %v5153_v10 = vpop.f32.mrf.mxu3 }
 0x5df   : > { %v7210_v3 = vadd.f32 %v16619_v19, %v6694_v33  ;;  %6180 = vst.msk [vmem:[#allocation2 + $0xfd0] sm:$0xff] %vm264_vm3, %v5667_v41 }
 0x5e0   : > { %9515 = vst.msk [vmem:[%s11763_s4 + $0x3e4] sm:$0xf] %vm9265_vm5, %v9002_v52  ;;  %v8618_v60 = vsel %vm7594_vm4, %v7082_v26, %v8106_v39  ;;  %v6311_v55 = vld [vmem:[#allocation2 + $0x3d0] sm:$0xff] }
 0x5e1   : > { %v9130_v14 = vpack.c.bf16 %v8618_v60, %v8618_v60  ;;  %vm7722_vm6 = vcmp.gt.f32.partialorder %v7210_v3, 0.0  ;;  %v8234_v58 = vmul.f32 0.01, %v7210_v3  ;;  %v6827_v59 = vadd.f32 %v16619_v19, %v6311_v55  ;;  %v6439_v49 = vld [vmem:[#allocation2 + $0x7d0] sm:$0xff]  ;;  %5797 = vst.msk [vmem:[#allocation2 + $0x3d8] sm:$0xff] %vm264_vm3, %v5284_v2  ;;  %v4196_v60 = vpop.f32.mrf.mxu0 }
 0x5e2   : > { %v6955_v23 = vadd.f32 %v16619_v19, %v6439_v49  ;;  %5925 = vst.msk [vmem:[#allocation2 + $0x7d8] sm:$0xff] %vm264_vm3, %v5412_v21  ;;  %v4516_v49 = vpop.f32.mrf.mxu1 }
 0x5e3   : > { %9643 = vst.msk [vmem:[%s11763_s4 + $0x5e4] sm:$0xf] %vm9265_vm5, %v9130_v14  ;;  %v8746_v48 = vsel %vm7722_vm6, %v7210_v3, %v8234_v58  ;;  %vm7339_vm7 = vcmp.gt.f32.partialorder %v6827_v59, 0.0  ;;  %v7851_v62 = vmul.f32 0.01, %v6827_v59 }
 0x5e4   : > { %v9258_v51 = vpack.c.bf16 %v8746_v48, %v8746_v48  ;;  %vm7467_vm8 = vcmp.gt.f32.partialorder %v6955_v23, 0.0  ;;  %v7979_v54 = vmul.f32 0.01, %v6955_v23  ;;  %6053 = vst.msk [vmem:[#allocation2 + $0xbd8] sm:$0xff] %vm264_vm3, %v5540_v38  ;;  %v5542_v38 = vadd.f32 %v4833_v31, %v1158_v45 }
 0x5e5   : > { %v8363_v63 = vsel %vm7339_vm7, %v6827_v59, %v7851_v62  ;;  %v6567_v50 = vld [vmem:[#allocation2 + $0xbd0] sm:$0xff]  ;;  %6181 = vst.msk [vmem:[#allocation2 + $0xfd8] sm:$0xff] %vm264_vm3, %v5668_v47  ;;  %v1286_v47 = vld [vmem:[#allocation2 + $0xfe8] sm:$0xff] }
 0x5e6   : > { %9771 = vst.msk [vmem:[%s11763_s4 + $0x7e4] sm:$0xf] %vm9265_vm5, %v9258_v51  ;;  %v8875_v5 = vpack.c.bf16 %v8363_v63, %v8363_v63  ;;  %v8491_v7 = vsel %vm7467_vm8, %v6955_v23, %v7979_v54  ;;  %v7083_v42 = vadd.f32 %v16619_v19, %v6567_v50  ;;  %v6695_v25 = vld [vmem:[#allocation2 + $0xfd0] sm:$0xff]  ;;  %v4836_v23 = vpop.f32.mrf.mxu2  ;;  %v5670_v34 = vadd.f32 %v5153_v10, %v1286_v47 }
 0x5e7   : > { %v9003_v40 = vpack.c.bf16 %v8491_v7, %v8491_v7  ;;  %v7211_v12 = vadd.f32 %v16619_v19, %v6695_v25  ;;  %5798 = vst.msk [vmem:[#allocation2 + $0x3e0] sm:$0xff] %vm264_vm3, %v5285_v0  ;;  %v5287_v63 = vadd.f32 %v4196_v60, %v903_v13  ;;  %v1159_v25 = vld [vmem:[#allocation2 + $0xbf0] sm:$0xff] }
 0x5e8   : > { %9388 = vst.msk [vmem:[%s11763_s4 + $0x1e8] sm:$0xf] %vm9265_vm5, %v8875_v5  ;;  %vm7595_vm9 = vcmp.gt.f32.partialorder %v7083_v42, 0.0  ;;  %v8107_v15 = vmul.f32 0.01, %v7083_v42  ;;  %v6312_v61 = vld [vmem:[#allocation2 + $0x3d8] sm:$0xff]  ;;  %v5156_v5 = vpop.f32.mrf.mxu3 }
 0x5e9   : > { %9516 = vst.msk [vmem:[%s11763_s4 + $0x3e8] sm:$0xf] %vm9265_vm5, %v9003_v40  ;;  %vm7723_vm10 = vcmp.gt.f32.partialorder %v7211_v12, 0.0  ;;  %v8235_v56 = vmul.f32 0.01, %v7211_v12  ;;  %v6828_v16 = vadd.f32 %v16619_v19, %v6312_v61  ;;  %v6440_v11 = vld [vmem:[#allocation2 + $0x7d8] sm:$0xff] }
 0x5ea   : > { %v8619_v29 = vsel %vm7595_vm9, %v7083_v42, %v8107_v15  ;;  %v6956_v57 = vadd.f32 %v16619_v19, %v6440_v11  ;;  %5926 = vst.msk [vmem:[#allocation2 + $0x7e0] sm:$0xff] %vm264_vm3, %v5413_v9  ;;  %v1031_v42 = vld [vmem:[#allocation2 + $0x7f0] sm:$0xff] }
 0x5eb   : > { %v9131_v43 = vpack.c.bf16 %v8619_v29, %v8619_v29  ;;  %v8747_v37 = vsel %vm7723_vm10, %v7211_v12, %v8235_v56  ;;  %vm7340_vm11 = vcmp.gt.f32.partialorder %v6828_v16, 0.0  ;;  %v7852_v24 = vmul.f32 0.01, %v6828_v16  ;;  %v6568_v46 = vld [vmem:[#allocation2 + $0xbd8] sm:$0xff]  ;;  %6054 = vst.msk [vmem:[#allocation2 + $0xbe0] sm:$0xff] %vm264_vm3, %v5541_v36 }
 0x5ec   : > { %v9259_v18 = vpack.c.bf16 %v8747_v37, %v8747_v37  ;;  %vm7468_vm12 = vcmp.gt.f32.partialorder %v6956_v57, 0.0  ;;  %v7980_v41 = vmul.f32 0.01, %v6956_v57  ;;  %v7084_v1 = vadd.f32 %v16619_v19, %v6568_v46  ;;  %v6696_v26 = vld [vmem:[#allocation2 + $0xfd8] sm:$0xff]  ;;  %6182 = vst.msk [vmem:[#allocation2 + $0xfe0] sm:$0xff] %vm264_vm3, %v5669_v30  ;;  %v1287_v30 = vld [vmem:[#allocation2 + $0xff0] sm:$0xff] }
 0x5ed   : > { %9644 = vst.msk [vmem:[%s11763_s4 + $0x5e8] sm:$0xf] %vm9265_vm5, %v9131_v43  ;;  %v8364_v44 = vsel %vm7340_vm11, %v6828_v16, %v7852_v24  ;;  %v7212_v2 = vadd.f32 %v16619_v19, %v6696_v26  ;;  %v5415_v61 = vadd.f32 %v4516_v49, %v1031_v42  ;;  %v904_v56 = vld [vmem:[#allocation2 + $0x3f8] sm:$0xff]  ;;  %v5671_v43 = vadd.f32 %v5156_v5, %v1287_v30  ;;  %v4518_v24 = vpop.f32.mrf.mxu1 }
 0x5ee   : > { %9772 = vst.msk [vmem:[%s11763_s4 + $0x7e8] sm:$0xf] %vm9265_vm5, %v9259_v18  ;;  %v8876_v20 = vpack.c.bf16 %v8364_v44, %v8364_v44  ;;  %v8492_v27 = vsel %vm7468_vm12, %v6956_v57, %v7980_v41  ;;  %vm7596_vm13 = vcmp.gt.f32.partialorder %v7084_v1, 0.0  ;;  %v8108_v52 = vmul.f32 0.01, %v7084_v1  ;;  %v6313_v39 = vld [vmem:[#allocation2 + $0x3e0] sm:$0xff]  ;;  %v4838_v18 = vpop.f32.mrf.mxu2 }
 0x5ef   : > { %v9004_v33 = vpack.c.bf16 %v8492_v27, %v8492_v27  ;;  %vm7724_vm14 = vcmp.gt.f32.partialorder %v7212_v2, 0.0  ;;  %v8236_v21 = vmul.f32 0.01, %v7212_v2  ;;  %v6829_v3 = vadd.f32 %v16619_v19, %v6313_v39  ;;  %5799 = vst.msk [vmem:[#allocation2 + $0x3e8] sm:$0xff] %vm264_vm3, %v5286_v8  ;;  %v4198_v8 = vpop.f32.mrf.mxu0  ;;  %v1032_v37 = vld [vmem:[#allocation2 + $0x7f8] sm:$0xff] }
 0x5f0   : > { %9389 = vst.msk [vmem:[%s11763_s4 + $0x1ec] sm:$0xf] %vm9265_vm5, %v8876_v20  ;;  %v8620_v55 = vsel %vm7596_vm13, %v7084_v1, %v8108_v52  ;;  %v5543_v57 = vadd.f32 %v4836_v23, %v1159_v25  ;;  %v1160_v46 = vld [vmem:[#allocation2 + $0xbf8] sm:$0xff]  ;;  %v5288_v44 = vadd.f32 %v4198_v8, %v904_v56  ;;  %v5416_v20 = vadd.f32 %v4518_v24, %v1032_v37  ;;  %v5158_v39 = vpop.f32.mrf.mxu3 }
 0x5f1   : > { %9517 = vst.msk [vmem:[%s11763_s4 + $0x3ec] sm:$0xf] %vm9265_vm5, %v9004_v33  ;;  %v9132_v17 = vpack.c.bf16 %v8620_v55, %v8620_v55  ;;  %v8748_v14 = vsel %vm7724_vm14, %v7212_v2, %v8236_v21  ;;  %vm7341_vm15 = vcmp.gt.f32.partialorder %v6829_v3, 0.0  ;;  %v7853_v58 = vmul.f32 0.01, %v6829_v3  ;;  %v6441_v59 = vld [vmem:[#allocation2 + $0x7e0] sm:$0xff] }
 0x5f2   : > { %v9260_v48 = vpack.c.bf16 %v8748_v14, %v8748_v14  ;;  %v6957_v62 = vadd.f32 %v16619_v19, %v6441_v59  ;;  %v6569_v0 = vld [vmem:[#allocation2 + $0xbe0] sm:$0xff]  ;;  %5927 = vst.msk [vmem:[#allocation2 + $0x7e8] sm:$0xff] %vm264_vm3, %v5414_v35  ;;  %v5544_v27 = vadd.f32 %v4838_v18, %v1160_v46  ;;  %v1288_v52 = vld [vmem:[#allocation2 + $0xff8] sm:$0xff] }
 0x5f3   : > { %9645 = vst.msk [vmem:[%s11763_s4 + $0x5ec] sm:$0xf] %vm9265_vm5, %v9132_v17  ;;  %v8365_v53 = vsel %vm7341_vm15, %v6829_v3, %v7853_v58  ;;  %v7085_v51 = vadd.f32 %v16619_v19, %v6569_v0  ;;  %v6697_v54 = vld [vmem:[#allocation2 + $0xfe0] sm:$0xff]  ;;  %v5672_v13 = vadd.f32 %v5158_v39, %v1288_v52 }
 0x5f4   : > { %9773 = vst.msk [vmem:[%s11763_s4 + $0x7ec] sm:$0xf] %vm9265_vm5, %v9260_v48  ;;  %v8877_v50 = vpack.c.bf16 %v8365_v53, %v8365_v53  ;;  %vm7469_vm2 = vcmp.gt.f32.partialorder %v6957_v62, 0.0  ;;  %v7981_v4 = vmul.f32 0.01, %v6957_v62  ;;  %v7213_v28 = vadd.f32 %v16619_v19, %v6697_v54 }
 0x5f5   : > { %vm7597_vm0 = vcmp.gt.f32.partialorder %v7085_v51, 0.0  ;;  %v8109_v7 = vmul.f32 0.01, %v7085_v51  ;;  %6055 = vst.msk [vmem:[#allocation2 + $0xbe8] sm:$0xff] %vm264_vm3, %v5542_v38 }
 0x5f6   : > { %9390 = vst.msk [vmem:[%s11763_s4 + $0x1f0] sm:$0xf] %vm9265_vm5, %v8877_v50  ;;  %v8493_v9 = vsel %vm7469_vm2, %v6957_v62, %v7981_v4  ;;  %vm7725_vm1 = vcmp.gt.f32.partialorder %v7213_v28, 0.0  ;;  %v8237_v40 = vmul.f32 0.01, %v7213_v28  ;;  %v6314_v12 = vld [vmem:[#allocation2 + $0x3e8] sm:$0xff] }
 0x5f7   : > { %v9005_v36 = vpack.c.bf16 %v8493_v9, %v8493_v9  ;;  %v8621_v6 = vsel %vm7597_vm0, %v7085_v51, %v8109_v7  ;;  %v6830_v32 = vadd.f32 %v16619_v19, %v6314_v12  ;;  %6183 = vst.msk [vmem:[#allocation2 + $0xfe8] sm:$0xff] %vm264_vm3, %v5670_v34 }
 0x5f8   : > { %v9133_v31 = vpack.c.bf16 %v8621_v6, %v8621_v6  ;;  %v8749_v15 = vsel %vm7725_vm1, %v7213_v28, %v8237_v40  ;;  %5800 = vst.msk [vmem:[#allocation2 + $0x3f0] sm:$0xff] %vm264_vm3, %v5287_v63 }
 0x5f9   : > { %9518 = vst.msk [vmem:[%s11763_s4 + $0x3f0] sm:$0xf] %vm9265_vm5, %v9005_v36  ;;  %v9261_v16 = vpack.c.bf16 %v8749_v15, %v8749_v15  ;;  %vm7342_vm4 = vcmp.gt.f32.partialorder %v6830_v32, 0.0  ;;  %v7854_v11 = vmul.f32 0.01, %v6830_v32  ;;  %v6442_v29 = vld [vmem:[#allocation2 + $0x7e8] sm:$0xff] }
 0x5fa   : > { %9646 = vst.msk [vmem:[%s11763_s4 + $0x5f0] sm:$0xf] %vm9265_vm5, %v9133_v31  ;;  %v6958_v22 = vadd.f32 %v16619_v19, %v6442_v29 }
 0x5fb   : > { %9774 = vst.msk [vmem:[%s11763_s4 + $0x7f0] sm:$0xf] %vm9265_vm5, %v9261_v16  ;;  %v8366_v10 = vsel %vm7342_vm4, %v6830_v32, %v7854_v11 }
 0x5fc   : > { %v8878_v41 = vpack.c.bf16 %v8366_v10, %v8366_v10  ;;  %vm7470_vm6 = vcmp.gt.f32.partialorder %v6958_v22, 0.0  ;;  %v7982_v1 = vmul.f32 0.01, %v6958_v22  ;;  %v6570_v26 = vld [vmem:[#allocation2 + $0xbe8] sm:$0xff]  ;;  %5928 = vst.msk [vmem:[#allocation2 + $0x7f0] sm:$0xff] %vm264_vm3, %v5415_v61 }
 0x5fd   : > { %v7086_v2 = vadd.f32 %v16619_v19, %v6570_v26  ;;  %6056 = vst.msk [vmem:[#allocation2 + $0xbf0] sm:$0xff] %vm264_vm3, %v5543_v57 }
 0x5fe   : > { %9391 = vst.msk [vmem:[%s11763_s4 + $0x1f4] sm:$0xf] %vm9265_vm5, %v8878_v41  ;;  %v8494_v35 = vsel %vm7470_vm6, %v6958_v22, %v7982_v1  ;;  %v6698_v45 = vld [vmem:[#allocation2 + $0xfe8] sm:$0xff] }
 0x5ff   : > { %v9006_v33 = vpack.c.bf16 %v8494_v35, %v8494_v35  ;;  %vm7598_vm7 = vcmp.gt.f32.partialorder %v7086_v2, 0.0  ;;  %v8110_v21 = vmul.f32 0.01, %v7086_v2  ;;  %v7214_v3 = vadd.f32 %v16619_v19, %v6698_v45  ;;  %v6315_v60 = vld [vmem:[#allocation2 + $0x3f0] sm:$0xff]  ;;  %6184 = vst.msk [vmem:[#allocation2 + $0xff0] sm:$0xff] %vm264_vm3, %v5671_v43 }
 0x600   : > { %v6831_v55 = vadd.f32 %v16619_v19, %v6315_v60  ;;  %5801 = vst.msk [vmem:[#allocation2 + $0x3f8] sm:$0xff] %vm264_vm3, %v5288_v44 }
 0x601   : > { %9519 = vst.msk [vmem:[%s11763_s4 + $0x3f4] sm:$0xf] %vm9265_vm5, %v9006_v33  ;;  %v8622_v38 = vsel %vm7598_vm7, %v7086_v2, %v8110_v21  ;;  %vm7726_vm8 = vcmp.gt.f32.partialorder %v7214_v3, 0.0  ;;  %v8238_v47 = vmul.f32 0.01, %v7214_v3 }
 0x602   : > { %v9134_v17 = vpack.c.bf16 %v8622_v38, %v8622_v38  ;;  %vm7343_vm9 = vcmp.gt.f32.partialorder %v6831_v55, 0.0  ;;  %v7855_v14 = vmul.f32 0.01, %v6831_v55  ;;  %5929 = vst.msk [vmem:[#allocation2 + $0x7f8] sm:$0xff] %vm264_vm3, %v5416_v20 }
 0x603   : > { %v8750_v58 = vsel %vm7726_vm8, %v7214_v3, %v8238_v47  ;;  %v6443_v59 = vld [vmem:[#allocation2 + $0x7f0] sm:$0xff]  ;;  %6057 = vst.msk [vmem:[#allocation2 + $0xbf8] sm:$0xff] %vm264_vm3, %v5544_v27 }
 0x604   : > { %9647 = vst.msk [vmem:[%s11763_s4 + $0x5f4] sm:$0xf] %vm9265_vm5, %v9134_v17  ;;  %v9262_v49 = vpack.c.bf16 %v8750_v58, %v8750_v58  ;;  %v8367_v23 = vsel %vm7343_vm9, %v6831_v55, %v7855_v14  ;;  %v6959_v48 = vadd.f32 %v16619_v19, %v6443_v59  ;;  %v6571_v62 = vld [vmem:[#allocation2 + $0xbf0] sm:$0xff] }
 0x605   : > { %v8879_v0 = vpack.c.bf16 %v8367_v23, %v8367_v23  ;;  %v7087_v53 = vadd.f32 %v16619_v19, %v6571_v62  ;;  %6185 = vst.msk [vmem:[#allocation2 + $0xff8] sm:$0xff] %vm264_vm3, %v5672_v13 }
 0x606   : > { %9775 = vst.msk [vmem:[%s11763_s4 + $0x7f4] sm:$0xf] %vm9265_vm5, %v9262_v49  ;;  %vm7471_vm10 = vcmp.gt.f32.partialorder %v6959_v48, 0.0  ;;  %v7983_v51 = vmul.f32 0.01, %v6959_v48  ;;  %v6699_v54 = vld [vmem:[#allocation2 + $0xff0] sm:$0xff] }
 0x607   : > { %9392 = vst.msk [vmem:[%s11763_s4 + $0x1f8] sm:$0xf] %vm9265_vm5, %v8879_v0  ;;  %vm7599_vm11 = vcmp.gt.f32.partialorder %v7087_v53, 0.0  ;;  %v8111_v34 = vmul.f32 0.01, %v7087_v53  ;;  %v7215_v63 = vadd.f32 %v16619_v19, %v6699_v54  ;;  %v6316_v50 = vld [vmem:[#allocation2 + $0x3f8] sm:$0xff] }
 0x608   : > { %v8495_v4 = vsel %vm7471_vm10, %v6959_v48, %v7983_v51  ;;  %v6832_v28 = vadd.f32 %v16619_v19, %v6316_v50 }
 0x609   : > { %v9007_v5 = vpack.c.bf16 %v8495_v4, %v8495_v4  ;;  %v8623_v7 = vsel %vm7599_vm11, %v7087_v53, %v8111_v34  ;;  %vm7727_vm3 = vcmp.gt.f32.partialorder %v7215_v63, 0.0  ;;  %v8239_v42 = vmul.f32 0.01, %v7215_v63  ;;  %v6444_v25 = vld [vmem:[#allocation2 + $0x7f8] sm:$0xff] }
 0x60a   : > { %v9135_v9 = vpack.c.bf16 %v8623_v7, %v8623_v7  ;;  %vm7344_vm12 = vcmp.gt.f32.partialorder %v6832_v28, 0.0  ;;  %v7856_v40 = vmul.f32 0.01, %v6832_v28  ;;  %v6960_v12 = vadd.f32 %v16619_v19, %v6444_v25  ;;  %v6572_v36 = vld [vmem:[#allocation2 + $0xbf8] sm:$0xff] }
 0x60b   : > { %9520 = vst.msk [vmem:[%s11763_s4 + $0x3f8] sm:$0xf] %vm9265_vm5, %v9007_v5  ;;  %v8751_v6 = vsel %vm7727_vm3, %v7215_v63, %v8239_v42  ;;  %v7088_v32 = vadd.f32 %v16619_v19, %v6572_v36 }
 0x60c   : > { %9648 = vst.msk [vmem:[%s11763_s4 + $0x5f8] sm:$0xf] %vm9265_vm5, %v9135_v9  ;;  %v9263_v31 = vpack.c.bf16 %v8751_v6, %v8751_v6  ;;  %v8368_v15 = vsel %vm7344_vm12, %v6832_v28, %v7856_v40  ;;  %vm7472_vm13 = vcmp.gt.f32.partialorder %v6960_v12, 0.0  ;;  %v7984_v61 = vmul.f32 0.01, %v6960_v12  ;;  %v6700_v30 = vld [vmem:[#allocation2 + $0xff8] sm:$0xff] }
 0x60d   : > { %v8880_v56 = vpack.c.bf16 %v8368_v15, %v8368_v15  ;;  %vm7600_vm14 = vcmp.gt.f32.partialorder %v7088_v32, 0.0  ;;  %v8112_v16 = vmul.f32 0.01, %v7088_v32  ;;  %v7216_v11 = vadd.f32 %v16619_v19, %v6700_v30 }
 0x60e   : > { %9776 = vst.msk [vmem:[%s11763_s4 + $0x7f8] sm:$0xf] %vm9265_vm5, %v9263_v31  ;;  %v8496_v29 = vsel %vm7472_vm13, %v6960_v12, %v7984_v61 }
 0x60f   : > { %9393 = vst.msk [vmem:[%s11763_s4 + $0x1fc] sm:$0xf] %vm9265_vm5, %v8880_v56  ;;  %v9008_v57 = vpack.c.bf16 %v8496_v29, %v8496_v29  ;;  %v8624_v8 = vsel %vm7600_vm14, %v7088_v32, %v8112_v16  ;;  %vm7728_vm15 = vcmp.gt.f32.partialorder %v7216_v11, 0.0  ;;  %v8240_v22 = vmul.f32 0.01, %v7216_v11 }
 0x610   : > { %v9136_v10 = vpack.c.bf16 %v8624_v8, %v8624_v8 }
 0x611   : > { %9521 = vst.msk [vmem:[%s11763_s4 + $0x3fc] sm:$0xf] %vm9265_vm5, %v9008_v57  ;;  %v8752_v43 = vsel %vm7728_vm15, %v7216_v11, %v8240_v22 }
 0x612   : > { %9649 = vst.msk [vmem:[%s11763_s4 + $0x5fc] sm:$0xf] %vm9265_vm5, %v9136_v10  ;;  %v9264_v37 = vpack.c.bf16 %v8752_v43, %v8752_v43 }
 0x614   : > { %9777 = vst.msk [vmem:[%s11763_s4 + $0x7fc] sm:$0xf] %vm9265_vm5, %v9264_v37 }
 0x615 PF: > { %s13_s14 = sadd.s32 1, %s11515_s14   ;;  %s16749_s12 = smov %s11511_s13 }
 0x616   : > { %p10_p5 = scmp.ge.s32.totalorder %s13_s14, 4   ;;  %s16750_s13 = smov %s16752_s15 }
 0x618   :  { %12 = sbr.rel (!%p10_p5) target bundleno = 2 (0x2), region = 76 }

</bundles_post_ra>
